<compile_context>
chip_gen: v7x
topology: tpu7x:2x2x1
jax: 0.10.0
libtpu: 0.0.40
codegen_flags: <defaults>
</compile_context>

<pallas_src>
import math
from functools import partial

import jax
import jax.numpy as jnp
from jax import lax
from jax.experimental import pallas as pl
from jax.experimental.pallas import tpu as pltpu

LANES = 128

# order of 1-row vectors inside the misc "vec" block of the slab
VEC_ORDER = ("embed_b", "enc_norm_g", "enc_norm_b",
             "b_i", "b_f", "b_g", "b_o", "fc1_b", "fc2_b")


def _round8(n):
    return ((n + 7) // 8) * 8


# ------------------------------ slab layout --------------------------------

def make_layout(input_size, d_model, dim_ff, output_size, nhead, num_layers,
                seq, batch):
    """Static row layout of the single packed (rows, 128) parameter slab."""
    D, F, H, L = d_model, dim_ff, nhead, num_layers
    R = seq * batch
    assert max(D, F, R, input_size, output_size) <= LANES
    SR = _round8(max(D, F))            # rows reserved per per-layer matrix slot
    NS = 4 * H + 2                     # Wq/Wk/Wv per head + Wo per head + ff1 + ff2
    NV = _round8(3 * H + 7)            # per-layer bias / LN rows

    lay = {"SR": SR, "NS": NS, "NV": NV,
           "lw_base": 0,                       # per-layer matrix slots
           "lv_base": L * NS * SR}             # per-layer vector rows
    off = lay["lv_base"] + L * NV

    def alloc(name, rows):
        nonlocal off
        lay[name] = off
        off += _round8(rows)

    alloc("embed_w", input_size)
    for g in "ifgo":
        alloc("w_ih_" + g, D)
    for g in "ifgo":
        alloc("w_hh_" + g, D)
    alloc("fc1_w", D)
    alloc("fc2_w", D)
    alloc("pe", R)
    alloc("mask", R)
    alloc("vec", _round8(len(VEC_ORDER)))
    lay["total_rows"] = off
    return lay


def pack_params(params, layout, *, nhead, seq, batch):
    """Pack all parameters into one (rows, 128) f32 slab (done once)."""
    D = params["embed_w"].shape[1]
    L = params["in_proj_w"].shape[0]
    F = params["ff1_w"].shape[2]
    H = nhead
    Dh = D // H
    R = seq * batch
    SR, NS, NV = layout["SR"], layout["NS"], layout["NV"]

    slab = jnp.zeros((layout["total_rows"], LANES), jnp.float32)

    def put(s, r0, mat):
        mat = jnp.asarray(mat, jnp.float32)
        if mat.ndim == 1:
            mat = mat.reshape(1, -1)
        return s.at[r0:r0 + mat.shape[0], :mat.shape[1]].set(mat)

    # ---- per-layer matrices (per-head qkv, per-head Wo row-blocks, FFN) ----
    for l in range(L):
        ipw = params["in_proj_w"][l]            # (D, 3D) = [Wq | Wk | Wv]
        ipb = params["in_proj_b"][l]            # (3D,)
        opw = params["out_proj_w"][l]           # (D, D)
        base = layout["lw_base"] + l * NS * SR
        for h in range(H):
            slab = put(slab, base + (3 * h + 0) * SR, ipw[:, h * Dh:(h + 1) * Dh])
            slab = put(slab, base + (3 * h + 1) * SR, ipw[:, D + h * Dh:D + (h + 1) * Dh])
            slab = put(slab, base + (3 * h + 2) * SR, ipw[:, 2 * D + h * Dh:2 * D + (h + 1) * Dh])
            slab = put(slab, base + (3 * H + h) * SR, opw[h * Dh:(h + 1) * Dh, :])
        slab = put(slab, base + (4 * H) * SR, params["ff1_w"][l])
        slab = put(slab, base + (4 * H + 1) * SR, params["ff2_w"][l])

        vbase = layout["lv_base"] + l * NV
        for h in range(H):
            slab = put(slab, vbase + 3 * h + 0, ipb[h * Dh:(h + 1) * Dh])
            slab = put(slab, vbase + 3 * h + 1, ipb[D + h * Dh:D + (h + 1) * Dh])
            slab = put(slab, vbase + 3 * h + 2, ipb[2 * D + h * Dh:2 * D + (h + 1) * Dh])
        slab = put(slab, vbase + 3 * H + 0, params["out_proj_b"][l])
        slab = put(slab, vbase + 3 * H + 1, params["ln1_g"][l])
        slab = put(slab, vbase + 3 * H + 2, params["ln1_b"][l])
        slab = put(slab, vbase + 3 * H + 3, params["ff1_b"][l])
        slab = put(slab, vbase + 3 * H + 4, params["ff2_b"][l])
        slab = put(slab, vbase + 3 * H + 5, params["ln2_g"][l])
        slab = put(slab, vbase + 3 * H + 6, params["ln2_b"][l])

    # ---- misc (embedding, per-gate LSTM, head, PE, attention mask) ----
    slab = put(slab, layout["embed_w"], params["embed_w"])
    for gi, g in enumerate("ifgo"):                    # PyTorch gate order i,f,g,o
        slab = put(slab, layout["w_ih_" + g], params["lstm_w_ih"][:, gi * D:(gi + 1) * D])
        slab = put(slab, layout["w_hh_" + g], params["lstm_w_hh"][:, gi * D:(gi + 1) * D])
    slab = put(slab, layout["fc1_w"], params["fc1_w"])
    slab = put(slab, layout["fc2_w"], params["fc2_w"])

    # positional encoding, time-major rows (row r = t*B + b -> pe[t])
    slab = put(slab, layout["pe"], jnp.repeat(params["pe"][:seq], batch, axis=0))

    # additive same-batch attention mask (0 where same batch element, -1e30 else)
    rb = jnp.arange(R) % batch
    mask = jnp.where(rb[:, None] == rb[None, :], 0.0, -1e30).astype(jnp.float32)
    slab = put(slab, layout["mask"], mask)

    lstm_b = params["lstm_b"]
    vecs = {"embed_b": params["embed_b"], "enc_norm_g": params["enc_norm_g"],
            "enc_norm_b": params["enc_norm_b"], "fc1_b": params["fc1_b"],
            "fc2_b": params["fc2_b"]}
    for gi, g in enumerate("ifgo"):
        vecs["b_" + g] = lstm_b[gi * D:(gi + 1) * D]
    for idx, name in enumerate(VEC_ORDER):
        slab = put(slab, layout["vec"] + idx, vecs[name])
    return slab


# ------------------------------ fused kernel -------------------------------

def _fused_forward_kernel(src_ref, p_ref, out_ref, *, batch, seq, d_model,
                          dim_ff, nhead, num_layers, input_size, output_size,
                          eps, layout):
    B, S, D, H, F = batch, seq, d_model, nhead, dim_ff
    Dh = D // H
    R = S * B
    SR, NS, NV = layout["SR"], layout["NS"], layout["NV"]
    scale = 1.0 / math.sqrt(Dh)
    f32 = jnp.float32

    # --- static, lane-0 / sublane-aligned views into the packed slab ---
    def mat(r0, rows, cols):
        return p_ref[r0:r0 + rows, :cols]

    def vec(r, cols):
        return p_ref[r:r + 1, :cols]

    def gvec(name, cols):
        return vec(layout["vec"] + VEC_ORDER.index(name), cols)

    def lw(l, slot, rows, cols):
        return mat(layout["lw_base"] + (l * NS + slot) * SR, rows, cols)

    def lv(l, row, cols):
        return vec(layout["lv_base"] + l * NV + row, cols)

    def layernorm(x, g, b):
        mu = jnp.mean(x, axis=-1, keepdims=True)
        xc = x - mu
        var = jnp.mean(xc * xc, axis=-1, keepdims=True)
        return xc * lax.rsqrt(var + eps) * g + b

    # ---- embedding + positional encoding ----
    x = jnp.dot(src_ref[...], mat(layout["embed_w"], input_size, D),
                preferred_element_type=f32) + gvec("embed_b", D)
    x = x + mat(layout["pe"], R, D)

    mask = mat(layout["mask"], R, R)          # additive block-diag batch mask

    # ---- transformer encoder (post-norm, ReLU FFN) ----
    for l in range(num_layers):
        attn = lv(l, 3 * H + 0, D)            # out_proj bias, broadcasts
        for h in range(H):
            q = jnp.dot(x, lw(l, 3 * h + 0, D, Dh),
                        preferred_element_type=f32) + lv(l, 3 * h + 0, Dh)
            k = jnp.dot(x, lw(l, 3 * h + 1, D, Dh),
                        preferred_element_type=f32) + lv(l, 3 * h + 1, Dh)
            v = jnp.dot(x, lw(l, 3 * h + 2, D, Dh),
                        preferred_element_type=f32) + lv(l, 3 * h + 2, Dh)
            s = lax.dot_general(q * scale, k, (((1,), (1,)), ((), ())),
                                preferred_element_type=f32) + mask     # (R, R)
            m = jnp.max(s, axis=-1, keepdims=True)
            p = jnp.exp(s - m)
            p = p * pl.reciprocal(jnp.sum(p, axis=-1, keepdims=True), approx=False)
            o_h = jnp.dot(p, v, preferred_element_type=f32)            # (R, Dh)
            # fold head output straight into its out-proj row block
            attn = attn + jnp.dot(o_h, lw(l, 3 * H + h, Dh, D),
                                  preferred_element_type=f32)
        x = layernorm(x + attn, lv(l, 3 * H + 1, D), lv(l, 3 * H + 2, D))

        h1 = jnp.maximum(
            jnp.dot(x, lw(l, 4 * H, D, F), preferred_element_type=f32)
            + lv(l, 3 * H + 3, F), 0.0)
        h2 = jnp.dot(h1, lw(l, 4 * H + 1, F, D),
                     preferred_element_type=f32) + lv(l, 3 * H + 4, D)
        x = layernorm(x + h2, lv(l, 3 * H + 5, D), lv(l, 3 * H + 6, D))

    # ---- final encoder LayerNorm ----
    x = layernorm(x, gvec("enc_norm_g", D), gvec("enc_norm_b", D))

    # ---- LSTM: per-gate lane-0-aligned projections + unrolled recurrence ----
    xp, whh = {}, {}
    for g in "ifgo":
        xp[g] = jnp.dot(x, mat(layout["w_ih_" + g], D, D),
                        preferred_element_type=f32) + gvec("b_" + g, D)  # (R, D)
        whh[g] = mat(layout["w_hh_" + g], D, D)                          # hoisted

    h_t = jnp.zeros((B, D), f32)
    c_t = jnp.zeros((B, D), f32)
    for t in range(S):                       # static unroll, S small
        r0 = t * B
        i_g = jax.nn.sigmoid(xp["i"][r0:r0 + B]
                             + jnp.dot(h_t, whh["i"], preferred_element_type=f32))
        f_g = jax.nn.sigmoid(xp["f"][r0:r0 + B]
                             + jnp.dot(h_t, whh["f"], preferred_element_type=f32))
        g_g = jnp.tanh(xp["g"][r0:r0 + B]
                       + jnp.dot(h_t, whh["g"], preferred_element_type=f32))
        o_g = jax.nn.sigmoid(xp["o"][r0:r0 + B]
                             + jnp.dot(h_t, whh["o"], preferred_element_type=f32))
        c_t = f_g * c_t + i_g * g_g
        h_t = o_g * jnp.tanh(c_t)

    # ---- output head (Dropout = identity at inference) ----
    y = jnp.maximum(jnp.dot(h_t, mat(layout["fc1_w"], D, D),
                            preferred_element_type=f32) + gvec("fc1_b", D), 0.0)
    out_ref[...] = jnp.dot(y, mat(layout["fc2_w"], D, output_size),
                           preferred_element_type=f32) + gvec("fc2_b", output_size)


# ------------------------------- forward pass ------------------------------

def transformer_lstm_forward(param_slab, src, *, layout, nhead, num_layers,
                             d_model, dim_ff, output_size):
    B, S, I = src.shape
    R = S * B
    # time-major row layout (row r = t*B + b); tiny one-time XLA reshuffle
    src2d = jnp.transpose(src, (1, 0, 2)).reshape(R, I)

    kernel = partial(_fused_forward_kernel, batch=B, seq=S, d_model=d_model,
                     dim_ff=dim_ff, nhead=nhead, num_layers=num_layers,
                     input_size=I, output_size=output_size, eps=1e-5,
                     layout=layout)

    return pl.pallas_call(
        kernel,
        out_shape=jax.ShapeDtypeStruct((B, output_size), jnp.float32),
        # no grid, whole-array VMEM specs: no pipelining machinery for 1 step
        in_specs=[pl.BlockSpec(memory_space=pltpu.MemorySpace.VMEM),
                  pl.BlockSpec(memory_space=pltpu.MemorySpace.VMEM)],
        out_specs=pl.BlockSpec(memory_space=pltpu.MemorySpace.VMEM),
    )(src2d, param_slab)


# ----------------------------- parameter init ------------------------------

def _linear_init(key, fan_in, fan_out):
    kw, kb = jax.random.split(key)
    bound = 1.0 / math.sqrt(fan_in)
    w = jax.random.uniform(kw, (fan_in, fan_out), jnp.float32, -bound, bound)
    b = jax.random.uniform(kb, (fan_out,), jnp.float32, -bound, bound)
    return w, b


def make_positional_encoding(max_len, d_model):
    position = jnp.arange(max_len, dtype=jnp.float32)[:, None]
    div_term = jnp.exp(jnp.arange(0, d_model, 2, dtype=jnp.float32)
                       * (-math.log(10000.0) / d_model))
    pe = jnp.zeros((max_len, d_model), jnp.float32)
    pe = pe.at[:, 0::2].set(jnp.sin(position * div_term))
    pe = pe.at[:, 1::2].set(jnp.cos(position * div_term))
    return pe


def init_params(key, input_size, d_model, dim_ff, output_size,
                num_encoder_layers, max_len):
    keys = jax.random.split(key, 4 + num_encoder_layers)
    params = {}

    w, b = _linear_init(keys[0], input_size, d_model)
    params["embed_w"], params["embed_b"] = w, b
    params["pe"] = make_positional_encoding(max_len, d_model)

    names = ["in_proj_w", "in_proj_b", "out_proj_w", "out_proj_b",
             "ln1_g", "ln1_b", "ff1_w", "ff1_b", "ff2_w", "ff2_b",
             "ln2_g", "ln2_b"]
    stacks = {n: [] for n in names}
    for li in range(num_encoder_layers):
        lk = jax.random.split(keys[1 + li], 4)
        ipw, ipb = _linear_init(lk[0], d_model, 3 * d_model)
        opw, opb = _linear_init(lk[1], d_model, d_model)
        f1w, f1b = _linear_init(lk[2], d_model, dim_ff)
        f2w, f2b = _linear_init(lk[3], dim_ff, d_model)
        stacks["in_proj_w"].append(ipw); stacks["in_proj_b"].append(ipb)
        stacks["out_proj_w"].append(opw); stacks["out_proj_b"].append(opb)
        stacks["ln1_g"].append(jnp.ones((d_model,), jnp.float32))
        stacks["ln1_b"].append(jnp.zeros((d_model,), jnp.float32))
        stacks["ff1_w"].append(f1w); stacks["ff1_b"].append(f1b)
        stacks["ff2_w"].append(f2w); stacks["ff2_b"].append(f2b)
        stacks["ln2_g"].append(jnp.ones((d_model,), jnp.float32))
        stacks["ln2_b"].append(jnp.zeros((d_model,), jnp.float32))
    for n in names:
        params[n] = jnp.stack(stacks[n])

    params["enc_norm_g"] = jnp.ones((d_model,), jnp.float32)
    params["enc_norm_b"] = jnp.zeros((d_model,), jnp.float32)

    # LSTM (input d_model, hidden d_model, gate order i,f,g,o)
    k_lstm = jax.random.split(keys[1 + num_encoder_layers], 4)
    bound = 1.0 / math.sqrt(d_model)
    params["lstm_w_ih"] = jax.random.uniform(
        k_lstm[0], (d_model, 4 * d_model), jnp.float32, -bound, bound)
    params["lstm_w_hh"] = jax.random.uniform(
        k_lstm[1], (d_model, 4 * d_model), jnp.float32, -bound, bound)
    b_ih = jax.random.uniform(k_lstm[2], (4 * d_model,), jnp.float32, -bound, bound)
    b_hh = jax.random.uniform(k_lstm[3], (4 * d_model,), jnp.float32, -bound, bound)
    params["lstm_b"] = b_ih + b_hh

    # output head: Linear(D, D) -> ReLU -> Dropout -> Linear(D, output_size)
    w, b = _linear_init(keys[2 + num_encoder_layers], d_model, d_model)
    params["fc1_w"], params["fc1_b"] = w, b
    w, b = _linear_init(keys[3 + num_encoder_layers], d_model, output_size)
    params["fc2_w"], params["fc2_b"] = w, b
    return params


# ----------------------------------- main -----------------------------------

if __name__ == "__main__":
    B, S = 2, 8
    input_size, d_model, output_size = 4, 32, 4
    num_encoder_layers = 6
    dim_ff = 4 * input_size      # nn.Transformer(dim_feedforward=4*input_size)
    nhead = 2
    max_len = 5000

    key = jax.random.PRNGKey(0)
    pkey, xkey = jax.random.split(key)
    params = init_params(pkey, input_size, d_model, dim_ff, output_size,
                         num_encoder_layers, max_len)
    layout = make_layout(input_size, d_model, dim_ff, output_size, nhead,
                         num_encoder_layers, S, B)
    # pack all parameters ONCE into a single lane-padded VMEM slab
    param_slab = pack_params(params, layout, nhead=nhead, seq=S, batch=B)
    src = jax.random.normal(xkey, (B, S, input_size), jnp.float32)

    fwd = jax.jit(partial(transformer_lstm_forward, layout=layout, nhead=nhead,
                          num_layers=num_encoder_layers, d_model=d_model,
                          dim_ff=dim_ff, output_size=output_size))
    out = fwd(param_slab, src)
    jax.block_until_ready(out)
    assert out.shape == (B, output_size)
    assert bool(jnp.all(jnp.isfinite(out)))
    print("KERNEL_OK")
</pallas_src>

<mosaic_0001>
module attributes {stable_mosaic.version = 11 : i64} {
  func.func @_fused_forward_kernel(%arg0: memref<16x4xf32, #tpu.memory_space<vmem>>, %arg1: memref<2392x128xf32, #tpu.memory_space<vmem>>, %arg2: memref<2x4xf32, #tpu.memory_space<vmem>>) attributes {dimension_semantics = [], scalar_prefetch = 0 : i64, scratch_operands = 0 : i64, tpu.core_type = #tpu.core_type<tc>} {
    %c0 = arith.constant 0 : index
    %c0_0 = arith.constant 0 : index
    %0 = vector.load %arg0[%c0, %c0_0] : memref<16x4xf32, #tpu.memory_space<vmem>>, vector<16x4xf32>
    %c2016 = arith.constant 2016 : index
    %c0_1 = arith.constant 0 : index
    %1 = vector.load %arg1[%c2016, %c0_1] : memref<2392x128xf32, #tpu.memory_space<vmem>>, vector<4x32xf32>
    %cst = arith.constant dense<0.000000e+00> : vector<16x32xf32>
    %2 = tpu.matmul %0, %1, %cst {dimension_numbers = #tpu.dot_dimension_numbers<[1], [0], [0], [1], [0, 0, 1, 1], [], []>} : vector<16x4xf32>, vector<4x32xf32>, vector<16x32xf32> -> vector<16x32xf32>
    %c2376 = arith.constant 2376 : index
    %c0_2 = arith.constant 0 : index
    %3 = vector.load %arg1[%c2376, %c0_2] : memref<2392x128xf32, #tpu.memory_space<vmem>>, vector<1x32xf32>
    %4 = vector.broadcast %3 : vector<1x32xf32> to vector<16x32xf32>
    %5 = arith.addf %2, %4 : vector<16x32xf32>
    %c2344 = arith.constant 2344 : index
    %c0_3 = arith.constant 0 : index
    %6 = vector.load %arg1[%c2344, %c0_3] : memref<2392x128xf32, #tpu.memory_space<vmem>>, vector<16x32xf32>
    %7 = arith.addf %5, %6 : vector<16x32xf32>
    %c2360 = arith.constant 2360 : index
    %c0_4 = arith.constant 0 : index
    %8 = vector.load %arg1[%c2360, %c0_4] : memref<2392x128xf32, #tpu.memory_space<vmem>>, vector<16x16xf32>
    %c1926 = arith.constant 1926 : index
    %c0_5 = arith.constant 0 : index
    %9 = vector.load %arg1[%c1926, %c0_5] : memref<2392x128xf32, #tpu.memory_space<vmem>>, vector<1x32xf32>
    %c0_6 = arith.constant 0 : index
    %c0_7 = arith.constant 0 : index
    %10 = vector.load %arg1[%c0_6, %c0_7] : memref<2392x128xf32, #tpu.memory_space<vmem>>, vector<32x16xf32>
    %cst_8 = arith.constant dense<0.000000e+00> : vector<16x16xf32>
    %11 = tpu.matmul %7, %10, %cst_8 {dimension_numbers = #tpu.dot_dimension_numbers<[1], [0], [0], [1], [0, 0, 1, 1], [], []>} : vector<16x32xf32>, vector<32x16xf32>, vector<16x16xf32> -> vector<16x16xf32>
    %c1920 = arith.constant 1920 : index
    %c0_9 = arith.constant 0 : index
    %12 = vector.load %arg1[%c1920, %c0_9] : memref<2392x128xf32, #tpu.memory_space<vmem>>, vector<1x16xf32>
    %13 = vector.broadcast %12 : vector<1x16xf32> to vector<16x16xf32>
    %14 = arith.addf %11, %13 : vector<16x16xf32>
    %c32 = arith.constant 32 : index
    %c0_10 = arith.constant 0 : index
    %15 = vector.load %arg1[%c32, %c0_10] : memref<2392x128xf32, #tpu.memory_space<vmem>>, vector<32x16xf32>
    %cst_11 = arith.constant dense<0.000000e+00> : vector<16x16xf32>
    %16 = tpu.matmul %7, %15, %cst_11 {dimension_numbers = #tpu.dot_dimension_numbers<[1], [0], [0], [1], [0, 0, 1, 1], [], []>} : vector<16x32xf32>, vector<32x16xf32>, vector<16x16xf32> -> vector<16x16xf32>
    %c1921 = arith.constant 1921 : index
    %c0_12 = arith.constant 0 : index
    %17 = vector.load %arg1[%c1921, %c0_12] : memref<2392x128xf32, #tpu.memory_space<vmem>>, vector<1x16xf32>
    %18 = vector.broadcast %17 : vector<1x16xf32> to vector<16x16xf32>
    %19 = arith.addf %16, %18 : vector<16x16xf32>
    %c64 = arith.constant 64 : index
    %c0_13 = arith.constant 0 : index
    %20 = vector.load %arg1[%c64, %c0_13] : memref<2392x128xf32, #tpu.memory_space<vmem>>, vector<32x16xf32>
    %cst_14 = arith.constant dense<0.000000e+00> : vector<16x16xf32>
    %21 = tpu.matmul %7, %20, %cst_14 {dimension_numbers = #tpu.dot_dimension_numbers<[1], [0], [0], [1], [0, 0, 1, 1], [], []>} : vector<16x32xf32>, vector<32x16xf32>, vector<16x16xf32> -> vector<16x16xf32>
    %c1922 = arith.constant 1922 : index
    %c0_15 = arith.constant 0 : index
    %22 = vector.load %arg1[%c1922, %c0_15] : memref<2392x128xf32, #tpu.memory_space<vmem>>, vector<1x16xf32>
    %23 = vector.broadcast %22 : vector<1x16xf32> to vector<16x16xf32>
    %24 = arith.addf %21, %23 : vector<16x16xf32>
    %cst_16 = arith.constant 2.500000e-01 : f32
    %25 = vector.broadcast %cst_16 : f32 to vector<16x16xf32>
    %26 = arith.mulf %14, %25 : vector<16x16xf32>
    %cst_17 = arith.constant dense<0.000000e+00> : vector<16x16xf32>
    %27 = tpu.matmul %26, %19, %cst_17 {dimension_numbers = #tpu.dot_dimension_numbers<[1], [1], [0], [0], [0, 0, 1, 0], [], []>} : vector<16x16xf32>, vector<16x16xf32>, vector<16x16xf32> -> vector<16x16xf32>
    %28 = arith.addf %27, %8 : vector<16x16xf32>
    %cst_18 = arith.constant dense<0xFF800000> : vector<16xf32>
    %29 = vector.multi_reduction <maximumf>, %28, %cst_18 [1] : vector<16x16xf32> to vector<16xf32>
    %30 = vector.shape_cast %29 : vector<16xf32> to vector<16x1xf32>
    %31 = vector.broadcast %30 : vector<16x1xf32> to vector<16x16xf32>
    %32 = arith.subf %28, %31 : vector<16x16xf32>
    %33 = math.exp %32 : vector<16x16xf32>
    %cst_19 = arith.constant dense<0.000000e+00> : vector<16xf32>
    %34 = vector.multi_reduction <add>, %33, %cst_19 [1] : vector<16x16xf32> to vector<16xf32>
    %35 = vector.shape_cast %34 : vector<16xf32> to vector<16x1xf32>
    %36 = tpu.reciprocal %35 : vector<16x1xf32> -> vector<16x1xf32>
    %37 = vector.broadcast %36 : vector<16x1xf32> to vector<16x16xf32>
    %38 = arith.mulf %33, %37 : vector<16x16xf32>
    %cst_20 = arith.constant dense<0.000000e+00> : vector<16x16xf32>
    %39 = tpu.matmul %38, %24, %cst_20 {dimension_numbers = #tpu.dot_dimension_numbers<[1], [0], [0], [1], [0, 0, 1, 1], [], []>} : vector<16x16xf32>, vector<16x16xf32>, vector<16x16xf32> -> vector<16x16xf32>
    %c192 = arith.constant 192 : index
    %c0_21 = arith.constant 0 : index
    %40 = vector.load %arg1[%c192, %c0_21] : memref<2392x128xf32, #tpu.memory_space<vmem>>, vector<16x32xf32>
    %cst_22 = arith.constant dense<0.000000e+00> : vector<16x32xf32>
    %41 = tpu.matmul %39, %40, %cst_22 {dimension_numbers = #tpu.dot_dimension_numbers<[1], [0], [0], [1], [0, 0, 1, 1], [], []>} : vector<16x16xf32>, vector<16x32xf32>, vector<16x32xf32> -> vector<16x32xf32>
    %42 = vector.broadcast %9 : vector<1x32xf32> to vector<16x32xf32>
    %43 = arith.addf %42, %41 : vector<16x32xf32>
    %c96 = arith.constant 96 : index
    %c0_23 = arith.constant 0 : index
    %44 = vector.load %arg1[%c96, %c0_23] : memref<2392x128xf32, #tpu.memory_space<vmem>>, vector<32x16xf32>
    %cst_24 = arith.constant dense<0.000000e+00> : vector<16x16xf32>
    %45 = tpu.matmul %7, %44, %cst_24 {dimension_numbers = #tpu.dot_dimension_numbers<[1], [0], [0], [1], [0, 0, 1, 1], [], []>} : vector<16x32xf32>, vector<32x16xf32>, vector<16x16xf32> -> vector<16x16xf32>
    %c1923 = arith.constant 1923 : index
    %c0_25 = arith.constant 0 : index
    %46 = vector.load %arg1[%c1923, %c0_25] : memref<2392x128xf32, #tpu.memory_space<vmem>>, vector<1x16xf32>
    %47 = vector.broadcast %46 : vector<1x16xf32> to vector<16x16xf32>
    %48 = arith.addf %45, %47 : vector<16x16xf32>
    %c128 = arith.constant 128 : index
    %c0_26 = arith.constant 0 : index
    %49 = vector.load %arg1[%c128, %c0_26] : memref<2392x128xf32, #tpu.memory_space<vmem>>, vector<32x16xf32>
    %cst_27 = arith.constant dense<0.000000e+00> : vector<16x16xf32>
    %50 = tpu.matmul %7, %49, %cst_27 {dimension_numbers = #tpu.dot_dimension_numbers<[1], [0], [0], [1], [0, 0, 1, 1], [], []>} : vector<16x32xf32>, vector<32x16xf32>, vector<16x16xf32> -> vector<16x16xf32>
    %c1924 = arith.constant 1924 : index
    %c0_28 = arith.constant 0 : index
    %51 = vector.load %arg1[%c1924, %c0_28] : memref<2392x128xf32, #tpu.memory_space<vmem>>, vector<1x16xf32>
    %52 = vector.broadcast %51 : vector<1x16xf32> to vector<16x16xf32>
    %53 = arith.addf %50, %52 : vector<16x16xf32>
    %c160 = arith.constant 160 : index
    %c0_29 = arith.constant 0 : index
    %54 = vector.load %arg1[%c160, %c0_29] : memref<2392x128xf32, #tpu.memory_space<vmem>>, vector<32x16xf32>
    %cst_30 = arith.constant dense<0.000000e+00> : vector<16x16xf32>
    %55 = tpu.matmul %7, %54, %cst_30 {dimension_numbers = #tpu.dot_dimension_numbers<[1], [0], [0], [1], [0, 0, 1, 1], [], []>} : vector<16x32xf32>, vector<32x16xf32>, vector<16x16xf32> -> vector<16x16xf32>
    %c1925 = arith.constant 1925 : index
    %c0_31 = arith.constant 0 : index
    %56 = vector.load %arg1[%c1925, %c0_31] : memref<2392x128xf32, #tpu.memory_space<vmem>>, vector<1x16xf32>
    %57 = vector.broadcast %56 : vector<1x16xf32> to vector<16x16xf32>
    %58 = arith.addf %55, %57 : vector<16x16xf32>
    %cst_32 = arith.constant 2.500000e-01 : f32
    %59 = vector.broadcast %cst_32 : f32 to vector<16x16xf32>
    %60 = arith.mulf %48, %59 : vector<16x16xf32>
    %cst_33 = arith.constant dense<0.000000e+00> : vector<16x16xf32>
    %61 = tpu.matmul %60, %53, %cst_33 {dimension_numbers = #tpu.dot_dimension_numbers<[1], [1], [0], [0], [0, 0, 1, 0], [], []>} : vector<16x16xf32>, vector<16x16xf32>, vector<16x16xf32> -> vector<16x16xf32>
    %62 = arith.addf %61, %8 : vector<16x16xf32>
    %cst_34 = arith.constant dense<0xFF800000> : vector<16xf32>
    %63 = vector.multi_reduction <maximumf>, %62, %cst_34 [1] : vector<16x16xf32> to vector<16xf32>
    %64 = vector.shape_cast %63 : vector<16xf32> to vector<16x1xf32>
    %65 = vector.broadcast %64 : vector<16x1xf32> to vector<16x16xf32>
    %66 = arith.subf %62, %65 : vector<16x16xf32>
    %67 = math.exp %66 : vector<16x16xf32>
    %cst_35 = arith.constant dense<0.000000e+00> : vector<16xf32>
    %68 = vector.multi_reduction <add>, %67, %cst_35 [1] : vector<16x16xf32> to vector<16xf32>
    %69 = vector.shape_cast %68 : vector<16xf32> to vector<16x1xf32>
    %70 = tpu.reciprocal %69 : vector<16x1xf32> -> vector<16x1xf32>
    %71 = vector.broadcast %70 : vector<16x1xf32> to vector<16x16xf32>
    %72 = arith.mulf %67, %71 : vector<16x16xf32>
    %cst_36 = arith.constant dense<0.000000e+00> : vector<16x16xf32>
    %73 = tpu.matmul %72, %58, %cst_36 {dimension_numbers = #tpu.dot_dimension_numbers<[1], [0], [0], [1], [0, 0, 1, 1], [], []>} : vector<16x16xf32>, vector<16x16xf32>, vector<16x16xf32> -> vector<16x16xf32>
    %c224 = arith.constant 224 : index
    %c0_37 = arith.constant 0 : index
    %74 = vector.load %arg1[%c224, %c0_37] : memref<2392x128xf32, #tpu.memory_space<vmem>>, vector<16x32xf32>
    %cst_38 = arith.constant dense<0.000000e+00> : vector<16x32xf32>
    %75 = tpu.matmul %73, %74, %cst_38 {dimension_numbers = #tpu.dot_dimension_numbers<[1], [0], [0], [1], [0, 0, 1, 1], [], []>} : vector<16x16xf32>, vector<16x32xf32>, vector<16x32xf32> -> vector<16x32xf32>
    %76 = arith.addf %43, %75 : vector<16x32xf32>
    %77 = arith.addf %7, %76 : vector<16x32xf32>
    %c1927 = arith.constant 1927 : index
    %c0_39 = arith.constant 0 : index
    %78 = vector.load %arg1[%c1927, %c0_39] : memref<2392x128xf32, #tpu.memory_space<vmem>>, vector<1x32xf32>
    %c1928 = arith.constant 1928 : index
    %c0_40 = arith.constant 0 : index
    %79 = vector.load %arg1[%c1928, %c0_40] : memref<2392x128xf32, #tpu.memory_space<vmem>>, vector<1x32xf32>
    %cst_41 = arith.constant dense<0.000000e+00> : vector<16xf32>
    %80 = vector.multi_reduction <add>, %77, %cst_41 [1] : vector<16x32xf32> to vector<16xf32>
    %81 = vector.shape_cast %80 : vector<16xf32> to vector<16x1xf32>
    %cst_42 = arith.constant 3.200000e+01 : f32
    %82 = vector.broadcast %cst_42 : f32 to vector<16x1xf32>
    %83 = arith.divf %81, %82 : vector<16x1xf32>
    %84 = vector.broadcast %83 : vector<16x1xf32> to vector<16x32xf32>
    %85 = arith.subf %77, %84 : vector<16x32xf32>
    %86 = arith.mulf %85, %85 : vector<16x32xf32>
    %cst_43 = arith.constant dense<0.000000e+00> : vector<16xf32>
    %87 = vector.multi_reduction <add>, %86, %cst_43 [1] : vector<16x32xf32> to vector<16xf32>
    %88 = vector.shape_cast %87 : vector<16xf32> to vector<16x1xf32>
    %cst_44 = arith.constant 3.200000e+01 : f32
    %89 = vector.broadcast %cst_44 : f32 to vector<16x1xf32>
    %90 = arith.divf %88, %89 : vector<16x1xf32>
    %cst_45 = arith.constant 9.99999974E-6 : f32
    %91 = vector.broadcast %cst_45 : f32 to vector<16x1xf32>
    %92 = arith.addf %90, %91 : vector<16x1xf32>
    %93 = math.rsqrt %92 : vector<16x1xf32>
    %94 = vector.broadcast %93 : vector<16x1xf32> to vector<16x32xf32>
    %95 = arith.mulf %85, %94 : vector<16x32xf32>
    %96 = vector.broadcast %78 : vector<1x32xf32> to vector<16x32xf32>
    %97 = arith.mulf %95, %96 : vector<16x32xf32>
    %98 = vector.broadcast %79 : vector<1x32xf32> to vector<16x32xf32>
    %99 = arith.addf %97, %98 : vector<16x32xf32>
    %c256 = arith.constant 256 : index
    %c0_46 = arith.constant 0 : index
    %100 = vector.load %arg1[%c256, %c0_46] : memref<2392x128xf32, #tpu.memory_space<vmem>>, vector<32x16xf32>
    %cst_47 = arith.constant dense<0.000000e+00> : vector<16x16xf32>
    %101 = tpu.matmul %99, %100, %cst_47 {dimension_numbers = #tpu.dot_dimension_numbers<[1], [0], [0], [1], [0, 0, 1, 1], [], []>} : vector<16x32xf32>, vector<32x16xf32>, vector<16x16xf32> -> vector<16x16xf32>
    %c1929 = arith.constant 1929 : index
    %c0_48 = arith.constant 0 : index
    %102 = vector.load %arg1[%c1929, %c0_48] : memref<2392x128xf32, #tpu.memory_space<vmem>>, vector<1x16xf32>
    %103 = vector.broadcast %102 : vector<1x16xf32> to vector<16x16xf32>
    %104 = arith.addf %101, %103 : vector<16x16xf32>
    %cst_49 = arith.constant 0.000000e+00 : f32
    %105 = vector.broadcast %cst_49 : f32 to vector<16x16xf32>
    %106 = arith.maximumf %104, %105 : vector<16x16xf32>
    %c288 = arith.constant 288 : index
    %c0_50 = arith.constant 0 : index
    %107 = vector.load %arg1[%c288, %c0_50] : memref<2392x128xf32, #tpu.memory_space<vmem>>, vector<16x32xf32>
    %cst_51 = arith.constant dense<0.000000e+00> : vector<16x32xf32>
    %108 = tpu.matmul %106, %107, %cst_51 {dimension_numbers = #tpu.dot_dimension_numbers<[1], [0], [0], [1], [0, 0, 1, 1], [], []>} : vector<16x16xf32>, vector<16x32xf32>, vector<16x32xf32> -> vector<16x32xf32>
    %c1930 = arith.constant 1930 : index
    %c0_52 = arith.constant 0 : index
    %109 = vector.load %arg1[%c1930, %c0_52] : memref<2392x128xf32, #tpu.memory_space<vmem>>, vector<1x32xf32>
    %110 = vector.broadcast %109 : vector<1x32xf32> to vector<16x32xf32>
    %111 = arith.addf %108, %110 : vector<16x32xf32>
    %112 = arith.addf %99, %111 : vector<16x32xf32>
    %c1931 = arith.constant 1931 : index
    %c0_53 = arith.constant 0 : index
    %113 = vector.load %arg1[%c1931, %c0_53] : memref<2392x128xf32, #tpu.memory_space<vmem>>, vector<1x32xf32>
    %c1932 = arith.constant 1932 : index
    %c0_54 = arith.constant 0 : index
    %114 = vector.load %arg1[%c1932, %c0_54] : memref<2392x128xf32, #tpu.memory_space<vmem>>, vector<1x32xf32>
    %cst_55 = arith.constant dense<0.000000e+00> : vector<16xf32>
    %115 = vector.multi_reduction <add>, %112, %cst_55 [1] : vector<16x32xf32> to vector<16xf32>
    %116 = vector.shape_cast %115 : vector<16xf32> to vector<16x1xf32>
    %cst_56 = arith.constant 3.200000e+01 : f32
    %117 = vector.broadcast %cst_56 : f32 to vector<16x1xf32>
    %118 = arith.divf %116, %117 : vector<16x1xf32>
    %119 = vector.broadcast %118 : vector<16x1xf32> to vector<16x32xf32>
    %120 = arith.subf %112, %119 : vector<16x32xf32>
    %121 = arith.mulf %120, %120 : vector<16x32xf32>
    %cst_57 = arith.constant dense<0.000000e+00> : vector<16xf32>
    %122 = vector.multi_reduction <add>, %121, %cst_57 [1] : vector<16x32xf32> to vector<16xf32>
    %123 = vector.shape_cast %122 : vector<16xf32> to vector<16x1xf32>
    %cst_58 = arith.constant 3.200000e+01 : f32
    %124 = vector.broadcast %cst_58 : f32 to vector<16x1xf32>
    %125 = arith.divf %123, %124 : vector<16x1xf32>
    %cst_59 = arith.constant 9.99999974E-6 : f32
    %126 = vector.broadcast %cst_59 : f32 to vector<16x1xf32>
    %127 = arith.addf %125, %126 : vector<16x1xf32>
    %128 = math.rsqrt %127 : vector<16x1xf32>
    %129 = vector.broadcast %128 : vector<16x1xf32> to vector<16x32xf32>
    %130 = arith.mulf %120, %129 : vector<16x32xf32>
    %131 = vector.broadcast %113 : vector<1x32xf32> to vector<16x32xf32>
    %132 = arith.mulf %130, %131 : vector<16x32xf32>
    %133 = vector.broadcast %114 : vector<1x32xf32> to vector<16x32xf32>
    %134 = arith.addf %132, %133 : vector<16x32xf32>
    %c1942 = arith.constant 1942 : index
    %c0_60 = arith.constant 0 : index
    %135 = vector.load %arg1[%c1942, %c0_60] : memref<2392x128xf32, #tpu.memory_space<vmem>>, vector<1x32xf32>
    %c320 = arith.constant 320 : index
    %c0_61 = arith.constant 0 : index
    %136 = vector.load %arg1[%c320, %c0_61] : memref<2392x128xf32, #tpu.memory_space<vmem>>, vector<32x16xf32>
    %cst_62 = arith.constant dense<0.000000e+00> : vector<16x16xf32>
    %137 = tpu.matmul %134, %136, %cst_62 {dimension_numbers = #tpu.dot_dimension_numbers<[1], [0], [0], [1], [0, 0, 1, 1], [], []>} : vector<16x32xf32>, vector<32x16xf32>, vector<16x16xf32> -> vector<16x16xf32>
    %c1936 = arith.constant 1936 : index
    %c0_63 = arith.constant 0 : index
    %138 = vector.load %arg1[%c1936, %c0_63] : memref<2392x128xf32, #tpu.memory_space<vmem>>, vector<1x16xf32>
    %139 = vector.broadcast %138 : vector<1x16xf32> to vector<16x16xf32>
    %140 = arith.addf %137, %139 : vector<16x16xf32>
    %c352 = arith.constant 352 : index
    %c0_64 = arith.constant 0 : index
    %141 = vector.load %arg1[%c352, %c0_64] : memref<2392x128xf32, #tpu.memory_space<vmem>>, vector<32x16xf32>
    %cst_65 = arith.constant dense<0.000000e+00> : vector<16x16xf32>
    %142 = tpu.matmul %134, %141, %cst_65 {dimension_numbers = #tpu.dot_dimension_numbers<[1], [0], [0], [1], [0, 0, 1, 1], [], []>} : vector<16x32xf32>, vector<32x16xf32>, vector<16x16xf32> -> vector<16x16xf32>
    %c1937 = arith.constant 1937 : index
    %c0_66 = arith.constant 0 : index
    %143 = vector.load %arg1[%c1937, %c0_66] : memref<2392x128xf32, #tpu.memory_space<vmem>>, vector<1x16xf32>
    %144 = vector.broadcast %143 : vector<1x16xf32> to vector<16x16xf32>
    %145 = arith.addf %142, %144 : vector<16x16xf32>
    %c384 = arith.constant 384 : index
    %c0_67 = arith.constant 0 : index
    %146 = vector.load %arg1[%c384, %c0_67] : memref<2392x128xf32, #tpu.memory_space<vmem>>, vector<32x16xf32>
    %cst_68 = arith.constant dense<0.000000e+00> : vector<16x16xf32>
    %147 = tpu.matmul %134, %146, %cst_68 {dimension_numbers = #tpu.dot_dimension_numbers<[1], [0], [0], [1], [0, 0, 1, 1], [], []>} : vector<16x32xf32>, vector<32x16xf32>, vector<16x16xf32> -> vector<16x16xf32>
    %c1938 = arith.constant 1938 : index
    %c0_69 = arith.constant 0 : index
    %148 = vector.load %arg1[%c1938, %c0_69] : memref<2392x128xf32, #tpu.memory_space<vmem>>, vector<1x16xf32>
    %149 = vector.broadcast %148 : vector<1x16xf32> to vector<16x16xf32>
    %150 = arith.addf %147, %149 : vector<16x16xf32>
    %cst_70 = arith.constant 2.500000e-01 : f32
    %151 = vector.broadcast %cst_70 : f32 to vector<16x16xf32>
    %152 = arith.mulf %140, %151 : vector<16x16xf32>
    %cst_71 = arith.constant dense<0.000000e+00> : vector<16x16xf32>
    %153 = tpu.matmul %152, %145, %cst_71 {dimension_numbers = #tpu.dot_dimension_numbers<[1], [1], [0], [0], [0, 0, 1, 0], [], []>} : vector<16x16xf32>, vector<16x16xf32>, vector<16x16xf32> -> vector<16x16xf32>
    %154 = arith.addf %153, %8 : vector<16x16xf32>
    %cst_72 = arith.constant dense<0xFF800000> : vector<16xf32>
    %155 = vector.multi_reduction <maximumf>, %154, %cst_72 [1] : vector<16x16xf32> to vector<16xf32>
    %156 = vector.shape_cast %155 : vector<16xf32> to vector<16x1xf32>
    %157 = vector.broadcast %156 : vector<16x1xf32> to vector<16x16xf32>
    %158 = arith.subf %154, %157 : vector<16x16xf32>
    %159 = math.exp %158 : vector<16x16xf32>
    %cst_73 = arith.constant dense<0.000000e+00> : vector<16xf32>
    %160 = vector.multi_reduction <add>, %159, %cst_73 [1] : vector<16x16xf32> to vector<16xf32>
    %161 = vector.shape_cast %160 : vector<16xf32> to vector<16x1xf32>
    %162 = tpu.reciprocal %161 : vector<16x1xf32> -> vector<16x1xf32>
    %163 = vector.broadcast %162 : vector<16x1xf32> to vector<16x16xf32>
    %164 = arith.mulf %159, %163 : vector<16x16xf32>
    %cst_74 = arith.constant dense<0.000000e+00> : vector<16x16xf32>
    %165 = tpu.matmul %164, %150, %cst_74 {dimension_numbers = #tpu.dot_dimension_numbers<[1], [0], [0], [1], [0, 0, 1, 1], [], []>} : vector<16x16xf32>, vector<16x16xf32>, vector<16x16xf32> -> vector<16x16xf32>
    %c512 = arith.constant 512 : index
    %c0_75 = arith.constant 0 : index
    %166 = vector.load %arg1[%c512, %c0_75] : memref<2392x128xf32, #tpu.memory_space<vmem>>, vector<16x32xf32>
    %cst_76 = arith.constant dense<0.000000e+00> : vector<16x32xf32>
    %167 = tpu.matmul %165, %166, %cst_76 {dimension_numbers = #tpu.dot_dimension_numbers<[1], [0], [0], [1], [0, 0, 1, 1], [], []>} : vector<16x16xf32>, vector<16x32xf32>, vector<16x32xf32> -> vector<16x32xf32>
    %168 = vector.broadcast %135 : vector<1x32xf32> to vector<16x32xf32>
    %169 = arith.addf %168, %167 : vector<16x32xf32>
    %c416 = arith.constant 416 : index
    %c0_77 = arith.constant 0 : index
    %170 = vector.load %arg1[%c416, %c0_77] : memref<2392x128xf32, #tpu.memory_space<vmem>>, vector<32x16xf32>
    %cst_78 = arith.constant dense<0.000000e+00> : vector<16x16xf32>
    %171 = tpu.matmul %134, %170, %cst_78 {dimension_numbers = #tpu.dot_dimension_numbers<[1], [0], [0], [1], [0, 0, 1, 1], [], []>} : vector<16x32xf32>, vector<32x16xf32>, vector<16x16xf32> -> vector<16x16xf32>
    %c1939 = arith.constant 1939 : index
    %c0_79 = arith.constant 0 : index
    %172 = vector.load %arg1[%c1939, %c0_79] : memref<2392x128xf32, #tpu.memory_space<vmem>>, vector<1x16xf32>
    %173 = vector.broadcast %172 : vector<1x16xf32> to vector<16x16xf32>
    %174 = arith.addf %171, %173 : vector<16x16xf32>
    %c448 = arith.constant 448 : index
    %c0_80 = arith.constant 0 : index
    %175 = vector.load %arg1[%c448, %c0_80] : memref<2392x128xf32, #tpu.memory_space<vmem>>, vector<32x16xf32>
    %cst_81 = arith.constant dense<0.000000e+00> : vector<16x16xf32>
    %176 = tpu.matmul %134, %175, %cst_81 {dimension_numbers = #tpu.dot_dimension_numbers<[1], [0], [0], [1], [0, 0, 1, 1], [], []>} : vector<16x32xf32>, vector<32x16xf32>, vector<16x16xf32> -> vector<16x16xf32>
    %c1940 = arith.constant 1940 : index
    %c0_82 = arith.constant 0 : index
    %177 = vector.load %arg1[%c1940, %c0_82] : memref<2392x128xf32, #tpu.memory_space<vmem>>, vector<1x16xf32>
    %178 = vector.broadcast %177 : vector<1x16xf32> to vector<16x16xf32>
    %179 = arith.addf %176, %178 : vector<16x16xf32>
    %c480 = arith.constant 480 : index
    %c0_83 = arith.constant 0 : index
    %180 = vector.load %arg1[%c480, %c0_83] : memref<2392x128xf32, #tpu.memory_space<vmem>>, vector<32x16xf32>
    %cst_84 = arith.constant dense<0.000000e+00> : vector<16x16xf32>
    %181 = tpu.matmul %134, %180, %cst_84 {dimension_numbers = #tpu.dot_dimension_numbers<[1], [0], [0], [1], [0, 0, 1, 1], [], []>} : vector<16x32xf32>, vector<32x16xf32>, vector<16x16xf32> -> vector<16x16xf32>
    %c1941 = arith.constant 1941 : index
    %c0_85 = arith.constant 0 : index
    %182 = vector.load %arg1[%c1941, %c0_85] : memref<2392x128xf32, #tpu.memory_space<vmem>>, vector<1x16xf32>
    %183 = vector.broadcast %182 : vector<1x16xf32> to vector<16x16xf32>
    %184 = arith.addf %181, %183 : vector<16x16xf32>
    %cst_86 = arith.constant 2.500000e-01 : f32
    %185 = vector.broadcast %cst_86 : f32 to vector<16x16xf32>
    %186 = arith.mulf %174, %185 : vector<16x16xf32>
    %cst_87 = arith.constant dense<0.000000e+00> : vector<16x16xf32>
    %187 = tpu.matmul %186, %179, %cst_87 {dimension_numbers = #tpu.dot_dimension_numbers<[1], [1], [0], [0], [0, 0, 1, 0], [], []>} : vector<16x16xf32>, vector<16x16xf32>, vector<16x16xf32> -> vector<16x16xf32>
    %188 = arith.addf %187, %8 : vector<16x16xf32>
    %cst_88 = arith.constant dense<0xFF800000> : vector<16xf32>
    %189 = vector.multi_reduction <maximumf>, %188, %cst_88 [1] : vector<16x16xf32> to vector<16xf32>
    %190 = vector.shape_cast %189 : vector<16xf32> to vector<16x1xf32>
    %191 = vector.broadcast %190 : vector<16x1xf32> to vector<16x16xf32>
    %192 = arith.subf %188, %191 : vector<16x16xf32>
    %193 = math.exp %192 : vector<16x16xf32>
    %cst_89 = arith.constant dense<0.000000e+00> : vector<16xf32>
    %194 = vector.multi_reduction <add>, %193, %cst_89 [1] : vector<16x16xf32> to vector<16xf32>
    %195 = vector.shape_cast %194 : vector<16xf32> to vector<16x1xf32>
    %196 = tpu.reciprocal %195 : vector<16x1xf32> -> vector<16x1xf32>
    %197 = vector.broadcast %196 : vector<16x1xf32> to vector<16x16xf32>
    %198 = arith.mulf %193, %197 : vector<16x16xf32>
    %cst_90 = arith.constant dense<0.000000e+00> : vector<16x16xf32>
    %199 = tpu.matmul %198, %184, %cst_90 {dimension_numbers = #tpu.dot_dimension_numbers<[1], [0], [0], [1], [0, 0, 1, 1], [], []>} : vector<16x16xf32>, vector<16x16xf32>, vector<16x16xf32> -> vector<16x16xf32>
    %c544 = arith.constant 544 : index
    %c0_91 = arith.constant 0 : index
    %200 = vector.load %arg1[%c544, %c0_91] : memref<2392x128xf32, #tpu.memory_space<vmem>>, vector<16x32xf32>
    %cst_92 = arith.constant dense<0.000000e+00> : vector<16x32xf32>
    %201 = tpu.matmul %199, %200, %cst_92 {dimension_numbers = #tpu.dot_dimension_numbers<[1], [0], [0], [1], [0, 0, 1, 1], [], []>} : vector<16x16xf32>, vector<16x32xf32>, vector<16x32xf32> -> vector<16x32xf32>
    %202 = arith.addf %169, %201 : vector<16x32xf32>
    %203 = arith.addf %134, %202 : vector<16x32xf32>
    %c1943 = arith.constant 1943 : index
    %c0_93 = arith.constant 0 : index
    %204 = vector.load %arg1[%c1943, %c0_93] : memref<2392x128xf32, #tpu.memory_space<vmem>>, vector<1x32xf32>
    %c1944 = arith.constant 1944 : index
    %c0_94 = arith.constant 0 : index
    %205 = vector.load %arg1[%c1944, %c0_94] : memref<2392x128xf32, #tpu.memory_space<vmem>>, vector<1x32xf32>
    %cst_95 = arith.constant dense<0.000000e+00> : vector<16xf32>
    %206 = vector.multi_reduction <add>, %203, %cst_95 [1] : vector<16x32xf32> to vector<16xf32>
    %207 = vector.shape_cast %206 : vector<16xf32> to vector<16x1xf32>
    %cst_96 = arith.constant 3.200000e+01 : f32
    %208 = vector.broadcast %cst_96 : f32 to vector<16x1xf32>
    %209 = arith.divf %207, %208 : vector<16x1xf32>
    %210 = vector.broadcast %209 : vector<16x1xf32> to vector<16x32xf32>
    %211 = arith.subf %203, %210 : vector<16x32xf32>
    %212 = arith.mulf %211, %211 : vector<16x32xf32>
    %cst_97 = arith.constant dense<0.000000e+00> : vector<16xf32>
    %213 = vector.multi_reduction <add>, %212, %cst_97 [1] : vector<16x32xf32> to vector<16xf32>
    %214 = vector.shape_cast %213 : vector<16xf32> to vector<16x1xf32>
    %cst_98 = arith.constant 3.200000e+01 : f32
    %215 = vector.broadcast %cst_98 : f32 to vector<16x1xf32>
    %216 = arith.divf %214, %215 : vector<16x1xf32>
    %cst_99 = arith.constant 9.99999974E-6 : f32
    %217 = vector.broadcast %cst_99 : f32 to vector<16x1xf32>
    %218 = arith.addf %216, %217 : vector<16x1xf32>
    %219 = math.rsqrt %218 : vector<16x1xf32>
    %220 = vector.broadcast %219 : vector<16x1xf32> to vector<16x32xf32>
    %221 = arith.mulf %211, %220 : vector<16x32xf32>
    %222 = vector.broadcast %204 : vector<1x32xf32> to vector<16x32xf32>
    %223 = arith.mulf %221, %222 : vector<16x32xf32>
    %224 = vector.broadcast %205 : vector<1x32xf32> to vector<16x32xf32>
    %225 = arith.addf %223, %224 : vector<16x32xf32>
    %c576 = arith.constant 576 : index
    %c0_100 = arith.constant 0 : index
    %226 = vector.load %arg1[%c576, %c0_100] : memref<2392x128xf32, #tpu.memory_space<vmem>>, vector<32x16xf32>
    %cst_101 = arith.constant dense<0.000000e+00> : vector<16x16xf32>
    %227 = tpu.matmul %225, %226, %cst_101 {dimension_numbers = #tpu.dot_dimension_numbers<[1], [0], [0], [1], [0, 0, 1, 1], [], []>} : vector<16x32xf32>, vector<32x16xf32>, vector<16x16xf32> -> vector<16x16xf32>
    %c1945 = arith.constant 1945 : index
    %c0_102 = arith.constant 0 : index
    %228 = vector.load %arg1[%c1945, %c0_102] : memref<2392x128xf32, #tpu.memory_space<vmem>>, vector<1x16xf32>
    %229 = vector.broadcast %228 : vector<1x16xf32> to vector<16x16xf32>
    %230 = arith.addf %227, %229 : vector<16x16xf32>
    %cst_103 = arith.constant 0.000000e+00 : f32
    %231 = vector.broadcast %cst_103 : f32 to vector<16x16xf32>
    %232 = arith.maximumf %230, %231 : vector<16x16xf32>
    %c608 = arith.constant 608 : index
    %c0_104 = arith.constant 0 : index
    %233 = vector.load %arg1[%c608, %c0_104] : memref<2392x128xf32, #tpu.memory_space<vmem>>, vector<16x32xf32>
    %cst_105 = arith.constant dense<0.000000e+00> : vector<16x32xf32>
    %234 = tpu.matmul %232, %233, %cst_105 {dimension_numbers = #tpu.dot_dimension_numbers<[1], [0], [0], [1], [0, 0, 1, 1], [], []>} : vector<16x16xf32>, vector<16x32xf32>, vector<16x32xf32> -> vector<16x32xf32>
    %c1946 = arith.constant 1946 : index
    %c0_106 = arith.constant 0 : index
    %235 = vector.load %arg1[%c1946, %c0_106] : memref<2392x128xf32, #tpu.memory_space<vmem>>, vector<1x32xf32>
    %236 = vector.broadcast %235 : vector<1x32xf32> to vector<16x32xf32>
    %237 = arith.addf %234, %236 : vector<16x32xf32>
    %238 = arith.addf %225, %237 : vector<16x32xf32>
    %c1947 = arith.constant 1947 : index
    %c0_107 = arith.constant 0 : index
    %239 = vector.load %arg1[%c1947, %c0_107] : memref<2392x128xf32, #tpu.memory_space<vmem>>, vector<1x32xf32>
    %c1948 = arith.constant 1948 : index
    %c0_108 = arith.constant 0 : index
    %240 = vector.load %arg1[%c1948, %c0_108] : memref<2392x128xf32, #tpu.memory_space<vmem>>, vector<1x32xf32>
    %cst_109 = arith.constant dense<0.000000e+00> : vector<16xf32>
    %241 = vector.multi_reduction <add>, %238, %cst_109 [1] : vector<16x32xf32> to vector<16xf32>
    %242 = vector.shape_cast %241 : vector<16xf32> to vector<16x1xf32>
    %cst_110 = arith.constant 3.200000e+01 : f32
    %243 = vector.broadcast %cst_110 : f32 to vector<16x1xf32>
    %244 = arith.divf %242, %243 : vector<16x1xf32>
    %245 = vector.broadcast %244 : vector<16x1xf32> to vector<16x32xf32>
    %246 = arith.subf %238, %245 : vector<16x32xf32>
    %247 = arith.mulf %246, %246 : vector<16x32xf32>
    %cst_111 = arith.constant dense<0.000000e+00> : vector<16xf32>
    %248 = vector.multi_reduction <add>, %247, %cst_111 [1] : vector<16x32xf32> to vector<16xf32>
    %249 = vector.shape_cast %248 : vector<16xf32> to vector<16x1xf32>
    %cst_112 = arith.constant 3.200000e+01 : f32
    %250 = vector.broadcast %cst_112 : f32 to vector<16x1xf32>
    %251 = arith.divf %249, %250 : vector<16x1xf32>
    %cst_113 = arith.constant 9.99999974E-6 : f32
    %252 = vector.broadcast %cst_113 : f32 to vector<16x1xf32>
    %253 = arith.addf %251, %252 : vector<16x1xf32>
    %254 = math.rsqrt %253 : vector<16x1xf32>
    %255 = vector.broadcast %254 : vector<16x1xf32> to vector<16x32xf32>
    %256 = arith.mulf %246, %255 : vector<16x32xf32>
    %257 = vector.broadcast %239 : vector<1x32xf32> to vector<16x32xf32>
    %258 = arith.mulf %256, %257 : vector<16x32xf32>
    %259 = vector.broadcast %240 : vector<1x32xf32> to vector<16x32xf32>
    %260 = arith.addf %258, %259 : vector<16x32xf32>
    %c1958 = arith.constant 1958 : index
    %c0_114 = arith.constant 0 : index
    %261 = vector.load %arg1[%c1958, %c0_114] : memref<2392x128xf32, #tpu.memory_space<vmem>>, vector<1x32xf32>
    %c640 = arith.constant 640 : index
    %c0_115 = arith.constant 0 : index
    %262 = vector.load %arg1[%c640, %c0_115] : memref<2392x128xf32, #tpu.memory_space<vmem>>, vector<32x16xf32>
    %cst_116 = arith.constant dense<0.000000e+00> : vector<16x16xf32>
    %263 = tpu.matmul %260, %262, %cst_116 {dimension_numbers = #tpu.dot_dimension_numbers<[1], [0], [0], [1], [0, 0, 1, 1], [], []>} : vector<16x32xf32>, vector<32x16xf32>, vector<16x16xf32> -> vector<16x16xf32>
    %c1952 = arith.constant 1952 : index
    %c0_117 = arith.constant 0 : index
    %264 = vector.load %arg1[%c1952, %c0_117] : memref<2392x128xf32, #tpu.memory_space<vmem>>, vector<1x16xf32>
    %265 = vector.broadcast %264 : vector<1x16xf32> to vector<16x16xf32>
    %266 = arith.addf %263, %265 : vector<16x16xf32>
    %c672 = arith.constant 672 : index
    %c0_118 = arith.constant 0 : index
    %267 = vector.load %arg1[%c672, %c0_118] : memref<2392x128xf32, #tpu.memory_space<vmem>>, vector<32x16xf32>
    %cst_119 = arith.constant dense<0.000000e+00> : vector<16x16xf32>
    %268 = tpu.matmul %260, %267, %cst_119 {dimension_numbers = #tpu.dot_dimension_numbers<[1], [0], [0], [1], [0, 0, 1, 1], [], []>} : vector<16x32xf32>, vector<32x16xf32>, vector<16x16xf32> -> vector<16x16xf32>
    %c1953 = arith.constant 1953 : index
    %c0_120 = arith.constant 0 : index
    %269 = vector.load %arg1[%c1953, %c0_120] : memref<2392x128xf32, #tpu.memory_space<vmem>>, vector<1x16xf32>
    %270 = vector.broadcast %269 : vector<1x16xf32> to vector<16x16xf32>
    %271 = arith.addf %268, %270 : vector<16x16xf32>
    %c704 = arith.constant 704 : index
    %c0_121 = arith.constant 0 : index
    %272 = vector.load %arg1[%c704, %c0_121] : memref<2392x128xf32, #tpu.memory_space<vmem>>, vector<32x16xf32>
    %cst_122 = arith.constant dense<0.000000e+00> : vector<16x16xf32>
    %273 = tpu.matmul %260, %272, %cst_122 {dimension_numbers = #tpu.dot_dimension_numbers<[1], [0], [0], [1], [0, 0, 1, 1], [], []>} : vector<16x32xf32>, vector<32x16xf32>, vector<16x16xf32> -> vector<16x16xf32>
    %c1954 = arith.constant 1954 : index
    %c0_123 = arith.constant 0 : index
    %274 = vector.load %arg1[%c1954, %c0_123] : memref<2392x128xf32, #tpu.memory_space<vmem>>, vector<1x16xf32>
    %275 = vector.broadcast %274 : vector<1x16xf32> to vector<16x16xf32>
    %276 = arith.addf %273, %275 : vector<16x16xf32>
    %cst_124 = arith.constant 2.500000e-01 : f32
    %277 = vector.broadcast %cst_124 : f32 to vector<16x16xf32>
    %278 = arith.mulf %266, %277 : vector<16x16xf32>
    %cst_125 = arith.constant dense<0.000000e+00> : vector<16x16xf32>
    %279 = tpu.matmul %278, %271, %cst_125 {dimension_numbers = #tpu.dot_dimension_numbers<[1], [1], [0], [0], [0, 0, 1, 0], [], []>} : vector<16x16xf32>, vector<16x16xf32>, vector<16x16xf32> -> vector<16x16xf32>
    %280 = arith.addf %279, %8 : vector<16x16xf32>
    %cst_126 = arith.constant dense<0xFF800000> : vector<16xf32>
    %281 = vector.multi_reduction <maximumf>, %280, %cst_126 [1] : vector<16x16xf32> to vector<16xf32>
    %282 = vector.shape_cast %281 : vector<16xf32> to vector<16x1xf32>
    %283 = vector.broadcast %282 : vector<16x1xf32> to vector<16x16xf32>
    %284 = arith.subf %280, %283 : vector<16x16xf32>
    %285 = math.exp %284 : vector<16x16xf32>
    %cst_127 = arith.constant dense<0.000000e+00> : vector<16xf32>
    %286 = vector.multi_reduction <add>, %285, %cst_127 [1] : vector<16x16xf32> to vector<16xf32>
    %287 = vector.shape_cast %286 : vector<16xf32> to vector<16x1xf32>
    %288 = tpu.reciprocal %287 : vector<16x1xf32> -> vector<16x1xf32>
    %289 = vector.broadcast %288 : vector<16x1xf32> to vector<16x16xf32>
    %290 = arith.mulf %285, %289 : vector<16x16xf32>
    %cst_128 = arith.constant dense<0.000000e+00> : vector<16x16xf32>
    %291 = tpu.matmul %290, %276, %cst_128 {dimension_numbers = #tpu.dot_dimension_numbers<[1], [0], [0], [1], [0, 0, 1, 1], [], []>} : vector<16x16xf32>, vector<16x16xf32>, vector<16x16xf32> -> vector<16x16xf32>
    %c832 = arith.constant 832 : index
    %c0_129 = arith.constant 0 : index
    %292 = vector.load %arg1[%c832, %c0_129] : memref<2392x128xf32, #tpu.memory_space<vmem>>, vector<16x32xf32>
    %cst_130 = arith.constant dense<0.000000e+00> : vector<16x32xf32>
    %293 = tpu.matmul %291, %292, %cst_130 {dimension_numbers = #tpu.dot_dimension_numbers<[1], [0], [0], [1], [0, 0, 1, 1], [], []>} : vector<16x16xf32>, vector<16x32xf32>, vector<16x32xf32> -> vector<16x32xf32>
    %294 = vector.broadcast %261 : vector<1x32xf32> to vector<16x32xf32>
    %295 = arith.addf %294, %293 : vector<16x32xf32>
    %c736 = arith.constant 736 : index
    %c0_131 = arith.constant 0 : index
    %296 = vector.load %arg1[%c736, %c0_131] : memref<2392x128xf32, #tpu.memory_space<vmem>>, vector<32x16xf32>
    %cst_132 = arith.constant dense<0.000000e+00> : vector<16x16xf32>
    %297 = tpu.matmul %260, %296, %cst_132 {dimension_numbers = #tpu.dot_dimension_numbers<[1], [0], [0], [1], [0, 0, 1, 1], [], []>} : vector<16x32xf32>, vector<32x16xf32>, vector<16x16xf32> -> vector<16x16xf32>
    %c1955 = arith.constant 1955 : index
    %c0_133 = arith.constant 0 : index
    %298 = vector.load %arg1[%c1955, %c0_133] : memref<2392x128xf32, #tpu.memory_space<vmem>>, vector<1x16xf32>
    %299 = vector.broadcast %298 : vector<1x16xf32> to vector<16x16xf32>
    %300 = arith.addf %297, %299 : vector<16x16xf32>
    %c768 = arith.constant 768 : index
    %c0_134 = arith.constant 0 : index
    %301 = vector.load %arg1[%c768, %c0_134] : memref<2392x128xf32, #tpu.memory_space<vmem>>, vector<32x16xf32>
    %cst_135 = arith.constant dense<0.000000e+00> : vector<16x16xf32>
    %302 = tpu.matmul %260, %301, %cst_135 {dimension_numbers = #tpu.dot_dimension_numbers<[1], [0], [0], [1], [0, 0, 1, 1], [], []>} : vector<16x32xf32>, vector<32x16xf32>, vector<16x16xf32> -> vector<16x16xf32>
    %c1956 = arith.constant 1956 : index
    %c0_136 = arith.constant 0 : index
    %303 = vector.load %arg1[%c1956, %c0_136] : memref<2392x128xf32, #tpu.memory_space<vmem>>, vector<1x16xf32>
    %304 = vector.broadcast %303 : vector<1x16xf32> to vector<16x16xf32>
    %305 = arith.addf %302, %304 : vector<16x16xf32>
    %c800 = arith.constant 800 : index
    %c0_137 = arith.constant 0 : index
    %306 = vector.load %arg1[%c800, %c0_137] : memref<2392x128xf32, #tpu.memory_space<vmem>>, vector<32x16xf32>
    %cst_138 = arith.constant dense<0.000000e+00> : vector<16x16xf32>
    %307 = tpu.matmul %260, %306, %cst_138 {dimension_numbers = #tpu.dot_dimension_numbers<[1], [0], [0], [1], [0, 0, 1, 1], [], []>} : vector<16x32xf32>, vector<32x16xf32>, vector<16x16xf32> -> vector<16x16xf32>
    %c1957 = arith.constant 1957 : index
    %c0_139 = arith.constant 0 : index
    %308 = vector.load %arg1[%c1957, %c0_139] : memref<2392x128xf32, #tpu.memory_space<vmem>>, vector<1x16xf32>
    %309 = vector.broadcast %308 : vector<1x16xf32> to vector<16x16xf32>
    %310 = arith.addf %307, %309 : vector<16x16xf32>
    %cst_140 = arith.constant 2.500000e-01 : f32
    %311 = vector.broadcast %cst_140 : f32 to vector<16x16xf32>
    %312 = arith.mulf %300, %311 : vector<16x16xf32>
    %cst_141 = arith.constant dense<0.000000e+00> : vector<16x16xf32>
    %313 = tpu.matmul %312, %305, %cst_141 {dimension_numbers = #tpu.dot_dimension_numbers<[1], [1], [0], [0], [0, 0, 1, 0], [], []>} : vector<16x16xf32>, vector<16x16xf32>, vector<16x16xf32> -> vector<16x16xf32>
    %314 = arith.addf %313, %8 : vector<16x16xf32>
    %cst_142 = arith.constant dense<0xFF800000> : vector<16xf32>
    %315 = vector.multi_reduction <maximumf>, %314, %cst_142 [1] : vector<16x16xf32> to vector<16xf32>
    %316 = vector.shape_cast %315 : vector<16xf32> to vector<16x1xf32>
    %317 = vector.broadcast %316 : vector<16x1xf32> to vector<16x16xf32>
    %318 = arith.subf %314, %317 : vector<16x16xf32>
    %319 = math.exp %318 : vector<16x16xf32>
    %cst_143 = arith.constant dense<0.000000e+00> : vector<16xf32>
    %320 = vector.multi_reduction <add>, %319, %cst_143 [1] : vector<16x16xf32> to vector<16xf32>
    %321 = vector.shape_cast %320 : vector<16xf32> to vector<16x1xf32>
    %322 = tpu.reciprocal %321 : vector<16x1xf32> -> vector<16x1xf32>
    %323 = vector.broadcast %322 : vector<16x1xf32> to vector<16x16xf32>
    %324 = arith.mulf %319, %323 : vector<16x16xf32>
    %cst_144 = arith.constant dense<0.000000e+00> : vector<16x16xf32>
    %325 = tpu.matmul %324, %310, %cst_144 {dimension_numbers = #tpu.dot_dimension_numbers<[1], [0], [0], [1], [0, 0, 1, 1], [], []>} : vector<16x16xf32>, vector<16x16xf32>, vector<16x16xf32> -> vector<16x16xf32>
    %c864 = arith.constant 864 : index
    %c0_145 = arith.constant 0 : index
    %326 = vector.load %arg1[%c864, %c0_145] : memref<2392x128xf32, #tpu.memory_space<vmem>>, vector<16x32xf32>
    %cst_146 = arith.constant dense<0.000000e+00> : vector<16x32xf32>
    %327 = tpu.matmul %325, %326, %cst_146 {dimension_numbers = #tpu.dot_dimension_numbers<[1], [0], [0], [1], [0, 0, 1, 1], [], []>} : vector<16x16xf32>, vector<16x32xf32>, vector<16x32xf32> -> vector<16x32xf32>
    %328 = arith.addf %295, %327 : vector<16x32xf32>
    %329 = arith.addf %260, %328 : vector<16x32xf32>
    %c1959 = arith.constant 1959 : index
    %c0_147 = arith.constant 0 : index
    %330 = vector.load %arg1[%c1959, %c0_147] : memref<2392x128xf32, #tpu.memory_space<vmem>>, vector<1x32xf32>
    %c1960 = arith.constant 1960 : index
    %c0_148 = arith.constant 0 : index
    %331 = vector.load %arg1[%c1960, %c0_148] : memref<2392x128xf32, #tpu.memory_space<vmem>>, vector<1x32xf32>
    %cst_149 = arith.constant dense<0.000000e+00> : vector<16xf32>
    %332 = vector.multi_reduction <add>, %329, %cst_149 [1] : vector<16x32xf32> to vector<16xf32>
    %333 = vector.shape_cast %332 : vector<16xf32> to vector<16x1xf32>
    %cst_150 = arith.constant 3.200000e+01 : f32
    %334 = vector.broadcast %cst_150 : f32 to vector<16x1xf32>
    %335 = arith.divf %333, %334 : vector<16x1xf32>
    %336 = vector.broadcast %335 : vector<16x1xf32> to vector<16x32xf32>
    %337 = arith.subf %329, %336 : vector<16x32xf32>
    %338 = arith.mulf %337, %337 : vector<16x32xf32>
    %cst_151 = arith.constant dense<0.000000e+00> : vector<16xf32>
    %339 = vector.multi_reduction <add>, %338, %cst_151 [1] : vector<16x32xf32> to vector<16xf32>
    %340 = vector.shape_cast %339 : vector<16xf32> to vector<16x1xf32>
    %cst_152 = arith.constant 3.200000e+01 : f32
    %341 = vector.broadcast %cst_152 : f32 to vector<16x1xf32>
    %342 = arith.divf %340, %341 : vector<16x1xf32>
    %cst_153 = arith.constant 9.99999974E-6 : f32
    %343 = vector.broadcast %cst_153 : f32 to vector<16x1xf32>
    %344 = arith.addf %342, %343 : vector<16x1xf32>
    %345 = math.rsqrt %344 : vector<16x1xf32>
    %346 = vector.broadcast %345 : vector<16x1xf32> to vector<16x32xf32>
    %347 = arith.mulf %337, %346 : vector<16x32xf32>
    %348 = vector.broadcast %330 : vector<1x32xf32> to vector<16x32xf32>
    %349 = arith.mulf %347, %348 : vector<16x32xf32>
    %350 = vector.broadcast %331 : vector<1x32xf32> to vector<16x32xf32>
    %351 = arith.addf %349, %350 : vector<16x32xf32>
    %c896 = arith.constant 896 : index
    %c0_154 = arith.constant 0 : index
    %352 = vector.load %arg1[%c896, %c0_154] : memref<2392x128xf32, #tpu.memory_space<vmem>>, vector<32x16xf32>
    %cst_155 = arith.constant dense<0.000000e+00> : vector<16x16xf32>
    %353 = tpu.matmul %351, %352, %cst_155 {dimension_numbers = #tpu.dot_dimension_numbers<[1], [0], [0], [1], [0, 0, 1, 1], [], []>} : vector<16x32xf32>, vector<32x16xf32>, vector<16x16xf32> -> vector<16x16xf32>
    %c1961 = arith.constant 1961 : index
    %c0_156 = arith.constant 0 : index
    %354 = vector.load %arg1[%c1961, %c0_156] : memref<2392x128xf32, #tpu.memory_space<vmem>>, vector<1x16xf32>
    %355 = vector.broadcast %354 : vector<1x16xf32> to vector<16x16xf32>
    %356 = arith.addf %353, %355 : vector<16x16xf32>
    %cst_157 = arith.constant 0.000000e+00 : f32
    %357 = vector.broadcast %cst_157 : f32 to vector<16x16xf32>
    %358 = arith.maximumf %356, %357 : vector<16x16xf32>
    %c928 = arith.constant 928 : index
    %c0_158 = arith.constant 0 : index
    %359 = vector.load %arg1[%c928, %c0_158] : memref<2392x128xf32, #tpu.memory_space<vmem>>, vector<16x32xf32>
    %cst_159 = arith.constant dense<0.000000e+00> : vector<16x32xf32>
    %360 = tpu.matmul %358, %359, %cst_159 {dimension_numbers = #tpu.dot_dimension_numbers<[1], [0], [0], [1], [0, 0, 1, 1], [], []>} : vector<16x16xf32>, vector<16x32xf32>, vector<16x32xf32> -> vector<16x32xf32>
    %c1962 = arith.constant 1962 : index
    %c0_160 = arith.constant 0 : index
    %361 = vector.load %arg1[%c1962, %c0_160] : memref<2392x128xf32, #tpu.memory_space<vmem>>, vector<1x32xf32>
    %362 = vector.broadcast %361 : vector<1x32xf32> to vector<16x32xf32>
    %363 = arith.addf %360, %362 : vector<16x32xf32>
    %364 = arith.addf %351, %363 : vector<16x32xf32>
    %c1963 = arith.constant 1963 : index
    %c0_161 = arith.constant 0 : index
    %365 = vector.load %arg1[%c1963, %c0_161] : memref<2392x128xf32, #tpu.memory_space<vmem>>, vector<1x32xf32>
    %c1964 = arith.constant 1964 : index
    %c0_162 = arith.constant 0 : index
    %366 = vector.load %arg1[%c1964, %c0_162] : memref<2392x128xf32, #tpu.memory_space<vmem>>, vector<1x32xf32>
    %cst_163 = arith.constant dense<0.000000e+00> : vector<16xf32>
    %367 = vector.multi_reduction <add>, %364, %cst_163 [1] : vector<16x32xf32> to vector<16xf32>
    %368 = vector.shape_cast %367 : vector<16xf32> to vector<16x1xf32>
    %cst_164 = arith.constant 3.200000e+01 : f32
    %369 = vector.broadcast %cst_164 : f32 to vector<16x1xf32>
    %370 = arith.divf %368, %369 : vector<16x1xf32>
    %371 = vector.broadcast %370 : vector<16x1xf32> to vector<16x32xf32>
    %372 = arith.subf %364, %371 : vector<16x32xf32>
    %373 = arith.mulf %372, %372 : vector<16x32xf32>
    %cst_165 = arith.constant dense<0.000000e+00> : vector<16xf32>
    %374 = vector.multi_reduction <add>, %373, %cst_165 [1] : vector<16x32xf32> to vector<16xf32>
    %375 = vector.shape_cast %374 : vector<16xf32> to vector<16x1xf32>
    %cst_166 = arith.constant 3.200000e+01 : f32
    %376 = vector.broadcast %cst_166 : f32 to vector<16x1xf32>
    %377 = arith.divf %375, %376 : vector<16x1xf32>
    %cst_167 = arith.constant 9.99999974E-6 : f32
    %378 = vector.broadcast %cst_167 : f32 to vector<16x1xf32>
    %379 = arith.addf %377, %378 : vector<16x1xf32>
    %380 = math.rsqrt %379 : vector<16x1xf32>
    %381 = vector.broadcast %380 : vector<16x1xf32> to vector<16x32xf32>
    %382 = arith.mulf %372, %381 : vector<16x32xf32>
    %383 = vector.broadcast %365 : vector<1x32xf32> to vector<16x32xf32>
    %384 = arith.mulf %382, %383 : vector<16x32xf32>
    %385 = vector.broadcast %366 : vector<1x32xf32> to vector<16x32xf32>
    %386 = arith.addf %384, %385 : vector<16x32xf32>
    %c1974 = arith.constant 1974 : index
    %c0_168 = arith.constant 0 : index
    %387 = vector.load %arg1[%c1974, %c0_168] : memref<2392x128xf32, #tpu.memory_space<vmem>>, vector<1x32xf32>
    %c960 = arith.constant 960 : index
    %c0_169 = arith.constant 0 : index
    %388 = vector.load %arg1[%c960, %c0_169] : memref<2392x128xf32, #tpu.memory_space<vmem>>, vector<32x16xf32>
    %cst_170 = arith.constant dense<0.000000e+00> : vector<16x16xf32>
    %389 = tpu.matmul %386, %388, %cst_170 {dimension_numbers = #tpu.dot_dimension_numbers<[1], [0], [0], [1], [0, 0, 1, 1], [], []>} : vector<16x32xf32>, vector<32x16xf32>, vector<16x16xf32> -> vector<16x16xf32>
    %c1968 = arith.constant 1968 : index
    %c0_171 = arith.constant 0 : index
    %390 = vector.load %arg1[%c1968, %c0_171] : memref<2392x128xf32, #tpu.memory_space<vmem>>, vector<1x16xf32>
    %391 = vector.broadcast %390 : vector<1x16xf32> to vector<16x16xf32>
    %392 = arith.addf %389, %391 : vector<16x16xf32>
    %c992 = arith.constant 992 : index
    %c0_172 = arith.constant 0 : index
    %393 = vector.load %arg1[%c992, %c0_172] : memref<2392x128xf32, #tpu.memory_space<vmem>>, vector<32x16xf32>
    %cst_173 = arith.constant dense<0.000000e+00> : vector<16x16xf32>
    %394 = tpu.matmul %386, %393, %cst_173 {dimension_numbers = #tpu.dot_dimension_numbers<[1], [0], [0], [1], [0, 0, 1, 1], [], []>} : vector<16x32xf32>, vector<32x16xf32>, vector<16x16xf32> -> vector<16x16xf32>
    %c1969 = arith.constant 1969 : index
    %c0_174 = arith.constant 0 : index
    %395 = vector.load %arg1[%c1969, %c0_174] : memref<2392x128xf32, #tpu.memory_space<vmem>>, vector<1x16xf32>
    %396 = vector.broadcast %395 : vector<1x16xf32> to vector<16x16xf32>
    %397 = arith.addf %394, %396 : vector<16x16xf32>
    %c1024 = arith.constant 1024 : index
    %c0_175 = arith.constant 0 : index
    %398 = vector.load %arg1[%c1024, %c0_175] : memref<2392x128xf32, #tpu.memory_space<vmem>>, vector<32x16xf32>
    %cst_176 = arith.constant dense<0.000000e+00> : vector<16x16xf32>
    %399 = tpu.matmul %386, %398, %cst_176 {dimension_numbers = #tpu.dot_dimension_numbers<[1], [0], [0], [1], [0, 0, 1, 1], [], []>} : vector<16x32xf32>, vector<32x16xf32>, vector<16x16xf32> -> vector<16x16xf32>
    %c1970 = arith.constant 1970 : index
    %c0_177 = arith.constant 0 : index
    %400 = vector.load %arg1[%c1970, %c0_177] : memref<2392x128xf32, #tpu.memory_space<vmem>>, vector<1x16xf32>
    %401 = vector.broadcast %400 : vector<1x16xf32> to vector<16x16xf32>
    %402 = arith.addf %399, %401 : vector<16x16xf32>
    %cst_178 = arith.constant 2.500000e-01 : f32
    %403 = vector.broadcast %cst_178 : f32 to vector<16x16xf32>
    %404 = arith.mulf %392, %403 : vector<16x16xf32>
    %cst_179 = arith.constant dense<0.000000e+00> : vector<16x16xf32>
    %405 = tpu.matmul %404, %397, %cst_179 {dimension_numbers = #tpu.dot_dimension_numbers<[1], [1], [0], [0], [0, 0, 1, 0], [], []>} : vector<16x16xf32>, vector<16x16xf32>, vector<16x16xf32> -> vector<16x16xf32>
    %406 = arith.addf %405, %8 : vector<16x16xf32>
    %cst_180 = arith.constant dense<0xFF800000> : vector<16xf32>
    %407 = vector.multi_reduction <maximumf>, %406, %cst_180 [1] : vector<16x16xf32> to vector<16xf32>
    %408 = vector.shape_cast %407 : vector<16xf32> to vector<16x1xf32>
    %409 = vector.broadcast %408 : vector<16x1xf32> to vector<16x16xf32>
    %410 = arith.subf %406, %409 : vector<16x16xf32>
    %411 = math.exp %410 : vector<16x16xf32>
    %cst_181 = arith.constant dense<0.000000e+00> : vector<16xf32>
    %412 = vector.multi_reduction <add>, %411, %cst_181 [1] : vector<16x16xf32> to vector<16xf32>
    %413 = vector.shape_cast %412 : vector<16xf32> to vector<16x1xf32>
    %414 = tpu.reciprocal %413 : vector<16x1xf32> -> vector<16x1xf32>
    %415 = vector.broadcast %414 : vector<16x1xf32> to vector<16x16xf32>
    %416 = arith.mulf %411, %415 : vector<16x16xf32>
    %cst_182 = arith.constant dense<0.000000e+00> : vector<16x16xf32>
    %417 = tpu.matmul %416, %402, %cst_182 {dimension_numbers = #tpu.dot_dimension_numbers<[1], [0], [0], [1], [0, 0, 1, 1], [], []>} : vector<16x16xf32>, vector<16x16xf32>, vector<16x16xf32> -> vector<16x16xf32>
    %c1152 = arith.constant 1152 : index
    %c0_183 = arith.constant 0 : index
    %418 = vector.load %arg1[%c1152, %c0_183] : memref<2392x128xf32, #tpu.memory_space<vmem>>, vector<16x32xf32>
    %cst_184 = arith.constant dense<0.000000e+00> : vector<16x32xf32>
    %419 = tpu.matmul %417, %418, %cst_184 {dimension_numbers = #tpu.dot_dimension_numbers<[1], [0], [0], [1], [0, 0, 1, 1], [], []>} : vector<16x16xf32>, vector<16x32xf32>, vector<16x32xf32> -> vector<16x32xf32>
    %420 = vector.broadcast %387 : vector<1x32xf32> to vector<16x32xf32>
    %421 = arith.addf %420, %419 : vector<16x32xf32>
    %c1056 = arith.constant 1056 : index
    %c0_185 = arith.constant 0 : index
    %422 = vector.load %arg1[%c1056, %c0_185] : memref<2392x128xf32, #tpu.memory_space<vmem>>, vector<32x16xf32>
    %cst_186 = arith.constant dense<0.000000e+00> : vector<16x16xf32>
    %423 = tpu.matmul %386, %422, %cst_186 {dimension_numbers = #tpu.dot_dimension_numbers<[1], [0], [0], [1], [0, 0, 1, 1], [], []>} : vector<16x32xf32>, vector<32x16xf32>, vector<16x16xf32> -> vector<16x16xf32>
    %c1971 = arith.constant 1971 : index
    %c0_187 = arith.constant 0 : index
    %424 = vector.load %arg1[%c1971, %c0_187] : memref<2392x128xf32, #tpu.memory_space<vmem>>, vector<1x16xf32>
    %425 = vector.broadcast %424 : vector<1x16xf32> to vector<16x16xf32>
    %426 = arith.addf %423, %425 : vector<16x16xf32>
    %c1088 = arith.constant 1088 : index
    %c0_188 = arith.constant 0 : index
    %427 = vector.load %arg1[%c1088, %c0_188] : memref<2392x128xf32, #tpu.memory_space<vmem>>, vector<32x16xf32>
    %cst_189 = arith.constant dense<0.000000e+00> : vector<16x16xf32>
    %428 = tpu.matmul %386, %427, %cst_189 {dimension_numbers = #tpu.dot_dimension_numbers<[1], [0], [0], [1], [0, 0, 1, 1], [], []>} : vector<16x32xf32>, vector<32x16xf32>, vector<16x16xf32> -> vector<16x16xf32>
    %c1972 = arith.constant 1972 : index
    %c0_190 = arith.constant 0 : index
    %429 = vector.load %arg1[%c1972, %c0_190] : memref<2392x128xf32, #tpu.memory_space<vmem>>, vector<1x16xf32>
    %430 = vector.broadcast %429 : vector<1x16xf32> to vector<16x16xf32>
    %431 = arith.addf %428, %430 : vector<16x16xf32>
    %c1120 = arith.constant 1120 : index
    %c0_191 = arith.constant 0 : index
    %432 = vector.load %arg1[%c1120, %c0_191] : memref<2392x128xf32, #tpu.memory_space<vmem>>, vector<32x16xf32>
    %cst_192 = arith.constant dense<0.000000e+00> : vector<16x16xf32>
    %433 = tpu.matmul %386, %432, %cst_192 {dimension_numbers = #tpu.dot_dimension_numbers<[1], [0], [0], [1], [0, 0, 1, 1], [], []>} : vector<16x32xf32>, vector<32x16xf32>, vector<16x16xf32> -> vector<16x16xf32>
    %c1973 = arith.constant 1973 : index
    %c0_193 = arith.constant 0 : index
    %434 = vector.load %arg1[%c1973, %c0_193] : memref<2392x128xf32, #tpu.memory_space<vmem>>, vector<1x16xf32>
    %435 = vector.broadcast %434 : vector<1x16xf32> to vector<16x16xf32>
    %436 = arith.addf %433, %435 : vector<16x16xf32>
    %cst_194 = arith.constant 2.500000e-01 : f32
    %437 = vector.broadcast %cst_194 : f32 to vector<16x16xf32>
    %438 = arith.mulf %426, %437 : vector<16x16xf32>
    %cst_195 = arith.constant dense<0.000000e+00> : vector<16x16xf32>
    %439 = tpu.matmul %438, %431, %cst_195 {dimension_numbers = #tpu.dot_dimension_numbers<[1], [1], [0], [0], [0, 0, 1, 0], [], []>} : vector<16x16xf32>, vector<16x16xf32>, vector<16x16xf32> -> vector<16x16xf32>
    %440 = arith.addf %439, %8 : vector<16x16xf32>
    %cst_196 = arith.constant dense<0xFF800000> : vector<16xf32>
    %441 = vector.multi_reduction <maximumf>, %440, %cst_196 [1] : vector<16x16xf32> to vector<16xf32>
    %442 = vector.shape_cast %441 : vector<16xf32> to vector<16x1xf32>
    %443 = vector.broadcast %442 : vector<16x1xf32> to vector<16x16xf32>
    %444 = arith.subf %440, %443 : vector<16x16xf32>
    %445 = math.exp %444 : vector<16x16xf32>
    %cst_197 = arith.constant dense<0.000000e+00> : vector<16xf32>
    %446 = vector.multi_reduction <add>, %445, %cst_197 [1] : vector<16x16xf32> to vector<16xf32>
    %447 = vector.shape_cast %446 : vector<16xf32> to vector<16x1xf32>
    %448 = tpu.reciprocal %447 : vector<16x1xf32> -> vector<16x1xf32>
    %449 = vector.broadcast %448 : vector<16x1xf32> to vector<16x16xf32>
    %450 = arith.mulf %445, %449 : vector<16x16xf32>
    %cst_198 = arith.constant dense<0.000000e+00> : vector<16x16xf32>
    %451 = tpu.matmul %450, %436, %cst_198 {dimension_numbers = #tpu.dot_dimension_numbers<[1], [0], [0], [1], [0, 0, 1, 1], [], []>} : vector<16x16xf32>, vector<16x16xf32>, vector<16x16xf32> -> vector<16x16xf32>
    %c1184 = arith.constant 1184 : index
    %c0_199 = arith.constant 0 : index
    %452 = vector.load %arg1[%c1184, %c0_199] : memref<2392x128xf32, #tpu.memory_space<vmem>>, vector<16x32xf32>
    %cst_200 = arith.constant dense<0.000000e+00> : vector<16x32xf32>
    %453 = tpu.matmul %451, %452, %cst_200 {dimension_numbers = #tpu.dot_dimension_numbers<[1], [0], [0], [1], [0, 0, 1, 1], [], []>} : vector<16x16xf32>, vector<16x32xf32>, vector<16x32xf32> -> vector<16x32xf32>
    %454 = arith.addf %421, %453 : vector<16x32xf32>
    %455 = arith.addf %386, %454 : vector<16x32xf32>
    %c1975 = arith.constant 1975 : index
    %c0_201 = arith.constant 0 : index
    %456 = vector.load %arg1[%c1975, %c0_201] : memref<2392x128xf32, #tpu.memory_space<vmem>>, vector<1x32xf32>
    %c1976 = arith.constant 1976 : index
    %c0_202 = arith.constant 0 : index
    %457 = vector.load %arg1[%c1976, %c0_202] : memref<2392x128xf32, #tpu.memory_space<vmem>>, vector<1x32xf32>
    %cst_203 = arith.constant dense<0.000000e+00> : vector<16xf32>
    %458 = vector.multi_reduction <add>, %455, %cst_203 [1] : vector<16x32xf32> to vector<16xf32>
    %459 = vector.shape_cast %458 : vector<16xf32> to vector<16x1xf32>
    %cst_204 = arith.constant 3.200000e+01 : f32
    %460 = vector.broadcast %cst_204 : f32 to vector<16x1xf32>
    %461 = arith.divf %459, %460 : vector<16x1xf32>
    %462 = vector.broadcast %461 : vector<16x1xf32> to vector<16x32xf32>
    %463 = arith.subf %455, %462 : vector<16x32xf32>
    %464 = arith.mulf %463, %463 : vector<16x32xf32>
    %cst_205 = arith.constant dense<0.000000e+00> : vector<16xf32>
    %465 = vector.multi_reduction <add>, %464, %cst_205 [1] : vector<16x32xf32> to vector<16xf32>
    %466 = vector.shape_cast %465 : vector<16xf32> to vector<16x1xf32>
    %cst_206 = arith.constant 3.200000e+01 : f32
    %467 = vector.broadcast %cst_206 : f32 to vector<16x1xf32>
    %468 = arith.divf %466, %467 : vector<16x1xf32>
    %cst_207 = arith.constant 9.99999974E-6 : f32
    %469 = vector.broadcast %cst_207 : f32 to vector<16x1xf32>
    %470 = arith.addf %468, %469 : vector<16x1xf32>
    %471 = math.rsqrt %470 : vector<16x1xf32>
    %472 = vector.broadcast %471 : vector<16x1xf32> to vector<16x32xf32>
    %473 = arith.mulf %463, %472 : vector<16x32xf32>
    %474 = vector.broadcast %456 : vector<1x32xf32> to vector<16x32xf32>
    %475 = arith.mulf %473, %474 : vector<16x32xf32>
    %476 = vector.broadcast %457 : vector<1x32xf32> to vector<16x32xf32>
    %477 = arith.addf %475, %476 : vector<16x32xf32>
    %c1216 = arith.constant 1216 : index
    %c0_208 = arith.constant 0 : index
    %478 = vector.load %arg1[%c1216, %c0_208] : memref<2392x128xf32, #tpu.memory_space<vmem>>, vector<32x16xf32>
    %cst_209 = arith.constant dense<0.000000e+00> : vector<16x16xf32>
    %479 = tpu.matmul %477, %478, %cst_209 {dimension_numbers = #tpu.dot_dimension_numbers<[1], [0], [0], [1], [0, 0, 1, 1], [], []>} : vector<16x32xf32>, vector<32x16xf32>, vector<16x16xf32> -> vector<16x16xf32>
    %c1977 = arith.constant 1977 : index
    %c0_210 = arith.constant 0 : index
    %480 = vector.load %arg1[%c1977, %c0_210] : memref<2392x128xf32, #tpu.memory_space<vmem>>, vector<1x16xf32>
    %481 = vector.broadcast %480 : vector<1x16xf32> to vector<16x16xf32>
    %482 = arith.addf %479, %481 : vector<16x16xf32>
    %cst_211 = arith.constant 0.000000e+00 : f32
    %483 = vector.broadcast %cst_211 : f32 to vector<16x16xf32>
    %484 = arith.maximumf %482, %483 : vector<16x16xf32>
    %c1248 = arith.constant 1248 : index
    %c0_212 = arith.constant 0 : index
    %485 = vector.load %arg1[%c1248, %c0_212] : memref<2392x128xf32, #tpu.memory_space<vmem>>, vector<16x32xf32>
    %cst_213 = arith.constant dense<0.000000e+00> : vector<16x32xf32>
    %486 = tpu.matmul %484, %485, %cst_213 {dimension_numbers = #tpu.dot_dimension_numbers<[1], [0], [0], [1], [0, 0, 1, 1], [], []>} : vector<16x16xf32>, vector<16x32xf32>, vector<16x32xf32> -> vector<16x32xf32>
    %c1978 = arith.constant 1978 : index
    %c0_214 = arith.constant 0 : index
    %487 = vector.load %arg1[%c1978, %c0_214] : memref<2392x128xf32, #tpu.memory_space<vmem>>, vector<1x32xf32>
    %488 = vector.broadcast %487 : vector<1x32xf32> to vector<16x32xf32>
    %489 = arith.addf %486, %488 : vector<16x32xf32>
    %490 = arith.addf %477, %489 : vector<16x32xf32>
    %c1979 = arith.constant 1979 : index
    %c0_215 = arith.constant 0 : index
    %491 = vector.load %arg1[%c1979, %c0_215] : memref<2392x128xf32, #tpu.memory_space<vmem>>, vector<1x32xf32>
    %c1980 = arith.constant 1980 : index
    %c0_216 = arith.constant 0 : index
    %492 = vector.load %arg1[%c1980, %c0_216] : memref<2392x128xf32, #tpu.memory_space<vmem>>, vector<1x32xf32>
    %cst_217 = arith.constant dense<0.000000e+00> : vector<16xf32>
    %493 = vector.multi_reduction <add>, %490, %cst_217 [1] : vector<16x32xf32> to vector<16xf32>
    %494 = vector.shape_cast %493 : vector<16xf32> to vector<16x1xf32>
    %cst_218 = arith.constant 3.200000e+01 : f32
    %495 = vector.broadcast %cst_218 : f32 to vector<16x1xf32>
    %496 = arith.divf %494, %495 : vector<16x1xf32>
    %497 = vector.broadcast %496 : vector<16x1xf32> to vector<16x32xf32>
    %498 = arith.subf %490, %497 : vector<16x32xf32>
    %499 = arith.mulf %498, %498 : vector<16x32xf32>
    %cst_219 = arith.constant dense<0.000000e+00> : vector<16xf32>
    %500 = vector.multi_reduction <add>, %499, %cst_219 [1] : vector<16x32xf32> to vector<16xf32>
    %501 = vector.shape_cast %500 : vector<16xf32> to vector<16x1xf32>
    %cst_220 = arith.constant 3.200000e+01 : f32
    %502 = vector.broadcast %cst_220 : f32 to vector<16x1xf32>
    %503 = arith.divf %501, %502 : vector<16x1xf32>
    %cst_221 = arith.constant 9.99999974E-6 : f32
    %504 = vector.broadcast %cst_221 : f32 to vector<16x1xf32>
    %505 = arith.addf %503, %504 : vector<16x1xf32>
    %506 = math.rsqrt %505 : vector<16x1xf32>
    %507 = vector.broadcast %506 : vector<16x1xf32> to vector<16x32xf32>
    %508 = arith.mulf %498, %507 : vector<16x32xf32>
    %509 = vector.broadcast %491 : vector<1x32xf32> to vector<16x32xf32>
    %510 = arith.mulf %508, %509 : vector<16x32xf32>
    %511 = vector.broadcast %492 : vector<1x32xf32> to vector<16x32xf32>
    %512 = arith.addf %510, %511 : vector<16x32xf32>
    %c1990 = arith.constant 1990 : index
    %c0_222 = arith.constant 0 : index
    %513 = vector.load %arg1[%c1990, %c0_222] : memref<2392x128xf32, #tpu.memory_space<vmem>>, vector<1x32xf32>
    %c1280 = arith.constant 1280 : index
    %c0_223 = arith.constant 0 : index
    %514 = vector.load %arg1[%c1280, %c0_223] : memref<2392x128xf32, #tpu.memory_space<vmem>>, vector<32x16xf32>
    %cst_224 = arith.constant dense<0.000000e+00> : vector<16x16xf32>
    %515 = tpu.matmul %512, %514, %cst_224 {dimension_numbers = #tpu.dot_dimension_numbers<[1], [0], [0], [1], [0, 0, 1, 1], [], []>} : vector<16x32xf32>, vector<32x16xf32>, vector<16x16xf32> -> vector<16x16xf32>
    %c1984 = arith.constant 1984 : index
    %c0_225 = arith.constant 0 : index
    %516 = vector.load %arg1[%c1984, %c0_225] : memref<2392x128xf32, #tpu.memory_space<vmem>>, vector<1x16xf32>
    %517 = vector.broadcast %516 : vector<1x16xf32> to vector<16x16xf32>
    %518 = arith.addf %515, %517 : vector<16x16xf32>
    %c1312 = arith.constant 1312 : index
    %c0_226 = arith.constant 0 : index
    %519 = vector.load %arg1[%c1312, %c0_226] : memref<2392x128xf32, #tpu.memory_space<vmem>>, vector<32x16xf32>
    %cst_227 = arith.constant dense<0.000000e+00> : vector<16x16xf32>
    %520 = tpu.matmul %512, %519, %cst_227 {dimension_numbers = #tpu.dot_dimension_numbers<[1], [0], [0], [1], [0, 0, 1, 1], [], []>} : vector<16x32xf32>, vector<32x16xf32>, vector<16x16xf32> -> vector<16x16xf32>
    %c1985 = arith.constant 1985 : index
    %c0_228 = arith.constant 0 : index
    %521 = vector.load %arg1[%c1985, %c0_228] : memref<2392x128xf32, #tpu.memory_space<vmem>>, vector<1x16xf32>
    %522 = vector.broadcast %521 : vector<1x16xf32> to vector<16x16xf32>
    %523 = arith.addf %520, %522 : vector<16x16xf32>
    %c1344 = arith.constant 1344 : index
    %c0_229 = arith.constant 0 : index
    %524 = vector.load %arg1[%c1344, %c0_229] : memref<2392x128xf32, #tpu.memory_space<vmem>>, vector<32x16xf32>
    %cst_230 = arith.constant dense<0.000000e+00> : vector<16x16xf32>
    %525 = tpu.matmul %512, %524, %cst_230 {dimension_numbers = #tpu.dot_dimension_numbers<[1], [0], [0], [1], [0, 0, 1, 1], [], []>} : vector<16x32xf32>, vector<32x16xf32>, vector<16x16xf32> -> vector<16x16xf32>
    %c1986 = arith.constant 1986 : index
    %c0_231 = arith.constant 0 : index
    %526 = vector.load %arg1[%c1986, %c0_231] : memref<2392x128xf32, #tpu.memory_space<vmem>>, vector<1x16xf32>
    %527 = vector.broadcast %526 : vector<1x16xf32> to vector<16x16xf32>
    %528 = arith.addf %525, %527 : vector<16x16xf32>
    %cst_232 = arith.constant 2.500000e-01 : f32
    %529 = vector.broadcast %cst_232 : f32 to vector<16x16xf32>
    %530 = arith.mulf %518, %529 : vector<16x16xf32>
    %cst_233 = arith.constant dense<0.000000e+00> : vector<16x16xf32>
    %531 = tpu.matmul %530, %523, %cst_233 {dimension_numbers = #tpu.dot_dimension_numbers<[1], [1], [0], [0], [0, 0, 1, 0], [], []>} : vector<16x16xf32>, vector<16x16xf32>, vector<16x16xf32> -> vector<16x16xf32>
    %532 = arith.addf %531, %8 : vector<16x16xf32>
    %cst_234 = arith.constant dense<0xFF800000> : vector<16xf32>
    %533 = vector.multi_reduction <maximumf>, %532, %cst_234 [1] : vector<16x16xf32> to vector<16xf32>
    %534 = vector.shape_cast %533 : vector<16xf32> to vector<16x1xf32>
    %535 = vector.broadcast %534 : vector<16x1xf32> to vector<16x16xf32>
    %536 = arith.subf %532, %535 : vector<16x16xf32>
    %537 = math.exp %536 : vector<16x16xf32>
    %cst_235 = arith.constant dense<0.000000e+00> : vector<16xf32>
    %538 = vector.multi_reduction <add>, %537, %cst_235 [1] : vector<16x16xf32> to vector<16xf32>
    %539 = vector.shape_cast %538 : vector<16xf32> to vector<16x1xf32>
    %540 = tpu.reciprocal %539 : vector<16x1xf32> -> vector<16x1xf32>
    %541 = vector.broadcast %540 : vector<16x1xf32> to vector<16x16xf32>
    %542 = arith.mulf %537, %541 : vector<16x16xf32>
    %cst_236 = arith.constant dense<0.000000e+00> : vector<16x16xf32>
    %543 = tpu.matmul %542, %528, %cst_236 {dimension_numbers = #tpu.dot_dimension_numbers<[1], [0], [0], [1], [0, 0, 1, 1], [], []>} : vector<16x16xf32>, vector<16x16xf32>, vector<16x16xf32> -> vector<16x16xf32>
    %c1472 = arith.constant 1472 : index
    %c0_237 = arith.constant 0 : index
    %544 = vector.load %arg1[%c1472, %c0_237] : memref<2392x128xf32, #tpu.memory_space<vmem>>, vector<16x32xf32>
    %cst_238 = arith.constant dense<0.000000e+00> : vector<16x32xf32>
    %545 = tpu.matmul %543, %544, %cst_238 {dimension_numbers = #tpu.dot_dimension_numbers<[1], [0], [0], [1], [0, 0, 1, 1], [], []>} : vector<16x16xf32>, vector<16x32xf32>, vector<16x32xf32> -> vector<16x32xf32>
    %546 = vector.broadcast %513 : vector<1x32xf32> to vector<16x32xf32>
    %547 = arith.addf %546, %545 : vector<16x32xf32>
    %c1376 = arith.constant 1376 : index
    %c0_239 = arith.constant 0 : index
    %548 = vector.load %arg1[%c1376, %c0_239] : memref<2392x128xf32, #tpu.memory_space<vmem>>, vector<32x16xf32>
    %cst_240 = arith.constant dense<0.000000e+00> : vector<16x16xf32>
    %549 = tpu.matmul %512, %548, %cst_240 {dimension_numbers = #tpu.dot_dimension_numbers<[1], [0], [0], [1], [0, 0, 1, 1], [], []>} : vector<16x32xf32>, vector<32x16xf32>, vector<16x16xf32> -> vector<16x16xf32>
    %c1987 = arith.constant 1987 : index
    %c0_241 = arith.constant 0 : index
    %550 = vector.load %arg1[%c1987, %c0_241] : memref<2392x128xf32, #tpu.memory_space<vmem>>, vector<1x16xf32>
    %551 = vector.broadcast %550 : vector<1x16xf32> to vector<16x16xf32>
    %552 = arith.addf %549, %551 : vector<16x16xf32>
    %c1408 = arith.constant 1408 : index
    %c0_242 = arith.constant 0 : index
    %553 = vector.load %arg1[%c1408, %c0_242] : memref<2392x128xf32, #tpu.memory_space<vmem>>, vector<32x16xf32>
    %cst_243 = arith.constant dense<0.000000e+00> : vector<16x16xf32>
    %554 = tpu.matmul %512, %553, %cst_243 {dimension_numbers = #tpu.dot_dimension_numbers<[1], [0], [0], [1], [0, 0, 1, 1], [], []>} : vector<16x32xf32>, vector<32x16xf32>, vector<16x16xf32> -> vector<16x16xf32>
    %c1988 = arith.constant 1988 : index
    %c0_244 = arith.constant 0 : index
    %555 = vector.load %arg1[%c1988, %c0_244] : memref<2392x128xf32, #tpu.memory_space<vmem>>, vector<1x16xf32>
    %556 = vector.broadcast %555 : vector<1x16xf32> to vector<16x16xf32>
    %557 = arith.addf %554, %556 : vector<16x16xf32>
    %c1440 = arith.constant 1440 : index
    %c0_245 = arith.constant 0 : index
    %558 = vector.load %arg1[%c1440, %c0_245] : memref<2392x128xf32, #tpu.memory_space<vmem>>, vector<32x16xf32>
    %cst_246 = arith.constant dense<0.000000e+00> : vector<16x16xf32>
    %559 = tpu.matmul %512, %558, %cst_246 {dimension_numbers = #tpu.dot_dimension_numbers<[1], [0], [0], [1], [0, 0, 1, 1], [], []>} : vector<16x32xf32>, vector<32x16xf32>, vector<16x16xf32> -> vector<16x16xf32>
    %c1989 = arith.constant 1989 : index
    %c0_247 = arith.constant 0 : index
    %560 = vector.load %arg1[%c1989, %c0_247] : memref<2392x128xf32, #tpu.memory_space<vmem>>, vector<1x16xf32>
    %561 = vector.broadcast %560 : vector<1x16xf32> to vector<16x16xf32>
    %562 = arith.addf %559, %561 : vector<16x16xf32>
    %cst_248 = arith.constant 2.500000e-01 : f32
    %563 = vector.broadcast %cst_248 : f32 to vector<16x16xf32>
    %564 = arith.mulf %552, %563 : vector<16x16xf32>
    %cst_249 = arith.constant dense<0.000000e+00> : vector<16x16xf32>
    %565 = tpu.matmul %564, %557, %cst_249 {dimension_numbers = #tpu.dot_dimension_numbers<[1], [1], [0], [0], [0, 0, 1, 0], [], []>} : vector<16x16xf32>, vector<16x16xf32>, vector<16x16xf32> -> vector<16x16xf32>
    %566 = arith.addf %565, %8 : vector<16x16xf32>
    %cst_250 = arith.constant dense<0xFF800000> : vector<16xf32>
    %567 = vector.multi_reduction <maximumf>, %566, %cst_250 [1] : vector<16x16xf32> to vector<16xf32>
    %568 = vector.shape_cast %567 : vector<16xf32> to vector<16x1xf32>
    %569 = vector.broadcast %568 : vector<16x1xf32> to vector<16x16xf32>
    %570 = arith.subf %566, %569 : vector<16x16xf32>
    %571 = math.exp %570 : vector<16x16xf32>
    %cst_251 = arith.constant dense<0.000000e+00> : vector<16xf32>
    %572 = vector.multi_reduction <add>, %571, %cst_251 [1] : vector<16x16xf32> to vector<16xf32>
    %573 = vector.shape_cast %572 : vector<16xf32> to vector<16x1xf32>
    %574 = tpu.reciprocal %573 : vector<16x1xf32> -> vector<16x1xf32>
    %575 = vector.broadcast %574 : vector<16x1xf32> to vector<16x16xf32>
    %576 = arith.mulf %571, %575 : vector<16x16xf32>
    %cst_252 = arith.constant dense<0.000000e+00> : vector<16x16xf32>
    %577 = tpu.matmul %576, %562, %cst_252 {dimension_numbers = #tpu.dot_dimension_numbers<[1], [0], [0], [1], [0, 0, 1, 1], [], []>} : vector<16x16xf32>, vector<16x16xf32>, vector<16x16xf32> -> vector<16x16xf32>
    %c1504 = arith.constant 1504 : index
    %c0_253 = arith.constant 0 : index
    %578 = vector.load %arg1[%c1504, %c0_253] : memref<2392x128xf32, #tpu.memory_space<vmem>>, vector<16x32xf32>
    %cst_254 = arith.constant dense<0.000000e+00> : vector<16x32xf32>
    %579 = tpu.matmul %577, %578, %cst_254 {dimension_numbers = #tpu.dot_dimension_numbers<[1], [0], [0], [1], [0, 0, 1, 1], [], []>} : vector<16x16xf32>, vector<16x32xf32>, vector<16x32xf32> -> vector<16x32xf32>
    %580 = arith.addf %547, %579 : vector<16x32xf32>
    %581 = arith.addf %512, %580 : vector<16x32xf32>
    %c1991 = arith.constant 1991 : index
    %c0_255 = arith.constant 0 : index
    %582 = vector.load %arg1[%c1991, %c0_255] : memref<2392x128xf32, #tpu.memory_space<vmem>>, vector<1x32xf32>
    %c1992 = arith.constant 1992 : index
    %c0_256 = arith.constant 0 : index
    %583 = vector.load %arg1[%c1992, %c0_256] : memref<2392x128xf32, #tpu.memory_space<vmem>>, vector<1x32xf32>
    %cst_257 = arith.constant dense<0.000000e+00> : vector<16xf32>
    %584 = vector.multi_reduction <add>, %581, %cst_257 [1] : vector<16x32xf32> to vector<16xf32>
    %585 = vector.shape_cast %584 : vector<16xf32> to vector<16x1xf32>
    %cst_258 = arith.constant 3.200000e+01 : f32
    %586 = vector.broadcast %cst_258 : f32 to vector<16x1xf32>
    %587 = arith.divf %585, %586 : vector<16x1xf32>
    %588 = vector.broadcast %587 : vector<16x1xf32> to vector<16x32xf32>
    %589 = arith.subf %581, %588 : vector<16x32xf32>
    %590 = arith.mulf %589, %589 : vector<16x32xf32>
    %cst_259 = arith.constant dense<0.000000e+00> : vector<16xf32>
    %591 = vector.multi_reduction <add>, %590, %cst_259 [1] : vector<16x32xf32> to vector<16xf32>
    %592 = vector.shape_cast %591 : vector<16xf32> to vector<16x1xf32>
    %cst_260 = arith.constant 3.200000e+01 : f32
    %593 = vector.broadcast %cst_260 : f32 to vector<16x1xf32>
    %594 = arith.divf %592, %593 : vector<16x1xf32>
    %cst_261 = arith.constant 9.99999974E-6 : f32
    %595 = vector.broadcast %cst_261 : f32 to vector<16x1xf32>
    %596 = arith.addf %594, %595 : vector<16x1xf32>
    %597 = math.rsqrt %596 : vector<16x1xf32>
    %598 = vector.broadcast %597 : vector<16x1xf32> to vector<16x32xf32>
    %599 = arith.mulf %589, %598 : vector<16x32xf32>
    %600 = vector.broadcast %582 : vector<1x32xf32> to vector<16x32xf32>
    %601 = arith.mulf %599, %600 : vector<16x32xf32>
    %602 = vector.broadcast %583 : vector<1x32xf32> to vector<16x32xf32>
    %603 = arith.addf %601, %602 : vector<16x32xf32>
    %c1536 = arith.constant 1536 : index
    %c0_262 = arith.constant 0 : index
    %604 = vector.load %arg1[%c1536, %c0_262] : memref<2392x128xf32, #tpu.memory_space<vmem>>, vector<32x16xf32>
    %cst_263 = arith.constant dense<0.000000e+00> : vector<16x16xf32>
    %605 = tpu.matmul %603, %604, %cst_263 {dimension_numbers = #tpu.dot_dimension_numbers<[1], [0], [0], [1], [0, 0, 1, 1], [], []>} : vector<16x32xf32>, vector<32x16xf32>, vector<16x16xf32> -> vector<16x16xf32>
    %c1993 = arith.constant 1993 : index
    %c0_264 = arith.constant 0 : index
    %606 = vector.load %arg1[%c1993, %c0_264] : memref<2392x128xf32, #tpu.memory_space<vmem>>, vector<1x16xf32>
    %607 = vector.broadcast %606 : vector<1x16xf32> to vector<16x16xf32>
    %608 = arith.addf %605, %607 : vector<16x16xf32>
    %cst_265 = arith.constant 0.000000e+00 : f32
    %609 = vector.broadcast %cst_265 : f32 to vector<16x16xf32>
    %610 = arith.maximumf %608, %609 : vector<16x16xf32>
    %c1568 = arith.constant 1568 : index
    %c0_266 = arith.constant 0 : index
    %611 = vector.load %arg1[%c1568, %c0_266] : memref<2392x128xf32, #tpu.memory_space<vmem>>, vector<16x32xf32>
    %cst_267 = arith.constant dense<0.000000e+00> : vector<16x32xf32>
    %612 = tpu.matmul %610, %611, %cst_267 {dimension_numbers = #tpu.dot_dimension_numbers<[1], [0], [0], [1], [0, 0, 1, 1], [], []>} : vector<16x16xf32>, vector<16x32xf32>, vector<16x32xf32> -> vector<16x32xf32>
    %c1994 = arith.constant 1994 : index
    %c0_268 = arith.constant 0 : index
    %613 = vector.load %arg1[%c1994, %c0_268] : memref<2392x128xf32, #tpu.memory_space<vmem>>, vector<1x32xf32>
    %614 = vector.broadcast %613 : vector<1x32xf32> to vector<16x32xf32>
    %615 = arith.addf %612, %614 : vector<16x32xf32>
    %616 = arith.addf %603, %615 : vector<16x32xf32>
    %c1995 = arith.constant 1995 : index
    %c0_269 = arith.constant 0 : index
    %617 = vector.load %arg1[%c1995, %c0_269] : memref<2392x128xf32, #tpu.memory_space<vmem>>, vector<1x32xf32>
    %c1996 = arith.constant 1996 : index
    %c0_270 = arith.constant 0 : index
    %618 = vector.load %arg1[%c1996, %c0_270] : memref<2392x128xf32, #tpu.memory_space<vmem>>, vector<1x32xf32>
    %cst_271 = arith.constant dense<0.000000e+00> : vector<16xf32>
    %619 = vector.multi_reduction <add>, %616, %cst_271 [1] : vector<16x32xf32> to vector<16xf32>
    %620 = vector.shape_cast %619 : vector<16xf32> to vector<16x1xf32>
    %cst_272 = arith.constant 3.200000e+01 : f32
    %621 = vector.broadcast %cst_272 : f32 to vector<16x1xf32>
    %622 = arith.divf %620, %621 : vector<16x1xf32>
    %623 = vector.broadcast %622 : vector<16x1xf32> to vector<16x32xf32>
    %624 = arith.subf %616, %623 : vector<16x32xf32>
    %625 = arith.mulf %624, %624 : vector<16x32xf32>
    %cst_273 = arith.constant dense<0.000000e+00> : vector<16xf32>
    %626 = vector.multi_reduction <add>, %625, %cst_273 [1] : vector<16x32xf32> to vector<16xf32>
    %627 = vector.shape_cast %626 : vector<16xf32> to vector<16x1xf32>
    %cst_274 = arith.constant 3.200000e+01 : f32
    %628 = vector.broadcast %cst_274 : f32 to vector<16x1xf32>
    %629 = arith.divf %627, %628 : vector<16x1xf32>
    %cst_275 = arith.constant 9.99999974E-6 : f32
    %630 = vector.broadcast %cst_275 : f32 to vector<16x1xf32>
    %631 = arith.addf %629, %630 : vector<16x1xf32>
    %632 = math.rsqrt %631 : vector<16x1xf32>
    %633 = vector.broadcast %632 : vector<16x1xf32> to vector<16x32xf32>
    %634 = arith.mulf %624, %633 : vector<16x32xf32>
    %635 = vector.broadcast %617 : vector<1x32xf32> to vector<16x32xf32>
    %636 = arith.mulf %634, %635 : vector<16x32xf32>
    %637 = vector.broadcast %618 : vector<1x32xf32> to vector<16x32xf32>
    %638 = arith.addf %636, %637 : vector<16x32xf32>
    %c2006 = arith.constant 2006 : index
    %c0_276 = arith.constant 0 : index
    %639 = vector.load %arg1[%c2006, %c0_276] : memref<2392x128xf32, #tpu.memory_space<vmem>>, vector<1x32xf32>
    %c1600 = arith.constant 1600 : index
    %c0_277 = arith.constant 0 : index
    %640 = vector.load %arg1[%c1600, %c0_277] : memref<2392x128xf32, #tpu.memory_space<vmem>>, vector<32x16xf32>
    %cst_278 = arith.constant dense<0.000000e+00> : vector<16x16xf32>
    %641 = tpu.matmul %638, %640, %cst_278 {dimension_numbers = #tpu.dot_dimension_numbers<[1], [0], [0], [1], [0, 0, 1, 1], [], []>} : vector<16x32xf32>, vector<32x16xf32>, vector<16x16xf32> -> vector<16x16xf32>
    %c2000 = arith.constant 2000 : index
    %c0_279 = arith.constant 0 : index
    %642 = vector.load %arg1[%c2000, %c0_279] : memref<2392x128xf32, #tpu.memory_space<vmem>>, vector<1x16xf32>
    %643 = vector.broadcast %642 : vector<1x16xf32> to vector<16x16xf32>
    %644 = arith.addf %641, %643 : vector<16x16xf32>
    %c1632 = arith.constant 1632 : index
    %c0_280 = arith.constant 0 : index
    %645 = vector.load %arg1[%c1632, %c0_280] : memref<2392x128xf32, #tpu.memory_space<vmem>>, vector<32x16xf32>
    %cst_281 = arith.constant dense<0.000000e+00> : vector<16x16xf32>
    %646 = tpu.matmul %638, %645, %cst_281 {dimension_numbers = #tpu.dot_dimension_numbers<[1], [0], [0], [1], [0, 0, 1, 1], [], []>} : vector<16x32xf32>, vector<32x16xf32>, vector<16x16xf32> -> vector<16x16xf32>
    %c2001 = arith.constant 2001 : index
    %c0_282 = arith.constant 0 : index
    %647 = vector.load %arg1[%c2001, %c0_282] : memref<2392x128xf32, #tpu.memory_space<vmem>>, vector<1x16xf32>
    %648 = vector.broadcast %647 : vector<1x16xf32> to vector<16x16xf32>
    %649 = arith.addf %646, %648 : vector<16x16xf32>
    %c1664 = arith.constant 1664 : index
    %c0_283 = arith.constant 0 : index
    %650 = vector.load %arg1[%c1664, %c0_283] : memref<2392x128xf32, #tpu.memory_space<vmem>>, vector<32x16xf32>
    %cst_284 = arith.constant dense<0.000000e+00> : vector<16x16xf32>
    %651 = tpu.matmul %638, %650, %cst_284 {dimension_numbers = #tpu.dot_dimension_numbers<[1], [0], [0], [1], [0, 0, 1, 1], [], []>} : vector<16x32xf32>, vector<32x16xf32>, vector<16x16xf32> -> vector<16x16xf32>
    %c2002 = arith.constant 2002 : index
    %c0_285 = arith.constant 0 : index
    %652 = vector.load %arg1[%c2002, %c0_285] : memref<2392x128xf32, #tpu.memory_space<vmem>>, vector<1x16xf32>
    %653 = vector.broadcast %652 : vector<1x16xf32> to vector<16x16xf32>
    %654 = arith.addf %651, %653 : vector<16x16xf32>
    %cst_286 = arith.constant 2.500000e-01 : f32
    %655 = vector.broadcast %cst_286 : f32 to vector<16x16xf32>
    %656 = arith.mulf %644, %655 : vector<16x16xf32>
    %cst_287 = arith.constant dense<0.000000e+00> : vector<16x16xf32>
    %657 = tpu.matmul %656, %649, %cst_287 {dimension_numbers = #tpu.dot_dimension_numbers<[1], [1], [0], [0], [0, 0, 1, 0], [], []>} : vector<16x16xf32>, vector<16x16xf32>, vector<16x16xf32> -> vector<16x16xf32>
    %658 = arith.addf %657, %8 : vector<16x16xf32>
    %cst_288 = arith.constant dense<0xFF800000> : vector<16xf32>
    %659 = vector.multi_reduction <maximumf>, %658, %cst_288 [1] : vector<16x16xf32> to vector<16xf32>
    %660 = vector.shape_cast %659 : vector<16xf32> to vector<16x1xf32>
    %661 = vector.broadcast %660 : vector<16x1xf32> to vector<16x16xf32>
    %662 = arith.subf %658, %661 : vector<16x16xf32>
    %663 = math.exp %662 : vector<16x16xf32>
    %cst_289 = arith.constant dense<0.000000e+00> : vector<16xf32>
    %664 = vector.multi_reduction <add>, %663, %cst_289 [1] : vector<16x16xf32> to vector<16xf32>
    %665 = vector.shape_cast %664 : vector<16xf32> to vector<16x1xf32>
    %666 = tpu.reciprocal %665 : vector<16x1xf32> -> vector<16x1xf32>
    %667 = vector.broadcast %666 : vector<16x1xf32> to vector<16x16xf32>
    %668 = arith.mulf %663, %667 : vector<16x16xf32>
    %cst_290 = arith.constant dense<0.000000e+00> : vector<16x16xf32>
    %669 = tpu.matmul %668, %654, %cst_290 {dimension_numbers = #tpu.dot_dimension_numbers<[1], [0], [0], [1], [0, 0, 1, 1], [], []>} : vector<16x16xf32>, vector<16x16xf32>, vector<16x16xf32> -> vector<16x16xf32>
    %c1792 = arith.constant 1792 : index
    %c0_291 = arith.constant 0 : index
    %670 = vector.load %arg1[%c1792, %c0_291] : memref<2392x128xf32, #tpu.memory_space<vmem>>, vector<16x32xf32>
    %cst_292 = arith.constant dense<0.000000e+00> : vector<16x32xf32>
    %671 = tpu.matmul %669, %670, %cst_292 {dimension_numbers = #tpu.dot_dimension_numbers<[1], [0], [0], [1], [0, 0, 1, 1], [], []>} : vector<16x16xf32>, vector<16x32xf32>, vector<16x32xf32> -> vector<16x32xf32>
    %672 = vector.broadcast %639 : vector<1x32xf32> to vector<16x32xf32>
    %673 = arith.addf %672, %671 : vector<16x32xf32>
    %c1696 = arith.constant 1696 : index
    %c0_293 = arith.constant 0 : index
    %674 = vector.load %arg1[%c1696, %c0_293] : memref<2392x128xf32, #tpu.memory_space<vmem>>, vector<32x16xf32>
    %cst_294 = arith.constant dense<0.000000e+00> : vector<16x16xf32>
    %675 = tpu.matmul %638, %674, %cst_294 {dimension_numbers = #tpu.dot_dimension_numbers<[1], [0], [0], [1], [0, 0, 1, 1], [], []>} : vector<16x32xf32>, vector<32x16xf32>, vector<16x16xf32> -> vector<16x16xf32>
    %c2003 = arith.constant 2003 : index
    %c0_295 = arith.constant 0 : index
    %676 = vector.load %arg1[%c2003, %c0_295] : memref<2392x128xf32, #tpu.memory_space<vmem>>, vector<1x16xf32>
    %677 = vector.broadcast %676 : vector<1x16xf32> to vector<16x16xf32>
    %678 = arith.addf %675, %677 : vector<16x16xf32>
    %c1728 = arith.constant 1728 : index
    %c0_296 = arith.constant 0 : index
    %679 = vector.load %arg1[%c1728, %c0_296] : memref<2392x128xf32, #tpu.memory_space<vmem>>, vector<32x16xf32>
    %cst_297 = arith.constant dense<0.000000e+00> : vector<16x16xf32>
    %680 = tpu.matmul %638, %679, %cst_297 {dimension_numbers = #tpu.dot_dimension_numbers<[1], [0], [0], [1], [0, 0, 1, 1], [], []>} : vector<16x32xf32>, vector<32x16xf32>, vector<16x16xf32> -> vector<16x16xf32>
    %c2004 = arith.constant 2004 : index
    %c0_298 = arith.constant 0 : index
    %681 = vector.load %arg1[%c2004, %c0_298] : memref<2392x128xf32, #tpu.memory_space<vmem>>, vector<1x16xf32>
    %682 = vector.broadcast %681 : vector<1x16xf32> to vector<16x16xf32>
    %683 = arith.addf %680, %682 : vector<16x16xf32>
    %c1760 = arith.constant 1760 : index
    %c0_299 = arith.constant 0 : index
    %684 = vector.load %arg1[%c1760, %c0_299] : memref<2392x128xf32, #tpu.memory_space<vmem>>, vector<32x16xf32>
    %cst_300 = arith.constant dense<0.000000e+00> : vector<16x16xf32>
    %685 = tpu.matmul %638, %684, %cst_300 {dimension_numbers = #tpu.dot_dimension_numbers<[1], [0], [0], [1], [0, 0, 1, 1], [], []>} : vector<16x32xf32>, vector<32x16xf32>, vector<16x16xf32> -> vector<16x16xf32>
    %c2005 = arith.constant 2005 : index
    %c0_301 = arith.constant 0 : index
    %686 = vector.load %arg1[%c2005, %c0_301] : memref<2392x128xf32, #tpu.memory_space<vmem>>, vector<1x16xf32>
    %687 = vector.broadcast %686 : vector<1x16xf32> to vector<16x16xf32>
    %688 = arith.addf %685, %687 : vector<16x16xf32>
    %cst_302 = arith.constant 2.500000e-01 : f32
    %689 = vector.broadcast %cst_302 : f32 to vector<16x16xf32>
    %690 = arith.mulf %678, %689 : vector<16x16xf32>
    %cst_303 = arith.constant dense<0.000000e+00> : vector<16x16xf32>
    %691 = tpu.matmul %690, %683, %cst_303 {dimension_numbers = #tpu.dot_dimension_numbers<[1], [1], [0], [0], [0, 0, 1, 0], [], []>} : vector<16x16xf32>, vector<16x16xf32>, vector<16x16xf32> -> vector<16x16xf32>
    %692 = arith.addf %691, %8 : vector<16x16xf32>
    %cst_304 = arith.constant dense<0xFF800000> : vector<16xf32>
    %693 = vector.multi_reduction <maximumf>, %692, %cst_304 [1] : vector<16x16xf32> to vector<16xf32>
    %694 = vector.shape_cast %693 : vector<16xf32> to vector<16x1xf32>
    %695 = vector.broadcast %694 : vector<16x1xf32> to vector<16x16xf32>
    %696 = arith.subf %692, %695 : vector<16x16xf32>
    %697 = math.exp %696 : vector<16x16xf32>
    %cst_305 = arith.constant dense<0.000000e+00> : vector<16xf32>
    %698 = vector.multi_reduction <add>, %697, %cst_305 [1] : vector<16x16xf32> to vector<16xf32>
    %699 = vector.shape_cast %698 : vector<16xf32> to vector<16x1xf32>
    %700 = tpu.reciprocal %699 : vector<16x1xf32> -> vector<16x1xf32>
    %701 = vector.broadcast %700 : vector<16x1xf32> to vector<16x16xf32>
    %702 = arith.mulf %697, %701 : vector<16x16xf32>
    %cst_306 = arith.constant dense<0.000000e+00> : vector<16x16xf32>
    %703 = tpu.matmul %702, %688, %cst_306 {dimension_numbers = #tpu.dot_dimension_numbers<[1], [0], [0], [1], [0, 0, 1, 1], [], []>} : vector<16x16xf32>, vector<16x16xf32>, vector<16x16xf32> -> vector<16x16xf32>
    %c1824 = arith.constant 1824 : index
    %c0_307 = arith.constant 0 : index
    %704 = vector.load %arg1[%c1824, %c0_307] : memref<2392x128xf32, #tpu.memory_space<vmem>>, vector<16x32xf32>
    %cst_308 = arith.constant dense<0.000000e+00> : vector<16x32xf32>
    %705 = tpu.matmul %703, %704, %cst_308 {dimension_numbers = #tpu.dot_dimension_numbers<[1], [0], [0], [1], [0, 0, 1, 1], [], []>} : vector<16x16xf32>, vector<16x32xf32>, vector<16x32xf32> -> vector<16x32xf32>
    %706 = arith.addf %673, %705 : vector<16x32xf32>
    %707 = arith.addf %638, %706 : vector<16x32xf32>
    %c2007 = arith.constant 2007 : index
    %c0_309 = arith.constant 0 : index
    %708 = vector.load %arg1[%c2007, %c0_309] : memref<2392x128xf32, #tpu.memory_space<vmem>>, vector<1x32xf32>
    %c2008 = arith.constant 2008 : index
    %c0_310 = arith.constant 0 : index
    %709 = vector.load %arg1[%c2008, %c0_310] : memref<2392x128xf32, #tpu.memory_space<vmem>>, vector<1x32xf32>
    %cst_311 = arith.constant dense<0.000000e+00> : vector<16xf32>
    %710 = vector.multi_reduction <add>, %707, %cst_311 [1] : vector<16x32xf32> to vector<16xf32>
    %711 = vector.shape_cast %710 : vector<16xf32> to vector<16x1xf32>
    %cst_312 = arith.constant 3.200000e+01 : f32
    %712 = vector.broadcast %cst_312 : f32 to vector<16x1xf32>
    %713 = arith.divf %711, %712 : vector<16x1xf32>
    %714 = vector.broadcast %713 : vector<16x1xf32> to vector<16x32xf32>
    %715 = arith.subf %707, %714 : vector<16x32xf32>
    %716 = arith.mulf %715, %715 : vector<16x32xf32>
    %cst_313 = arith.constant dense<0.000000e+00> : vector<16xf32>
    %717 = vector.multi_reduction <add>, %716, %cst_313 [1] : vector<16x32xf32> to vector<16xf32>
    %718 = vector.shape_cast %717 : vector<16xf32> to vector<16x1xf32>
    %cst_314 = arith.constant 3.200000e+01 : f32
    %719 = vector.broadcast %cst_314 : f32 to vector<16x1xf32>
    %720 = arith.divf %718, %719 : vector<16x1xf32>
    %cst_315 = arith.constant 9.99999974E-6 : f32
    %721 = vector.broadcast %cst_315 : f32 to vector<16x1xf32>
    %722 = arith.addf %720, %721 : vector<16x1xf32>
    %723 = math.rsqrt %722 : vector<16x1xf32>
    %724 = vector.broadcast %723 : vector<16x1xf32> to vector<16x32xf32>
    %725 = arith.mulf %715, %724 : vector<16x32xf32>
    %726 = vector.broadcast %708 : vector<1x32xf32> to vector<16x32xf32>
    %727 = arith.mulf %725, %726 : vector<16x32xf32>
    %728 = vector.broadcast %709 : vector<1x32xf32> to vector<16x32xf32>
    %729 = arith.addf %727, %728 : vector<16x32xf32>
    %c1856 = arith.constant 1856 : index
    %c0_316 = arith.constant 0 : index
    %730 = vector.load %arg1[%c1856, %c0_316] : memref<2392x128xf32, #tpu.memory_space<vmem>>, vector<32x16xf32>
    %cst_317 = arith.constant dense<0.000000e+00> : vector<16x16xf32>
    %731 = tpu.matmul %729, %730, %cst_317 {dimension_numbers = #tpu.dot_dimension_numbers<[1], [0], [0], [1], [0, 0, 1, 1], [], []>} : vector<16x32xf32>, vector<32x16xf32>, vector<16x16xf32> -> vector<16x16xf32>
    %c2009 = arith.constant 2009 : index
    %c0_318 = arith.constant 0 : index
    %732 = vector.load %arg1[%c2009, %c0_318] : memref<2392x128xf32, #tpu.memory_space<vmem>>, vector<1x16xf32>
    %733 = vector.broadcast %732 : vector<1x16xf32> to vector<16x16xf32>
    %734 = arith.addf %731, %733 : vector<16x16xf32>
    %cst_319 = arith.constant 0.000000e+00 : f32
    %735 = vector.broadcast %cst_319 : f32 to vector<16x16xf32>
    %736 = arith.maximumf %734, %735 : vector<16x16xf32>
    %c1888 = arith.constant 1888 : index
    %c0_320 = arith.constant 0 : index
    %737 = vector.load %arg1[%c1888, %c0_320] : memref<2392x128xf32, #tpu.memory_space<vmem>>, vector<16x32xf32>
    %cst_321 = arith.constant dense<0.000000e+00> : vector<16x32xf32>
    %738 = tpu.matmul %736, %737, %cst_321 {dimension_numbers = #tpu.dot_dimension_numbers<[1], [0], [0], [1], [0, 0, 1, 1], [], []>} : vector<16x16xf32>, vector<16x32xf32>, vector<16x32xf32> -> vector<16x32xf32>
    %c2010 = arith.constant 2010 : index
    %c0_322 = arith.constant 0 : index
    %739 = vector.load %arg1[%c2010, %c0_322] : memref<2392x128xf32, #tpu.memory_space<vmem>>, vector<1x32xf32>
    %740 = vector.broadcast %739 : vector<1x32xf32> to vector<16x32xf32>
    %741 = arith.addf %738, %740 : vector<16x32xf32>
    %742 = arith.addf %729, %741 : vector<16x32xf32>
    %c2011 = arith.constant 2011 : index
    %c0_323 = arith.constant 0 : index
    %743 = vector.load %arg1[%c2011, %c0_323] : memref<2392x128xf32, #tpu.memory_space<vmem>>, vector<1x32xf32>
    %c2012 = arith.constant 2012 : index
    %c0_324 = arith.constant 0 : index
    %744 = vector.load %arg1[%c2012, %c0_324] : memref<2392x128xf32, #tpu.memory_space<vmem>>, vector<1x32xf32>
    %cst_325 = arith.constant dense<0.000000e+00> : vector<16xf32>
    %745 = vector.multi_reduction <add>, %742, %cst_325 [1] : vector<16x32xf32> to vector<16xf32>
    %746 = vector.shape_cast %745 : vector<16xf32> to vector<16x1xf32>
    %cst_326 = arith.constant 3.200000e+01 : f32
    %747 = vector.broadcast %cst_326 : f32 to vector<16x1xf32>
    %748 = arith.divf %746, %747 : vector<16x1xf32>
    %749 = vector.broadcast %748 : vector<16x1xf32> to vector<16x32xf32>
    %750 = arith.subf %742, %749 : vector<16x32xf32>
    %751 = arith.mulf %750, %750 : vector<16x32xf32>
    %cst_327 = arith.constant dense<0.000000e+00> : vector<16xf32>
    %752 = vector.multi_reduction <add>, %751, %cst_327 [1] : vector<16x32xf32> to vector<16xf32>
    %753 = vector.shape_cast %752 : vector<16xf32> to vector<16x1xf32>
    %cst_328 = arith.constant 3.200000e+01 : f32
    %754 = vector.broadcast %cst_328 : f32 to vector<16x1xf32>
    %755 = arith.divf %753, %754 : vector<16x1xf32>
    %cst_329 = arith.constant 9.99999974E-6 : f32
    %756 = vector.broadcast %cst_329 : f32 to vector<16x1xf32>
    %757 = arith.addf %755, %756 : vector<16x1xf32>
    %758 = math.rsqrt %757 : vector<16x1xf32>
    %759 = vector.broadcast %758 : vector<16x1xf32> to vector<16x32xf32>
    %760 = arith.mulf %750, %759 : vector<16x32xf32>
    %761 = vector.broadcast %743 : vector<1x32xf32> to vector<16x32xf32>
    %762 = arith.mulf %760, %761 : vector<16x32xf32>
    %763 = vector.broadcast %744 : vector<1x32xf32> to vector<16x32xf32>
    %764 = arith.addf %762, %763 : vector<16x32xf32>
    %c2377 = arith.constant 2377 : index
    %c0_330 = arith.constant 0 : index
    %765 = vector.load %arg1[%c2377, %c0_330] : memref<2392x128xf32, #tpu.memory_space<vmem>>, vector<1x32xf32>
    %c2378 = arith.constant 2378 : index
    %c0_331 = arith.constant 0 : index
    %766 = vector.load %arg1[%c2378, %c0_331] : memref<2392x128xf32, #tpu.memory_space<vmem>>, vector<1x32xf32>
    %cst_332 = arith.constant dense<0.000000e+00> : vector<16xf32>
    %767 = vector.multi_reduction <add>, %764, %cst_332 [1] : vector<16x32xf32> to vector<16xf32>
    %768 = vector.shape_cast %767 : vector<16xf32> to vector<16x1xf32>
    %cst_333 = arith.constant 3.200000e+01 : f32
    %769 = vector.broadcast %cst_333 : f32 to vector<16x1xf32>
    %770 = arith.divf %768, %769 : vector<16x1xf32>
    %771 = vector.broadcast %770 : vector<16x1xf32> to vector<16x32xf32>
    %772 = arith.subf %764, %771 : vector<16x32xf32>
    %773 = arith.mulf %772, %772 : vector<16x32xf32>
    %cst_334 = arith.constant dense<0.000000e+00> : vector<16xf32>
    %774 = vector.multi_reduction <add>, %773, %cst_334 [1] : vector<16x32xf32> to vector<16xf32>
    %775 = vector.shape_cast %774 : vector<16xf32> to vector<16x1xf32>
    %cst_335 = arith.constant 3.200000e+01 : f32
    %776 = vector.broadcast %cst_335 : f32 to vector<16x1xf32>
    %777 = arith.divf %775, %776 : vector<16x1xf32>
    %cst_336 = arith.constant 9.99999974E-6 : f32
    %778 = vector.broadcast %cst_336 : f32 to vector<16x1xf32>
    %779 = arith.addf %777, %778 : vector<16x1xf32>
    %780 = math.rsqrt %779 : vector<16x1xf32>
    %781 = vector.broadcast %780 : vector<16x1xf32> to vector<16x32xf32>
    %782 = arith.mulf %772, %781 : vector<16x32xf32>
    %783 = vector.broadcast %765 : vector<1x32xf32> to vector<16x32xf32>
    %784 = arith.mulf %782, %783 : vector<16x32xf32>
    %785 = vector.broadcast %766 : vector<1x32xf32> to vector<16x32xf32>
    %786 = arith.addf %784, %785 : vector<16x32xf32>
    %c2024 = arith.constant 2024 : index
    %c0_337 = arith.constant 0 : index
    %787 = vector.load %arg1[%c2024, %c0_337] : memref<2392x128xf32, #tpu.memory_space<vmem>>, vector<32x32xf32>
    %cst_338 = arith.constant dense<0.000000e+00> : vector<16x32xf32>
    %788 = tpu.matmul %786, %787, %cst_338 {dimension_numbers = #tpu.dot_dimension_numbers<[1], [0], [0], [1], [0, 0, 1, 1], [], []>} : vector<16x32xf32>, vector<32x32xf32>, vector<16x32xf32> -> vector<16x32xf32>
    %c2379 = arith.constant 2379 : index
    %c0_339 = arith.constant 0 : index
    %789 = vector.load %arg1[%c2379, %c0_339] : memref<2392x128xf32, #tpu.memory_space<vmem>>, vector<1x32xf32>
    %790 = vector.broadcast %789 : vector<1x32xf32> to vector<16x32xf32>
    %791 = arith.addf %788, %790 : vector<16x32xf32>
    %c2152 = arith.constant 2152 : index
    %c0_340 = arith.constant 0 : index
    %792 = vector.load %arg1[%c2152, %c0_340] : memref<2392x128xf32, #tpu.memory_space<vmem>>, vector<32x32xf32>
    %c2056 = arith.constant 2056 : index
    %c0_341 = arith.constant 0 : index
    %793 = vector.load %arg1[%c2056, %c0_341] : memref<2392x128xf32, #tpu.memory_space<vmem>>, vector<32x32xf32>
    %cst_342 = arith.constant dense<0.000000e+00> : vector<16x32xf32>
    %794 = tpu.matmul %786, %793, %cst_342 {dimension_numbers = #tpu.dot_dimension_numbers<[1], [0], [0], [1], [0, 0, 1, 1], [], []>} : vector<16x32xf32>, vector<32x32xf32>, vector<16x32xf32> -> vector<16x32xf32>
    %c2380 = arith.constant 2380 : index
    %c0_343 = arith.constant 0 : index
    %795 = vector.load %arg1[%c2380, %c0_343] : memref<2392x128xf32, #tpu.memory_space<vmem>>, vector<1x32xf32>
    %796 = vector.broadcast %795 : vector<1x32xf32> to vector<16x32xf32>
    %797 = arith.addf %794, %796 : vector<16x32xf32>
    %c2184 = arith.constant 2184 : index
    %c0_344 = arith.constant 0 : index
    %798 = vector.load %arg1[%c2184, %c0_344] : memref<2392x128xf32, #tpu.memory_space<vmem>>, vector<32x32xf32>
    %c2088 = arith.constant 2088 : index
    %c0_345 = arith.constant 0 : index
    %799 = vector.load %arg1[%c2088, %c0_345] : memref<2392x128xf32, #tpu.memory_space<vmem>>, vector<32x32xf32>
    %cst_346 = arith.constant dense<0.000000e+00> : vector<16x32xf32>
    %800 = tpu.matmul %786, %799, %cst_346 {dimension_numbers = #tpu.dot_dimension_numbers<[1], [0], [0], [1], [0, 0, 1, 1], [], []>} : vector<16x32xf32>, vector<32x32xf32>, vector<16x32xf32> -> vector<16x32xf32>
    %c2381 = arith.constant 2381 : index
    %c0_347 = arith.constant 0 : index
    %801 = vector.load %arg1[%c2381, %c0_347] : memref<2392x128xf32, #tpu.memory_space<vmem>>, vector<1x32xf32>
    %802 = vector.broadcast %801 : vector<1x32xf32> to vector<16x32xf32>
    %803 = arith.addf %800, %802 : vector<16x32xf32>
    %c2216 = arith.constant 2216 : index
    %c0_348 = arith.constant 0 : index
    %804 = vector.load %arg1[%c2216, %c0_348] : memref<2392x128xf32, #tpu.memory_space<vmem>>, vector<32x32xf32>
    %c2120 = arith.constant 2120 : index
    %c0_349 = arith.constant 0 : index
    %805 = vector.load %arg1[%c2120, %c0_349] : memref<2392x128xf32, #tpu.memory_space<vmem>>, vector<32x32xf32>
    %cst_350 = arith.constant dense<0.000000e+00> : vector<16x32xf32>
    %806 = tpu.matmul %786, %805, %cst_350 {dimension_numbers = #tpu.dot_dimension_numbers<[1], [0], [0], [1], [0, 0, 1, 1], [], []>} : vector<16x32xf32>, vector<32x32xf32>, vector<16x32xf32> -> vector<16x32xf32>
    %c2382 = arith.constant 2382 : index
    %c0_351 = arith.constant 0 : index
    %807 = vector.load %arg1[%c2382, %c0_351] : memref<2392x128xf32, #tpu.memory_space<vmem>>, vector<1x32xf32>
    %808 = vector.broadcast %807 : vector<1x32xf32> to vector<16x32xf32>
    %809 = arith.addf %806, %808 : vector<16x32xf32>
    %c2248 = arith.constant 2248 : index
    %c0_352 = arith.constant 0 : index
    %810 = vector.load %arg1[%c2248, %c0_352] : memref<2392x128xf32, #tpu.memory_space<vmem>>, vector<32x32xf32>
    %cst_353 = arith.constant 0.000000e+00 : f32
    %811 = vector.broadcast %cst_353 : f32 to vector<2x32xf32>
    %cst_354 = arith.constant 0.000000e+00 : f32
    %812 = vector.broadcast %cst_354 : f32 to vector<2x32xf32>
    %813 = vector.extract_strided_slice %791 {offsets = [0, 0], sizes = [2, 32], strides = [1, 1]} : vector<16x32xf32> to vector<2x32xf32>
    %cst_355 = arith.constant dense<0.000000e+00> : vector<2x32xf32>
    %814 = tpu.matmul %811, %792, %cst_355 {dimension_numbers = #tpu.dot_dimension_numbers<[1], [0], [0], [1], [0, 0, 1, 1], [], []>} : vector<2x32xf32>, vector<32x32xf32>, vector<2x32xf32> -> vector<2x32xf32>
    %815 = arith.addf %813, %814 : vector<2x32xf32>
    %816 = arith.negf %815 : vector<2x32xf32>
    %817 = math.exp %816 : vector<2x32xf32>
    %cst_356 = arith.constant 1.000000e+00 : f32
    %818 = vector.broadcast %cst_356 : f32 to vector<2x32xf32>
    %819 = arith.addf %818, %817 : vector<2x32xf32>
    %820 = arith.divf %818, %819 : vector<2x32xf32>
    %821 = vector.extract_strided_slice %797 {offsets = [0, 0], sizes = [2, 32], strides = [1, 1]} : vector<16x32xf32> to vector<2x32xf32>
    %cst_357 = arith.constant dense<0.000000e+00> : vector<2x32xf32>
    %822 = tpu.matmul %811, %798, %cst_357 {dimension_numbers = #tpu.dot_dimension_numbers<[1], [0], [0], [1], [0, 0, 1, 1], [], []>} : vector<2x32xf32>, vector<32x32xf32>, vector<2x32xf32> -> vector<2x32xf32>
    %823 = arith.addf %821, %822 : vector<2x32xf32>
    %824 = arith.negf %823 : vector<2x32xf32>
    %825 = math.exp %824 : vector<2x32xf32>
    %cst_358 = arith.constant 1.000000e+00 : f32
    %826 = vector.broadcast %cst_358 : f32 to vector<2x32xf32>
    %827 = arith.addf %826, %825 : vector<2x32xf32>
    %828 = arith.divf %826, %827 : vector<2x32xf32>
    %829 = vector.extract_strided_slice %803 {offsets = [0, 0], sizes = [2, 32], strides = [1, 1]} : vector<16x32xf32> to vector<2x32xf32>
    %cst_359 = arith.constant dense<0.000000e+00> : vector<2x32xf32>
    %830 = tpu.matmul %811, %804, %cst_359 {dimension_numbers = #tpu.dot_dimension_numbers<[1], [0], [0], [1], [0, 0, 1, 1], [], []>} : vector<2x32xf32>, vector<32x32xf32>, vector<2x32xf32> -> vector<2x32xf32>
    %831 = arith.addf %829, %830 : vector<2x32xf32>
    %832 = math.tanh %831 : vector<2x32xf32>
    %833 = vector.extract_strided_slice %809 {offsets = [0, 0], sizes = [2, 32], strides = [1, 1]} : vector<16x32xf32> to vector<2x32xf32>
    %cst_360 = arith.constant dense<0.000000e+00> : vector<2x32xf32>
    %834 = tpu.matmul %811, %810, %cst_360 {dimension_numbers = #tpu.dot_dimension_numbers<[1], [0], [0], [1], [0, 0, 1, 1], [], []>} : vector<2x32xf32>, vector<32x32xf32>, vector<2x32xf32> -> vector<2x32xf32>
    %835 = arith.addf %833, %834 : vector<2x32xf32>
    %836 = arith.negf %835 : vector<2x32xf32>
    %837 = math.exp %836 : vector<2x32xf32>
    %cst_361 = arith.constant 1.000000e+00 : f32
    %838 = vector.broadcast %cst_361 : f32 to vector<2x32xf32>
    %839 = arith.addf %838, %837 : vector<2x32xf32>
    %840 = arith.divf %838, %839 : vector<2x32xf32>
    %841 = arith.mulf %828, %812 : vector<2x32xf32>
    %842 = arith.mulf %820, %832 : vector<2x32xf32>
    %843 = arith.addf %841, %842 : vector<2x32xf32>
    %844 = math.tanh %843 : vector<2x32xf32>
    %845 = arith.mulf %840, %844 : vector<2x32xf32>
    %846 = vector.extract_strided_slice %791 {offsets = [2, 0], sizes = [2, 32], strides = [1, 1]} : vector<16x32xf32> to vector<2x32xf32>
    %cst_362 = arith.constant dense<0.000000e+00> : vector<2x32xf32>
    %847 = tpu.matmul %845, %792, %cst_362 {dimension_numbers = #tpu.dot_dimension_numbers<[1], [0], [0], [1], [0, 0, 1, 1], [], []>} : vector<2x32xf32>, vector<32x32xf32>, vector<2x32xf32> -> vector<2x32xf32>
    %848 = arith.addf %846, %847 : vector<2x32xf32>
    %849 = arith.negf %848 : vector<2x32xf32>
    %850 = math.exp %849 : vector<2x32xf32>
    %cst_363 = arith.constant 1.000000e+00 : f32
    %851 = vector.broadcast %cst_363 : f32 to vector<2x32xf32>
    %852 = arith.addf %851, %850 : vector<2x32xf32>
    %853 = arith.divf %851, %852 : vector<2x32xf32>
    %854 = vector.extract_strided_slice %797 {offsets = [2, 0], sizes = [2, 32], strides = [1, 1]} : vector<16x32xf32> to vector<2x32xf32>
    %cst_364 = arith.constant dense<0.000000e+00> : vector<2x32xf32>
    %855 = tpu.matmul %845, %798, %cst_364 {dimension_numbers = #tpu.dot_dimension_numbers<[1], [0], [0], [1], [0, 0, 1, 1], [], []>} : vector<2x32xf32>, vector<32x32xf32>, vector<2x32xf32> -> vector<2x32xf32>
    %856 = arith.addf %854, %855 : vector<2x32xf32>
    %857 = arith.negf %856 : vector<2x32xf32>
    %858 = math.exp %857 : vector<2x32xf32>
    %cst_365 = arith.constant 1.000000e+00 : f32
    %859 = vector.broadcast %cst_365 : f32 to vector<2x32xf32>
    %860 = arith.addf %859, %858 : vector<2x32xf32>
    %861 = arith.divf %859, %860 : vector<2x32xf32>
    %862 = vector.extract_strided_slice %803 {offsets = [2, 0], sizes = [2, 32], strides = [1, 1]} : vector<16x32xf32> to vector<2x32xf32>
    %cst_366 = arith.constant dense<0.000000e+00> : vector<2x32xf32>
    %863 = tpu.matmul %845, %804, %cst_366 {dimension_numbers = #tpu.dot_dimension_numbers<[1], [0], [0], [1], [0, 0, 1, 1], [], []>} : vector<2x32xf32>, vector<32x32xf32>, vector<2x32xf32> -> vector<2x32xf32>
    %864 = arith.addf %862, %863 : vector<2x32xf32>
    %865 = math.tanh %864 : vector<2x32xf32>
    %866 = vector.extract_strided_slice %809 {offsets = [2, 0], sizes = [2, 32], strides = [1, 1]} : vector<16x32xf32> to vector<2x32xf32>
    %cst_367 = arith.constant dense<0.000000e+00> : vector<2x32xf32>
    %867 = tpu.matmul %845, %810, %cst_367 {dimension_numbers = #tpu.dot_dimension_numbers<[1], [0], [0], [1], [0, 0, 1, 1], [], []>} : vector<2x32xf32>, vector<32x32xf32>, vector<2x32xf32> -> vector<2x32xf32>
    %868 = arith.addf %866, %867 : vector<2x32xf32>
    %869 = arith.negf %868 : vector<2x32xf32>
    %870 = math.exp %869 : vector<2x32xf32>
    %cst_368 = arith.constant 1.000000e+00 : f32
    %871 = vector.broadcast %cst_368 : f32 to vector<2x32xf32>
    %872 = arith.addf %871, %870 : vector<2x32xf32>
    %873 = arith.divf %871, %872 : vector<2x32xf32>
    %874 = arith.mulf %861, %843 : vector<2x32xf32>
    %875 = arith.mulf %853, %865 : vector<2x32xf32>
    %876 = arith.addf %874, %875 : vector<2x32xf32>
    %877 = math.tanh %876 : vector<2x32xf32>
    %878 = arith.mulf %873, %877 : vector<2x32xf32>
    %879 = vector.extract_strided_slice %791 {offsets = [4, 0], sizes = [2, 32], strides = [1, 1]} : vector<16x32xf32> to vector<2x32xf32>
    %cst_369 = arith.constant dense<0.000000e+00> : vector<2x32xf32>
    %880 = tpu.matmul %878, %792, %cst_369 {dimension_numbers = #tpu.dot_dimension_numbers<[1], [0], [0], [1], [0, 0, 1, 1], [], []>} : vector<2x32xf32>, vector<32x32xf32>, vector<2x32xf32> -> vector<2x32xf32>
    %881 = arith.addf %879, %880 : vector<2x32xf32>
    %882 = arith.negf %881 : vector<2x32xf32>
    %883 = math.exp %882 : vector<2x32xf32>
    %cst_370 = arith.constant 1.000000e+00 : f32
    %884 = vector.broadcast %cst_370 : f32 to vector<2x32xf32>
    %885 = arith.addf %884, %883 : vector<2x32xf32>
    %886 = arith.divf %884, %885 : vector<2x32xf32>
    %887 = vector.extract_strided_slice %797 {offsets = [4, 0], sizes = [2, 32], strides = [1, 1]} : vector<16x32xf32> to vector<2x32xf32>
    %cst_371 = arith.constant dense<0.000000e+00> : vector<2x32xf32>
    %888 = tpu.matmul %878, %798, %cst_371 {dimension_numbers = #tpu.dot_dimension_numbers<[1], [0], [0], [1], [0, 0, 1, 1], [], []>} : vector<2x32xf32>, vector<32x32xf32>, vector<2x32xf32> -> vector<2x32xf32>
    %889 = arith.addf %887, %888 : vector<2x32xf32>
    %890 = arith.negf %889 : vector<2x32xf32>
    %891 = math.exp %890 : vector<2x32xf32>
    %cst_372 = arith.constant 1.000000e+00 : f32
    %892 = vector.broadcast %cst_372 : f32 to vector<2x32xf32>
    %893 = arith.addf %892, %891 : vector<2x32xf32>
    %894 = arith.divf %892, %893 : vector<2x32xf32>
    %895 = vector.extract_strided_slice %803 {offsets = [4, 0], sizes = [2, 32], strides = [1, 1]} : vector<16x32xf32> to vector<2x32xf32>
    %cst_373 = arith.constant dense<0.000000e+00> : vector<2x32xf32>
    %896 = tpu.matmul %878, %804, %cst_373 {dimension_numbers = #tpu.dot_dimension_numbers<[1], [0], [0], [1], [0, 0, 1, 1], [], []>} : vector<2x32xf32>, vector<32x32xf32>, vector<2x32xf32> -> vector<2x32xf32>
    %897 = arith.addf %895, %896 : vector<2x32xf32>
    %898 = math.tanh %897 : vector<2x32xf32>
    %899 = vector.extract_strided_slice %809 {offsets = [4, 0], sizes = [2, 32], strides = [1, 1]} : vector<16x32xf32> to vector<2x32xf32>
    %cst_374 = arith.constant dense<0.000000e+00> : vector<2x32xf32>
    %900 = tpu.matmul %878, %810, %cst_374 {dimension_numbers = #tpu.dot_dimension_numbers<[1], [0], [0], [1], [0, 0, 1, 1], [], []>} : vector<2x32xf32>, vector<32x32xf32>, vector<2x32xf32> -> vector<2x32xf32>
    %901 = arith.addf %899, %900 : vector<2x32xf32>
    %902 = arith.negf %901 : vector<2x32xf32>
    %903 = math.exp %902 : vector<2x32xf32>
    %cst_375 = arith.constant 1.000000e+00 : f32
    %904 = vector.broadcast %cst_375 : f32 to vector<2x32xf32>
    %905 = arith.addf %904, %903 : vector<2x32xf32>
    %906 = arith.divf %904, %905 : vector<2x32xf32>
    %907 = arith.mulf %894, %876 : vector<2x32xf32>
    %908 = arith.mulf %886, %898 : vector<2x32xf32>
    %909 = arith.addf %907, %908 : vector<2x32xf32>
    %910 = math.tanh %909 : vector<2x32xf32>
    %911 = arith.mulf %906, %910 : vector<2x32xf32>
    %912 = vector.extract_strided_slice %791 {offsets = [6, 0], sizes = [2, 32], strides = [1, 1]} : vector<16x32xf32> to vector<2x32xf32>
    %cst_376 = arith.constant dense<0.000000e+00> : vector<2x32xf32>
    %913 = tpu.matmul %911, %792, %cst_376 {dimension_numbers = #tpu.dot_dimension_numbers<[1], [0], [0], [1], [0, 0, 1, 1], [], []>} : vector<2x32xf32>, vector<32x32xf32>, vector<2x32xf32> -> vector<2x32xf32>
    %914 = arith.addf %912, %913 : vector<2x32xf32>
    %915 = arith.negf %914 : vector<2x32xf32>
    %916 = math.exp %915 : vector<2x32xf32>
    %cst_377 = arith.constant 1.000000e+00 : f32
    %917 = vector.broadcast %cst_377 : f32 to vector<2x32xf32>
    %918 = arith.addf %917, %916 : vector<2x32xf32>
    %919 = arith.divf %917, %918 : vector<2x32xf32>
    %920 = vector.extract_strided_slice %797 {offsets = [6, 0], sizes = [2, 32], strides = [1, 1]} : vector<16x32xf32> to vector<2x32xf32>
    %cst_378 = arith.constant dense<0.000000e+00> : vector<2x32xf32>
    %921 = tpu.matmul %911, %798, %cst_378 {dimension_numbers = #tpu.dot_dimension_numbers<[1], [0], [0], [1], [0, 0, 1, 1], [], []>} : vector<2x32xf32>, vector<32x32xf32>, vector<2x32xf32> -> vector<2x32xf32>
    %922 = arith.addf %920, %921 : vector<2x32xf32>
    %923 = arith.negf %922 : vector<2x32xf32>
    %924 = math.exp %923 : vector<2x32xf32>
    %cst_379 = arith.constant 1.000000e+00 : f32
    %925 = vector.broadcast %cst_379 : f32 to vector<2x32xf32>
    %926 = arith.addf %925, %924 : vector<2x32xf32>
    %927 = arith.divf %925, %926 : vector<2x32xf32>
    %928 = vector.extract_strided_slice %803 {offsets = [6, 0], sizes = [2, 32], strides = [1, 1]} : vector<16x32xf32> to vector<2x32xf32>
    %cst_380 = arith.constant dense<0.000000e+00> : vector<2x32xf32>
    %929 = tpu.matmul %911, %804, %cst_380 {dimension_numbers = #tpu.dot_dimension_numbers<[1], [0], [0], [1], [0, 0, 1, 1], [], []>} : vector<2x32xf32>, vector<32x32xf32>, vector<2x32xf32> -> vector<2x32xf32>
    %930 = arith.addf %928, %929 : vector<2x32xf32>
    %931 = math.tanh %930 : vector<2x32xf32>
    %932 = vector.extract_strided_slice %809 {offsets = [6, 0], sizes = [2, 32], strides = [1, 1]} : vector<16x32xf32> to vector<2x32xf32>
    %cst_381 = arith.constant dense<0.000000e+00> : vector<2x32xf32>
    %933 = tpu.matmul %911, %810, %cst_381 {dimension_numbers = #tpu.dot_dimension_numbers<[1], [0], [0], [1], [0, 0, 1, 1], [], []>} : vector<2x32xf32>, vector<32x32xf32>, vector<2x32xf32> -> vector<2x32xf32>
    %934 = arith.addf %932, %933 : vector<2x32xf32>
    %935 = arith.negf %934 : vector<2x32xf32>
    %936 = math.exp %935 : vector<2x32xf32>
    %cst_382 = arith.constant 1.000000e+00 : f32
    %937 = vector.broadcast %cst_382 : f32 to vector<2x32xf32>
    %938 = arith.addf %937, %936 : vector<2x32xf32>
    %939 = arith.divf %937, %938 : vector<2x32xf32>
    %940 = arith.mulf %927, %909 : vector<2x32xf32>
    %941 = arith.mulf %919, %931 : vector<2x32xf32>
    %942 = arith.addf %940, %941 : vector<2x32xf32>
    %943 = math.tanh %942 : vector<2x32xf32>
    %944 = arith.mulf %939, %943 : vector<2x32xf32>
    %945 = vector.extract_strided_slice %791 {offsets = [8, 0], sizes = [2, 32], strides = [1, 1]} : vector<16x32xf32> to vector<2x32xf32>
    %cst_383 = arith.constant dense<0.000000e+00> : vector<2x32xf32>
    %946 = tpu.matmul %944, %792, %cst_383 {dimension_numbers = #tpu.dot_dimension_numbers<[1], [0], [0], [1], [0, 0, 1, 1], [], []>} : vector<2x32xf32>, vector<32x32xf32>, vector<2x32xf32> -> vector<2x32xf32>
    %947 = arith.addf %945, %946 : vector<2x32xf32>
    %948 = arith.negf %947 : vector<2x32xf32>
    %949 = math.exp %948 : vector<2x32xf32>
    %cst_384 = arith.constant 1.000000e+00 : f32
    %950 = vector.broadcast %cst_384 : f32 to vector<2x32xf32>
    %951 = arith.addf %950, %949 : vector<2x32xf32>
    %952 = arith.divf %950, %951 : vector<2x32xf32>
    %953 = vector.extract_strided_slice %797 {offsets = [8, 0], sizes = [2, 32], strides = [1, 1]} : vector<16x32xf32> to vector<2x32xf32>
    %cst_385 = arith.constant dense<0.000000e+00> : vector<2x32xf32>
    %954 = tpu.matmul %944, %798, %cst_385 {dimension_numbers = #tpu.dot_dimension_numbers<[1], [0], [0], [1], [0, 0, 1, 1], [], []>} : vector<2x32xf32>, vector<32x32xf32>, vector<2x32xf32> -> vector<2x32xf32>
    %955 = arith.addf %953, %954 : vector<2x32xf32>
    %956 = arith.negf %955 : vector<2x32xf32>
    %957 = math.exp %956 : vector<2x32xf32>
    %cst_386 = arith.constant 1.000000e+00 : f32
    %958 = vector.broadcast %cst_386 : f32 to vector<2x32xf32>
    %959 = arith.addf %958, %957 : vector<2x32xf32>
    %960 = arith.divf %958, %959 : vector<2x32xf32>
    %961 = vector.extract_strided_slice %803 {offsets = [8, 0], sizes = [2, 32], strides = [1, 1]} : vector<16x32xf32> to vector<2x32xf32>
    %cst_387 = arith.constant dense<0.000000e+00> : vector<2x32xf32>
    %962 = tpu.matmul %944, %804, %cst_387 {dimension_numbers = #tpu.dot_dimension_numbers<[1], [0], [0], [1], [0, 0, 1, 1], [], []>} : vector<2x32xf32>, vector<32x32xf32>, vector<2x32xf32> -> vector<2x32xf32>
    %963 = arith.addf %961, %962 : vector<2x32xf32>
    %964 = math.tanh %963 : vector<2x32xf32>
    %965 = vector.extract_strided_slice %809 {offsets = [8, 0], sizes = [2, 32], strides = [1, 1]} : vector<16x32xf32> to vector<2x32xf32>
    %cst_388 = arith.constant dense<0.000000e+00> : vector<2x32xf32>
    %966 = tpu.matmul %944, %810, %cst_388 {dimension_numbers = #tpu.dot_dimension_numbers<[1], [0], [0], [1], [0, 0, 1, 1], [], []>} : vector<2x32xf32>, vector<32x32xf32>, vector<2x32xf32> -> vector<2x32xf32>
    %967 = arith.addf %965, %966 : vector<2x32xf32>
    %968 = arith.negf %967 : vector<2x32xf32>
    %969 = math.exp %968 : vector<2x32xf32>
    %cst_389 = arith.constant 1.000000e+00 : f32
    %970 = vector.broadcast %cst_389 : f32 to vector<2x32xf32>
    %971 = arith.addf %970, %969 : vector<2x32xf32>
    %972 = arith.divf %970, %971 : vector<2x32xf32>
    %973 = arith.mulf %960, %942 : vector<2x32xf32>
    %974 = arith.mulf %952, %964 : vector<2x32xf32>
    %975 = arith.addf %973, %974 : vector<2x32xf32>
    %976 = math.tanh %975 : vector<2x32xf32>
    %977 = arith.mulf %972, %976 : vector<2x32xf32>
    %978 = vector.extract_strided_slice %791 {offsets = [10, 0], sizes = [2, 32], strides = [1, 1]} : vector<16x32xf32> to vector<2x32xf32>
    %cst_390 = arith.constant dense<0.000000e+00> : vector<2x32xf32>
    %979 = tpu.matmul %977, %792, %cst_390 {dimension_numbers = #tpu.dot_dimension_numbers<[1], [0], [0], [1], [0, 0, 1, 1], [], []>} : vector<2x32xf32>, vector<32x32xf32>, vector<2x32xf32> -> vector<2x32xf32>
    %980 = arith.addf %978, %979 : vector<2x32xf32>
    %981 = arith.negf %980 : vector<2x32xf32>
    %982 = math.exp %981 : vector<2x32xf32>
    %cst_391 = arith.constant 1.000000e+00 : f32
    %983 = vector.broadcast %cst_391 : f32 to vector<2x32xf32>
    %984 = arith.addf %983, %982 : vector<2x32xf32>
    %985 = arith.divf %983, %984 : vector<2x32xf32>
    %986 = vector.extract_strided_slice %797 {offsets = [10, 0], sizes = [2, 32], strides = [1, 1]} : vector<16x32xf32> to vector<2x32xf32>
    %cst_392 = arith.constant dense<0.000000e+00> : vector<2x32xf32>
    %987 = tpu.matmul %977, %798, %cst_392 {dimension_numbers = #tpu.dot_dimension_numbers<[1], [0], [0], [1], [0, 0, 1, 1], [], []>} : vector<2x32xf32>, vector<32x32xf32>, vector<2x32xf32> -> vector<2x32xf32>
    %988 = arith.addf %986, %987 : vector<2x32xf32>
    %989 = arith.negf %988 : vector<2x32xf32>
    %990 = math.exp %989 : vector<2x32xf32>
    %cst_393 = arith.constant 1.000000e+00 : f32
    %991 = vector.broadcast %cst_393 : f32 to vector<2x32xf32>
    %992 = arith.addf %991, %990 : vector<2x32xf32>
    %993 = arith.divf %991, %992 : vector<2x32xf32>
    %994 = vector.extract_strided_slice %803 {offsets = [10, 0], sizes = [2, 32], strides = [1, 1]} : vector<16x32xf32> to vector<2x32xf32>
    %cst_394 = arith.constant dense<0.000000e+00> : vector<2x32xf32>
    %995 = tpu.matmul %977, %804, %cst_394 {dimension_numbers = #tpu.dot_dimension_numbers<[1], [0], [0], [1], [0, 0, 1, 1], [], []>} : vector<2x32xf32>, vector<32x32xf32>, vector<2x32xf32> -> vector<2x32xf32>
    %996 = arith.addf %994, %995 : vector<2x32xf32>
    %997 = math.tanh %996 : vector<2x32xf32>
    %998 = vector.extract_strided_slice %809 {offsets = [10, 0], sizes = [2, 32], strides = [1, 1]} : vector<16x32xf32> to vector<2x32xf32>
    %cst_395 = arith.constant dense<0.000000e+00> : vector<2x32xf32>
    %999 = tpu.matmul %977, %810, %cst_395 {dimension_numbers = #tpu.dot_dimension_numbers<[1], [0], [0], [1], [0, 0, 1, 1], [], []>} : vector<2x32xf32>, vector<32x32xf32>, vector<2x32xf32> -> vector<2x32xf32>
    %1000 = arith.addf %998, %999 : vector<2x32xf32>
    %1001 = arith.negf %1000 : vector<2x32xf32>
    %1002 = math.exp %1001 : vector<2x32xf32>
    %cst_396 = arith.constant 1.000000e+00 : f32
    %1003 = vector.broadcast %cst_396 : f32 to vector<2x32xf32>
    %1004 = arith.addf %1003, %1002 : vector<2x32xf32>
    %1005 = arith.divf %1003, %1004 : vector<2x32xf32>
    %1006 = arith.mulf %993, %975 : vector<2x32xf32>
    %1007 = arith.mulf %985, %997 : vector<2x32xf32>
    %1008 = arith.addf %1006, %1007 : vector<2x32xf32>
    %1009 = math.tanh %1008 : vector<2x32xf32>
    %1010 = arith.mulf %1005, %1009 : vector<2x32xf32>
    %1011 = vector.extract_strided_slice %791 {offsets = [12, 0], sizes = [2, 32], strides = [1, 1]} : vector<16x32xf32> to vector<2x32xf32>
    %cst_397 = arith.constant dense<0.000000e+00> : vector<2x32xf32>
    %1012 = tpu.matmul %1010, %792, %cst_397 {dimension_numbers = #tpu.dot_dimension_numbers<[1], [0], [0], [1], [0, 0, 1, 1], [], []>} : vector<2x32xf32>, vector<32x32xf32>, vector<2x32xf32> -> vector<2x32xf32>
    %1013 = arith.addf %1011, %1012 : vector<2x32xf32>
    %1014 = arith.negf %1013 : vector<2x32xf32>
    %1015 = math.exp %1014 : vector<2x32xf32>
    %cst_398 = arith.constant 1.000000e+00 : f32
    %1016 = vector.broadcast %cst_398 : f32 to vector<2x32xf32>
    %1017 = arith.addf %1016, %1015 : vector<2x32xf32>
    %1018 = arith.divf %1016, %1017 : vector<2x32xf32>
    %1019 = vector.extract_strided_slice %797 {offsets = [12, 0], sizes = [2, 32], strides = [1, 1]} : vector<16x32xf32> to vector<2x32xf32>
    %cst_399 = arith.constant dense<0.000000e+00> : vector<2x32xf32>
    %1020 = tpu.matmul %1010, %798, %cst_399 {dimension_numbers = #tpu.dot_dimension_numbers<[1], [0], [0], [1], [0, 0, 1, 1], [], []>} : vector<2x32xf32>, vector<32x32xf32>, vector<2x32xf32> -> vector<2x32xf32>
    %1021 = arith.addf %1019, %1020 : vector<2x32xf32>
    %1022 = arith.negf %1021 : vector<2x32xf32>
    %1023 = math.exp %1022 : vector<2x32xf32>
    %cst_400 = arith.constant 1.000000e+00 : f32
    %1024 = vector.broadcast %cst_400 : f32 to vector<2x32xf32>
    %1025 = arith.addf %1024, %1023 : vector<2x32xf32>
    %1026 = arith.divf %1024, %1025 : vector<2x32xf32>
    %1027 = vector.extract_strided_slice %803 {offsets = [12, 0], sizes = [2, 32], strides = [1, 1]} : vector<16x32xf32> to vector<2x32xf32>
    %cst_401 = arith.constant dense<0.000000e+00> : vector<2x32xf32>
    %1028 = tpu.matmul %1010, %804, %cst_401 {dimension_numbers = #tpu.dot_dimension_numbers<[1], [0], [0], [1], [0, 0, 1, 1], [], []>} : vector<2x32xf32>, vector<32x32xf32>, vector<2x32xf32> -> vector<2x32xf32>
    %1029 = arith.addf %1027, %1028 : vector<2x32xf32>
    %1030 = math.tanh %1029 : vector<2x32xf32>
    %1031 = vector.extract_strided_slice %809 {offsets = [12, 0], sizes = [2, 32], strides = [1, 1]} : vector<16x32xf32> to vector<2x32xf32>
    %cst_402 = arith.constant dense<0.000000e+00> : vector<2x32xf32>
    %1032 = tpu.matmul %1010, %810, %cst_402 {dimension_numbers = #tpu.dot_dimension_numbers<[1], [0], [0], [1], [0, 0, 1, 1], [], []>} : vector<2x32xf32>, vector<32x32xf32>, vector<2x32xf32> -> vector<2x32xf32>
    %1033 = arith.addf %1031, %1032 : vector<2x32xf32>
    %1034 = arith.negf %1033 : vector<2x32xf32>
    %1035 = math.exp %1034 : vector<2x32xf32>
    %cst_403 = arith.constant 1.000000e+00 : f32
    %1036 = vector.broadcast %cst_403 : f32 to vector<2x32xf32>
    %1037 = arith.addf %1036, %1035 : vector<2x32xf32>
    %1038 = arith.divf %1036, %1037 : vector<2x32xf32>
    %1039 = arith.mulf %1026, %1008 : vector<2x32xf32>
    %1040 = arith.mulf %1018, %1030 : vector<2x32xf32>
    %1041 = arith.addf %1039, %1040 : vector<2x32xf32>
    %1042 = math.tanh %1041 : vector<2x32xf32>
    %1043 = arith.mulf %1038, %1042 : vector<2x32xf32>
    %1044 = vector.extract_strided_slice %791 {offsets = [14, 0], sizes = [2, 32], strides = [1, 1]} : vector<16x32xf32> to vector<2x32xf32>
    %cst_404 = arith.constant dense<0.000000e+00> : vector<2x32xf32>
    %1045 = tpu.matmul %1043, %792, %cst_404 {dimension_numbers = #tpu.dot_dimension_numbers<[1], [0], [0], [1], [0, 0, 1, 1], [], []>} : vector<2x32xf32>, vector<32x32xf32>, vector<2x32xf32> -> vector<2x32xf32>
    %1046 = arith.addf %1044, %1045 : vector<2x32xf32>
    %1047 = arith.negf %1046 : vector<2x32xf32>
    %1048 = math.exp %1047 : vector<2x32xf32>
    %cst_405 = arith.constant 1.000000e+00 : f32
    %1049 = vector.broadcast %cst_405 : f32 to vector<2x32xf32>
    %1050 = arith.addf %1049, %1048 : vector<2x32xf32>
    %1051 = arith.divf %1049, %1050 : vector<2x32xf32>
    %1052 = vector.extract_strided_slice %797 {offsets = [14, 0], sizes = [2, 32], strides = [1, 1]} : vector<16x32xf32> to vector<2x32xf32>
    %cst_406 = arith.constant dense<0.000000e+00> : vector<2x32xf32>
    %1053 = tpu.matmul %1043, %798, %cst_406 {dimension_numbers = #tpu.dot_dimension_numbers<[1], [0], [0], [1], [0, 0, 1, 1], [], []>} : vector<2x32xf32>, vector<32x32xf32>, vector<2x32xf32> -> vector<2x32xf32>
    %1054 = arith.addf %1052, %1053 : vector<2x32xf32>
    %1055 = arith.negf %1054 : vector<2x32xf32>
    %1056 = math.exp %1055 : vector<2x32xf32>
    %cst_407 = arith.constant 1.000000e+00 : f32
    %1057 = vector.broadcast %cst_407 : f32 to vector<2x32xf32>
    %1058 = arith.addf %1057, %1056 : vector<2x32xf32>
    %1059 = arith.divf %1057, %1058 : vector<2x32xf32>
    %1060 = vector.extract_strided_slice %803 {offsets = [14, 0], sizes = [2, 32], strides = [1, 1]} : vector<16x32xf32> to vector<2x32xf32>
    %cst_408 = arith.constant dense<0.000000e+00> : vector<2x32xf32>
    %1061 = tpu.matmul %1043, %804, %cst_408 {dimension_numbers = #tpu.dot_dimension_numbers<[1], [0], [0], [1], [0, 0, 1, 1], [], []>} : vector<2x32xf32>, vector<32x32xf32>, vector<2x32xf32> -> vector<2x32xf32>
    %1062 = arith.addf %1060, %1061 : vector<2x32xf32>
    %1063 = math.tanh %1062 : vector<2x32xf32>
    %1064 = vector.extract_strided_slice %809 {offsets = [14, 0], sizes = [2, 32], strides = [1, 1]} : vector<16x32xf32> to vector<2x32xf32>
    %cst_409 = arith.constant dense<0.000000e+00> : vector<2x32xf32>
    %1065 = tpu.matmul %1043, %810, %cst_409 {dimension_numbers = #tpu.dot_dimension_numbers<[1], [0], [0], [1], [0, 0, 1, 1], [], []>} : vector<2x32xf32>, vector<32x32xf32>, vector<2x32xf32> -> vector<2x32xf32>
    %1066 = arith.addf %1064, %1065 : vector<2x32xf32>
    %1067 = arith.negf %1066 : vector<2x32xf32>
    %1068 = math.exp %1067 : vector<2x32xf32>
    %cst_410 = arith.constant 1.000000e+00 : f32
    %1069 = vector.broadcast %cst_410 : f32 to vector<2x32xf32>
    %1070 = arith.addf %1069, %1068 : vector<2x32xf32>
    %1071 = arith.divf %1069, %1070 : vector<2x32xf32>
    %1072 = arith.mulf %1059, %1041 : vector<2x32xf32>
    %1073 = arith.mulf %1051, %1063 : vector<2x32xf32>
    %1074 = arith.addf %1072, %1073 : vector<2x32xf32>
    %1075 = math.tanh %1074 : vector<2x32xf32>
    %1076 = arith.mulf %1071, %1075 : vector<2x32xf32>
    %c2280 = arith.constant 2280 : index
    %c0_411 = arith.constant 0 : index
    %1077 = vector.load %arg1[%c2280, %c0_411] : memref<2392x128xf32, #tpu.memory_space<vmem>>, vector<32x32xf32>
    %cst_412 = arith.constant dense<0.000000e+00> : vector<2x32xf32>
    %1078 = tpu.matmul %1076, %1077, %cst_412 {dimension_numbers = #tpu.dot_dimension_numbers<[1], [0], [0], [1], [0, 0, 1, 1], [], []>} : vector<2x32xf32>, vector<32x32xf32>, vector<2x32xf32> -> vector<2x32xf32>
    %c2383 = arith.constant 2383 : index
    %c0_413 = arith.constant 0 : index
    %1079 = vector.load %arg1[%c2383, %c0_413] : memref<2392x128xf32, #tpu.memory_space<vmem>>, vector<1x32xf32>
    %1080 = vector.broadcast %1079 : vector<1x32xf32> to vector<2x32xf32>
    %1081 = arith.addf %1078, %1080 : vector<2x32xf32>
    %cst_414 = arith.constant 0.000000e+00 : f32
    %1082 = vector.broadcast %cst_414 : f32 to vector<2x32xf32>
    %1083 = arith.maximumf %1081, %1082 : vector<2x32xf32>
    %c2312 = arith.constant 2312 : index
    %c0_415 = arith.constant 0 : index
    %1084 = vector.load %arg1[%c2312, %c0_415] : memref<2392x128xf32, #tpu.memory_space<vmem>>, vector<32x4xf32>
    %cst_416 = arith.constant dense<0.000000e+00> : vector<2x4xf32>
    %1085 = tpu.matmul %1083, %1084, %cst_416 {dimension_numbers = #tpu.dot_dimension_numbers<[1], [0], [0], [1], [0, 0, 1, 1], [], []>} : vector<2x32xf32>, vector<32x4xf32>, vector<2x4xf32> -> vector<2x4xf32>
    %c2384 = arith.constant 2384 : index
    %c0_417 = arith.constant 0 : index
    %1086 = vector.load %arg1[%c2384, %c0_417] : memref<2392x128xf32, #tpu.memory_space<vmem>>, vector<1x4xf32>
    %1087 = vector.broadcast %1086 : vector<1x4xf32> to vector<2x4xf32>
    %1088 = arith.addf %1085, %1087 : vector<2x4xf32>
    %c0_418 = arith.constant 0 : index
    %c0_419 = arith.constant 0 : index
    %1089 = vector.load %arg2[%c0_418, %c0_419] : memref<2x4xf32, #tpu.memory_space<vmem>>, vector<2x4xf32>
    tpu.vector_store %arg2[%c0_418, %c0_419], %1088 {strides = array<i32>} : memref<2x4xf32, #tpu.memory_space<vmem>>, vector<2x4xf32>,
    return
  }
}

</mosaic_0001>

<bundles_post_ra>
// kernel: transformer_lstm_forward.1
= control target key start
LH: loop header
LB: loop body
LE: loop exit
PB: predicated region body
PF: predicated region fallthrough
CT: control target
= control target key end

     0   :  { %7 = vsyncpa [#allocation3], 0  ;;  %s15409_s0 = inlined_call_operand.vmem [shape: f32[16,4], index: 0, kind: input, shape index: {}]   ;;  %s15410_s1 = inlined_call_operand.hbm [shape: f32[2392,128], index: 1, kind: input, shape index: {}]   ;;  %s15411_s2 = inlined_call_operand.hbm [shape: f32[2,4], index: 2, kind: output, shape index: {}]  }
   0x1   :  { %8 = vsyncpa [#allocation4], 0  ;;  %s14557_s9 = smov [#allocation2]   ;;  %s14509_s13 = scalar_lea.hbm %s15410_s1, 38272 }
   0x2   :  { %s16_s10 = sshll.u32 %s14557_s9, 4  ;;  %p14510_p0 = scmp.ne.s32.totalorder %s15410_s1, %s14509_s13  ;;  %s17_s10 = int_to_ptr.vmem [resolvable:$true] %s16_s10 }
   0x3   :  { %p14513_p1 = scmp.lt.u32.totalorder %s14509_s13, %s15410_s1 }
   0x5   :  { %p14515_p2 = pnand %p14513_p1, %p14510_p0 }
   0x7   :  { %14518 = shalt.err (!%p14515_p2)
}
   0x8   :  { %s14519_s18 = scalar_lea.vmem %s17_s10, 38272  ;;  %p14524_p4 = scmp.lt.s32.totalorder %s17_s10, %s17_s10 }
   0x9   :  { %p14520_p3 = scmp.ne.s32.totalorder %s17_s10, %s14519_s18  ;;  %p14525_p5 = scmp.lt.s32.totalorder %s14519_s18, %s14519_s18 }
   0xb   :  { %p14526_p6 = por %p14525_p5, %p14524_p4 }
   0xd   :  { %p14527_p7 = pnand %p14526_p6, %p14520_p3 }
   0xf   :  { %14530 = shalt.err (!%p14527_p7)
}
  0x10   :  { %s14558_s19 = smov 128   ;;  %s14559_s20 = smov 8  }
  0x11   :  { %22 = dma.hbm_to_vmem [thread:$0]  %s15410_s1, 38272, %s17_s10, [#allocation3], %s14558_s19, %s14558_s19, %s14559_s20  }
  0x12   :  { %14553 = dma.done.wait [#allocation3], 38272  }
  0x13   :  { %14554 = vsyncadd [#allocation3], 4294929024  ;;  %vm41_vm0 = vcmask 1043456   ;;  %vm34_vm1 = vcmask 31744   ;;  %v28_v0 = vld [vmem:[#allocation2 + $0x7e0] sm:$0xf] }
  0x14   :  { %v26_v1 = vld [vmem:[%s15409_s0] sm:$0xff]  ;;  %v27_v2 = vld [vmem:[%s15409_s0 + $0x8] sm:$0xff]  ;;  %12255 = vmatprep.subr.msk.mxu0 %vm41_vm0, %v28_v0  ;;  %v129_v9 = vld [vmem:[#allocation2 + $0x10] sm:$0xff]  ;;  %vm136_vm2 = vcmask 261120   ;;  %vm388_vm3 = vcmask 130048   ;;  %vm14561_vm5 = vmmov 0  }
  0x15   :  { %12257 = vmatprep.mubr.msk.f32.mxu0 %vm34_vm1, %v26_v1  ;;  %v127_v3 = vld [vmem:[#allocation2] sm:$0xff]  ;;  %v128_v4 = vld [vmem:[#allocation2 + $0x8] sm:$0xff]  ;;  %12256 = vmatpush3.msk.msra.mxu0 %vm41_vm0, %v28_v0  ;;  %v130_v10 = vld [vmem:[#allocation2 + $0x18] sm:$0xff]  ;;  %s14563_s0 = smov [#allocation5]   ;;  %vm11277_vm6 = vcmask 25600  }
  0x16   :  { %v218_v5 = vld [vmem:[#allocation2 + $0x20] sm:$0xff]  ;;  %v13434_v6 = vpack.c.bf16 %v128_v4, %v127_v3  ;;  %v219_v7 = vld [vmem:[#allocation2 + $0x28] sm:$0xff]  ;;  %12258 = vmatmul.mubr.msk.f32.vlgmr.msra.gmra.mrb[0].mxu0 %vm34_vm1, %v27_v2  ;;  %v13438_v11 = vpack.c.bf16 %v130_v10, %v129_v9  ;;  %v220_v12 = vld [vmem:[#allocation2 + $0x30] sm:$0xff]  ;;  %s11285_s1 = sshll.u32 %s14563_s0, 4  ;;  %s11286_s1 = int_to_ptr.vmem [resolvable:$true] %s11285_s1 }
  0x17   :  { %v13442_v8 = vpack.c.bf16 %v219_v7, %v218_v5  ;;  %v221_v13 = vld [vmem:[#allocation2 + $0x38] sm:$0xff]  ;;  %v302_v15 = vld [vmem:[#allocation2 + $0x40] sm:$0xff]  ;;  %v303_v16 = vld [vmem:[#allocation2 + $0x48] sm:$0xff]  ;;  %s14531_s27 = scalar_lea.vmem %s11286_s1, 32  ;;  %p14536_p9 = scmp.lt.s32.totalorder %s11286_s1, %s11286_s1 }
  0x18   :  { %13435 = vmatprep.subr.bf16.mxu1 %v13434_v6  ;;  %v13446_v14 = vpack.c.bf16 %v221_v13, %v220_v12  ;;  %v13450_v17 = vpack.c.bf16 %v303_v16, %v302_v15  ;;  %v11294_v18 = vld [vmem:[#allocation2 + $0x948] ss:$0 sm:$0xff]  ;;  %v121_v23 = vld [vmem:[#allocation2 + $0x930] sm:$0xff]  ;;  %v305_v26 = vld [vmem:[#allocation2 + $0x58] sm:$0xff]  ;;  %p14532_p8 = scmp.ne.s32.totalorder %s11286_s1, %s14531_s27  ;;  %p14537_p10 = scmp.lt.s32.totalorder %s14531_s27, %s14531_s27 }
  0x19   :  { %13437 = vmatpush3.bf16.msra.mxu1 %v13434_v6  ;;  %13443 = vmatprep.subr.bf16.mxu0 %v13442_v8  ;;  %v120_v22 = vld [vmem:[#allocation2 + $0x928] sm:$0xff]  ;;  %v304_v25 = vld [vmem:[#allocation2 + $0x50] sm:$0xff]  ;;  %v11301_v30 = vld [vmem:[#allocation2 + $0x781] ss:$0 sm:$0xff] }
  0x1a   :  { %13445 = vmatpush3.bf16.msra.mxu0 %v13442_v8  ;;  %13439 = vmatprep.subr.bf16.mxu1 %v13438_v11  ;;  %v13454_v29 = vpack.c.bf16 %v305_v26, %v304_v25  ;;  %v11298_v31 = vld [vmem:[#allocation2 + $0x780] ss:$0 sm:$0xff]  ;;  %vm14615_vm4 = vmpackc.low %vm388_vm3, %vm388_vm3  ;;  %v11304_v42 = vld [vmem:[#allocation2 + $0x782] ss:$0 sm:$0xff]  ;;  %p14538_p11 = por %p14537_p10, %p14536_p9 }
  0x1b   :  { %13447 = vmatprep.subr.bf16.mxu0 %v13446_v14  ;;  %v14625_v50 = vld [vmem:[#allocation2 + $0x938] sm:$0xff]  ;;  %v14627_v52 = vld [vmem:[#allocation2 + $0x940] sm:$0xff]  ;;  %v669_v5 = vld [vmem:[#allocation2 + $0x68] sm:$0xff] }
  0x1c   :  { %v668_v4 = vld [vmem:[#allocation2 + $0x60] sm:$0xff]  ;;  %v580_v8 = vld [vmem:[#allocation2 + $0xc8] sm:$0xff]  ;;  %v671_v15 = vld [vmem:[#allocation2 + $0x78] sm:$0xff]  ;;  %p14539_p12 = pnand %p14538_p11, %p14532_p8 }
  0x1d   :  { %13441 = vmatpush3.bf16.msra.mxu1 %v13438_v11  ;;  %v13472_v6 = vpack.c.bf16 %v669_v5, %v668_v4  ;;  %v579_v7 = vld [vmem:[#allocation2 + $0xc0] sm:$0xff]  ;;  %v753_v26 = vld [vmem:[#allocation2 + $0x88] sm:$0xff] }
  0x1e   :  { %13449 = vmatpush3.bf16.msra.mxu0 %v13446_v14  ;;  %13451 = vmatprep.subr.bf16.mxu1 %v13450_v17  ;;  %v13468_v9 = vpack.c.bf16 %v580_v8, %v579_v7  ;;  %v670_v14 = vld [vmem:[#allocation2 + $0x70] sm:$0xff]  ;;  %v752_v25 = vld [vmem:[#allocation2 + $0x80] sm:$0xff] }
  0xe9   :  { %v12259_v19 = vpop.f32.mrb[0].mxu0 }
  0xea   :  { %v117_v20 = vadd.f32 %v12259_v19, %v11294_v18  ;;  %v111_v21 = vpop.f32.mrb[1].mxu0  ;;  %v836_v19 = vld [vmem:[#allocation2 + $0xa0] sm:$0xff] }
  0xeb   :  { %v112_v24 = vadd.f32 %v11294_v18, %v111_v21  ;;  %v13476_v18 = vpack.c.bf16 %v671_v15, %v670_v14 }
  0xec   :  { %v14599_v28 = vadd.f32 %v121_v23, %v117_v20  ;;  %v837_v20 = vld [vmem:[#allocation2 + $0xa8] sm:$0xff]  ;;  %v839_v23 = vld [vmem:[#allocation2 + $0xb8] sm:$0xff] }
  0xed   :  { %v14597_v27 = vadd.f32 %v120_v22, %v112_v24  ;;  %v13488_v21 = vpack.c.bf16 %v837_v20, %v836_v19  ;;  %v838_v22 = vld [vmem:[#allocation2 + $0xb0] sm:$0xff]  ;;  %v11315_v20 = vld [vmem:[#allocation2 + $0x786] ss:$0 sm:$0xff] }
  0xee   :  { %v13492_v24 = vpack.c.bf16 %v839_v23, %v838_v22 }
  0xef   :  { %12268 = vmatprep.mubr.msk.f32.mxu1 %vm136_vm2, %v14597_v27  ;;  %12279 = vmatprep.mubr.msk.f32.mxu0 %vm136_vm2, %v14597_v27 }
  0xf0   :  { %12269 = vmatmul.mubr.msk.f32.vlgmr.msra.gmra.mrb[0].mxu1 %vm136_vm2, %v14599_v28  ;;  %12280 = vmatmul.mubr.msk.f32.vlgmr.msra.gmra.mrb[2].mxu0 %vm136_vm2, %v14599_v28 }
  0xf1   :  { %13453 = vmatpush3.bf16.msra.mxu1 %v13450_v17  ;;  %12290 = vmatprep.mubr.msk.f32.mxu1 %vm136_vm2, %v14597_v27 }
  0xf2   :  { %13455 = vmatprep.subr.bf16.mxu1 %v13454_v29 }
  0xf5   :  { %13457 = vmatpush3.bf16.msra.mxu1 %v13454_v29  ;;  %v13480_v29 = vpack.c.bf16 %v753_v26, %v752_v25 }
  0xf8   :  { %12291 = vmatmul.mubr.msk.f32.vlgmr.msra.gmra.mrb[2].mxu1 %vm136_vm2, %v14599_v28 }
 0x1c3   :  { %v12270_v32 = vpop.f32.mrb[0].mxu1  ;;  %v12281_v33 = vpop.f32.mrb[2].mxu0 }
 0x1c4   :  { %v299_v34 = vadd.f32 %v12281_v33, %v11301_v30  ;;  %v209_v35 = vpop.f32.mrb[1].mxu1  ;;  %v293_v36 = vpop.f32.mrb[3].mxu0  ;;  %v215_v43 = vadd.f32 %v12270_v32, %v11298_v31 }
 0x1c5   :  { %v210_v37 = vadd.f32 %v11298_v31, %v209_v35  ;;  %v294_v38 = vadd.f32 %v11301_v30, %v293_v36  ;;  %v754_v30 = vld [vmem:[#allocation2 + $0x90] sm:$0xff]  ;;  %v755_v31 = vld [vmem:[#allocation2 + $0x98] sm:$0xff]  ;;  %v11316_v35 = vld [vmem:[#allocation2 + $0x783] ss:$0 sm:$0xff] }
 0x1c6   :  { %v387_v48 = vmul.f32 0.25, %v215_v43 }
 0x1c7   :  { %v386_v40 = vmul.f32 0.25, %v210_v37  ;;  %v13458_v41 = vpack.c.bf16 %v299_v34, %v294_v38  ;;  %v13484_v34 = vpack.c.bf16 %v755_v31, %v754_v30 }
 0x1c9   :  { %13460 = vmatprep.subr.msk.bf16.mxu0 %vm14615_vm4, %v13458_v41  ;;  %12297 = vmatprep.mubr.msk.f32.mxu0 %vm388_vm3, %v386_v40 }
 0x1ca   :  { %13463 = vmatpush3.bf16.xpose.msk.msra.mxu0 %vm14615_vm4, %v13458_v41 }
 0x1cb   :  { %v12292_v44 = vpop.f32.mrb[2].mxu1  ;;  %13469 = vmatprep.subr.bf16.mxu0 %v13468_v9 }
 0x1cc   :  { %v383_v45 = vadd.f32 %v12292_v44, %v11304_v42  ;;  %v377_v46 = vpop.f32.mrb[3].mxu1 }
 0x1cd   :  { %v378_v47 = vadd.f32 %v11304_v42, %v377_v46  ;;  %v11322_v42 = vld [vmem:[#allocation2 + $0x785] ss:$0 sm:$0xff] }
 0x1cf   :  { %v13464_v49 = vpack.c.bf16 %v383_v45, %v378_v47 }
 0x1d1   :  { %13465 = vmatprep.subr.bf16.mxu1 %v13464_v49  ;;  %12298 = vmatmul.mubr.msk.f32.vlgmr.msra.gmra.mrb[4].mxu0 %vm388_vm3, %v387_v48  ;;  %v11319_v48 = vld [vmem:[#allocation2 + $0x784] ss:$0 sm:$0xff] }
 0x1d2   :  { %13467 = vmatpush3.bf16.msra.mxu1 %v13464_v49  ;;  %13471 = vmatpush3.bf16.msra.mxu0 %v13468_v9  ;;  %v1112_v9 = vld [vmem:[#allocation2 + $0xe0] sm:$0xff] }
 0x1d3   :  { %13473 = vmatprep.subr.bf16.mxu1 %v13472_v6  ;;  %13481 = vmatprep.subr.bf16.mxu0 %v13480_v29 }
 0x2a4   :  { %v12299_v51 = vpop.f32.mrb[4].mxu0 }
 0x2a5   :  { %v467_v53 = vpop.f32.mrb[5].mxu0  ;;  %v473_v55 = vadd.f32 %v12299_v51, %v14627_v52 }
 0x2a6   :  { %v468_v54 = vadd.f32 %v467_v53, %v14625_v50 }
 0x2a7   :  { %v479_v57 = vsel %vm388_vm3, %v473_v55, -inf }
 0x2a8   :  { %v476_v56 = vsel %vm388_vm3, %v468_v54, -inf }
 0x2a9   :  { %477 = vmax.xlane.f32.xlu0 %v476_v56 }
 0x2ad   :  { %480 = vmax.xlane.f32.xlu0 %v479_v57 }
 0x336   :  { %v478_v58 = vpop.xlane.xlu0 %477 }
 0x337   :  { %v482_v59 = vsub.f32 %v468_v54, %v478_v58 }
 0x339   :  { %v484_v60 = vmul.f32 1.442695, %v482_v59 }
 0x33a   :  { %v481_v61 = vpop.xlane.xlu0 %480 }
 0x33b   :  { %14229 = vpow2.f32 %v484_v60  ;;  %v483_v62 = vsub.f32 %v473_v55, %v481_v61 }
 0x33d   :  { %v486_v63 = vmul.f32 1.442695, %v483_v62 }
 0x33f   :  { %14231 = vpow2.f32 %v486_v63 }
 0x345   :  { %v14230_v0 = vpop.eup %14229 }
 0x346   :  { %v488_v1 = vsel %vm388_vm3, %v14230_v0, 0.0 }
 0x347   :  { %489 = vadd.xlane.f32.xlu1 %v488_v1 }
 0x349   :  { %v14232_v2 = vpop.eup %14231 }
 0x34a   :  { %v491_v3 = vsel %vm388_vm3, %v14232_v2, 0.0 }
 0x34b   :  { %492 = vadd.xlane.f32.xlu1 %v491_v3 }
 0x3d4   :  { %v490_v10 = vpop.xlane.xlu1 %489 }
 0x3d5   :  { %14233 = vrcp.f32 %v490_v10  ;;  %v1113_v10 = vld [vmem:[#allocation2 + $0xe8] sm:$0xff] }
 0x3d8   :  { %v493_v11 = vpop.xlane.xlu1 %492 }
 0x3d9   :  { %14235 = vrcp.f32 %v493_v11  ;;  %v13506_v11 = vpack.c.bf16 %v1113_v10, %v1112_v9  ;;  %v11338_v10 = vld [vmem:[#allocation2 + $0x78a] ss:$0 sm:$0xff] }
 0x3df   :  { %v14234_v12 = vpop.eup %14233 }
 0x3e0   :  { %v496_v13 = vmul.f32 %v14234_v12, %v14230_v0 }
 0x3e2   :  { %12304 = vmatprep.mubr.msk.f32.mxu1 %vm388_vm3, %v496_v13 }
 0x3e3   :  { %v14236_v16 = vpop.eup %14235 }
 0x3e4   :  { %v497_v17 = vmul.f32 %v14236_v16, %v14232_v2 }
 0x3e6   :  { %12305 = vmatmul.mubr.msk.f32.vlgmr.msra.gmra.mrb[4].mxu1 %vm388_vm3, %v497_v17 }
 0x3e7   :  { %13475 = vmatpush3.bf16.msra.mxu1 %v13472_v6  ;;  %12322 = vmatprep.mubr.msk.f32.mxu1 %vm136_vm2, %v14597_v27 }
 0x3e8   :  { %13477 = vmatprep.subr.bf16.mxu1 %v13476_v18 }
 0x3eb   :  { %13479 = vmatpush3.bf16.msra.mxu1 %v13476_v18 }
 0x3ec   :  { %13489 = vmatprep.subr.bf16.mxu1 %v13488_v21 }
 0x3ee   :  { %12323 = vmatmul.mubr.msk.f32.vlgmr.msra.gmra.mrb[6].mxu1 %vm136_vm2, %v14599_v28 }
 0x3ef   :  { %13491 = vmatpush3.bf16.msra.mxu1 %v13488_v21  ;;  %12344 = vmatprep.mubr.msk.f32.mxu1 %vm136_vm2, %v14597_v27 }
 0x3f0   :  { %13493 = vmatprep.subr.bf16.mxu1 %v13492_v24 }
 0x3f3   :  { %13495 = vmatpush3.bf16.msra.mxu1 %v13492_v24 }
 0x3f6   :  { %12345 = vmatmul.mubr.msk.f32.vlgmr.msra.gmra.mrb[8].mxu1 %vm136_vm2, %v14599_v28 }
 0x4b9   :  { %v12306_v32 = vpop.f32.mrb[4].mxu1 }
 0x4ba   :  { %v570_v33 = vpop.f32.mrb[5].mxu1 }
 0x4bb   :  { %12311 = vmatprep.mubr.msk.f32.mxu0 %vm388_vm3, %v570_v33 }
 0x4bc   :  { %12312 = vmatmul.mubr.msk.f32.vlgmr.msra.gmra.mrb[6].mxu0 %vm388_vm3, %v12306_v32 }
 0x4bd   :  { %13483 = vmatpush3.bf16.msra.mxu0 %v13480_v29  ;;  %12333 = vmatprep.mubr.msk.f32.mxu0 %vm136_vm2, %v14597_v27 }
 0x4be   :  { %13485 = vmatprep.subr.bf16.mxu0 %v13484_v34 }
 0x4c1   :  { %v12324_v36 = vpop.f32.mrb[6].mxu1  ;;  %13487 = vmatpush3.bf16.msra.mxu0 %v13484_v34 }
 0x4c2   :  { %v749_v37 = vadd.f32 %v12324_v36, %v11316_v35  ;;  %v743_v38 = vpop.f32.mrb[7].mxu1 }
 0x4c3   :  { %v744_v40 = vadd.f32 %v11316_v35, %v743_v38 }
 0x4c4   :  { %12334 = vmatmul.mubr.msk.f32.vlgmr.msra.gmra.mrb[8].mxu0 %vm136_vm2, %v14599_v28  ;;  %v921_v56 = vmul.f32 0.25, %v749_v37 }
 0x4c5   :  { %v920_v41 = vmul.f32 0.25, %v744_v40 }
 0x4c7   :  { %12351 = vmatprep.mubr.msk.f32.mxu0 %vm388_vm3, %v920_v41  ;;  %v1241_v41 = vld [vmem:[#allocation2 + $0x108] sm:$0xff] }
 0x4c9   :  { %v12346_v43 = vpop.f32.mrb[8].mxu1 }
 0x4ca   :  { %v917_v44 = vadd.f32 %v12346_v43, %v11322_v42  ;;  %v911_v45 = vpop.f32.mrb[9].mxu1  ;;  %v1242_v43 = vld [vmem:[#allocation2 + $0x110] sm:$0xff] }
 0x4cb   :  { %v912_v46 = vadd.f32 %v11322_v42, %v911_v45 }
 0x4cd   :  { %v13502_v47 = vpack.c.bf16 %v917_v44, %v912_v46  ;;  %v1243_v44 = vld [vmem:[#allocation2 + $0x118] sm:$0xff] }
 0x4ce   :  { %v13514_v45 = vpack.c.bf16 %v1243_v44, %v1242_v43  ;;  %v1638_v43 = vld [vmem:[#allocation2 + $0x188] sm:$0xff] }
 0x4cf   :  { %13503 = vmatprep.subr.bf16.mxu1 %v13502_v47 }
 0x4d0   :  { %13505 = vmatpush3.bf16.msra.mxu1 %v13502_v47 }
 0x597   :  { %v12335_v49 = vpop.f32.mrb[8].mxu0 }
 0x598   :  { %v833_v51 = vadd.f32 %v12335_v49, %v11319_v48  ;;  %v827_v53 = vpop.f32.mrb[9].mxu0 }
 0x599   :  { %v828_v54 = vadd.f32 %v11319_v48, %v827_v53 }
 0x59b   :  { %v13496_v55 = vpack.c.bf16 %v833_v51, %v828_v54 }
 0x59d   :  { %13498 = vmatprep.subr.msk.bf16.mxu0 %vm14615_vm4, %v13496_v55 }
 0x59e   :  { %13501 = vmatpush3.bf16.xpose.msk.msra.mxu0 %vm14615_vm4, %v13496_v55  ;;  %v11333_v55 = vld [vmem:[#allocation2 + $0x787] ss:$0 sm:$0xff] }
 0x59f   :  { %13507 = vmatprep.subr.bf16.mxu0 %v13506_v11 }
 0x5a5   :  { %12352 = vmatmul.mubr.msk.f32.vlgmr.msra.gmra.mrb[10].mxu0 %vm388_vm3, %v921_v56 }
 0x5a6   :  { %13509 = vmatpush3.bf16.msra.mxu0 %v13506_v11 }
 0x678   :  { %v12353_v57 = vpop.f32.mrb[10].mxu0 }
 0x679   :  { %v1006_v58 = vadd.f32 %v12353_v57, %v14627_v52  ;;  %v1000_v59 = vpop.f32.mrb[11].mxu0 }
 0x67a   :  { %v1001_v60 = vadd.f32 %v1000_v59, %v14625_v50  ;;  %v11334_v59 = vld [vmem:[#allocation2 + $0x788] ss:$0 sm:$0xff] }
 0x67b   :  { %v1012_v61 = vsel %vm388_vm3, %v1006_v58, -inf }
 0x67c   :  { %1013 = vmax.xlane.f32.xlu1 %v1012_v61  ;;  %v1009_v62 = vsel %vm388_vm3, %v1001_v60, -inf }
 0x67d   :  { %1010 = vmax.xlane.f32.xlu0 %v1009_v62 }
 0x709   :  { %v1014_v63 = vpop.xlane.xlu1 %1013 }
 0x70a   :  { %v1016_v0 = vsub.f32 %v1006_v58, %v1014_v63  ;;  %v1011_v1 = vpop.xlane.xlu0 %1010 }
 0x70b   :  { %v1015_v2 = vsub.f32 %v1001_v60, %v1011_v1  ;;  %v1333_v1 = vld [vmem:[#allocation2 + $0x128] sm:$0xff] }
 0x70c   :  { %v1019_v3 = vmul.f32 1.442695, %v1016_v0  ;;  %v1332_v0 = vld [vmem:[#allocation2 + $0x120] sm:$0xff] }
 0x70d   :  { %v1017_v4 = vmul.f32 1.442695, %v1015_v2  ;;  %v13518_v2 = vpack.c.bf16 %v1333_v1, %v1332_v0 }
 0x70e   :  { %14237 = vpow2.f32 %v1019_v3  ;;  %v11335_v3 = vld [vmem:[#allocation2 + $0x789] ss:$0 sm:$0xff] }
 0x70f   :  { %14239 = vpow2.f32 %v1017_v4  ;;  %13519 = vmatprep.subr.bf16.mxu0 %v13518_v2 }
 0x718   :  { %v14238_v5 = vpop.eup %14237 }
 0x719   :  { %v14240_v6 = vpop.eup %14239  ;;  %v1024_v7 = vsel %vm388_vm3, %v14238_v5, 0.0 }
 0x71a   :  { %1025 = vadd.xlane.f32.xlu1 %v1024_v7  ;;  %v1021_v8 = vsel %vm388_vm3, %v14240_v6, 0.0 }
 0x71b   :  { %1022 = vadd.xlane.f32.xlu0 %v1021_v8 }
 0x7a7   :  { %v1026_v12 = vpop.xlane.xlu1 %1025 }
 0x7a8   :  { %14241 = vrcp.f32 %v1026_v12  ;;  %v1023_v13 = vpop.xlane.xlu0 %1022 }
 0x7a9   :  { %14243 = vrcp.f32 %v1023_v13 }
 0x7b2   :  { %v14242_v14 = vpop.eup %14241 }
 0x7b3   :  { %v14244_v15 = vpop.eup %14243  ;;  %v1030_v17 = vmul.f32 %v14242_v14, %v14238_v5 }
 0x7b4   :  { %v1029_v16 = vmul.f32 %v14244_v15, %v14240_v6 }
 0x7b6   :  { %12358 = vmatprep.mubr.msk.f32.mxu1 %vm388_vm3, %v1029_v16 }
 0x7b7   :  { %12359 = vmatmul.mubr.msk.f32.vlgmr.msra.gmra.mrb[10].mxu1 %vm388_vm3, %v1030_v17 }
 0x88a   :  { %v12360_v18 = vpop.f32.mrb[10].mxu1 }
 0x88b   :  { %v1103_v19 = vpop.f32.mrb[11].mxu1 }
 0x88c   :  { %12365 = vmatprep.mubr.msk.f32.mxu0 %vm388_vm3, %v1103_v19 }
 0x88d   :  { %12366 = vmatmul.mubr.msk.f32.vlgmr.msra.gmra.mrb[6].mxu0 %vm388_vm3, %v12360_v18 }
 0x88e   :  { %13521 = vmatpush3.bf16.msra.mxu0 %v13518_v2  ;;  %v11346_v2 = vld [vmem:[#allocation2 + $0x791] ss:$0 sm:$0xff] }
 0x960   :  { %v12367_v21 = vpop.f32.mrb[6].mxu0 }
 0x961   :  { %v14198_v22 = vadd.f32 %v12367_v21, %v11315_v20  ;;  %v1186_v23 = vpop.f32.mrb[7].mxu0 }
 0x962   :  { %v14199_v24 = vadd.f32 %v11315_v20, %v1186_v23 }
 0x963   :  { %v1198_v25 = vadd.f32 %v14198_v22, %v14599_v28 }
 0x964   :  { %v1197_v26 = vadd.f32 %v14199_v24, %v14597_v27  ;;  %v1240_v27 = vld [vmem:[#allocation2 + $0x100] sm:$0xff] }
 0x965   :  { %v1204_v29 = vsel %vm136_vm2, %v1198_v25, 0.0  ;;  %v13510_v42 = vpack.c.bf16 %v1241_v41, %v1240_v27  ;;  %v1556_v27 = vld [vmem:[#allocation2 + $0x178] sm:$0xff] }
 0x966   :  { %1205 = vadd.xlane.f32.xlu1 %v1204_v29  ;;  %v1201_v30 = vsel %vm136_vm2, %v1197_v26, 0.0 }
 0x967   :  { %1202 = vadd.xlane.f32.xlu0 %v1201_v30  ;;  %13511 = vmatprep.subr.bf16.mxu1 %v13510_v42 }
 0x968   :  { %13513 = vmatpush3.bf16.msra.mxu1 %v13510_v42  ;;  %v1637_v42 = vld [vmem:[#allocation2 + $0x180] sm:$0xff] }
 0x969   :  { %13515 = vmatprep.subr.bf16.mxu1 %v13514_v45  ;;  %v13538_v44 = vpack.c.bf16 %v1638_v43, %v1637_v42  ;;  %v1914_v42 = vld [vmem:[#allocation2 + $0x208] sm:$0xff] }
 0x96c   :  { %13517 = vmatpush3.bf16.msra.mxu1 %v13514_v45 }
 0x9f3   :  { %v1206_v31 = vpop.xlane.xlu1 %1205 }
 0x9f4   :  { %v1209_v32 = vmul.f32 0.03125, %v1206_v31  ;;  %v1203_v33 = vpop.xlane.xlu0 %1202  ;;  %v1463_v31 = vld [vmem:[#allocation2 + $0x140] sm:$0xff] }
 0x9f5   :  { %v1208_v34 = vmul.f32 0.03125, %v1203_v33 }
 0x9f6   :  { %v1211_v35 = vsub.f32 %v1198_v25, %v1209_v32  ;;  %v1464_v32 = vld [vmem:[#allocation2 + $0x148] sm:$0xff] }
 0x9f7   :  { %v1210_v36 = vsub.f32 %v1197_v26, %v1208_v34  ;;  %v13522_v33 = vpack.c.bf16 %v1464_v32, %v1463_v31  ;;  %v1553_v34 = vld [vmem:[#allocation2 + $0x160] sm:$0xff] }
 0x9f8   :  { %v1213_v37 = vmul.f32 %v1211_v35, %v1211_v35 }
 0x9f9   :  { %v1212_v38 = vmul.f32 %v1210_v36, %v1210_v36  ;;  %13523 = vmatprep.subr.bf16.mxu0 %v13522_v33 }
 0x9fa   :  { %v1217_v40 = vsel %vm136_vm2, %v1213_v37, 0.0  ;;  %v1465_v37 = vld [vmem:[#allocation2 + $0x150] sm:$0xff] }
 0x9fb   :  { %1218 = vadd.xlane.f32.xlu1 %v1217_v40  ;;  %v1214_v28 = vsel %vm136_vm2, %v1212_v38, 0.0  ;;  %v1466_v38 = vld [vmem:[#allocation2 + $0x158] sm:$0xff] }
 0x9fc   :  { %1215 = vadd.xlane.f32.xlu0 %v1214_v28  ;;  %v13526_v40 = vpack.c.bf16 %v1466_v38, %v1465_v37  ;;  %v1555_v28 = vld [vmem:[#allocation2 + $0x170] sm:$0xff] }
 0x9fd   :  { %v13534_v41 = vpack.c.bf16 %v1556_v27, %v1555_v28  ;;  %v2003_v28 = vld [vmem:[#allocation2 + $0x1a8] sm:$0xff] }
 0xa88   :  { %v1219_v46 = vpop.xlane.xlu1 %1218 }
 0xa89   :  { %v1221_v47 = vmul.f32 0.03125, %v1219_v46  ;;  %v1216_v48 = vpop.xlane.xlu0 %1215 }
 0xa8a   :  { %v1220_v49 = vmul.f32 0.03125, %v1216_v48 }
 0xa8b   :  { %v1223_v51 = vadd.f32 1e-05, %v1221_v47 }
 0xa8c   :  { %v1222_v53 = vadd.f32 1e-05, %v1220_v49 }
 0xa8d   :  { %14245 = vrsqrt.f32 %v1223_v51 }
 0xa8e   :  { %14247 = vrsqrt.f32 %v1222_v53 }
 0xa97   :  { %v14246_v54 = vpop.eup %14245 }
 0xa98   :  { %v14248_v56 = vpop.eup %14247  ;;  %v1227_v57 = vmul.f32 %v14246_v54, %v1211_v35  ;;  %v1554_v35 = vld [vmem:[#allocation2 + $0x168] sm:$0xff] }
 0xa99   :  { %v1226_v58 = vmul.f32 %v14248_v56, %v1210_v36  ;;  %v13530_v36 = vpack.c.bf16 %v1554_v35, %v1553_v34  ;;  %v11341_v54 = vld [vmem:[#allocation2 + $0x78b] ss:$0 sm:$0xff] }
 0xa9a   :  { %v1233_v60 = vmul.f32 %v11333_v55, %v1227_v57 }
 0xa9b   :  { %v1232_v61 = vmul.f32 %v11333_v55, %v1226_v58  ;;  %13531 = vmatprep.subr.bf16.mxu1 %v13530_v36  ;;  %v11342_v58 = vld [vmem:[#allocation2 + $0x78c] ss:$0 sm:$0xff] }
 0xa9c   :  { %v1239_v63 = vadd.f32 %v11334_v59, %v1233_v60 }
 0xa9d   :  { %v1238_v62 = vadd.f32 %v11334_v59, %v1232_v61  ;;  %v1639_v61 = vld [vmem:[#allocation2 + $0x190] sm:$0xff] }
 0xa9f   :  { %12376 = vmatprep.mubr.msk.f32.mxu1 %vm136_vm2, %v1238_v62 }
 0xaa0   :  { %12377 = vmatmul.mubr.msk.f32.vlgmr.msra.gmra.mrb[12].mxu1 %vm136_vm2, %v1239_v63 }
 0xaa1   :  { %13533 = vmatpush3.bf16.msra.mxu1 %v13530_v36 }
 0xaa2   :  { %13535 = vmatprep.subr.bf16.mxu1 %v13534_v41 }
 0xaa5   :  { %13537 = vmatpush3.bf16.msra.mxu1 %v13534_v41  ;;  %v1913_v41 = vld [vmem:[#allocation2 + $0x200] sm:$0xff] }
 0xaa6   :  { %v13556_v43 = vpack.c.bf16 %v1914_v42, %v1913_v41  ;;  %v2446_v41 = vld [vmem:[#allocation2 + $0x220] sm:$0xff]  ;;  %v2447_v42 = vld [vmem:[#allocation2 + $0x228] sm:$0xff] }
 0xb73   :  { %v12378_v4 = vpop.f32.mrb[12].mxu1 }
 0xb74   :  { %v1327_v5 = vadd.f32 %v12378_v4, %v11335_v3  ;;  %v1321_v6 = vpop.f32.mrb[13].mxu1 }
 0xb75   :  { %v1322_v7 = vadd.f32 %v11335_v3, %v1321_v6  ;;  %v11343_v3 = vld [vmem:[#allocation2 + $0x790] ss:$0 sm:$0xff] }
 0xb76   :  { %v1331_v9 = vmax.f32 %v1327_v5, 0.0 }
 0xb77   :  { %v1330_v8 = vmax.f32 %v1322_v7, 0.0 }
 0xb79   :  { %12383 = vmatprep.mubr.msk.f32.mxu0 %vm388_vm3, %v1330_v8 }
 0xb7a   :  { %12384 = vmatmul.mubr.msk.f32.vlgmr.msra.gmra.mrb[12].mxu0 %vm388_vm3, %v1331_v9 }
 0xb7b   :  { %13525 = vmatpush3.bf16.msra.mxu0 %v13522_v33 }
 0xb7c   :  { %13527 = vmatprep.subr.bf16.mxu0 %v13526_v40 }
 0xb7f   :  { %13529 = vmatpush3.bf16.msra.mxu0 %v13526_v40  ;;  %v2002_v40 = vld [vmem:[#allocation2 + $0x1a0] sm:$0xff] }
 0xb80   :  { %13539 = vmatprep.subr.bf16.mxu0 %v13538_v44  ;;  %v13560_v27 = vpack.c.bf16 %v2003_v28, %v2002_v40 }
 0xc4d   :  { %v12385_v11 = vpop.f32.mrb[12].mxu0 }
 0xc4e   :  { %v1417_v12 = vadd.f32 %v12385_v11, %v11338_v10  ;;  %v1411_v13 = vpop.f32.mrb[13].mxu0 }
 0xc4f   :  { %v1412_v14 = vadd.f32 %v11338_v10, %v1411_v13  ;;  %v11349_v13 = vld [vmem:[#allocation2 + $0x792] ss:$0 sm:$0xff] }
 0xc50   :  { %v1421_v15 = vadd.f32 %v1417_v12, %v1239_v63 }
 0xc51   :  { %v1420_v16 = vadd.f32 %v1412_v14, %v1238_v62  ;;  %v1640_v62 = vld [vmem:[#allocation2 + $0x198] sm:$0xff] }
 0xc52   :  { %v1427_v17 = vsel %vm136_vm2, %v1421_v15, 0.0  ;;  %v13542_v1 = vpack.c.bf16 %v1640_v62, %v1639_v61  ;;  %v2086_v61 = vld [vmem:[#allocation2 + $0x1c0] sm:$0xff]  ;;  %v2087_v62 = vld [vmem:[#allocation2 + $0x1c8] sm:$0xff] }
 0xc53   :  { %1428 = vadd.xlane.f32.xlu1 %v1427_v17  ;;  %v1424_v18 = vsel %vm136_vm2, %v1420_v16, 0.0 }
 0xc54   :  { %1425 = vadd.xlane.f32.xlu0 %v1424_v18 }
 0xce0   :  { %v1429_v19 = vpop.xlane.xlu1 %1428 }
 0xce1   :  { %v1431_v20 = vmul.f32 0.03125, %v1429_v19  ;;  %v1426_v21 = vpop.xlane.xlu0 %1425 }
 0xce2   :  { %v1430_v22 = vmul.f32 0.03125, %v1426_v21 }
 0xce3   :  { %v1433_v23 = vsub.f32 %v1421_v15, %v1431_v20 }
 0xce4   :  { %v1432_v24 = vsub.f32 %v1420_v16, %v1430_v22 }
 0xce5   :  { %v1435_v25 = vmul.f32 %v1433_v23, %v1433_v23 }
 0xce6   :  { %v1434_v26 = vmul.f32 %v1432_v24, %v1432_v24 }
 0xce7   :  { %v1439_v29 = vsel %vm136_vm2, %v1435_v25, 0.0 }
 0xce8   :  { %1440 = vadd.xlane.f32.xlu1 %v1439_v29  ;;  %v1436_v30 = vsel %vm136_vm2, %v1434_v26, 0.0 }
 0xce9   :  { %1437 = vadd.xlane.f32.xlu0 %v1436_v30 }
 0xd75   :  { %v1441_v45 = vpop.xlane.xlu1 %1440 }
 0xd76   :  { %v1443_v46 = vmul.f32 0.03125, %v1441_v45  ;;  %v1438_v47 = vpop.xlane.xlu0 %1437 }
 0xd77   :  { %v1442_v48 = vmul.f32 0.03125, %v1438_v47  ;;  %v2004_v47 = vld [vmem:[#allocation2 + $0x1b0] sm:$0xff] }
 0xd78   :  { %v1445_v49 = vadd.f32 1e-05, %v1443_v46 }
 0xd79   :  { %v1444_v51 = vadd.f32 1e-05, %v1442_v48  ;;  %v2005_v48 = vld [vmem:[#allocation2 + $0x1b8] sm:$0xff] }
 0xd7a   :  { %14249 = vrsqrt.f32 %v1445_v49 }
 0xd7b   :  { %14251 = vrsqrt.f32 %v1444_v51 }
 0xd84   :  { %v14250_v53 = vpop.eup %14249 }
 0xd85   :  { %v14252_v55 = vpop.eup %14251  ;;  %v1449_v56 = vmul.f32 %v14250_v53, %v1433_v23 }
 0xd86   :  { %v1448_v57 = vmul.f32 %v14252_v55, %v1432_v24  ;;  %v2170_v55 = vld [vmem:[#allocation2 + $0x1e0] sm:$0xff] }
 0xd87   :  { %v1455_v59 = vmul.f32 %v11341_v54, %v1449_v56  ;;  %v2171_v56 = vld [vmem:[#allocation2 + $0x1e8] sm:$0xff] }
 0xd88   :  { %v1454_v60 = vmul.f32 %v11341_v54, %v1448_v57  ;;  %v13564_v54 = vpack.c.bf16 %v2005_v48, %v2004_v47  ;;  %v13576_v57 = vpack.c.bf16 %v2171_v56, %v2170_v55 }
 0xd89   :  { %v14683_v0 = vadd.f32 %v11342_v58, %v1455_v59  ;;  %v2173_v59 = vld [vmem:[#allocation2 + $0x1f8] sm:$0xff] }
 0xd8a   :  { %v14681_v63 = vadd.f32 %v11342_v58, %v1454_v60  ;;  %v2172_v58 = vld [vmem:[#allocation2 + $0x1f0] sm:$0xff] }
 0xd8b   :  { %v13580_v60 = vpack.c.bf16 %v2173_v59, %v2172_v58 }
 0xd8c   :  { %12394 = vmatprep.mubr.msk.f32.mxu0 %vm136_vm2, %v14681_v63  ;;  %12405 = vmatprep.mubr.msk.f32.mxu1 %vm136_vm2, %v14681_v63 }
 0xd8d   :  { %12395 = vmatmul.mubr.msk.f32.vlgmr.msra.gmra.mrb[14].mxu0 %vm136_vm2, %v14683_v0  ;;  %12406 = vmatmul.mubr.msk.f32.vlgmr.msra.gmra.mrb[14].mxu1 %vm136_vm2, %v14683_v0 }
 0xd8e   :  { %13541 = vmatpush3.bf16.msra.mxu0 %v13538_v44  ;;  %12416 = vmatprep.mubr.msk.f32.mxu0 %vm136_vm2, %v14681_v63 }
 0xd8f   :  { %13543 = vmatprep.subr.bf16.mxu0 %v13542_v1 }
 0xd92   :  { %13545 = vmatpush3.bf16.msra.mxu0 %v13542_v1  ;;  %v13568_v1 = vpack.c.bf16 %v2087_v62, %v2086_v61 }
 0xd95   :  { %12417 = vmatmul.mubr.msk.f32.vlgmr.msra.gmra.mrb[16].mxu0 %vm136_vm2, %v14683_v0 }
 0xe60   :  { %v12396_v4 = vpop.f32.mrb[14].mxu0  ;;  %v12407_v5 = vpop.f32.mrb[14].mxu1 }
 0xe61   :  { %v1634_v6 = vadd.f32 %v12407_v5, %v11346_v2  ;;  %v1544_v7 = vpop.f32.mrb[15].mxu0  ;;  %v1628_v8 = vpop.f32.mrb[15].mxu1  ;;  %v1550_v14 = vadd.f32 %v12396_v4, %v11343_v3 }
 0xe62   :  { %v1545_v9 = vadd.f32 %v11343_v3, %v1544_v7  ;;  %v1629_v10 = vadd.f32 %v11346_v2, %v1628_v8  ;;  %v2088_v2 = vld [vmem:[#allocation2 + $0x1d0] sm:$0xff]  ;;  %v2089_v3 = vld [vmem:[#allocation2 + $0x1d8] sm:$0xff] }
 0xe63   :  { %v1722_v19 = vmul.f32 0.25, %v1550_v14  ;;  %v11361_v7 = vld [vmem:[#allocation2 + $0x793] ss:$0 sm:$0xff] }
 0xe64   :  { %v1721_v11 = vmul.f32 0.25, %v1545_v9  ;;  %v13546_v12 = vpack.c.bf16 %v1634_v6, %v1629_v10  ;;  %v13572_v6 = vpack.c.bf16 %v2089_v3, %v2088_v2 }
 0xe66   :  { %13548 = vmatprep.subr.msk.bf16.mxu1 %vm14615_vm4, %v13546_v12  ;;  %12423 = vmatprep.mubr.msk.f32.mxu1 %vm388_vm3, %v1721_v11 }
 0xe67   :  { %13551 = vmatpush3.bf16.xpose.msk.msra.mxu1 %vm14615_vm4, %v13546_v12 }
 0xe68   :  { %v12418_v15 = vpop.f32.mrb[16].mxu0  ;;  %13557 = vmatprep.subr.bf16.mxu1 %v13556_v43 }
 0xe69   :  { %v1718_v16 = vadd.f32 %v12418_v15, %v11349_v13  ;;  %v1712_v17 = vpop.f32.mrb[17].mxu0 }
 0xe6a   :  { %v1713_v18 = vadd.f32 %v11349_v13, %v1712_v17  ;;  %v11367_v13 = vld [vmem:[#allocation2 + $0x795] ss:$0 sm:$0xff] }
 0xe6c   :  { %v13552_v20 = vpack.c.bf16 %v1718_v16, %v1713_v18 }
 0xe6e   :  { %13553 = vmatprep.subr.bf16.mxu0 %v13552_v20  ;;  %12424 = vmatmul.mubr.msk.f32.vlgmr.msra.gmra.mrb[16].mxu1 %vm388_vm3, %v1722_v19  ;;  %v11364_v19 = vld [vmem:[#allocation2 + $0x794] ss:$0 sm:$0xff] }
 0xe6f   :  { %13555 = vmatpush3.bf16.msra.mxu0 %v13552_v20  ;;  %13559 = vmatpush3.bf16.msra.mxu1 %v13556_v43  ;;  %v13594_v43 = vpack.c.bf16 %v2447_v42, %v2446_v41 }
 0xe70   :  { %13561 = vmatprep.subr.bf16.mxu0 %v13560_v27  ;;  %13569 = vmatprep.subr.bf16.mxu1 %v13568_v1 }
 0xf41   :  { %v12425_v21 = vpop.f32.mrb[16].mxu1 }
 0xf42   :  { %v1807_v22 = vadd.f32 %v12425_v21, %v14627_v52  ;;  %v1801_v23 = vpop.f32.mrb[17].mxu1 }
 0xf43   :  { %v1802_v24 = vadd.f32 %v1801_v23, %v14625_v50 }
 0xf44   :  { %v1813_v25 = vsel %vm388_vm3, %v1807_v22, -inf }
 0xf45   :  { %1814 = vmax.xlane.f32.xlu1 %v1813_v25  ;;  %v1810_v26 = vsel %vm388_vm3, %v1802_v24, -inf }
 0xf46   :  { %1811 = vmax.xlane.f32.xlu0 %v1810_v26 }
 0xfd2   :  { %v1815_v29 = vpop.xlane.xlu1 %1814 }
 0xfd3   :  { %v1817_v30 = vsub.f32 %v1807_v22, %v1815_v29  ;;  %v1812_v31 = vpop.xlane.xlu0 %1811 }
 0xfd4   :  { %v1816_v32 = vsub.f32 %v1802_v24, %v1812_v31 }
 0xfd5   :  { %v1820_v33 = vmul.f32 1.442695, %v1817_v30 }
 0xfd6   :  { %v1818_v34 = vmul.f32 1.442695, %v1816_v32 }
 0xfd7   :  { %14253 = vpow2.f32 %v1820_v33 }
 0xfd8   :  { %14255 = vpow2.f32 %v1818_v34 }
 0xfe1   :  { %v14254_v35 = vpop.eup %14253 }
 0xfe2   :  { %v14256_v36 = vpop.eup %14255  ;;  %v1825_v37 = vsel %vm388_vm3, %v14254_v35, 0.0 }
 0xfe3   :  { %1826 = vadd.xlane.f32.xlu1 %v1825_v37  ;;  %v1822_v38 = vsel %vm388_vm3, %v14256_v36, 0.0 }
 0xfe4   :  { %1823 = vadd.xlane.f32.xlu0 %v1822_v38 }
0x1070   :  { %v1827_v44 = vpop.xlane.xlu1 %1826 }
0x1071   :  { %14257 = vrcp.f32 %v1827_v44  ;;  %v1824_v45 = vpop.xlane.xlu0 %1823 }
0x1072   :  { %14259 = vrcp.f32 %v1824_v45 }
0x107b   :  { %v14258_v46 = vpop.eup %14257 }
0x107c   :  { %v14260_v49 = vpop.eup %14259  ;;  %v1831_v53 = vmul.f32 %v14258_v46, %v14254_v35 }
0x107d   :  { %v1830_v51 = vmul.f32 %v14260_v49, %v14256_v36 }
0x107f   :  { %12430 = vmatprep.mubr.msk.f32.mxu0 %vm388_vm3, %v1830_v51 }
0x1080   :  { %12431 = vmatmul.mubr.msk.f32.vlgmr.msra.gmra.mrb[18].mxu0 %vm388_vm3, %v1831_v53 }
0x1081   :  { %13563 = vmatpush3.bf16.msra.mxu0 %v13560_v27  ;;  %12448 = vmatprep.mubr.msk.f32.mxu0 %vm136_vm2, %v14681_v63 }
0x1082   :  { %13565 = vmatprep.subr.bf16.mxu0 %v13564_v54 }
0x1085   :  { %13567 = vmatpush3.bf16.msra.mxu0 %v13564_v54  ;;  %v11360_v54 = vld [vmem:[#allocation2 + $0x796] ss:$0 sm:$0xff] }
0x1086   :  { %13577 = vmatprep.subr.bf16.mxu0 %v13576_v57 }
0x1088   :  { %12449 = vmatmul.mubr.msk.f32.vlgmr.msra.gmra.mrb[20].mxu0 %vm136_vm2, %v14683_v0 }
0x1089   :  { %13579 = vmatpush3.bf16.msra.mxu0 %v13576_v57  ;;  %12470 = vmatprep.mubr.msk.f32.mxu0 %vm136_vm2, %v14681_v63 }
0x108a   :  { %13581 = vmatprep.subr.bf16.mxu0 %v13580_v60 }
0x108d   :  { %13583 = vmatpush3.bf16.msra.mxu0 %v13580_v60 }
0x1090   :  { %12471 = vmatmul.mubr.msk.f32.vlgmr.msra.gmra.mrb[22].mxu0 %vm136_vm2, %v14683_v0 }
0x1153   :  { %v12432_v4 = vpop.f32.mrb[18].mxu0 }
0x1154   :  { %v1904_v5 = vpop.f32.mrb[19].mxu0 }
0x1155   :  { %12437 = vmatprep.mubr.msk.f32.mxu1 %vm388_vm3, %v1904_v5 }
0x1156   :  { %12438 = vmatmul.mubr.msk.f32.vlgmr.msra.gmra.mrb[18].mxu1 %vm388_vm3, %v12432_v4 }
0x1157   :  { %13571 = vmatpush3.bf16.msra.mxu1 %v13568_v1  ;;  %12459 = vmatprep.mubr.msk.f32.mxu1 %vm136_vm2, %v14681_v63 }
0x1158   :  { %13573 = vmatprep.subr.bf16.mxu1 %v13572_v6 }
0x115b   :  { %v12450_v8 = vpop.f32.mrb[20].mxu0  ;;  %13575 = vmatpush3.bf16.msra.mxu1 %v13572_v6 }
0x115c   :  { %v2083_v9 = vadd.f32 %v12450_v8, %v11361_v7  ;;  %v2077_v10 = vpop.f32.mrb[21].mxu0 }
0x115d   :  { %v2078_v11 = vadd.f32 %v11361_v7, %v2077_v10  ;;  %v2574_v10 = vld [vmem:[#allocation2 + $0x248] sm:$0xff] }
0x115e   :  { %12460 = vmatmul.mubr.msk.f32.vlgmr.msra.gmra.mrb[20].mxu1 %vm136_vm2, %v14683_v0  ;;  %v2255_v25 = vmul.f32 0.25, %v2083_v9 }
0x115f   :  { %v2254_v12 = vmul.f32 0.25, %v2078_v11 }
0x1161   :  { %12477 = vmatprep.mubr.msk.f32.mxu1 %vm388_vm3, %v2254_v12  ;;  %v2575_v12 = vld [vmem:[#allocation2 + $0x250] sm:$0xff] }
0x1163   :  { %v12472_v14 = vpop.f32.mrb[22].mxu0 }
0x1164   :  { %v2251_v15 = vadd.f32 %v12472_v14, %v11367_v13  ;;  %v2245_v16 = vpop.f32.mrb[23].mxu0 }
0x1165   :  { %v2246_v17 = vadd.f32 %v11367_v13, %v2245_v16  ;;  %v2576_v13 = vld [vmem:[#allocation2 + $0x258] sm:$0xff] }
0x1166   :  { %v13602_v14 = vpack.c.bf16 %v2576_v13, %v2575_v12 }
0x1167   :  { %v13590_v18 = vpack.c.bf16 %v2251_v15, %v2246_v17 }
0x1169   :  { %13591 = vmatprep.subr.bf16.mxu0 %v13590_v18 }
0x116a   :  { %13593 = vmatpush3.bf16.msra.mxu0 %v13590_v18 }
0x1231   :  { %v12461_v20 = vpop.f32.mrb[20].mxu1 }
0x1232   :  { %v2167_v21 = vadd.f32 %v12461_v20, %v11364_v19  ;;  %v2161_v22 = vpop.f32.mrb[21].mxu1 }
0x1233   :  { %v2162_v23 = vadd.f32 %v11364_v19, %v2161_v22  ;;  %v11378_v22 = vld [vmem:[#allocation2 + $0x797] ss:$0 sm:$0xff] }
0x1235   :  { %v13584_v24 = vpack.c.bf16 %v2167_v21, %v2162_v23 }
0x1237   :  { %13586 = vmatprep.subr.msk.bf16.mxu1 %vm14615_vm4, %v13584_v24 }
0x1238   :  { %13589 = vmatpush3.bf16.xpose.msk.msra.mxu1 %vm14615_vm4, %v13584_v24 }
0x1239   :  { %13595 = vmatprep.subr.bf16.mxu1 %v13594_v43 }
0x123f   :  { %12478 = vmatmul.mubr.msk.f32.vlgmr.msra.gmra.mrb[22].mxu1 %vm388_vm3, %v2255_v25 }
0x1240   :  { %13597 = vmatpush3.bf16.msra.mxu1 %v13594_v43 }
0x1312   :  { %v12479_v26 = vpop.f32.mrb[22].mxu1 }
0x1313   :  { %v2340_v29 = vadd.f32 %v12479_v26, %v14627_v52  ;;  %v2334_v30 = vpop.f32.mrb[23].mxu1  ;;  %v11379_v26 = vld [vmem:[#allocation2 + $0x798] ss:$0 sm:$0xff] }
0x1314   :  { %v2335_v31 = vadd.f32 %v2334_v30, %v14625_v50 }
0x1315   :  { %v2346_v32 = vsel %vm388_vm3, %v2340_v29, -inf }
0x1316   :  { %2347 = vmax.xlane.f32.xlu1 %v2346_v32  ;;  %v2343_v33 = vsel %vm388_vm3, %v2335_v31, -inf }
0x1317   :  { %2344 = vmax.xlane.f32.xlu0 %v2343_v33  ;;  %v2665_v33 = vld [vmem:[#allocation2 + $0x260] sm:$0xff] }
0x13a3   :  { %v2348_v34 = vpop.xlane.xlu1 %2347 }
0x13a4   :  { %v2350_v35 = vsub.f32 %v2340_v29, %v2348_v34  ;;  %v2345_v36 = vpop.xlane.xlu0 %2344  ;;  %v2666_v34 = vld [vmem:[#allocation2 + $0x268] sm:$0xff] }
0x13a5   :  { %v2349_v37 = vsub.f32 %v2335_v31, %v2345_v36  ;;  %v11380_v36 = vld [vmem:[#allocation2 + $0x799] ss:$0 sm:$0xff] }
0x13a6   :  { %v2353_v38 = vmul.f32 1.442695, %v2350_v35  ;;  %v13606_v35 = vpack.c.bf16 %v2666_v34, %v2665_v33  ;;  %v11391_v33 = vld [vmem:[#allocation2 + $0x7a1] ss:$0 sm:$0xff]  ;;  %v11388_v34 = vld [vmem:[#allocation2 + $0x7a0] ss:$0 sm:$0xff] }
0x13a7   :  { %v2351_v40 = vmul.f32 1.442695, %v2349_v37 }
0x13a8   :  { %14261 = vpow2.f32 %v2353_v38  ;;  %13607 = vmatprep.subr.bf16.mxu1 %v13606_v35 }
0x13a9   :  { %14263 = vpow2.f32 %v2351_v40 }
0x13b2   :  { %v14262_v28 = vpop.eup %14261 }
0x13b3   :  { %v14264_v27 = vpop.eup %14263  ;;  %v2358_v52 = vsel %vm388_vm3, %v14262_v28, 0.0 }
0x13b4   :  { %2359 = vadd.xlane.f32.xlu1 %v2358_v52  ;;  %v2355_v50 = vsel %vm388_vm3, %v14264_v27, 0.0 }
0x13b5   :  { %2356 = vadd.xlane.f32.xlu0 %v2355_v50  ;;  %v11383_v50 = vld [vmem:[#allocation2 + $0x79a] ss:$0 sm:$0xff] }
0x1441   :  { %v2360_v44 = vpop.xlane.xlu1 %2359 }
0x1442   :  { %14265 = vrcp.f32 %v2360_v44  ;;  %v2357_v45 = vpop.xlane.xlu0 %2356 }
0x1443   :  { %14267 = vrcp.f32 %v2357_v45 }
0x144c   :  { %v14266_v46 = vpop.eup %14265 }
0x144d   :  { %v14268_v47 = vpop.eup %14267  ;;  %v2364_v49 = vmul.f32 %v14266_v46, %v14262_v28 }
0x144e   :  { %v2363_v48 = vmul.f32 %v14268_v47, %v14264_v27 }
0x1450   :  { %12484 = vmatprep.mubr.msk.f32.mxu0 %vm388_vm3, %v2363_v48 }
0x1451   :  { %12485 = vmatmul.mubr.msk.f32.vlgmr.msra.gmra.mrb[24].mxu0 %vm388_vm3, %v2364_v49 }
0x1524   :  { %v12486_v51 = vpop.f32.mrb[24].mxu0 }
0x1525   :  { %v2437_v53 = vpop.f32.mrb[25].mxu0 }
0x1526   :  { %12491 = vmatprep.mubr.msk.f32.mxu1 %vm388_vm3, %v2437_v53 }
0x1527   :  { %12492 = vmatmul.mubr.msk.f32.vlgmr.msra.gmra.mrb[18].mxu1 %vm388_vm3, %v12486_v51 }
0x1528   :  { %13609 = vmatpush3.bf16.msra.mxu1 %v13606_v35 }
0x15fa   :  { %v12493_v55 = vpop.f32.mrb[18].mxu1 }
0x15fb   :  { %v14200_v56 = vadd.f32 %v12493_v55, %v11360_v54  ;;  %v2520_v57 = vpop.f32.mrb[19].mxu1 }
0x15fc   :  { %v14201_v58 = vadd.f32 %v11360_v54, %v2520_v57 }
0x15fd   :  { %v2532_v59 = vadd.f32 %v14200_v56, %v14683_v0 }
0x15fe   :  { %v2531_v60 = vadd.f32 %v14201_v58, %v14681_v63  ;;  %v2573_v63 = vld [vmem:[#allocation2 + $0x240] sm:$0xff] }
0x15ff   :  { %v2538_v61 = vsel %vm136_vm2, %v2532_v59, 0.0  ;;  %v13598_v11 = vpack.c.bf16 %v2574_v10, %v2573_v63  ;;  %v2970_v63 = vld [vmem:[#allocation2 + $0x2c0] sm:$0xff]  ;;  %v2971_v10 = vld [vmem:[#allocation2 + $0x2c8] sm:$0xff] }
0x1600   :  { %2539 = vadd.xlane.f32.xlu1 %v2538_v61  ;;  %v2535_v62 = vsel %vm136_vm2, %v2531_v60, 0.0  ;;  %v2796_v61 = vld [vmem:[#allocation2 + $0x280] sm:$0xff] }
0x1601   :  { %2536 = vadd.xlane.f32.xlu0 %v2535_v62  ;;  %13599 = vmatprep.subr.bf16.mxu0 %v13598_v11  ;;  %v2797_v62 = vld [vmem:[#allocation2 + $0x288] sm:$0xff] }
0x1602   :  { %13601 = vmatpush3.bf16.msra.mxu0 %v13598_v11  ;;  %v13626_v11 = vpack.c.bf16 %v2971_v10, %v2970_v63  ;;  %v3247_v63 = vld [vmem:[#allocation2 + $0x348] sm:$0xff] }
0x1603   :  { %13603 = vmatprep.subr.bf16.mxu0 %v13602_v14 }
0x1606   :  { %13605 = vmatpush3.bf16.msra.mxu0 %v13602_v14 }
0x168d   :  { %v2540_v1 = vpop.xlane.xlu1 %2539 }
0x168e   :  { %v2542_v2 = vmul.f32 0.03125, %v2540_v1  ;;  %v2537_v3 = vpop.xlane.xlu0 %2536  ;;  %v13610_v1 = vpack.c.bf16 %v2797_v62, %v2796_v61 }
0x168f   :  { %v2541_v4 = vmul.f32 0.03125, %v2537_v3  ;;  %v2887_v3 = vld [vmem:[#allocation2 + $0x2a8] sm:$0xff] }
0x1690   :  { %v2544_v5 = vsub.f32 %v2532_v59, %v2542_v2  ;;  %v2886_v2 = vld [vmem:[#allocation2 + $0x2a0] sm:$0xff]  ;;  %13611 = vmatprep.subr.bf16.mxu1 %v13610_v1 }
0x1691   :  { %v2543_v6 = vsub.f32 %v2531_v60, %v2541_v4  ;;  %v13618_v4 = vpack.c.bf16 %v2887_v3, %v2886_v2 }
0x1692   :  { %v2546_v7 = vmul.f32 %v2544_v5, %v2544_v5 }
0x1693   :  { %v2545_v8 = vmul.f32 %v2543_v6, %v2543_v6  ;;  %13619 = vmatprep.subr.bf16.mxu0 %v13618_v4 }
0x1694   :  { %v2550_v9 = vsel %vm136_vm2, %v2546_v7, 0.0 }
0x1695   :  { %2551 = vadd.xlane.f32.xlu1 %v2550_v9  ;;  %v2547_v0 = vsel %vm136_vm2, %v2545_v8, 0.0  ;;  %v2888_v8 = vld [vmem:[#allocation2 + $0x2b0] sm:$0xff]  ;;  %v2889_v9 = vld [vmem:[#allocation2 + $0x2b8] sm:$0xff] }
0x1696   :  { %2548 = vadd.xlane.f32.xlu0 %v2547_v0  ;;  %v13622_v0 = vpack.c.bf16 %v2889_v9, %v2888_v8  ;;  %v3336_v8 = vld [vmem:[#allocation2 + $0x2e8] sm:$0xff] }
0x1722   :  { %v2552_v15 = vpop.xlane.xlu1 %2551 }
0x1723   :  { %v2554_v16 = vmul.f32 0.03125, %v2552_v15  ;;  %v2549_v17 = vpop.xlane.xlu0 %2548 }
0x1724   :  { %v2553_v18 = vmul.f32 0.03125, %v2549_v17 }
0x1725   :  { %v2556_v19 = vadd.f32 1e-05, %v2554_v16 }
0x1726   :  { %v2555_v20 = vadd.f32 1e-05, %v2553_v18 }
0x1727   :  { %14269 = vrsqrt.f32 %v2556_v19  ;;  %v11386_v19 = vld [vmem:[#allocation2 + $0x79b] ss:$0 sm:$0xff] }
0x1728   :  { %14271 = vrsqrt.f32 %v2555_v20 }
0x1731   :  { %v14270_v21 = vpop.eup %14269 }
0x1732   :  { %v14272_v23 = vpop.eup %14271  ;;  %v2560_v24 = vmul.f32 %v14270_v21, %v2544_v5  ;;  %v2798_v5 = vld [vmem:[#allocation2 + $0x290] sm:$0xff] }
0x1733   :  { %v2559_v25 = vmul.f32 %v14272_v23, %v2543_v6  ;;  %v2799_v6 = vld [vmem:[#allocation2 + $0x298] sm:$0xff] }
0x1734   :  { %v2566_v29 = vmul.f32 %v11378_v22, %v2560_v24  ;;  %v13614_v7 = vpack.c.bf16 %v2799_v6, %v2798_v5  ;;  %v11387_v23 = vld [vmem:[#allocation2 + $0x79c] ss:$0 sm:$0xff] }
0x1735   :  { %v2565_v30 = vmul.f32 %v11378_v22, %v2559_v25 }
0x1736   :  { %v2572_v32 = vadd.f32 %v11379_v26, %v2566_v29  ;;  %v2973_v29 = vld [vmem:[#allocation2 + $0x2d8] sm:$0xff] }
0x1737   :  { %v2571_v31 = vadd.f32 %v11379_v26, %v2565_v30  ;;  %v2972_v26 = vld [vmem:[#allocation2 + $0x2d0] sm:$0xff] }
0x1739   :  { %12502 = vmatprep.mubr.msk.f32.mxu0 %vm136_vm2, %v2571_v31 }
0x173a   :  { %12503 = vmatmul.mubr.msk.f32.vlgmr.msra.gmra.mrb[26].mxu0 %vm136_vm2, %v2572_v32 }
0x173b   :  { %13621 = vmatpush3.bf16.msra.mxu0 %v13618_v4 }
0x173c   :  { %13623 = vmatprep.subr.bf16.mxu0 %v13622_v0 }
0x173f   :  { %13625 = vmatpush3.bf16.msra.mxu0 %v13622_v0  ;;  %v3246_v0 = vld [vmem:[#allocation2 + $0x340] sm:$0xff] }
0x1740   :  { %v13644_v10 = vpack.c.bf16 %v3247_v63, %v3246_v0 }
0x180d   :  { %v12504_v37 = vpop.f32.mrb[26].mxu0 }
0x180e   :  { %v2660_v38 = vadd.f32 %v12504_v37, %v11380_v36  ;;  %v2654_v40 = vpop.f32.mrb[27].mxu0 }
0x180f   :  { %v2655_v28 = vadd.f32 %v11380_v36, %v2654_v40 }
0x1810   :  { %v2664_v52 = vmax.f32 %v2660_v38, 0.0 }
0x1811   :  { %v2663_v27 = vmax.f32 %v2655_v28, 0.0 }
0x1813   :  { %12509 = vmatprep.mubr.msk.f32.mxu1 %vm388_vm3, %v2663_v27 }
0x1814   :  { %12510 = vmatmul.mubr.msk.f32.vlgmr.msra.gmra.mrb[24].mxu1 %vm388_vm3, %v2664_v52 }
0x1815   :  { %13613 = vmatpush3.bf16.msra.mxu1 %v13610_v1 }
0x1816   :  { %13615 = vmatprep.subr.bf16.mxu1 %v13614_v7 }
0x1819   :  { %13617 = vmatpush3.bf16.msra.mxu1 %v13614_v7  ;;  %v3335_v7 = vld [vmem:[#allocation2 + $0x2e0] sm:$0xff] }
0x181a   :  { %13627 = vmatprep.subr.bf16.mxu1 %v13626_v11  ;;  %v13648_v9 = vpack.c.bf16 %v3336_v8, %v3335_v7 }
0x18e7   :  { %v12511_v41 = vpop.f32.mrb[24].mxu1 }
0x18e8   :  { %v2750_v42 = vadd.f32 %v12511_v41, %v11383_v50  ;;  %v2744_v43 = vpop.f32.mrb[25].mxu1  ;;  %v11394_v41 = vld [vmem:[#allocation2 + $0x7a2] ss:$0 sm:$0xff] }
0x18e9   :  { %v2745_v44 = vadd.f32 %v11383_v50, %v2744_v43 }
0x18ea   :  { %v2754_v45 = vadd.f32 %v2750_v42, %v2572_v32  ;;  %v13630_v32 = vpack.c.bf16 %v2973_v29, %v2972_v26  ;;  %v3419_v26 = vld [vmem:[#allocation2 + $0x300] sm:$0xff]  ;;  %v3420_v29 = vld [vmem:[#allocation2 + $0x308] sm:$0xff] }
0x18eb   :  { %v2753_v46 = vadd.f32 %v2745_v44, %v2571_v31 }
0x18ec   :  { %v2760_v47 = vsel %vm136_vm2, %v2754_v45, 0.0 }
0x18ed   :  { %2761 = vadd.xlane.f32.xlu1 %v2760_v47  ;;  %v2757_v48 = vsel %vm136_vm2, %v2753_v46, 0.0 }
0x18ee   :  { %2758 = vadd.xlane.f32.xlu0 %v2757_v48 }
0x197a   :  { %v2762_v49 = vpop.xlane.xlu1 %2761 }
0x197b   :  { %v2764_v51 = vmul.f32 0.03125, %v2762_v49  ;;  %v2759_v53 = vpop.xlane.xlu0 %2758 }
0x197c   :  { %v2763_v54 = vmul.f32 0.03125, %v2759_v53 }
0x197d   :  { %v2766_v55 = vsub.f32 %v2754_v45, %v2764_v51  ;;  %v14777_v51 = vld [vmem:[#allocation2 + $0x940] sm:$0xff] }
0x197e   :  { %v2765_v56 = vsub.f32 %v2753_v46, %v2763_v54 }
0x197f   :  { %v2768_v57 = vmul.f32 %v2766_v55, %v2766_v55 }
0x1980   :  { %v2767_v58 = vmul.f32 %v2765_v56, %v2765_v56 }
0x1981   :  { %v2772_v59 = vsel %vm136_vm2, %v2768_v57, 0.0 }
0x1982   :  { %2773 = vadd.xlane.f32.xlu1 %v2772_v59  ;;  %v2769_v60 = vsel %vm136_vm2, %v2767_v58, 0.0 }
0x1983   :  { %2770 = vadd.xlane.f32.xlu0 %v2769_v60 }
0x1a0f   :  { %v2774_v12 = vpop.xlane.xlu1 %2773 }
0x1a10   :  { %v2776_v13 = vmul.f32 0.03125, %v2774_v12  ;;  %v2771_v14 = vpop.xlane.xlu0 %2770 }
0x1a11   :  { %v2775_v15 = vmul.f32 0.03125, %v2771_v14  ;;  %v3337_v14 = vld [vmem:[#allocation2 + $0x2f0] sm:$0xff] }
0x1a12   :  { %v2778_v16 = vadd.f32 1e-05, %v2776_v13 }
0x1a13   :  { %v2777_v17 = vadd.f32 1e-05, %v2775_v15  ;;  %v3338_v15 = vld [vmem:[#allocation2 + $0x2f8] sm:$0xff] }
0x1a14   :  { %14273 = vrsqrt.f32 %v2778_v16 }
0x1a15   :  { %14275 = vrsqrt.f32 %v2777_v17 }
0x1a1e   :  { %v14274_v18 = vpop.eup %14273 }
0x1a1f   :  { %v14276_v20 = vpop.eup %14275  ;;  %v2782_v21 = vmul.f32 %v14274_v18, %v2766_v55  ;;  %v14780_v55 = vld [vmem:[#allocation2 + $0x938] sm:$0xff] }
0x1a20   :  { %v2781_v22 = vmul.f32 %v14276_v20, %v2765_v56  ;;  %v3503_v20 = vld [vmem:[#allocation2 + $0x320] sm:$0xff] }
0x1a21   :  { %v2788_v24 = vmul.f32 %v11386_v19, %v2782_v21  ;;  %v3504_v21 = vld [vmem:[#allocation2 + $0x328] sm:$0xff] }
0x1a22   :  { %v2787_v25 = vmul.f32 %v11386_v19, %v2781_v22  ;;  %v13652_v19 = vpack.c.bf16 %v3338_v15, %v3337_v14  ;;  %v13664_v22 = vpack.c.bf16 %v3504_v21, %v3503_v20  ;;  %v11405_v21 = vld [vmem:[#allocation2 + $0x7a6] ss:$0 sm:$0xff] }
0x1a23   :  { %v14757_v31 = vadd.f32 %v11387_v23, %v2788_v24  ;;  %v3506_v24 = vld [vmem:[#allocation2 + $0x338] sm:$0xff] }
0x1a24   :  { %v14755_v30 = vadd.f32 %v11387_v23, %v2787_v25  ;;  %v3505_v23 = vld [vmem:[#allocation2 + $0x330] sm:$0xff] }
0x1a25   :  { %v13668_v25 = vpack.c.bf16 %v3506_v24, %v3505_v23 }
0x1a26   :  { %12520 = vmatprep.mubr.msk.f32.mxu1 %vm136_vm2, %v14755_v30  ;;  %12531 = vmatprep.mubr.msk.f32.mxu0 %vm136_vm2, %v14755_v30 }
0x1a27   :  { %12521 = vmatmul.mubr.msk.f32.vlgmr.msra.gmra.mrb[26].mxu1 %vm136_vm2, %v14757_v31  ;;  %12532 = vmatmul.mubr.msk.f32.vlgmr.msra.gmra.mrb[28].mxu0 %vm136_vm2, %v14757_v31 }
0x1a28   :  { %13629 = vmatpush3.bf16.msra.mxu1 %v13626_v11  ;;  %12542 = vmatprep.mubr.msk.f32.mxu1 %vm136_vm2, %v14755_v30 }
0x1a29   :  { %13631 = vmatprep.subr.bf16.mxu1 %v13630_v32 }
0x1a2c   :  { %13633 = vmatpush3.bf16.msra.mxu1 %v13630_v32  ;;  %v13656_v32 = vpack.c.bf16 %v3420_v29, %v3419_v26 }
0x1a2f   :  { %12543 = vmatmul.mubr.msk.f32.vlgmr.msra.gmra.mrb[28].mxu1 %vm136_vm2, %v14757_v31 }
0x1afa   :  { %v12522_v35 = vpop.f32.mrb[26].mxu1  ;;  %v12533_v36 = vpop.f32.mrb[28].mxu0 }
0x1afb   :  { %v2967_v37 = vadd.f32 %v12533_v36, %v11391_v33  ;;  %v2877_v38 = vpop.f32.mrb[27].mxu1  ;;  %v2961_v40 = vpop.f32.mrb[29].mxu0  ;;  %v2883_v42 = vadd.f32 %v12522_v35, %v11388_v34 }
0x1afc   :  { %v2878_v28 = vadd.f32 %v11388_v34, %v2877_v38  ;;  %v2962_v27 = vadd.f32 %v11391_v33, %v2961_v40  ;;  %v3421_v33 = vld [vmem:[#allocation2 + $0x310] sm:$0xff]  ;;  %v3422_v34 = vld [vmem:[#allocation2 + $0x318] sm:$0xff]  ;;  %v11406_v38 = vld [vmem:[#allocation2 + $0x7a3] ss:$0 sm:$0xff] }
0x1afd   :  { %v3055_v47 = vmul.f32 0.25, %v2883_v42 }
0x1afe   :  { %v3054_v52 = vmul.f32 0.25, %v2878_v28  ;;  %v13634_v50 = vpack.c.bf16 %v2967_v37, %v2962_v27  ;;  %v13660_v37 = vpack.c.bf16 %v3422_v34, %v3421_v33 }
0x1b00   :  { %13636 = vmatprep.subr.msk.bf16.mxu0 %vm14615_vm4, %v13634_v50  ;;  %12549 = vmatprep.mubr.msk.f32.mxu0 %vm388_vm3, %v3054_v52 }
0x1b01   :  { %13639 = vmatpush3.bf16.xpose.msk.msra.mxu0 %vm14615_vm4, %v13634_v50 }
0x1b02   :  { %v12544_v43 = vpop.f32.mrb[28].mxu1  ;;  %13645 = vmatprep.subr.bf16.mxu0 %v13644_v10 }
0x1b03   :  { %v3051_v44 = vadd.f32 %v12544_v43, %v11394_v41  ;;  %v3045_v45 = vpop.f32.mrb[29].mxu1 }
0x1b04   :  { %v3046_v46 = vadd.f32 %v11394_v41, %v3045_v45  ;;  %v11412_v41 = vld [vmem:[#allocation2 + $0x7a5] ss:$0 sm:$0xff] }
0x1b06   :  { %v13640_v48 = vpack.c.bf16 %v3051_v44, %v3046_v46 }
0x1b08   :  { %13641 = vmatprep.subr.bf16.mxu1 %v13640_v48  ;;  %12550 = vmatmul.mubr.msk.f32.vlgmr.msra.gmra.mrb[30].mxu0 %vm388_vm3, %v3055_v47  ;;  %v11409_v47 = vld [vmem:[#allocation2 + $0x7a4] ss:$0 sm:$0xff] }
0x1b09   :  { %13643 = vmatpush3.bf16.msra.mxu1 %v13640_v48  ;;  %13647 = vmatpush3.bf16.msra.mxu0 %v13644_v10  ;;  %v3779_v10 = vld [vmem:[#allocation2 + $0x360] sm:$0xff] }
0x1b0a   :  { %13649 = vmatprep.subr.bf16.mxu1 %v13648_v9  ;;  %13657 = vmatprep.subr.bf16.mxu0 %v13656_v32 }
0x1bdb   :  { %v12551_v49 = vpop.f32.mrb[30].mxu0 }
0x1bdc   :  { %v3140_v53 = vadd.f32 %v14777_v51, %v12551_v49  ;;  %v3134_v54 = vpop.f32.mrb[31].mxu0 }
0x1bdd   :  { %v3135_v56 = vadd.f32 %v14780_v55, %v3134_v54 }
0x1bde   :  { %v3146_v57 = vsel %vm388_vm3, %v3140_v53, -inf }
0x1bdf   :  { %3147 = vmax.xlane.f32.xlu1 %v3146_v57  ;;  %v3143_v58 = vsel %vm388_vm3, %v3135_v56, -inf }
0x1be0   :  { %3144 = vmax.xlane.f32.xlu0 %v3143_v58 }
0x1c6c   :  { %v3148_v59 = vpop.xlane.xlu1 %3147 }
0x1c6d   :  { %v3150_v60 = vsub.f32 %v3140_v53, %v3148_v59  ;;  %v3145_v61 = vpop.xlane.xlu0 %3144 }
0x1c6e   :  { %v3149_v62 = vsub.f32 %v3135_v56, %v3145_v61 }
0x1c6f   :  { %v3153_v1 = vmul.f32 1.442695, %v3150_v60 }
0x1c70   :  { %v3151_v2 = vmul.f32 1.442695, %v3149_v62 }
0x1c71   :  { %14277 = vpow2.f32 %v3153_v1 }
0x1c72   :  { %14279 = vpow2.f32 %v3151_v2 }
0x1c7b   :  { %v14278_v3 = vpop.eup %14277 }
0x1c7c   :  { %v14280_v4 = vpop.eup %14279  ;;  %v3158_v5 = vsel %vm388_vm3, %v14278_v3, 0.0 }
0x1c7d   :  { %3159 = vadd.xlane.f32.xlu1 %v3158_v5  ;;  %v3155_v6 = vsel %vm388_vm3, %v14280_v4, 0.0 }
0x1c7e   :  { %3156 = vadd.xlane.f32.xlu0 %v3155_v6 }
0x1d0a   :  { %v3160_v11 = vpop.xlane.xlu1 %3159 }
0x1d0b   :  { %14281 = vrcp.f32 %v3160_v11  ;;  %v3157_v12 = vpop.xlane.xlu0 %3156  ;;  %v3780_v11 = vld [vmem:[#allocation2 + $0x368] sm:$0xff] }
0x1d0c   :  { %14283 = vrcp.f32 %v3157_v12  ;;  %v13682_v12 = vpack.c.bf16 %v3780_v11, %v3779_v10  ;;  %v11428_v11 = vld [vmem:[#allocation2 + $0x7aa] ss:$0 sm:$0xff] }
0x1d15   :  { %v14282_v13 = vpop.eup %14281 }
0x1d16   :  { %v14284_v16 = vpop.eup %14283  ;;  %v3164_v18 = vmul.f32 %v14282_v13, %v14278_v3 }
0x1d17   :  { %v3163_v17 = vmul.f32 %v14284_v16, %v14280_v4 }
0x1d19   :  { %12556 = vmatprep.mubr.msk.f32.mxu1 %vm388_vm3, %v3163_v17 }
0x1d1a   :  { %12557 = vmatmul.mubr.msk.f32.vlgmr.msra.gmra.mrb[30].mxu1 %vm388_vm3, %v3164_v18 }
0x1d1b   :  { %13651 = vmatpush3.bf16.msra.mxu1 %v13648_v9  ;;  %12574 = vmatprep.mubr.msk.f32.mxu1 %vm136_vm2, %v14755_v30 }
0x1d1c   :  { %13653 = vmatprep.subr.bf16.mxu1 %v13652_v19 }
0x1d1f   :  { %13655 = vmatpush3.bf16.msra.mxu1 %v13652_v19 }
0x1d20   :  { %13665 = vmatprep.subr.bf16.mxu1 %v13664_v22 }
0x1d22   :  { %12575 = vmatmul.mubr.msk.f32.vlgmr.msra.gmra.mrb[32].mxu1 %vm136_vm2, %v14757_v31 }
0x1d23   :  { %13667 = vmatpush3.bf16.msra.mxu1 %v13664_v22  ;;  %12596 = vmatprep.mubr.msk.f32.mxu1 %vm136_vm2, %v14755_v30 }
0x1d24   :  { %13669 = vmatprep.subr.bf16.mxu1 %v13668_v25 }
0x1d27   :  { %13671 = vmatpush3.bf16.msra.mxu1 %v13668_v25 }
0x1d2a   :  { %12597 = vmatmul.mubr.msk.f32.vlgmr.msra.gmra.mrb[34].mxu1 %vm136_vm2, %v14757_v31 }
0x1ded   :  { %v12558_v35 = vpop.f32.mrb[30].mxu1 }
0x1dee   :  { %v3237_v36 = vpop.f32.mrb[31].mxu1 }
0x1def   :  { %12563 = vmatprep.mubr.msk.f32.mxu0 %vm388_vm3, %v3237_v36 }
0x1df0   :  { %12564 = vmatmul.mubr.msk.f32.vlgmr.msra.gmra.mrb[32].mxu0 %vm388_vm3, %v12558_v35 }
0x1df1   :  { %13659 = vmatpush3.bf16.msra.mxu0 %v13656_v32  ;;  %12585 = vmatprep.mubr.msk.f32.mxu0 %vm136_vm2, %v14755_v30 }
0x1df2   :  { %13661 = vmatprep.subr.bf16.mxu0 %v13660_v37 }
0x1df5   :  { %v12576_v40 = vpop.f32.mrb[32].mxu1  ;;  %13663 = vmatpush3.bf16.msra.mxu0 %v13660_v37 }
0x1df6   :  { %v3416_v28 = vadd.f32 %v12576_v40, %v11406_v38  ;;  %v3410_v27 = vpop.f32.mrb[33].mxu1 }
0x1df7   :  { %v3411_v52 = vadd.f32 %v11406_v38, %v3410_v27 }
0x1df8   :  { %12586 = vmatmul.mubr.msk.f32.vlgmr.msra.gmra.mrb[34].mxu0 %vm136_vm2, %v14757_v31  ;;  %v3588_v57 = vmul.f32 0.25, %v3416_v28 }
0x1df9   :  { %v3587_v50 = vmul.f32 0.25, %v3411_v52 }
0x1dfb   :  { %12603 = vmatprep.mubr.msk.f32.mxu0 %vm388_vm3, %v3587_v50  ;;  %v3907_v50 = vld [vmem:[#allocation2 + $0x388] sm:$0xff] }
0x1dfd   :  { %v12598_v42 = vpop.f32.mrb[34].mxu1 }
0x1dfe   :  { %v3584_v43 = vadd.f32 %v12598_v42, %v11412_v41  ;;  %v3578_v44 = vpop.f32.mrb[35].mxu1  ;;  %v3908_v42 = vld [vmem:[#allocation2 + $0x390] sm:$0xff] }
0x1dff   :  { %v3579_v45 = vadd.f32 %v11412_v41, %v3578_v44 }
0x1e01   :  { %v13678_v46 = vpack.c.bf16 %v3584_v43, %v3579_v45  ;;  %v3909_v43 = vld [vmem:[#allocation2 + $0x398] sm:$0xff] }
0x1e02   :  { %v13690_v44 = vpack.c.bf16 %v3909_v43, %v3908_v42  ;;  %v4304_v42 = vld [vmem:[#allocation2 + $0x408] sm:$0xff] }
0x1e03   :  { %13679 = vmatprep.subr.bf16.mxu1 %v13678_v46 }
0x1e04   :  { %13681 = vmatpush3.bf16.msra.mxu1 %v13678_v46 }
0x1ecb   :  { %v12587_v48 = vpop.f32.mrb[34].mxu0 }
0x1ecc   :  { %v3500_v49 = vadd.f32 %v12587_v48, %v11409_v47  ;;  %v3494_v53 = vpop.f32.mrb[35].mxu0 }
0x1ecd   :  { %v3495_v54 = vadd.f32 %v11409_v47, %v3494_v53 }
0x1ecf   :  { %v13672_v56 = vpack.c.bf16 %v3500_v49, %v3495_v54 }
0x1ed1   :  { %13674 = vmatprep.subr.msk.bf16.mxu0 %vm14615_vm4, %v13672_v56 }
0x1ed2   :  { %13677 = vmatpush3.bf16.xpose.msk.msra.mxu0 %vm14615_vm4, %v13672_v56  ;;  %v11423_v56 = vld [vmem:[#allocation2 + $0x7a7] ss:$0 sm:$0xff] }
0x1ed3   :  { %13683 = vmatprep.subr.bf16.mxu0 %v13682_v12 }
0x1ed9   :  { %12604 = vmatmul.mubr.msk.f32.vlgmr.msra.gmra.mrb[36].mxu0 %vm388_vm3, %v3588_v57 }
0x1eda   :  { %13685 = vmatpush3.bf16.msra.mxu0 %v13682_v12 }
0x1fac   :  { %v12605_v58 = vpop.f32.mrb[36].mxu0 }
0x1fad   :  { %v3673_v59 = vadd.f32 %v14777_v51, %v12605_v58  ;;  %v3667_v60 = vpop.f32.mrb[37].mxu0 }
0x1fae   :  { %v3668_v61 = vadd.f32 %v14780_v55, %v3667_v60  ;;  %v11424_v60 = vld [vmem:[#allocation2 + $0x7a8] ss:$0 sm:$0xff] }
0x1faf   :  { %v3679_v62 = vsel %vm388_vm3, %v3673_v59, -inf }
0x1fb0   :  { %3680 = vmax.xlane.f32.xlu1 %v3679_v62  ;;  %v3676_v1 = vsel %vm388_vm3, %v3668_v61, -inf }
0x1fb1   :  { %3677 = vmax.xlane.f32.xlu0 %v3676_v1 }
0x203d   :  { %v3681_v2 = vpop.xlane.xlu1 %3680 }
0x203e   :  { %v3683_v3 = vsub.f32 %v3673_v59, %v3681_v2  ;;  %v3678_v4 = vpop.xlane.xlu0 %3677 }
0x203f   :  { %v3682_v5 = vsub.f32 %v3668_v61, %v3678_v4  ;;  %v3999_v4 = vld [vmem:[#allocation2 + $0x3a8] sm:$0xff] }
0x2040   :  { %v3686_v6 = vmul.f32 1.442695, %v3683_v3  ;;  %v3998_v3 = vld [vmem:[#allocation2 + $0x3a0] sm:$0xff] }
0x2041   :  { %v3684_v7 = vmul.f32 1.442695, %v3682_v5  ;;  %v13694_v5 = vpack.c.bf16 %v3999_v4, %v3998_v3 }
0x2042   :  { %14285 = vpow2.f32 %v3686_v6  ;;  %v11425_v6 = vld [vmem:[#allocation2 + $0x7a9] ss:$0 sm:$0xff] }
0x2043   :  { %14287 = vpow2.f32 %v3684_v7  ;;  %13695 = vmatprep.subr.bf16.mxu0 %v13694_v5 }
0x204c   :  { %v14286_v8 = vpop.eup %14285 }
0x204d   :  { %v14288_v9 = vpop.eup %14287  ;;  %v3691_v0 = vsel %vm388_vm3, %v14286_v8, 0.0 }
0x204e   :  { %3692 = vadd.xlane.f32.xlu1 %v3691_v0  ;;  %v3688_v63 = vsel %vm388_vm3, %v14288_v9, 0.0 }
0x204f   :  { %3689 = vadd.xlane.f32.xlu0 %v3688_v63 }
0x20db   :  { %v3693_v13 = vpop.xlane.xlu1 %3692 }
0x20dc   :  { %14289 = vrcp.f32 %v3693_v13  ;;  %v3690_v14 = vpop.xlane.xlu0 %3689 }
0x20dd   :  { %14291 = vrcp.f32 %v3690_v14 }
0x20e6   :  { %v14290_v15 = vpop.eup %14289 }
0x20e7   :  { %v14292_v16 = vpop.eup %14291  ;;  %v3697_v18 = vmul.f32 %v14290_v15, %v14286_v8 }
0x20e8   :  { %v3696_v17 = vmul.f32 %v14292_v16, %v14288_v9 }
0x20ea   :  { %12610 = vmatprep.mubr.msk.f32.mxu1 %vm388_vm3, %v3696_v17 }
0x20eb   :  { %12611 = vmatmul.mubr.msk.f32.vlgmr.msra.gmra.mrb[36].mxu1 %vm388_vm3, %v3697_v18 }
0x21be   :  { %v12612_v19 = vpop.f32.mrb[36].mxu1 }
0x21bf   :  { %v3770_v20 = vpop.f32.mrb[37].mxu1 }
0x21c0   :  { %12617 = vmatprep.mubr.msk.f32.mxu0 %vm388_vm3, %v3770_v20 }
0x21c1   :  { %12618 = vmatmul.mubr.msk.f32.vlgmr.msra.gmra.mrb[32].mxu0 %vm388_vm3, %v12612_v19 }
0x21c2   :  { %13697 = vmatpush3.bf16.msra.mxu0 %v13694_v5  ;;  %v11436_v5 = vld [vmem:[#allocation2 + $0x7b1] ss:$0 sm:$0xff] }
0x2294   :  { %v12619_v22 = vpop.f32.mrb[32].mxu0 }
0x2295   :  { %v14202_v23 = vadd.f32 %v12619_v22, %v11405_v21  ;;  %v3853_v24 = vpop.f32.mrb[33].mxu0 }
0x2296   :  { %v14203_v25 = vadd.f32 %v11405_v21, %v3853_v24 }
0x2297   :  { %v3865_v26 = vadd.f32 %v14202_v23, %v14757_v31 }
0x2298   :  { %v3864_v29 = vadd.f32 %v14203_v25, %v14755_v30  ;;  %v3906_v30 = vld [vmem:[#allocation2 + $0x380] sm:$0xff] }
0x2299   :  { %v3871_v32 = vsel %vm136_vm2, %v3865_v26, 0.0  ;;  %v13686_v41 = vpack.c.bf16 %v3907_v50, %v3906_v30  ;;  %v4222_v30 = vld [vmem:[#allocation2 + $0x3f8] sm:$0xff] }
0x229a   :  { %3872 = vadd.xlane.f32.xlu1 %v3871_v32  ;;  %v3868_v33 = vsel %vm136_vm2, %v3864_v29, 0.0 }
0x229b   :  { %3869 = vadd.xlane.f32.xlu0 %v3868_v33  ;;  %13687 = vmatprep.subr.bf16.mxu1 %v13686_v41 }
0x229c   :  { %13689 = vmatpush3.bf16.msra.mxu1 %v13686_v41  ;;  %v4303_v41 = vld [vmem:[#allocation2 + $0x400] sm:$0xff] }
0x229d   :  { %13691 = vmatprep.subr.bf16.mxu1 %v13690_v44  ;;  %v13714_v43 = vpack.c.bf16 %v4304_v42, %v4303_v41  ;;  %v4580_v41 = vld [vmem:[#allocation2 + $0x488] sm:$0xff] }
0x22a0   :  { %13693 = vmatpush3.bf16.msra.mxu1 %v13690_v44 }
0x2327   :  { %v3873_v34 = vpop.xlane.xlu1 %3872 }
0x2328   :  { %v3875_v35 = vmul.f32 0.03125, %v3873_v34  ;;  %v3870_v36 = vpop.xlane.xlu0 %3869  ;;  %v4129_v34 = vld [vmem:[#allocation2 + $0x3c0] sm:$0xff] }
0x2329   :  { %v3874_v37 = vmul.f32 0.03125, %v3870_v36 }
0x232a   :  { %v3877_v38 = vsub.f32 %v3865_v26, %v3875_v35  ;;  %v4130_v35 = vld [vmem:[#allocation2 + $0x3c8] sm:$0xff] }
0x232b   :  { %v3876_v40 = vsub.f32 %v3864_v29, %v3874_v37  ;;  %v13698_v36 = vpack.c.bf16 %v4130_v35, %v4129_v34  ;;  %v4219_v37 = vld [vmem:[#allocation2 + $0x3e0] sm:$0xff] }
0x232c   :  { %v3879_v28 = vmul.f32 %v3877_v38, %v3877_v38 }
0x232d   :  { %v3878_v27 = vmul.f32 %v3876_v40, %v3876_v40  ;;  %13699 = vmatprep.subr.bf16.mxu0 %v13698_v36 }
0x232e   :  { %v3883_v52 = vsel %vm136_vm2, %v3879_v28, 0.0  ;;  %v4131_v28 = vld [vmem:[#allocation2 + $0x3d0] sm:$0xff] }
0x232f   :  { %3884 = vadd.xlane.f32.xlu1 %v3883_v52  ;;  %v3880_v31 = vsel %vm136_vm2, %v3878_v27, 0.0  ;;  %v4132_v27 = vld [vmem:[#allocation2 + $0x3d8] sm:$0xff] }
0x2330   :  { %3881 = vadd.xlane.f32.xlu0 %v3880_v31  ;;  %v13702_v52 = vpack.c.bf16 %v4132_v27, %v4131_v28  ;;  %v4221_v31 = vld [vmem:[#allocation2 + $0x3f0] sm:$0xff] }
0x2331   :  { %v13710_v50 = vpack.c.bf16 %v4222_v30, %v4221_v31  ;;  %v4669_v31 = vld [vmem:[#allocation2 + $0x428] sm:$0xff] }
0x23bc   :  { %v3885_v45 = vpop.xlane.xlu1 %3884 }
0x23bd   :  { %v3887_v46 = vmul.f32 0.03125, %v3885_v45  ;;  %v3882_v47 = vpop.xlane.xlu0 %3881 }
0x23be   :  { %v3886_v48 = vmul.f32 0.03125, %v3882_v47 }
0x23bf   :  { %v3889_v49 = vadd.f32 1e-05, %v3887_v46 }
0x23c0   :  { %v3888_v53 = vadd.f32 1e-05, %v3886_v48 }
0x23c1   :  { %14293 = vrsqrt.f32 %v3889_v49 }
0x23c2   :  { %14295 = vrsqrt.f32 %v3888_v53 }
0x23cb   :  { %v14294_v54 = vpop.eup %14293 }
0x23cc   :  { %v14296_v57 = vpop.eup %14295  ;;  %v3893_v58 = vmul.f32 %v14294_v54, %v3877_v38  ;;  %v4220_v38 = vld [vmem:[#allocation2 + $0x3e8] sm:$0xff] }
0x23cd   :  { %v3892_v59 = vmul.f32 %v14296_v57, %v3876_v40  ;;  %v13706_v40 = vpack.c.bf16 %v4220_v38, %v4219_v37  ;;  %v11431_v54 = vld [vmem:[#allocation2 + $0x7ab] ss:$0 sm:$0xff] }
0x23ce   :  { %v3899_v61 = vmul.f32 %v11423_v56, %v3893_v58 }
0x23cf   :  { %v3898_v62 = vmul.f32 %v11423_v56, %v3892_v59  ;;  %13707 = vmatprep.subr.bf16.mxu1 %v13706_v40  ;;  %v11432_v59 = vld [vmem:[#allocation2 + $0x7ac] ss:$0 sm:$0xff] }
0x23d0   :  { %v3905_v2 = vadd.f32 %v11424_v60, %v3899_v61 }
0x23d1   :  { %v3904_v1 = vadd.f32 %v11424_v60, %v3898_v62  ;;  %v4305_v62 = vld [vmem:[#allocation2 + $0x410] sm:$0xff] }
0x23d3   :  { %12628 = vmatprep.mubr.msk.f32.mxu1 %vm136_vm2, %v3904_v1 }
0x23d4   :  { %12629 = vmatmul.mubr.msk.f32.vlgmr.msra.gmra.mrb[38].mxu1 %vm136_vm2, %v3905_v2 }
0x23d5   :  { %13709 = vmatpush3.bf16.msra.mxu1 %v13706_v40 }
0x23d6   :  { %13711 = vmatprep.subr.bf16.mxu1 %v13710_v50 }
0x23d9   :  { %13713 = vmatpush3.bf16.msra.mxu1 %v13710_v50  ;;  %v4579_v50 = vld [vmem:[#allocation2 + $0x480] sm:$0xff] }
0x23da   :  { %v13732_v42 = vpack.c.bf16 %v4580_v41, %v4579_v50  ;;  %v5112_v50 = vld [vmem:[#allocation2 + $0x4a0] sm:$0xff]  ;;  %v5113_v41 = vld [vmem:[#allocation2 + $0x4a8] sm:$0xff] }
0x24a7   :  { %v12630_v7 = vpop.f32.mrb[38].mxu1 }
0x24a8   :  { %v3993_v8 = vadd.f32 %v12630_v7, %v11425_v6  ;;  %v3987_v9 = vpop.f32.mrb[39].mxu1 }
0x24a9   :  { %v3988_v0 = vadd.f32 %v11425_v6, %v3987_v9  ;;  %v11433_v6 = vld [vmem:[#allocation2 + $0x7b0] ss:$0 sm:$0xff] }
0x24aa   :  { %v3997_v10 = vmax.f32 %v3993_v8, 0.0 }
0x24ab   :  { %v3996_v63 = vmax.f32 %v3988_v0, 0.0 }
0x24ad   :  { %12635 = vmatprep.mubr.msk.f32.mxu0 %vm388_vm3, %v3996_v63 }
0x24ae   :  { %12636 = vmatmul.mubr.msk.f32.vlgmr.msra.gmra.mrb[38].mxu0 %vm388_vm3, %v3997_v10 }
0x24af   :  { %13701 = vmatpush3.bf16.msra.mxu0 %v13698_v36 }
0x24b0   :  { %13703 = vmatprep.subr.bf16.mxu0 %v13702_v52 }
0x24b3   :  { %13705 = vmatpush3.bf16.msra.mxu0 %v13702_v52  ;;  %v4668_v52 = vld [vmem:[#allocation2 + $0x420] sm:$0xff] }
0x24b4   :  { %13715 = vmatprep.subr.bf16.mxu0 %v13714_v43  ;;  %v13736_v30 = vpack.c.bf16 %v4669_v31, %v4668_v52 }
0x2581   :  { %v12637_v12 = vpop.f32.mrb[38].mxu0 }
0x2582   :  { %v4083_v13 = vadd.f32 %v12637_v12, %v11428_v11  ;;  %v4077_v14 = vpop.f32.mrb[39].mxu0 }
0x2583   :  { %v4078_v15 = vadd.f32 %v11428_v11, %v4077_v14  ;;  %v11439_v14 = vld [vmem:[#allocation2 + $0x7b2] ss:$0 sm:$0xff] }
0x2584   :  { %v4087_v16 = vadd.f32 %v4083_v13, %v3905_v2 }
0x2585   :  { %v4086_v17 = vadd.f32 %v4078_v15, %v3904_v1  ;;  %v4306_v1 = vld [vmem:[#allocation2 + $0x418] sm:$0xff] }
0x2586   :  { %v4093_v18 = vsel %vm136_vm2, %v4087_v16, 0.0  ;;  %v13718_v4 = vpack.c.bf16 %v4306_v1, %v4305_v62  ;;  %v4752_v62 = vld [vmem:[#allocation2 + $0x440] sm:$0xff]  ;;  %v4753_v1 = vld [vmem:[#allocation2 + $0x448] sm:$0xff] }
0x2587   :  { %4094 = vadd.xlane.f32.xlu1 %v4093_v18  ;;  %v4090_v19 = vsel %vm136_vm2, %v4086_v17, 0.0 }
0x2588   :  { %4091 = vadd.xlane.f32.xlu0 %v4090_v19 }
0x2614   :  { %v4095_v20 = vpop.xlane.xlu1 %4094 }
0x2615   :  { %v4097_v21 = vmul.f32 0.03125, %v4095_v20  ;;  %v4092_v22 = vpop.xlane.xlu0 %4091 }
0x2616   :  { %v4096_v23 = vmul.f32 0.03125, %v4092_v22 }
0x2617   :  { %v4099_v24 = vsub.f32 %v4087_v16, %v4097_v21 }
0x2618   :  { %v4098_v25 = vsub.f32 %v4086_v17, %v4096_v23 }
0x2619   :  { %v4101_v26 = vmul.f32 %v4099_v24, %v4099_v24 }
0x261a   :  { %v4100_v29 = vmul.f32 %v4098_v25, %v4098_v25 }
0x261b   :  { %v4105_v32 = vsel %vm136_vm2, %v4101_v26, 0.0 }
0x261c   :  { %4106 = vadd.xlane.f32.xlu1 %v4105_v32  ;;  %v4102_v33 = vsel %vm136_vm2, %v4100_v29, 0.0 }
0x261d   :  { %4103 = vadd.xlane.f32.xlu0 %v4102_v33 }
0x26a9   :  { %v4107_v44 = vpop.xlane.xlu1 %4106 }
0x26aa   :  { %v4109_v45 = vmul.f32 0.03125, %v4107_v44  ;;  %v4104_v46 = vpop.xlane.xlu0 %4103 }
0x26ab   :  { %v4108_v47 = vmul.f32 0.03125, %v4104_v46  ;;  %v4670_v46 = vld [vmem:[#allocation2 + $0x430] sm:$0xff] }
0x26ac   :  { %v4111_v48 = vadd.f32 1e-05, %v4109_v45 }
0x26ad   :  { %v4110_v49 = vadd.f32 1e-05, %v4108_v47  ;;  %v4671_v47 = vld [vmem:[#allocation2 + $0x438] sm:$0xff] }
0x26ae   :  { %14297 = vrsqrt.f32 %v4111_v48 }
0x26af   :  { %14299 = vrsqrt.f32 %v4110_v49 }
0x26b8   :  { %v14298_v53 = vpop.eup %14297 }
0x26b9   :  { %v14300_v56 = vpop.eup %14299  ;;  %v4115_v57 = vmul.f32 %v14298_v53, %v4099_v24 }
0x26ba   :  { %v4114_v58 = vmul.f32 %v14300_v56, %v4098_v25  ;;  %v4836_v56 = vld [vmem:[#allocation2 + $0x460] sm:$0xff] }
0x26bb   :  { %v4121_v60 = vmul.f32 %v11431_v54, %v4115_v57  ;;  %v4837_v57 = vld [vmem:[#allocation2 + $0x468] sm:$0xff] }
0x26bc   :  { %v4120_v61 = vmul.f32 %v11431_v54, %v4114_v58  ;;  %v13740_v54 = vpack.c.bf16 %v4671_v47, %v4670_v46  ;;  %v13752_v58 = vpack.c.bf16 %v4837_v57, %v4836_v56 }
0x26bd   :  { %v14835_v3 = vadd.f32 %v11432_v59, %v4121_v60  ;;  %v4839_v60 = vld [vmem:[#allocation2 + $0x478] sm:$0xff] }
0x26be   :  { %v14833_v2 = vadd.f32 %v11432_v59, %v4120_v61  ;;  %v4838_v59 = vld [vmem:[#allocation2 + $0x470] sm:$0xff] }
0x26bf   :  { %v13756_v61 = vpack.c.bf16 %v4839_v60, %v4838_v59 }
0x26c0   :  { %12646 = vmatprep.mubr.msk.f32.mxu0 %vm136_vm2, %v14833_v2  ;;  %12657 = vmatprep.mubr.msk.f32.mxu1 %vm136_vm2, %v14833_v2 }
0x26c1   :  { %12647 = vmatmul.mubr.msk.f32.vlgmr.msra.gmra.mrb[40].mxu0 %vm136_vm2, %v14835_v3  ;;  %12658 = vmatmul.mubr.msk.f32.vlgmr.msra.gmra.mrb[40].mxu1 %vm136_vm2, %v14835_v3 }
0x26c2   :  { %13717 = vmatpush3.bf16.msra.mxu0 %v13714_v43  ;;  %12668 = vmatprep.mubr.msk.f32.mxu0 %vm136_vm2, %v14833_v2 }
0x26c3   :  { %13719 = vmatprep.subr.bf16.mxu0 %v13718_v4 }
0x26c6   :  { %13721 = vmatpush3.bf16.msra.mxu0 %v13718_v4  ;;  %v13744_v4 = vpack.c.bf16 %v4753_v1, %v4752_v62 }
0x26c9   :  { %12669 = vmatmul.mubr.msk.f32.vlgmr.msra.gmra.mrb[42].mxu0 %vm136_vm2, %v14835_v3 }
0x2794   :  { %v12648_v7 = vpop.f32.mrb[40].mxu0  ;;  %v12659_v8 = vpop.f32.mrb[40].mxu1 }
0x2795   :  { %v4300_v9 = vadd.f32 %v12659_v8, %v11436_v5  ;;  %v4210_v0 = vpop.f32.mrb[41].mxu0  ;;  %v4294_v63 = vpop.f32.mrb[41].mxu1  ;;  %v4216_v15 = vadd.f32 %v12648_v7, %v11433_v6 }
0x2796   :  { %v4211_v10 = vadd.f32 %v11433_v6, %v4210_v0  ;;  %v4295_v11 = vadd.f32 %v11436_v5, %v4294_v63  ;;  %v4754_v5 = vld [vmem:[#allocation2 + $0x450] sm:$0xff]  ;;  %v4755_v6 = vld [vmem:[#allocation2 + $0x458] sm:$0xff] }
0x2797   :  { %v4388_v20 = vmul.f32 0.25, %v4216_v15  ;;  %v11451_v0 = vld [vmem:[#allocation2 + $0x7b3] ss:$0 sm:$0xff] }
0x2798   :  { %v4387_v12 = vmul.f32 0.25, %v4211_v10  ;;  %v13722_v13 = vpack.c.bf16 %v4300_v9, %v4295_v11  ;;  %v13748_v9 = vpack.c.bf16 %v4755_v6, %v4754_v5 }
0x279a   :  { %13724 = vmatprep.subr.msk.bf16.mxu1 %vm14615_vm4, %v13722_v13  ;;  %12675 = vmatprep.mubr.msk.f32.mxu1 %vm388_vm3, %v4387_v12 }
0x279b   :  { %13727 = vmatpush3.bf16.xpose.msk.msra.mxu1 %vm14615_vm4, %v13722_v13 }
0x279c   :  { %v12670_v16 = vpop.f32.mrb[42].mxu0  ;;  %13733 = vmatprep.subr.bf16.mxu1 %v13732_v42 }
0x279d   :  { %v4384_v17 = vadd.f32 %v12670_v16, %v11439_v14  ;;  %v4378_v18 = vpop.f32.mrb[43].mxu0 }
0x279e   :  { %v4379_v19 = vadd.f32 %v11439_v14, %v4378_v18  ;;  %v11457_v14 = vld [vmem:[#allocation2 + $0x7b5] ss:$0 sm:$0xff] }
0x27a0   :  { %v13728_v21 = vpack.c.bf16 %v4384_v17, %v4379_v19 }
0x27a2   :  { %13729 = vmatprep.subr.bf16.mxu0 %v13728_v21  ;;  %12676 = vmatmul.mubr.msk.f32.vlgmr.msra.gmra.mrb[42].mxu1 %vm388_vm3, %v4388_v20  ;;  %v11454_v20 = vld [vmem:[#allocation2 + $0x7b4] ss:$0 sm:$0xff] }
0x27a3   :  { %13731 = vmatpush3.bf16.msra.mxu0 %v13728_v21  ;;  %13735 = vmatpush3.bf16.msra.mxu1 %v13732_v42  ;;  %v13770_v42 = vpack.c.bf16 %v5113_v41, %v5112_v50 }
0x27a4   :  { %13737 = vmatprep.subr.bf16.mxu0 %v13736_v30  ;;  %13745 = vmatprep.subr.bf16.mxu1 %v13744_v4 }
0x2875   :  { %v12677_v22 = vpop.f32.mrb[42].mxu1 }
0x2876   :  { %v4473_v23 = vadd.f32 %v14777_v51, %v12677_v22  ;;  %v4467_v24 = vpop.f32.mrb[43].mxu1 }
0x2877   :  { %v4468_v25 = vadd.f32 %v14780_v55, %v4467_v24 }
0x2878   :  { %v4479_v26 = vsel %vm388_vm3, %v4473_v23, -inf }
0x2879   :  { %4480 = vmax.xlane.f32.xlu1 %v4479_v26  ;;  %v4476_v29 = vsel %vm388_vm3, %v4468_v25, -inf }
0x287a   :  { %4477 = vmax.xlane.f32.xlu0 %v4476_v29 }
0x2906   :  { %v4481_v32 = vpop.xlane.xlu1 %4480 }
0x2907   :  { %v4483_v33 = vsub.f32 %v4473_v23, %v4481_v32  ;;  %v4478_v34 = vpop.xlane.xlu0 %4477 }
0x2908   :  { %v4482_v35 = vsub.f32 %v4468_v25, %v4478_v34 }
0x2909   :  { %v4486_v36 = vmul.f32 1.442695, %v4483_v33 }
0x290a   :  { %v4484_v37 = vmul.f32 1.442695, %v4482_v35 }
0x290b   :  { %14301 = vpow2.f32 %v4486_v36 }
0x290c   :  { %14303 = vpow2.f32 %v4484_v37 }
0x2915   :  { %v14302_v38 = vpop.eup %14301 }
0x2916   :  { %v14304_v40 = vpop.eup %14303  ;;  %v4491_v28 = vsel %vm388_vm3, %v14302_v38, 0.0 }
0x2917   :  { %4492 = vadd.xlane.f32.xlu1 %v4491_v28  ;;  %v4488_v27 = vsel %vm388_vm3, %v14304_v40, 0.0 }
0x2918   :  { %4489 = vadd.xlane.f32.xlu0 %v4488_v27 }
0x29a4   :  { %v4493_v43 = vpop.xlane.xlu1 %4492 }
0x29a5   :  { %14305 = vrcp.f32 %v4493_v43  ;;  %v4490_v44 = vpop.xlane.xlu0 %4489 }
0x29a6   :  { %14307 = vrcp.f32 %v4490_v44 }
0x29af   :  { %v14306_v45 = vpop.eup %14305 }
0x29b0   :  { %v14308_v48 = vpop.eup %14307  ;;  %v4497_v53 = vmul.f32 %v14306_v45, %v14302_v38 }
0x29b1   :  { %v4496_v49 = vmul.f32 %v14308_v48, %v14304_v40 }
0x29b3   :  { %12682 = vmatprep.mubr.msk.f32.mxu0 %vm388_vm3, %v4496_v49 }
0x29b4   :  { %12683 = vmatmul.mubr.msk.f32.vlgmr.msra.gmra.mrb[44].mxu0 %vm388_vm3, %v4497_v53 }
0x29b5   :  { %13739 = vmatpush3.bf16.msra.mxu0 %v13736_v30  ;;  %12700 = vmatprep.mubr.msk.f32.mxu0 %vm136_vm2, %v14833_v2 }
0x29b6   :  { %13741 = vmatprep.subr.bf16.mxu0 %v13740_v54 }
0x29b9   :  { %13743 = vmatpush3.bf16.msra.mxu0 %v13740_v54  ;;  %v11450_v54 = vld [vmem:[#allocation2 + $0x7b6] ss:$0 sm:$0xff] }
0x29ba   :  { %13753 = vmatprep.subr.bf16.mxu0 %v13752_v58 }
0x29bc   :  { %12701 = vmatmul.mubr.msk.f32.vlgmr.msra.gmra.mrb[46].mxu0 %vm136_vm2, %v14835_v3 }
0x29bd   :  { %13755 = vmatpush3.bf16.msra.mxu0 %v13752_v58  ;;  %12722 = vmatprep.mubr.msk.f32.mxu0 %vm136_vm2, %v14833_v2 }
0x29be   :  { %13757 = vmatprep.subr.bf16.mxu0 %v13756_v61 }
0x29c1   :  { %13759 = vmatpush3.bf16.msra.mxu0 %v13756_v61 }
0x29c4   :  { %12723 = vmatmul.mubr.msk.f32.vlgmr.msra.gmra.mrb[48].mxu0 %vm136_vm2, %v14835_v3 }
0x2a87   :  { %v12684_v7 = vpop.f32.mrb[44].mxu0 }
0x2a88   :  { %v4570_v8 = vpop.f32.mrb[45].mxu0 }
0x2a89   :  { %12689 = vmatprep.mubr.msk.f32.mxu1 %vm388_vm3, %v4570_v8 }
0x2a8a   :  { %12690 = vmatmul.mubr.msk.f32.vlgmr.msra.gmra.mrb[44].mxu1 %vm388_vm3, %v12684_v7 }
0x2a8b   :  { %13747 = vmatpush3.bf16.msra.mxu1 %v13744_v4  ;;  %12711 = vmatprep.mubr.msk.f32.mxu1 %vm136_vm2, %v14833_v2 }
0x2a8c   :  { %13749 = vmatprep.subr.bf16.mxu1 %v13748_v9 }
0x2a8f   :  { %v12702_v63 = vpop.f32.mrb[46].mxu0  ;;  %13751 = vmatpush3.bf16.msra.mxu1 %v13748_v9 }
0x2a90   :  { %v4749_v10 = vadd.f32 %v12702_v63, %v11451_v0  ;;  %v4743_v11 = vpop.f32.mrb[47].mxu0 }
0x2a91   :  { %v4744_v12 = vadd.f32 %v11451_v0, %v4743_v11  ;;  %v5240_v11 = vld [vmem:[#allocation2 + $0x4c8] sm:$0xff] }
0x2a92   :  { %12712 = vmatmul.mubr.msk.f32.vlgmr.msra.gmra.mrb[46].mxu1 %vm136_vm2, %v14835_v3  ;;  %v4921_v26 = vmul.f32 0.25, %v4749_v10 }
0x2a93   :  { %v4920_v13 = vmul.f32 0.25, %v4744_v12 }
0x2a95   :  { %12729 = vmatprep.mubr.msk.f32.mxu1 %vm388_vm3, %v4920_v13  ;;  %v5241_v13 = vld [vmem:[#allocation2 + $0x4d0] sm:$0xff] }
0x2a97   :  { %v12724_v15 = vpop.f32.mrb[48].mxu0 }
0x2a98   :  { %v4917_v16 = vadd.f32 %v12724_v15, %v11457_v14  ;;  %v4911_v17 = vpop.f32.mrb[49].mxu0 }
0x2a99   :  { %v4912_v18 = vadd.f32 %v11457_v14, %v4911_v17  ;;  %v5242_v14 = vld [vmem:[#allocation2 + $0x4d8] sm:$0xff] }
0x2a9a   :  { %v13778_v15 = vpack.c.bf16 %v5242_v14, %v5241_v13 }
0x2a9b   :  { %v13766_v19 = vpack.c.bf16 %v4917_v16, %v4912_v18 }
0x2a9d   :  { %13767 = vmatprep.subr.bf16.mxu0 %v13766_v19 }
0x2a9e   :  { %13769 = vmatpush3.bf16.msra.mxu0 %v13766_v19 }
0x2b65   :  { %v12713_v21 = vpop.f32.mrb[46].mxu1 }
0x2b66   :  { %v4833_v22 = vadd.f32 %v12713_v21, %v11454_v20  ;;  %v4827_v23 = vpop.f32.mrb[47].mxu1 }
0x2b67   :  { %v4828_v24 = vadd.f32 %v11454_v20, %v4827_v23  ;;  %v11468_v23 = vld [vmem:[#allocation2 + $0x7b7] ss:$0 sm:$0xff] }
0x2b69   :  { %v13760_v25 = vpack.c.bf16 %v4833_v22, %v4828_v24 }
0x2b6b   :  { %13762 = vmatprep.subr.msk.bf16.mxu1 %vm14615_vm4, %v13760_v25 }
0x2b6c   :  { %13765 = vmatpush3.bf16.xpose.msk.msra.mxu1 %vm14615_vm4, %v13760_v25 }
0x2b6d   :  { %13771 = vmatprep.subr.bf16.mxu1 %v13770_v42 }
0x2b73   :  { %12730 = vmatmul.mubr.msk.f32.vlgmr.msra.gmra.mrb[48].mxu1 %vm388_vm3, %v4921_v26 }
0x2b74   :  { %13773 = vmatpush3.bf16.msra.mxu1 %v13770_v42 }
0x2c46   :  { %v12731_v29 = vpop.f32.mrb[48].mxu1 }
0x2c47   :  { %v5006_v32 = vadd.f32 %v14777_v51, %v12731_v29  ;;  %v5000_v33 = vpop.f32.mrb[49].mxu1  ;;  %v11469_v29 = vld [vmem:[#allocation2 + $0x7b8] ss:$0 sm:$0xff] }
0x2c48   :  { %v5001_v34 = vadd.f32 %v14780_v55, %v5000_v33 }
0x2c49   :  { %v5012_v35 = vsel %vm388_vm3, %v5006_v32, -inf }
0x2c4a   :  { %5013 = vmax.xlane.f32.xlu1 %v5012_v35  ;;  %v5009_v36 = vsel %vm388_vm3, %v5001_v34, -inf }
0x2c4b   :  { %5010 = vmax.xlane.f32.xlu0 %v5009_v36  ;;  %v5331_v36 = vld [vmem:[#allocation2 + $0x4e0] sm:$0xff] }
0x2cd7   :  { %v5014_v37 = vpop.xlane.xlu1 %5013 }
0x2cd8   :  { %v5016_v38 = vsub.f32 %v5006_v32, %v5014_v37  ;;  %v5011_v40 = vpop.xlane.xlu0 %5010  ;;  %v5332_v37 = vld [vmem:[#allocation2 + $0x4e8] sm:$0xff] }
0x2cd9   :  { %v5015_v28 = vsub.f32 %v5001_v34, %v5011_v40  ;;  %v11470_v40 = vld [vmem:[#allocation2 + $0x7b9] ss:$0 sm:$0xff] }
0x2cda   :  { %v5019_v27 = vmul.f32 1.442695, %v5016_v38  ;;  %v13782_v38 = vpack.c.bf16 %v5332_v37, %v5331_v36  ;;  %v11481_v36 = vld [vmem:[#allocation2 + $0x7c1] ss:$0 sm:$0xff]  ;;  %v11478_v37 = vld [vmem:[#allocation2 + $0x7c0] ss:$0 sm:$0xff] }
0x2cdb   :  { %v5017_v52 = vmul.f32 1.442695, %v5015_v28 }
0x2cdc   :  { %14309 = vpow2.f32 %v5019_v27  ;;  %13783 = vmatprep.subr.bf16.mxu1 %v13782_v38 }
0x2cdd   :  { %14311 = vpow2.f32 %v5017_v52 }
0x2ce6   :  { %v14310_v31 = vpop.eup %14309 }
0x2ce7   :  { %v14312_v30 = vpop.eup %14311  ;;  %v5024_v51 = vsel %vm388_vm3, %v14310_v31, 0.0 }
0x2ce8   :  { %5025 = vadd.xlane.f32.xlu1 %v5024_v51  ;;  %v5021_v55 = vsel %vm388_vm3, %v14312_v30, 0.0 }
0x2ce9   :  { %5022 = vadd.xlane.f32.xlu0 %v5021_v55  ;;  %v11473_v55 = vld [vmem:[#allocation2 + $0x7ba] ss:$0 sm:$0xff] }
0x2d75   :  { %v5026_v43 = vpop.xlane.xlu1 %5025 }
0x2d76   :  { %14313 = vrcp.f32 %v5026_v43  ;;  %v5023_v44 = vpop.xlane.xlu0 %5022 }
0x2d77   :  { %14315 = vrcp.f32 %v5023_v44 }
0x2d80   :  { %v14314_v45 = vpop.eup %14313 }
0x2d81   :  { %v14316_v46 = vpop.eup %14315  ;;  %v5030_v48 = vmul.f32 %v14314_v45, %v14310_v31 }
0x2d82   :  { %v5029_v47 = vmul.f32 %v14316_v46, %v14312_v30 }
0x2d84   :  { %12736 = vmatprep.mubr.msk.f32.mxu0 %vm388_vm3, %v5029_v47 }
0x2d85   :  { %12737 = vmatmul.mubr.msk.f32.vlgmr.msra.gmra.mrb[50].mxu0 %vm388_vm3, %v5030_v48 }
0x2e58   :  { %v12738_v49 = vpop.f32.mrb[50].mxu0 }
0x2e59   :  { %v5103_v53 = vpop.f32.mrb[51].mxu0 }
0x2e5a   :  { %12743 = vmatprep.mubr.msk.f32.mxu1 %vm388_vm3, %v5103_v53 }
0x2e5b   :  { %12744 = vmatmul.mubr.msk.f32.vlgmr.msra.gmra.mrb[44].mxu1 %vm388_vm3, %v12738_v49 }
0x2e5c   :  { %13785 = vmatpush3.bf16.msra.mxu1 %v13782_v38 }
0x2f2e   :  { %v12745_v56 = vpop.f32.mrb[44].mxu1 }
0x2f2f   :  { %v14204_v57 = vadd.f32 %v12745_v56, %v11450_v54  ;;  %v5186_v58 = vpop.f32.mrb[45].mxu1 }
0x2f30   :  { %v14205_v59 = vadd.f32 %v11450_v54, %v5186_v58 }
0x2f31   :  { %v5198_v60 = vadd.f32 %v14204_v57, %v14835_v3 }
0x2f32   :  { %v5197_v61 = vadd.f32 %v14205_v59, %v14833_v2  ;;  %v5239_v2 = vld [vmem:[#allocation2 + $0x4c0] sm:$0xff] }
0x2f33   :  { %v5204_v62 = vsel %vm136_vm2, %v5198_v60, 0.0  ;;  %v13774_v12 = vpack.c.bf16 %v5240_v11, %v5239_v2  ;;  %v5636_v2 = vld [vmem:[#allocation2 + $0x540] sm:$0xff]  ;;  %v5637_v11 = vld [vmem:[#allocation2 + $0x548] sm:$0xff] }
0x2f34   :  { %5205 = vadd.xlane.f32.xlu1 %v5204_v62  ;;  %v5201_v1 = vsel %vm136_vm2, %v5197_v61, 0.0  ;;  %v5462_v62 = vld [vmem:[#allocation2 + $0x500] sm:$0xff] }
0x2f35   :  { %5202 = vadd.xlane.f32.xlu0 %v5201_v1  ;;  %13775 = vmatprep.subr.bf16.mxu0 %v13774_v12  ;;  %v5463_v1 = vld [vmem:[#allocation2 + $0x508] sm:$0xff] }
0x2f36   :  { %13777 = vmatpush3.bf16.msra.mxu0 %v13774_v12  ;;  %v13802_v12 = vpack.c.bf16 %v5637_v11, %v5636_v2  ;;  %v5913_v2 = vld [vmem:[#allocation2 + $0x5c8] sm:$0xff] }
0x2f37   :  { %13779 = vmatprep.subr.bf16.mxu0 %v13778_v15 }
0x2f3a   :  { %13781 = vmatpush3.bf16.msra.mxu0 %v13778_v15 }
0x2fc1   :  { %v5206_v4 = vpop.xlane.xlu1 %5205 }
0x2fc2   :  { %v5208_v5 = vmul.f32 0.03125, %v5206_v4  ;;  %v5203_v6 = vpop.xlane.xlu0 %5202  ;;  %v13786_v4 = vpack.c.bf16 %v5463_v1, %v5462_v62 }
0x2fc3   :  { %v5207_v7 = vmul.f32 0.03125, %v5203_v6  ;;  %v5553_v6 = vld [vmem:[#allocation2 + $0x528] sm:$0xff] }
0x2fc4   :  { %v5210_v8 = vsub.f32 %v5198_v60, %v5208_v5  ;;  %v5552_v5 = vld [vmem:[#allocation2 + $0x520] sm:$0xff]  ;;  %13787 = vmatprep.subr.bf16.mxu1 %v13786_v4 }
0x2fc5   :  { %v5209_v9 = vsub.f32 %v5197_v61, %v5207_v7  ;;  %v13794_v7 = vpack.c.bf16 %v5553_v6, %v5552_v5 }
0x2fc6   :  { %v5212_v0 = vmul.f32 %v5210_v8, %v5210_v8 }
0x2fc7   :  { %v5211_v63 = vmul.f32 %v5209_v9, %v5209_v9  ;;  %13795 = vmatprep.subr.bf16.mxu0 %v13794_v7 }
0x2fc8   :  { %v5216_v10 = vsel %vm136_vm2, %v5212_v0, 0.0 }
0x2fc9   :  { %5217 = vadd.xlane.f32.xlu1 %v5216_v10  ;;  %v5213_v3 = vsel %vm136_vm2, %v5211_v63, 0.0  ;;  %v5554_v63 = vld [vmem:[#allocation2 + $0x530] sm:$0xff]  ;;  %v5555_v10 = vld [vmem:[#allocation2 + $0x538] sm:$0xff] }
0x2fca   :  { %5214 = vadd.xlane.f32.xlu0 %v5213_v3  ;;  %v13798_v3 = vpack.c.bf16 %v5555_v10, %v5554_v63  ;;  %v6002_v63 = vld [vmem:[#allocation2 + $0x568] sm:$0xff] }
0x3056   :  { %v5218_v16 = vpop.xlane.xlu1 %5217 }
0x3057   :  { %v5220_v17 = vmul.f32 0.03125, %v5218_v16  ;;  %v5215_v18 = vpop.xlane.xlu0 %5214 }
0x3058   :  { %v5219_v19 = vmul.f32 0.03125, %v5215_v18 }
0x3059   :  { %v5222_v20 = vadd.f32 1e-05, %v5220_v17 }
0x305a   :  { %v5221_v21 = vadd.f32 1e-05, %v5219_v19 }
0x305b   :  { %14317 = vrsqrt.f32 %v5222_v20  ;;  %v11476_v20 = vld [vmem:[#allocation2 + $0x7bb] ss:$0 sm:$0xff] }
0x305c   :  { %14319 = vrsqrt.f32 %v5221_v21 }
0x3065   :  { %v14318_v22 = vpop.eup %14317 }
0x3066   :  { %v14320_v24 = vpop.eup %14319  ;;  %v5226_v25 = vmul.f32 %v14318_v22, %v5210_v8  ;;  %v5464_v8 = vld [vmem:[#allocation2 + $0x510] sm:$0xff] }
0x3067   :  { %v5225_v26 = vmul.f32 %v14320_v24, %v5209_v9  ;;  %v5465_v9 = vld [vmem:[#allocation2 + $0x518] sm:$0xff] }
0x3068   :  { %v5232_v32 = vmul.f32 %v11468_v23, %v5226_v25  ;;  %v13790_v0 = vpack.c.bf16 %v5465_v9, %v5464_v8  ;;  %v11477_v24 = vld [vmem:[#allocation2 + $0x7bc] ss:$0 sm:$0xff] }
0x3069   :  { %v5231_v33 = vmul.f32 %v11468_v23, %v5225_v26 }
0x306a   :  { %v5238_v35 = vadd.f32 %v11469_v29, %v5232_v32  ;;  %v5639_v32 = vld [vmem:[#allocation2 + $0x558] sm:$0xff] }
0x306b   :  { %v5237_v34 = vadd.f32 %v11469_v29, %v5231_v33  ;;  %v5638_v29 = vld [vmem:[#allocation2 + $0x550] sm:$0xff] }
0x306d   :  { %12754 = vmatprep.mubr.msk.f32.mxu0 %vm136_vm2, %v5237_v34 }
0x306e   :  { %12755 = vmatmul.mubr.msk.f32.vlgmr.msra.gmra.mrb[52].mxu0 %vm136_vm2, %v5238_v35 }
0x306f   :  { %13797 = vmatpush3.bf16.msra.mxu0 %v13794_v7 }
0x3070   :  { %13799 = vmatprep.subr.bf16.mxu0 %v13798_v3 }
0x3073   :  { %13801 = vmatpush3.bf16.msra.mxu0 %v13798_v3  ;;  %v5912_v3 = vld [vmem:[#allocation2 + $0x5c0] sm:$0xff] }
0x3074   :  { %v13820_v11 = vpack.c.bf16 %v5913_v2, %v5912_v3 }
0x3141   :  { %v12756_v28 = vpop.f32.mrb[52].mxu0 }
0x3142   :  { %v5326_v27 = vadd.f32 %v12756_v28, %v11470_v40  ;;  %v5320_v52 = vpop.f32.mrb[53].mxu0 }
0x3143   :  { %v5321_v31 = vadd.f32 %v11470_v40, %v5320_v52 }
0x3144   :  { %v5330_v51 = vmax.f32 %v5326_v27, 0.0 }
0x3145   :  { %v5329_v30 = vmax.f32 %v5321_v31, 0.0 }
0x3147   :  { %12761 = vmatprep.mubr.msk.f32.mxu1 %vm388_vm3, %v5329_v30 }
0x3148   :  { %12762 = vmatmul.mubr.msk.f32.vlgmr.msra.gmra.mrb[50].mxu1 %vm388_vm3, %v5330_v51 }
0x3149   :  { %13789 = vmatpush3.bf16.msra.mxu1 %v13786_v4 }
0x314a   :  { %13791 = vmatprep.subr.bf16.mxu1 %v13790_v0 }
0x314d   :  { %13793 = vmatpush3.bf16.msra.mxu1 %v13790_v0  ;;  %v6001_v0 = vld [vmem:[#allocation2 + $0x560] sm:$0xff] }
0x314e   :  { %13803 = vmatprep.subr.bf16.mxu1 %v13802_v12  ;;  %v13824_v10 = vpack.c.bf16 %v6002_v63, %v6001_v0 }
0x321b   :  { %v12763_v50 = vpop.f32.mrb[50].mxu1 }
0x321c   :  { %v5416_v41 = vadd.f32 %v12763_v50, %v11473_v55  ;;  %v5410_v42 = vpop.f32.mrb[51].mxu1  ;;  %v11484_v50 = vld [vmem:[#allocation2 + $0x7c2] ss:$0 sm:$0xff] }
0x321d   :  { %v5411_v43 = vadd.f32 %v11473_v55, %v5410_v42 }
0x321e   :  { %v5420_v44 = vadd.f32 %v5416_v41, %v5238_v35  ;;  %v13806_v35 = vpack.c.bf16 %v5639_v32, %v5638_v29  ;;  %v6085_v29 = vld [vmem:[#allocation2 + $0x580] sm:$0xff]  ;;  %v6086_v32 = vld [vmem:[#allocation2 + $0x588] sm:$0xff] }
0x321f   :  { %v5419_v45 = vadd.f32 %v5411_v43, %v5237_v34 }
0x3220   :  { %v5426_v46 = vsel %vm136_vm2, %v5420_v44, 0.0 }
0x3221   :  { %5427 = vadd.xlane.f32.xlu1 %v5426_v46  ;;  %v5423_v47 = vsel %vm136_vm2, %v5419_v45, 0.0 }
0x3222   :  { %5424 = vadd.xlane.f32.xlu0 %v5423_v47 }
0x32ae   :  { %v5428_v48 = vpop.xlane.xlu1 %5427 }
0x32af   :  { %v5430_v49 = vmul.f32 0.03125, %v5428_v48  ;;  %v5425_v53 = vpop.xlane.xlu0 %5424 }
0x32b0   :  { %v5429_v54 = vmul.f32 0.03125, %v5425_v53 }
0x32b1   :  { %v5432_v56 = vsub.f32 %v5420_v44, %v5430_v49  ;;  %v14929_v49 = vld [vmem:[#allocation2 + $0x940] sm:$0xff] }
0x32b2   :  { %v5431_v57 = vsub.f32 %v5419_v45, %v5429_v54 }
0x32b3   :  { %v5434_v58 = vmul.f32 %v5432_v56, %v5432_v56 }
0x32b4   :  { %v5433_v59 = vmul.f32 %v5431_v57, %v5431_v57 }
0x32b5   :  { %v5438_v60 = vsel %vm136_vm2, %v5434_v58, 0.0 }
0x32b6   :  { %5439 = vadd.xlane.f32.xlu1 %v5438_v60  ;;  %v5435_v61 = vsel %vm136_vm2, %v5433_v59, 0.0 }
0x32b7   :  { %5436 = vadd.xlane.f32.xlu0 %v5435_v61 }
0x3343   :  { %v5440_v13 = vpop.xlane.xlu1 %5439 }
0x3344   :  { %v5442_v14 = vmul.f32 0.03125, %v5440_v13  ;;  %v5437_v15 = vpop.xlane.xlu0 %5436 }
0x3345   :  { %v5441_v16 = vmul.f32 0.03125, %v5437_v15  ;;  %v6003_v15 = vld [vmem:[#allocation2 + $0x570] sm:$0xff] }
0x3346   :  { %v5444_v17 = vadd.f32 1e-05, %v5442_v14 }
0x3347   :  { %v5443_v18 = vadd.f32 1e-05, %v5441_v16  ;;  %v6004_v16 = vld [vmem:[#allocation2 + $0x578] sm:$0xff] }
0x3348   :  { %14321 = vrsqrt.f32 %v5444_v17 }
0x3349   :  { %14323 = vrsqrt.f32 %v5443_v18 }
0x3352   :  { %v14322_v19 = vpop.eup %14321 }
0x3353   :  { %v14324_v21 = vpop.eup %14323  ;;  %v5448_v22 = vmul.f32 %v14322_v19, %v5432_v56  ;;  %v14932_v56 = vld [vmem:[#allocation2 + $0x938] sm:$0xff] }
0x3354   :  { %v5447_v23 = vmul.f32 %v14324_v21, %v5431_v57  ;;  %v6169_v21 = vld [vmem:[#allocation2 + $0x5a0] sm:$0xff] }
0x3355   :  { %v5454_v25 = vmul.f32 %v11476_v20, %v5448_v22  ;;  %v6170_v22 = vld [vmem:[#allocation2 + $0x5a8] sm:$0xff] }
0x3356   :  { %v5453_v26 = vmul.f32 %v11476_v20, %v5447_v23  ;;  %v13828_v20 = vpack.c.bf16 %v6004_v16, %v6003_v15  ;;  %v13840_v23 = vpack.c.bf16 %v6170_v22, %v6169_v21  ;;  %v11495_v22 = vld [vmem:[#allocation2 + $0x7c6] ss:$0 sm:$0xff] }
0x3357   :  { %v14909_v34 = vadd.f32 %v11477_v24, %v5454_v25  ;;  %v6172_v25 = vld [vmem:[#allocation2 + $0x5b8] sm:$0xff] }
0x3358   :  { %v14907_v33 = vadd.f32 %v11477_v24, %v5453_v26  ;;  %v6171_v24 = vld [vmem:[#allocation2 + $0x5b0] sm:$0xff] }
0x3359   :  { %v13844_v26 = vpack.c.bf16 %v6172_v25, %v6171_v24 }
0x335a   :  { %12772 = vmatprep.mubr.msk.f32.mxu1 %vm136_vm2, %v14907_v33  ;;  %12783 = vmatprep.mubr.msk.f32.mxu0 %vm136_vm2, %v14907_v33 }
0x335b   :  { %12773 = vmatmul.mubr.msk.f32.vlgmr.msra.gmra.mrb[52].mxu1 %vm136_vm2, %v14909_v34  ;;  %12784 = vmatmul.mubr.msk.f32.vlgmr.msra.gmra.mrb[54].mxu0 %vm136_vm2, %v14909_v34 }
0x335c   :  { %13805 = vmatpush3.bf16.msra.mxu1 %v13802_v12  ;;  %12794 = vmatprep.mubr.msk.f32.mxu1 %vm136_vm2, %v14907_v33 }
0x335d   :  { %13807 = vmatprep.subr.bf16.mxu1 %v13806_v35 }
0x3360   :  { %13809 = vmatpush3.bf16.msra.mxu1 %v13806_v35  ;;  %v13832_v35 = vpack.c.bf16 %v6086_v32, %v6085_v29 }
0x3363   :  { %12795 = vmatmul.mubr.msk.f32.vlgmr.msra.gmra.mrb[54].mxu1 %vm136_vm2, %v14909_v34 }
0x342e   :  { %v12774_v38 = vpop.f32.mrb[52].mxu1  ;;  %v12785_v40 = vpop.f32.mrb[54].mxu0 }
0x342f   :  { %v5633_v28 = vadd.f32 %v12785_v40, %v11481_v36  ;;  %v5543_v27 = vpop.f32.mrb[53].mxu1  ;;  %v5627_v52 = vpop.f32.mrb[55].mxu0  ;;  %v5549_v41 = vadd.f32 %v12774_v38, %v11478_v37 }
0x3430   :  { %v5544_v31 = vadd.f32 %v11478_v37, %v5543_v27  ;;  %v5628_v30 = vadd.f32 %v11481_v36, %v5627_v52  ;;  %v6087_v36 = vld [vmem:[#allocation2 + $0x590] sm:$0xff]  ;;  %v6088_v37 = vld [vmem:[#allocation2 + $0x598] sm:$0xff]  ;;  %v11496_v27 = vld [vmem:[#allocation2 + $0x7c3] ss:$0 sm:$0xff] }
0x3431   :  { %v5721_v46 = vmul.f32 0.25, %v5549_v41 }
0x3432   :  { %v5720_v51 = vmul.f32 0.25, %v5544_v31  ;;  %v13810_v55 = vpack.c.bf16 %v5633_v28, %v5628_v30  ;;  %v13836_v28 = vpack.c.bf16 %v6088_v37, %v6087_v36 }
0x3434   :  { %13812 = vmatprep.subr.msk.bf16.mxu0 %vm14615_vm4, %v13810_v55  ;;  %12801 = vmatprep.mubr.msk.f32.mxu0 %vm388_vm3, %v5720_v51 }
0x3435   :  { %13815 = vmatpush3.bf16.xpose.msk.msra.mxu0 %vm14615_vm4, %v13810_v55 }
0x3436   :  { %v12796_v42 = vpop.f32.mrb[54].mxu1  ;;  %13821 = vmatprep.subr.bf16.mxu0 %v13820_v11 }
0x3437   :  { %v5717_v43 = vadd.f32 %v12796_v42, %v11484_v50  ;;  %v5711_v44 = vpop.f32.mrb[55].mxu1 }
0x3438   :  { %v5712_v45 = vadd.f32 %v11484_v50, %v5711_v44  ;;  %v11502_v50 = vld [vmem:[#allocation2 + $0x7c5] ss:$0 sm:$0xff] }
0x343a   :  { %v13816_v47 = vpack.c.bf16 %v5717_v43, %v5712_v45 }
0x343c   :  { %13817 = vmatprep.subr.bf16.mxu1 %v13816_v47  ;;  %12802 = vmatmul.mubr.msk.f32.vlgmr.msra.gmra.mrb[56].mxu0 %vm388_vm3, %v5721_v46  ;;  %v11499_v46 = vld [vmem:[#allocation2 + $0x7c4] ss:$0 sm:$0xff] }
0x343d   :  { %13819 = vmatpush3.bf16.msra.mxu1 %v13816_v47  ;;  %13823 = vmatpush3.bf16.msra.mxu0 %v13820_v11  ;;  %v6445_v11 = vld [vmem:[#allocation2 + $0x5e0] sm:$0xff] }
0x343e   :  { %13825 = vmatprep.subr.bf16.mxu1 %v13824_v10  ;;  %13833 = vmatprep.subr.bf16.mxu0 %v13832_v35 }
0x350f   :  { %v12803_v48 = vpop.f32.mrb[56].mxu0 }
0x3510   :  { %v5806_v53 = vadd.f32 %v14929_v49, %v12803_v48  ;;  %v5800_v54 = vpop.f32.mrb[57].mxu0 }
0x3511   :  { %v5801_v57 = vadd.f32 %v14932_v56, %v5800_v54 }
0x3512   :  { %v5812_v58 = vsel %vm388_vm3, %v5806_v53, -inf }
0x3513   :  { %5813 = vmax.xlane.f32.xlu1 %v5812_v58  ;;  %v5809_v59 = vsel %vm388_vm3, %v5801_v57, -inf }
0x3514   :  { %5810 = vmax.xlane.f32.xlu0 %v5809_v59 }
0x35a0   :  { %v5814_v60 = vpop.xlane.xlu1 %5813 }
0x35a1   :  { %v5816_v61 = vsub.f32 %v5806_v53, %v5814_v60  ;;  %v5811_v62 = vpop.xlane.xlu0 %5810 }
0x35a2   :  { %v5815_v1 = vsub.f32 %v5801_v57, %v5811_v62 }
0x35a3   :  { %v5819_v4 = vmul.f32 1.442695, %v5816_v61 }
0x35a4   :  { %v5817_v5 = vmul.f32 1.442695, %v5815_v1 }
0x35a5   :  { %14325 = vpow2.f32 %v5819_v4 }
0x35a6   :  { %14327 = vpow2.f32 %v5817_v5 }
0x35af   :  { %v14326_v6 = vpop.eup %14325 }
0x35b0   :  { %v14328_v7 = vpop.eup %14327  ;;  %v5824_v8 = vsel %vm388_vm3, %v14326_v6, 0.0 }
0x35b1   :  { %5825 = vadd.xlane.f32.xlu1 %v5824_v8  ;;  %v5821_v9 = vsel %vm388_vm3, %v14328_v7, 0.0 }
0x35b2   :  { %5822 = vadd.xlane.f32.xlu0 %v5821_v9 }
0x363e   :  { %v5826_v12 = vpop.xlane.xlu1 %5825 }
0x363f   :  { %14329 = vrcp.f32 %v5826_v12  ;;  %v5823_v13 = vpop.xlane.xlu0 %5822  ;;  %v6446_v12 = vld [vmem:[#allocation2 + $0x5e8] sm:$0xff] }
0x3640   :  { %14331 = vrcp.f32 %v5823_v13  ;;  %v13858_v13 = vpack.c.bf16 %v6446_v12, %v6445_v11  ;;  %v11518_v12 = vld [vmem:[#allocation2 + $0x7ca] ss:$0 sm:$0xff] }
0x3649   :  { %v14330_v14 = vpop.eup %14329 }
0x364a   :  { %v14332_v17 = vpop.eup %14331  ;;  %v5830_v19 = vmul.f32 %v14330_v14, %v14326_v6 }
0x364b   :  { %v5829_v18 = vmul.f32 %v14332_v17, %v14328_v7 }
0x364d   :  { %12808 = vmatprep.mubr.msk.f32.mxu1 %vm388_vm3, %v5829_v18 }
0x364e   :  { %12809 = vmatmul.mubr.msk.f32.vlgmr.msra.gmra.mrb[56].mxu1 %vm388_vm3, %v5830_v19 }
0x364f   :  { %13827 = vmatpush3.bf16.msra.mxu1 %v13824_v10  ;;  %12826 = vmatprep.mubr.msk.f32.mxu1 %vm136_vm2, %v14907_v33 }
0x3650   :  { %13829 = vmatprep.subr.bf16.mxu1 %v13828_v20 }
0x3653   :  { %13831 = vmatpush3.bf16.msra.mxu1 %v13828_v20 }
0x3654   :  { %13841 = vmatprep.subr.bf16.mxu1 %v13840_v23 }
0x3656   :  { %12827 = vmatmul.mubr.msk.f32.vlgmr.msra.gmra.mrb[58].mxu1 %vm136_vm2, %v14909_v34 }
0x3657   :  { %13843 = vmatpush3.bf16.msra.mxu1 %v13840_v23  ;;  %12848 = vmatprep.mubr.msk.f32.mxu1 %vm136_vm2, %v14907_v33 }
0x3658   :  { %13845 = vmatprep.subr.bf16.mxu1 %v13844_v26 }
0x365b   :  { %13847 = vmatpush3.bf16.msra.mxu1 %v13844_v26 }
0x365e   :  { %12849 = vmatmul.mubr.msk.f32.vlgmr.msra.gmra.mrb[60].mxu1 %vm136_vm2, %v14909_v34 }
0x3721   :  { %v12810_v38 = vpop.f32.mrb[56].mxu1 }
0x3722   :  { %v5903_v40 = vpop.f32.mrb[57].mxu1 }
0x3723   :  { %12815 = vmatprep.mubr.msk.f32.mxu0 %vm388_vm3, %v5903_v40 }
0x3724   :  { %12816 = vmatmul.mubr.msk.f32.vlgmr.msra.gmra.mrb[58].mxu0 %vm388_vm3, %v12810_v38 }
0x3725   :  { %13835 = vmatpush3.bf16.msra.mxu0 %v13832_v35  ;;  %12837 = vmatprep.mubr.msk.f32.mxu0 %vm136_vm2, %v14907_v33 }
0x3726   :  { %13837 = vmatprep.subr.bf16.mxu0 %v13836_v28 }
0x3729   :  { %v12828_v52 = vpop.f32.mrb[58].mxu1  ;;  %13839 = vmatpush3.bf16.msra.mxu0 %v13836_v28 }
0x372a   :  { %v6082_v31 = vadd.f32 %v12828_v52, %v11496_v27  ;;  %v6076_v30 = vpop.f32.mrb[59].mxu1 }
0x372b   :  { %v6077_v51 = vadd.f32 %v11496_v27, %v6076_v30 }
0x372c   :  { %12838 = vmatmul.mubr.msk.f32.vlgmr.msra.gmra.mrb[60].mxu0 %vm136_vm2, %v14909_v34  ;;  %v6254_v58 = vmul.f32 0.25, %v6082_v31 }
0x372d   :  { %v6253_v55 = vmul.f32 0.25, %v6077_v51 }
0x372f   :  { %12855 = vmatprep.mubr.msk.f32.mxu0 %vm388_vm3, %v6253_v55  ;;  %v6573_v55 = vld [vmem:[#allocation2 + $0x608] sm:$0xff] }
0x3731   :  { %v12850_v41 = vpop.f32.mrb[60].mxu1 }
0x3732   :  { %v6250_v42 = vadd.f32 %v12850_v41, %v11502_v50  ;;  %v6244_v43 = vpop.f32.mrb[61].mxu1  ;;  %v6574_v41 = vld [vmem:[#allocation2 + $0x610] sm:$0xff] }
0x3733   :  { %v6245_v44 = vadd.f32 %v11502_v50, %v6244_v43 }
0x3735   :  { %v13854_v45 = vpack.c.bf16 %v6250_v42, %v6245_v44  ;;  %v6575_v42 = vld [vmem:[#allocation2 + $0x618] sm:$0xff] }
0x3736   :  { %v13866_v43 = vpack.c.bf16 %v6575_v42, %v6574_v41  ;;  %v6970_v41 = vld [vmem:[#allocation2 + $0x688] sm:$0xff] }
0x3737   :  { %13855 = vmatprep.subr.bf16.mxu1 %v13854_v45 }
0x3738   :  { %13857 = vmatpush3.bf16.msra.mxu1 %v13854_v45 }
0x37ff   :  { %v12839_v47 = vpop.f32.mrb[60].mxu0 }
0x3800   :  { %v6166_v48 = vadd.f32 %v12839_v47, %v11499_v46  ;;  %v6160_v53 = vpop.f32.mrb[61].mxu0 }
0x3801   :  { %v6161_v54 = vadd.f32 %v11499_v46, %v6160_v53 }
0x3803   :  { %v13848_v57 = vpack.c.bf16 %v6166_v48, %v6161_v54 }
0x3805   :  { %13850 = vmatprep.subr.msk.bf16.mxu0 %vm14615_vm4, %v13848_v57 }
0x3806   :  { %13853 = vmatpush3.bf16.xpose.msk.msra.mxu0 %vm14615_vm4, %v13848_v57  ;;  %v11513_v57 = vld [vmem:[#allocation2 + $0x7c7] ss:$0 sm:$0xff] }
0x3807   :  { %13859 = vmatprep.subr.bf16.mxu0 %v13858_v13 }
0x380d   :  { %12856 = vmatmul.mubr.msk.f32.vlgmr.msra.gmra.mrb[62].mxu0 %vm388_vm3, %v6254_v58 }
0x380e   :  { %13861 = vmatpush3.bf16.msra.mxu0 %v13858_v13 }
0x38e0   :  { %v12857_v59 = vpop.f32.mrb[62].mxu0 }
0x38e1   :  { %v6339_v60 = vadd.f32 %v14929_v49, %v12857_v59  ;;  %v6333_v61 = vpop.f32.mrb[63].mxu0 }
0x38e2   :  { %v6334_v62 = vadd.f32 %v14932_v56, %v6333_v61  ;;  %v11514_v61 = vld [vmem:[#allocation2 + $0x7c8] ss:$0 sm:$0xff] }
0x38e3   :  { %v6345_v1 = vsel %vm388_vm3, %v6339_v60, -inf }
0x38e4   :  { %6346 = vmax.xlane.f32.xlu1 %v6345_v1  ;;  %v6342_v4 = vsel %vm388_vm3, %v6334_v62, -inf }
0x38e5   :  { %6343 = vmax.xlane.f32.xlu0 %v6342_v4 }
0x3971   :  { %v6347_v5 = vpop.xlane.xlu1 %6346 }
0x3972   :  { %v6349_v6 = vsub.f32 %v6339_v60, %v6347_v5  ;;  %v6344_v7 = vpop.xlane.xlu0 %6343 }
0x3973   :  { %v6348_v8 = vsub.f32 %v6334_v62, %v6344_v7  ;;  %v6665_v7 = vld [vmem:[#allocation2 + $0x628] sm:$0xff] }
0x3974   :  { %v6352_v9 = vmul.f32 1.442695, %v6349_v6  ;;  %v6664_v6 = vld [vmem:[#allocation2 + $0x620] sm:$0xff] }
0x3975   :  { %v6350_v0 = vmul.f32 1.442695, %v6348_v8  ;;  %v13870_v8 = vpack.c.bf16 %v6665_v7, %v6664_v6 }
0x3976   :  { %14333 = vpow2.f32 %v6352_v9  ;;  %v11515_v9 = vld [vmem:[#allocation2 + $0x7c9] ss:$0 sm:$0xff] }
0x3977   :  { %14335 = vpow2.f32 %v6350_v0  ;;  %13871 = vmatprep.subr.bf16.mxu0 %v13870_v8 }
0x3980   :  { %v14334_v63 = vpop.eup %14333 }
0x3981   :  { %v14336_v10 = vpop.eup %14335  ;;  %v6357_v3 = vsel %vm388_vm3, %v14334_v63, 0.0 }
0x3982   :  { %6358 = vadd.xlane.f32.xlu1 %v6357_v3  ;;  %v6354_v2 = vsel %vm388_vm3, %v14336_v10, 0.0 }
0x3983   :  { %6355 = vadd.xlane.f32.xlu0 %v6354_v2 }
0x3a0f   :  { %v6359_v14 = vpop.xlane.xlu1 %6358 }
0x3a10   :  { %14337 = vrcp.f32 %v6359_v14  ;;  %v6356_v15 = vpop.xlane.xlu0 %6355 }
0x3a11   :  { %14339 = vrcp.f32 %v6356_v15 }
0x3a1a   :  { %v14338_v16 = vpop.eup %14337 }
0x3a1b   :  { %v14340_v17 = vpop.eup %14339  ;;  %v6363_v19 = vmul.f32 %v14338_v16, %v14334_v63 }
0x3a1c   :  { %v6362_v18 = vmul.f32 %v14340_v17, %v14336_v10 }
0x3a1e   :  { %12862 = vmatprep.mubr.msk.f32.mxu1 %vm388_vm3, %v6362_v18 }
0x3a1f   :  { %12863 = vmatmul.mubr.msk.f32.vlgmr.msra.gmra.mrb[62].mxu1 %vm388_vm3, %v6363_v19 }
0x3af2   :  { %v12864_v20 = vpop.f32.mrb[62].mxu1 }
0x3af3   :  { %v6436_v21 = vpop.f32.mrb[63].mxu1 }
0x3af4   :  { %12869 = vmatprep.mubr.msk.f32.mxu0 %vm388_vm3, %v6436_v21 }
0x3af5   :  { %12870 = vmatmul.mubr.msk.f32.vlgmr.msra.gmra.mrb[58].mxu0 %vm388_vm3, %v12864_v20 }
0x3af6   :  { %13873 = vmatpush3.bf16.msra.mxu0 %v13870_v8  ;;  %v11526_v8 = vld [vmem:[#allocation2 + $0x7d1] ss:$0 sm:$0xff] }
0x3bc8   :  { %v12871_v23 = vpop.f32.mrb[58].mxu0 }
0x3bc9   :  { %v14206_v24 = vadd.f32 %v12871_v23, %v11495_v22  ;;  %v6519_v25 = vpop.f32.mrb[59].mxu0 }
0x3bca   :  { %v14207_v26 = vadd.f32 %v11495_v22, %v6519_v25 }
0x3bcb   :  { %v6531_v29 = vadd.f32 %v14206_v24, %v14909_v34 }
0x3bcc   :  { %v6530_v32 = vadd.f32 %v14207_v26, %v14907_v33  ;;  %v6572_v33 = vld [vmem:[#allocation2 + $0x600] sm:$0xff] }
0x3bcd   :  { %v6537_v35 = vsel %vm136_vm2, %v6531_v29, 0.0  ;;  %v13862_v50 = vpack.c.bf16 %v6573_v55, %v6572_v33  ;;  %v6888_v33 = vld [vmem:[#allocation2 + $0x678] sm:$0xff] }
0x3bce   :  { %6538 = vadd.xlane.f32.xlu1 %v6537_v35  ;;  %v6534_v36 = vsel %vm136_vm2, %v6530_v32, 0.0 }
0x3bcf   :  { %6535 = vadd.xlane.f32.xlu0 %v6534_v36  ;;  %13863 = vmatprep.subr.bf16.mxu1 %v13862_v50 }
0x3bd0   :  { %13865 = vmatpush3.bf16.msra.mxu1 %v13862_v50  ;;  %v6969_v50 = vld [vmem:[#allocation2 + $0x680] sm:$0xff] }
0x3bd1   :  { %13867 = vmatprep.subr.bf16.mxu1 %v13866_v43  ;;  %v13890_v42 = vpack.c.bf16 %v6970_v41, %v6969_v50  ;;  %v7246_v50 = vld [vmem:[#allocation2 + $0x708] sm:$0xff] }
0x3bd4   :  { %13869 = vmatpush3.bf16.msra.mxu1 %v13866_v43 }
0x3c5b   :  { %v6539_v37 = vpop.xlane.xlu1 %6538 }
0x3c5c   :  { %v6541_v38 = vmul.f32 0.03125, %v6539_v37  ;;  %v6536_v40 = vpop.xlane.xlu0 %6535  ;;  %v6795_v37 = vld [vmem:[#allocation2 + $0x640] sm:$0xff] }
0x3c5d   :  { %v6540_v28 = vmul.f32 0.03125, %v6536_v40 }
0x3c5e   :  { %v6543_v27 = vsub.f32 %v6531_v29, %v6541_v38  ;;  %v6796_v38 = vld [vmem:[#allocation2 + $0x648] sm:$0xff] }
0x3c5f   :  { %v6542_v52 = vsub.f32 %v6530_v32, %v6540_v28  ;;  %v13874_v40 = vpack.c.bf16 %v6796_v38, %v6795_v37  ;;  %v6885_v28 = vld [vmem:[#allocation2 + $0x660] sm:$0xff] }
0x3c60   :  { %v6545_v31 = vmul.f32 %v6543_v27, %v6543_v27 }
0x3c61   :  { %v6544_v30 = vmul.f32 %v6542_v52, %v6542_v52  ;;  %13875 = vmatprep.subr.bf16.mxu0 %v13874_v40 }
0x3c62   :  { %v6549_v51 = vsel %vm136_vm2, %v6545_v31, 0.0  ;;  %v6797_v31 = vld [vmem:[#allocation2 + $0x650] sm:$0xff] }
0x3c63   :  { %6550 = vadd.xlane.f32.xlu1 %v6549_v51  ;;  %v6546_v34 = vsel %vm136_vm2, %v6544_v30, 0.0  ;;  %v6798_v30 = vld [vmem:[#allocation2 + $0x658] sm:$0xff] }
0x3c64   :  { %6547 = vadd.xlane.f32.xlu0 %v6546_v34  ;;  %v13878_v51 = vpack.c.bf16 %v6798_v30, %v6797_v31  ;;  %v6887_v34 = vld [vmem:[#allocation2 + $0x670] sm:$0xff] }
0x3c65   :  { %v13886_v55 = vpack.c.bf16 %v6888_v33, %v6887_v34  ;;  %v7335_v34 = vld [vmem:[#allocation2 + $0x6a8] sm:$0xff] }
0x3cf0   :  { %v6551_v44 = vpop.xlane.xlu1 %6550 }
0x3cf1   :  { %v6553_v45 = vmul.f32 0.03125, %v6551_v44  ;;  %v6548_v46 = vpop.xlane.xlu0 %6547 }
0x3cf2   :  { %v6552_v47 = vmul.f32 0.03125, %v6548_v46 }
0x3cf3   :  { %v6555_v48 = vadd.f32 1e-05, %v6553_v45 }
0x3cf4   :  { %v6554_v53 = vadd.f32 1e-05, %v6552_v47 }
0x3cf5   :  { %14341 = vrsqrt.f32 %v6555_v48 }
0x3cf6   :  { %14343 = vrsqrt.f32 %v6554_v53 }
0x3cff   :  { %v14342_v54 = vpop.eup %14341 }
0x3d00   :  { %v14344_v58 = vpop.eup %14343  ;;  %v6559_v59 = vmul.f32 %v14342_v54, %v6543_v27  ;;  %v6886_v27 = vld [vmem:[#allocation2 + $0x668] sm:$0xff] }
0x3d01   :  { %v6558_v60 = vmul.f32 %v14344_v58, %v6542_v52  ;;  %v13882_v52 = vpack.c.bf16 %v6886_v27, %v6885_v28  ;;  %v11521_v54 = vld [vmem:[#allocation2 + $0x7cb] ss:$0 sm:$0xff] }
0x3d02   :  { %v6565_v62 = vmul.f32 %v11513_v57, %v6559_v59 }
0x3d03   :  { %v6564_v1 = vmul.f32 %v11513_v57, %v6558_v60  ;;  %13883 = vmatprep.subr.bf16.mxu1 %v13882_v52  ;;  %v11522_v60 = vld [vmem:[#allocation2 + $0x7cc] ss:$0 sm:$0xff] }
0x3d04   :  { %v6571_v5 = vadd.f32 %v11514_v61, %v6565_v62 }
0x3d05   :  { %v6570_v4 = vadd.f32 %v11514_v61, %v6564_v1  ;;  %v6971_v1 = vld [vmem:[#allocation2 + $0x690] sm:$0xff] }
0x3d07   :  { %12880 = vmatprep.mubr.msk.f32.mxu1 %vm136_vm2, %v6570_v4 }
0x3d08   :  { %12881 = vmatmul.mubr.msk.f32.vlgmr.msra.gmra.mrb[64].mxu1 %vm136_vm2, %v6571_v5 }
0x3d09   :  { %13885 = vmatpush3.bf16.msra.mxu1 %v13882_v52 }
0x3d0a   :  { %13887 = vmatprep.subr.bf16.mxu1 %v13886_v55 }
0x3d0d   :  { %13889 = vmatpush3.bf16.msra.mxu1 %v13886_v55  ;;  %v7245_v55 = vld [vmem:[#allocation2 + $0x700] sm:$0xff] }
0x3d0e   :  { %v13908_v41 = vpack.c.bf16 %v7246_v50, %v7245_v55  ;;  %v7779_v55 = vld [vmem:[#allocation2 + $0x728] sm:$0xff] }
0x3ddb   :  { %v12882_v0 = vpop.f32.mrb[64].mxu1 }
0x3ddc   :  { %v6659_v63 = vadd.f32 %v12882_v0, %v11515_v9  ;;  %v6653_v10 = vpop.f32.mrb[65].mxu1 }
0x3ddd   :  { %v6654_v3 = vadd.f32 %v11515_v9, %v6653_v10  ;;  %v11523_v9 = vld [vmem:[#allocation2 + $0x7d0] ss:$0 sm:$0xff] }
0x3dde   :  { %v6663_v11 = vmax.f32 %v6659_v63, 0.0 }
0x3ddf   :  { %v6662_v2 = vmax.f32 %v6654_v3, 0.0 }
0x3de1   :  { %12887 = vmatprep.mubr.msk.f32.mxu0 %vm388_vm3, %v6662_v2 }
0x3de2   :  { %12888 = vmatmul.mubr.msk.f32.vlgmr.msra.gmra.mrb[64].mxu0 %vm388_vm3, %v6663_v11 }
0x3de3   :  { %13877 = vmatpush3.bf16.msra.mxu0 %v13874_v40 }
0x3de4   :  { %13879 = vmatprep.subr.bf16.mxu0 %v13878_v51 }
0x3de7   :  { %13881 = vmatpush3.bf16.msra.mxu0 %v13878_v51  ;;  %v7334_v51 = vld [vmem:[#allocation2 + $0x6a0] sm:$0xff] }
0x3de8   :  { %13891 = vmatprep.subr.bf16.mxu0 %v13890_v42  ;;  %v13912_v33 = vpack.c.bf16 %v7335_v34, %v7334_v51 }
0x3eb5   :  { %v12889_v13 = vpop.f32.mrb[64].mxu0 }
0x3eb6   :  { %v6749_v14 = vadd.f32 %v12889_v13, %v11518_v12  ;;  %v6743_v15 = vpop.f32.mrb[65].mxu0 }
0x3eb7   :  { %v6744_v16 = vadd.f32 %v11518_v12, %v6743_v15  ;;  %v11529_v15 = vld [vmem:[#allocation2 + $0x7d2] ss:$0 sm:$0xff] }
0x3eb8   :  { %v6753_v17 = vadd.f32 %v6749_v14, %v6571_v5 }
0x3eb9   :  { %v6752_v18 = vadd.f32 %v6744_v16, %v6570_v4  ;;  %v6972_v4 = vld [vmem:[#allocation2 + $0x698] sm:$0xff] }
0x3eba   :  { %v6759_v19 = vsel %vm136_vm2, %v6753_v17, 0.0  ;;  %v13894_v7 = vpack.c.bf16 %v6972_v4, %v6971_v1  ;;  %v7418_v1 = vld [vmem:[#allocation2 + $0x6c0] sm:$0xff]  ;;  %v7419_v4 = vld [vmem:[#allocation2 + $0x6c8] sm:$0xff] }
0x3ebb   :  { %6760 = vadd.xlane.f32.xlu1 %v6759_v19  ;;  %v6756_v20 = vsel %vm136_vm2, %v6752_v18, 0.0 }
0x3ebc   :  { %6757 = vadd.xlane.f32.xlu0 %v6756_v20 }
0x3f48   :  { %v6761_v21 = vpop.xlane.xlu1 %6760 }
0x3f49   :  { %v6763_v22 = vmul.f32 0.03125, %v6761_v21  ;;  %v6758_v23 = vpop.xlane.xlu0 %6757 }
0x3f4a   :  { %v6762_v24 = vmul.f32 0.03125, %v6758_v23 }
0x3f4b   :  { %v6765_v25 = vsub.f32 %v6753_v17, %v6763_v22 }
0x3f4c   :  { %v6764_v26 = vsub.f32 %v6752_v18, %v6762_v24 }
0x3f4d   :  { %v6767_v29 = vmul.f32 %v6765_v25, %v6765_v25 }
0x3f4e   :  { %v6766_v32 = vmul.f32 %v6764_v26, %v6764_v26 }
0x3f4f   :  { %v6771_v35 = vsel %vm136_vm2, %v6767_v29, 0.0 }
0x3f50   :  { %6772 = vadd.xlane.f32.xlu1 %v6771_v35  ;;  %v6768_v36 = vsel %vm136_vm2, %v6766_v32, 0.0 }
0x3f51   :  { %6769 = vadd.xlane.f32.xlu0 %v6768_v36 }
0x3fdd   :  { %v6773_v43 = vpop.xlane.xlu1 %6772 }
0x3fde   :  { %v6775_v44 = vmul.f32 0.03125, %v6773_v43  ;;  %v6770_v45 = vpop.xlane.xlu0 %6769 }
0x3fdf   :  { %v6774_v46 = vmul.f32 0.03125, %v6770_v45  ;;  %v7336_v45 = vld [vmem:[#allocation2 + $0x6b0] sm:$0xff] }
0x3fe0   :  { %v6777_v47 = vadd.f32 1e-05, %v6775_v44 }
0x3fe1   :  { %v6776_v48 = vadd.f32 1e-05, %v6774_v46  ;;  %v7337_v46 = vld [vmem:[#allocation2 + $0x6b8] sm:$0xff] }
0x3fe2   :  { %14345 = vrsqrt.f32 %v6777_v47 }
0x3fe3   :  { %14347 = vrsqrt.f32 %v6776_v48 }
0x3fec   :  { %v14346_v53 = vpop.eup %14345 }
0x3fed   :  { %v14348_v57 = vpop.eup %14347  ;;  %v6781_v58 = vmul.f32 %v14346_v53, %v6765_v25 }
0x3fee   :  { %v6780_v59 = vmul.f32 %v14348_v57, %v6764_v26  ;;  %v7502_v57 = vld [vmem:[#allocation2 + $0x6e0] sm:$0xff] }
0x3fef   :  { %v6787_v61 = vmul.f32 %v11521_v54, %v6781_v58  ;;  %v7503_v58 = vld [vmem:[#allocation2 + $0x6e8] sm:$0xff] }
0x3ff0   :  { %v6786_v62 = vmul.f32 %v11521_v54, %v6780_v59  ;;  %v13916_v54 = vpack.c.bf16 %v7337_v46, %v7336_v45  ;;  %v13928_v59 = vpack.c.bf16 %v7503_v58, %v7502_v57 }
0x3ff1   :  { %v14987_v6 = vadd.f32 %v11522_v60, %v6787_v61  ;;  %v7505_v61 = vld [vmem:[#allocation2 + $0x6f8] sm:$0xff] }
0x3ff2   :  { %v14985_v5 = vadd.f32 %v11522_v60, %v6786_v62  ;;  %v7504_v60 = vld [vmem:[#allocation2 + $0x6f0] sm:$0xff] }
0x3ff3   :  { %v13932_v62 = vpack.c.bf16 %v7505_v61, %v7504_v60 }
0x3ff4   :  { %12898 = vmatprep.mubr.msk.f32.mxu0 %vm136_vm2, %v14985_v5  ;;  %12909 = vmatprep.mubr.msk.f32.mxu1 %vm136_vm2, %v14985_v5 }
0x3ff5   :  { %12899 = vmatmul.mubr.msk.f32.vlgmr.msra.gmra.mrb[66].mxu0 %vm136_vm2, %v14987_v6  ;;  %12910 = vmatmul.mubr.msk.f32.vlgmr.msra.gmra.mrb[66].mxu1 %vm136_vm2, %v14987_v6 }
0x3ff6   :  { %13893 = vmatpush3.bf16.msra.mxu0 %v13890_v42  ;;  %12920 = vmatprep.mubr.msk.f32.mxu0 %vm136_vm2, %v14985_v5 }
0x3ff7   :  { %13895 = vmatprep.subr.bf16.mxu0 %v13894_v7 }
0x3ffa   :  { %13897 = vmatpush3.bf16.msra.mxu0 %v13894_v7  ;;  %v13920_v7 = vpack.c.bf16 %v7419_v4, %v7418_v1 }
0x3ffd   :  { %12921 = vmatmul.mubr.msk.f32.vlgmr.msra.gmra.mrb[68].mxu0 %vm136_vm2, %v14987_v6 }
0x40c8   :  { %v12900_v0 = vpop.f32.mrb[66].mxu0  ;;  %v12911_v63 = vpop.f32.mrb[66].mxu1 }
0x40c9   :  { %v6966_v10 = vadd.f32 %v12911_v63, %v11526_v8  ;;  %v6876_v3 = vpop.f32.mrb[67].mxu0  ;;  %v6960_v2 = vpop.f32.mrb[67].mxu1  ;;  %v6882_v16 = vadd.f32 %v12900_v0, %v11523_v9 }
0x40ca   :  { %v6877_v11 = vadd.f32 %v11523_v9, %v6876_v3  ;;  %v6961_v12 = vadd.f32 %v11526_v8, %v6960_v2  ;;  %v7420_v8 = vld [vmem:[#allocation2 + $0x6d0] sm:$0xff]  ;;  %v7421_v9 = vld [vmem:[#allocation2 + $0x6d8] sm:$0xff] }
0x40cb   :  { %v7054_v21 = vmul.f32 0.25, %v6882_v16  ;;  %v11541_v3 = vld [vmem:[#allocation2 + $0x7d3] ss:$0 sm:$0xff] }
0x40cc   :  { %v7053_v13 = vmul.f32 0.25, %v6877_v11  ;;  %v13898_v14 = vpack.c.bf16 %v6966_v10, %v6961_v12  ;;  %v13924_v10 = vpack.c.bf16 %v7421_v9, %v7420_v8 }
0x40ce   :  { %13900 = vmatprep.subr.msk.bf16.mxu1 %vm14615_vm4, %v13898_v14  ;;  %12927 = vmatprep.mubr.msk.f32.mxu1 %vm388_vm3, %v7053_v13 }
0x40cf   :  { %13903 = vmatpush3.bf16.xpose.msk.msra.mxu1 %vm14615_vm4, %v13898_v14 }
0x40d0   :  { %v12922_v17 = vpop.f32.mrb[68].mxu0  ;;  %13909 = vmatprep.subr.bf16.mxu1 %v13908_v41 }
0x40d1   :  { %v7050_v18 = vadd.f32 %v12922_v17, %v11529_v15  ;;  %v7044_v19 = vpop.f32.mrb[69].mxu0 }
0x40d2   :  { %v7045_v20 = vadd.f32 %v11529_v15, %v7044_v19  ;;  %v11547_v15 = vld [vmem:[#allocation2 + $0x7d5] ss:$0 sm:$0xff] }
0x40d4   :  { %v13904_v22 = vpack.c.bf16 %v7050_v18, %v7045_v20 }
0x40d6   :  { %13905 = vmatprep.subr.bf16.mxu0 %v13904_v22  ;;  %12928 = vmatmul.mubr.msk.f32.vlgmr.msra.gmra.mrb[68].mxu1 %vm388_vm3, %v7054_v21  ;;  %v11544_v21 = vld [vmem:[#allocation2 + $0x7d4] ss:$0 sm:$0xff] }
0x40d7   :  { %13907 = vmatpush3.bf16.msra.mxu0 %v13904_v22  ;;  %13911 = vmatpush3.bf16.msra.mxu1 %v13908_v41 }
0x40d8   :  { %13913 = vmatprep.subr.bf16.mxu0 %v13912_v33  ;;  %13921 = vmatprep.subr.bf16.mxu1 %v13920_v7 }
0x41a9   :  { %v12929_v23 = vpop.f32.mrb[68].mxu1 }
0x41aa   :  { %v7139_v24 = vadd.f32 %v14929_v49, %v12929_v23  ;;  %v7133_v25 = vpop.f32.mrb[69].mxu1 }
0x41ab   :  { %v7134_v26 = vadd.f32 %v14932_v56, %v7133_v25 }
0x41ac   :  { %v7145_v29 = vsel %vm388_vm3, %v7139_v24, -inf }
0x41ad   :  { %7146 = vmax.xlane.f32.xlu1 %v7145_v29  ;;  %v7142_v32 = vsel %vm388_vm3, %v7134_v26, -inf }
0x41ae   :  { %7143 = vmax.xlane.f32.xlu0 %v7142_v32 }
0x423a   :  { %v7147_v35 = vpop.xlane.xlu1 %7146 }
0x423b   :  { %v7149_v36 = vsub.f32 %v7139_v24, %v7147_v35  ;;  %v7144_v37 = vpop.xlane.xlu0 %7143 }
0x423c   :  { %v7148_v38 = vsub.f32 %v7134_v26, %v7144_v37 }
0x423d   :  { %v7152_v40 = vmul.f32 1.442695, %v7149_v36 }
0x423e   :  { %v7150_v28 = vmul.f32 1.442695, %v7148_v38 }
0x423f   :  { %14349 = vpow2.f32 %v7152_v40 }
0x4240   :  { %14351 = vpow2.f32 %v7150_v28 }
0x4249   :  { %v14350_v27 = vpop.eup %14349 }
0x424a   :  { %v14352_v52 = vpop.eup %14351  ;;  %v7157_v31 = vsel %vm388_vm3, %v14350_v27, 0.0 }
0x424b   :  { %7158 = vadd.xlane.f32.xlu1 %v7157_v31  ;;  %v7154_v30 = vsel %vm388_vm3, %v14352_v52, 0.0 }
0x424c   :  { %7155 = vadd.xlane.f32.xlu0 %v7154_v30 }
0x42d8   :  { %v7159_v42 = vpop.xlane.xlu1 %7158 }
0x42d9   :  { %14353 = vrcp.f32 %v7159_v42  ;;  %v7156_v43 = vpop.xlane.xlu0 %7155 }
0x42da   :  { %14355 = vrcp.f32 %v7156_v43 }
0x42e3   :  { %v14354_v44 = vpop.eup %14353 }
0x42e4   :  { %v14356_v47 = vpop.eup %14355  ;;  %v7163_v53 = vmul.f32 %v14354_v44, %v14350_v27 }
0x42e5   :  { %v7162_v48 = vmul.f32 %v14356_v47, %v14352_v52 }
0x42e7   :  { %12934 = vmatprep.mubr.msk.f32.mxu0 %vm388_vm3, %v7162_v48 }
0x42e8   :  { %12935 = vmatmul.mubr.msk.f32.vlgmr.msra.gmra.mrb[70].mxu0 %vm388_vm3, %v7163_v53  ;;  %v11540_v53 = vld [vmem:[#allocation2 + $0x7d6] ss:$0 sm:$0xff] }
0x42e9   :  { %13915 = vmatpush3.bf16.msra.mxu0 %v13912_v33  ;;  %12952 = vmatprep.mubr.msk.f32.mxu0 %vm136_vm2, %v14985_v5  ;;  %v7778_v33 = vld [vmem:[#allocation2 + $0x720] sm:$0xff] }
0x42ea   :  { %13917 = vmatprep.subr.bf16.mxu0 %v13916_v54  ;;  %v13946_v50 = vpack.c.bf16 %v7779_v55, %v7778_v33 }
0x42ed   :  { %13919 = vmatpush3.bf16.msra.mxu0 %v13916_v54 }
0x42ee   :  { %13929 = vmatprep.subr.bf16.mxu0 %v13928_v59 }
0x42f0   :  { %12953 = vmatmul.mubr.msk.f32.vlgmr.msra.gmra.mrb[72].mxu0 %vm136_vm2, %v14987_v6 }
0x42f1   :  { %13931 = vmatpush3.bf16.msra.mxu0 %v13928_v59  ;;  %12974 = vmatprep.mubr.msk.f32.mxu0 %vm136_vm2, %v14985_v5 }
0x42f2   :  { %13933 = vmatprep.subr.bf16.mxu0 %v13932_v62 }
0x42f5   :  { %13935 = vmatpush3.bf16.msra.mxu0 %v13932_v62 }
0x42f8   :  { %12975 = vmatmul.mubr.msk.f32.vlgmr.msra.gmra.mrb[74].mxu0 %vm136_vm2, %v14987_v6 }
0x43bb   :  { %v12936_v0 = vpop.f32.mrb[70].mxu0 }
0x43bc   :  { %v7236_v63 = vpop.f32.mrb[71].mxu0 }
0x43bd   :  { %12941 = vmatprep.mubr.msk.f32.mxu1 %vm388_vm3, %v7236_v63 }
0x43be   :  { %12942 = vmatmul.mubr.msk.f32.vlgmr.msra.gmra.mrb[70].mxu1 %vm388_vm3, %v12936_v0 }
0x43bf   :  { %13923 = vmatpush3.bf16.msra.mxu1 %v13920_v7  ;;  %12963 = vmatprep.mubr.msk.f32.mxu1 %vm136_vm2, %v14985_v5 }
0x43c0   :  { %13925 = vmatprep.subr.bf16.mxu1 %v13924_v10 }
0x43c3   :  { %v12954_v2 = vpop.f32.mrb[72].mxu0  ;;  %13927 = vmatpush3.bf16.msra.mxu1 %v13924_v10 }
0x43c4   :  { %v7415_v11 = vadd.f32 %v12954_v2, %v11541_v3  ;;  %v7409_v12 = vpop.f32.mrb[73].mxu0 }
0x43c5   :  { %v7410_v13 = vadd.f32 %v11541_v3, %v7409_v12 }
0x43c6   :  { %12964 = vmatmul.mubr.msk.f32.vlgmr.msra.gmra.mrb[72].mxu1 %vm136_vm2, %v14987_v6  ;;  %v7587_v29 = vmul.f32 0.25, %v7415_v11  ;;  %v7906_v11 = vld [vmem:[#allocation2 + $0x748] sm:$0xff] }
0x43c7   :  { %v7586_v14 = vmul.f32 0.25, %v7410_v13  ;;  %v7907_v13 = vld [vmem:[#allocation2 + $0x750] sm:$0xff] }
0x43c9   :  { %12981 = vmatprep.mubr.msk.f32.mxu1 %vm388_vm3, %v7586_v14  ;;  %v7908_v14 = vld [vmem:[#allocation2 + $0x758] sm:$0xff] }
0x43cb   :  { %v12976_v16 = vpop.f32.mrb[74].mxu0 }
0x43cc   :  { %v7583_v17 = vadd.f32 %v12976_v16, %v11547_v15  ;;  %v7577_v18 = vpop.f32.mrb[75].mxu0 }
0x43cd   :  { %v7578_v19 = vadd.f32 %v11547_v15, %v7577_v18  ;;  %v13954_v15 = vpack.c.bf16 %v7908_v14, %v7907_v13 }
0x43cf   :  { %v13942_v20 = vpack.c.bf16 %v7583_v17, %v7578_v19 }
0x43d1   :  { %13943 = vmatprep.subr.bf16.mxu0 %v13942_v20 }
0x43d2   :  { %13945 = vmatpush3.bf16.msra.mxu0 %v13942_v20 }
0x4499   :  { %v12965_v22 = vpop.f32.mrb[72].mxu1 }
0x449a   :  { %v7499_v23 = vadd.f32 %v12965_v22, %v11544_v21  ;;  %v7493_v24 = vpop.f32.mrb[73].mxu1 }
0x449b   :  { %v7494_v25 = vadd.f32 %v11544_v21, %v7493_v24 }
0x449d   :  { %v13936_v26 = vpack.c.bf16 %v7499_v23, %v7494_v25  ;;  %v11558_v23 = vld [vmem:[#allocation2 + $0x7d7] ss:$0 sm:$0xff] }
0x449f   :  { %13938 = vmatprep.subr.msk.bf16.mxu1 %vm14615_vm4, %v13936_v26 }
0x44a0   :  { %13941 = vmatpush3.bf16.xpose.msk.msra.mxu1 %vm14615_vm4, %v13936_v26 }
0x44a1   :  { %13947 = vmatprep.subr.bf16.mxu1 %v13946_v50 }
0x44a7   :  { %12982 = vmatmul.mubr.msk.f32.vlgmr.msra.gmra.mrb[74].mxu1 %vm388_vm3, %v7587_v29  ;;  %v11559_v29 = vld [vmem:[#allocation2 + $0x7d8] ss:$0 sm:$0xff] }
0x44a8   :  { %13949 = vmatpush3.bf16.msra.mxu1 %v13946_v50 }
0x457a   :  { %v12983_v32 = vpop.f32.mrb[74].mxu1 }
0x457b   :  { %v7672_v35 = vadd.f32 %v14929_v49, %v12983_v32  ;;  %v7666_v36 = vpop.f32.mrb[75].mxu1 }
0x457c   :  { %v7667_v37 = vadd.f32 %v14932_v56, %v7666_v36 }
0x457d   :  { %v7678_v38 = vsel %vm388_vm3, %v7672_v35, -inf }
0x457e   :  { %7679 = vmax.xlane.f32.xlu1 %v7678_v38  ;;  %v7675_v40 = vsel %vm388_vm3, %v7667_v37, -inf  ;;  %v7997_v38 = vld [vmem:[#allocation2 + $0x760] sm:$0xff] }
0x457f   :  { %7676 = vmax.xlane.f32.xlu0 %v7675_v40  ;;  %v7998_v40 = vld [vmem:[#allocation2 + $0x768] sm:$0xff] }
0x460b   :  { %v7680_v28 = vpop.xlane.xlu1 %7679 }
0x460c   :  { %v7682_v27 = vsub.f32 %v7672_v35, %v7680_v28  ;;  %v7677_v52 = vpop.xlane.xlu0 %7676  ;;  %v13958_v28 = vpack.c.bf16 %v7998_v40, %v7997_v38  ;;  %v8170_v38 = vld [vmem:[#allocation2 + $0x800] sm:$0xff]  ;;  %v8263_v40 = vld [vmem:[#allocation2 + $0x818] sm:$0xff] }
0x460d   :  { %v7681_v39 = vsub.f32 %v7667_v37, %v7677_v52 }
0x460e   :  { %v7685_v31 = vmul.f32 1.442695, %v7682_v27  ;;  %13959 = vmatprep.subr.bf16.mxu1 %v13958_v28  ;;  %v11560_v27 = vld [vmem:[#allocation2 + $0x7d9] ss:$0 sm:$0xff] }
0x460f   :  { %v7683_v30 = vmul.f32 1.442695, %v7681_v39 }
0x4610   :  { %14357 = vpow2.f32 %v7685_v31 }
0x4611   :  { %14359 = vpow2.f32 %v7683_v30 }
0x461a   :  { %v14358_v51 = vpop.eup %14357 }
0x461b   :  { %v14360_v34 = vpop.eup %14359  ;;  %v7690_v49 = vsel %vm388_vm3, %v14358_v51, 0.0 }
0x461c   :  { %7691 = vadd.xlane.f32.xlu1 %v7690_v49  ;;  %v7687_v56 = vsel %vm388_vm3, %v14360_v34, 0.0  ;;  %v11563_v49 = vld [vmem:[#allocation2 + $0x7da] ss:$0 sm:$0xff] }
0x461d   :  { %7688 = vadd.xlane.f32.xlu0 %v7687_v56 }
0x46a9   :  { %v7692_v41 = vpop.xlane.xlu1 %7691 }
0x46aa   :  { %14361 = vrcp.f32 %v7692_v41  ;;  %v7689_v42 = vpop.xlane.xlu0 %7688 }
0x46ab   :  { %14363 = vrcp.f32 %v7689_v42 }
0x46b4   :  { %v14362_v43 = vpop.eup %14361 }
0x46b5   :  { %v14364_v44 = vpop.eup %14363  ;;  %v7696_v46 = vmul.f32 %v14362_v43, %v14358_v51 }
0x46b6   :  { %v7695_v45 = vmul.f32 %v14364_v44, %v14360_v34 }
0x46b8   :  { %12988 = vmatprep.mubr.msk.f32.mxu0 %vm388_vm3, %v7695_v45 }
0x46b9   :  { %12989 = vmatmul.mubr.msk.f32.vlgmr.msra.gmra.mrb[76].mxu0 %vm388_vm3, %v7696_v46 }
0x478c   :  { %v12990_v47 = vpop.f32.mrb[76].mxu0 }
0x478d   :  { %v7769_v48 = vpop.f32.mrb[77].mxu0 }
0x478e   :  { %12995 = vmatprep.mubr.msk.f32.mxu1 %vm388_vm3, %v7769_v48 }
0x478f   :  { %12996 = vmatmul.mubr.msk.f32.vlgmr.msra.gmra.mrb[70].mxu1 %vm388_vm3, %v12990_v47 }
0x4790   :  { %13961 = vmatpush3.bf16.msra.mxu1 %v13958_v28 }
0x4862   :  { %v12997_v54 = vpop.f32.mrb[70].mxu1 }
0x4863   :  { %v14208_v57 = vadd.f32 %v12997_v54, %v11540_v53  ;;  %v7852_v58 = vpop.f32.mrb[71].mxu1 }
0x4864   :  { %v14209_v59 = vadd.f32 %v11540_v53, %v7852_v58 }
0x4865   :  { %v7864_v60 = vadd.f32 %v14208_v57, %v14987_v6 }
0x4866   :  { %v7863_v61 = vadd.f32 %v14209_v59, %v14985_v5  ;;  %v7905_v5 = vld [vmem:[#allocation2 + $0x740] sm:$0xff] }
0x4867   :  { %v7870_v62 = vsel %vm136_vm2, %v7864_v60, 0.0  ;;  %v13950_v12 = vpack.c.bf16 %v7906_v11, %v7905_v5 }
0x4868   :  { %7871 = vadd.xlane.f32.xlu1 %v7870_v62  ;;  %v7867_v1 = vsel %vm136_vm2, %v7863_v61, 0.0 }
0x4869   :  { %7868 = vadd.xlane.f32.xlu0 %v7867_v1  ;;  %13951 = vmatprep.subr.bf16.mxu0 %v13950_v12 }
0x486a   :  { %13953 = vmatpush3.bf16.msra.mxu0 %v13950_v12 }
0x486b   :  { %13955 = vmatprep.subr.bf16.mxu0 %v13954_v15 }
0x486e   :  { %13957 = vmatpush3.bf16.msra.mxu0 %v13954_v15 }
0x48f5   :  { %v7872_v4 = vpop.xlane.xlu1 %7871 }
0x48f6   :  { %v7874_v7 = vmul.f32 0.03125, %v7872_v4  ;;  %v7869_v8 = vpop.xlane.xlu0 %7868 }
0x48f7   :  { %v7873_v9 = vmul.f32 0.03125, %v7869_v8 }
0x48f8   :  { %v7876_v0 = vsub.f32 %v7864_v60, %v7874_v7 }
0x48f9   :  { %v7875_v63 = vsub.f32 %v7863_v61, %v7873_v9 }
0x48fa   :  { %v7878_v10 = vmul.f32 %v7876_v0, %v7876_v0 }
0x48fb   :  { %v7877_v3 = vmul.f32 %v7875_v63, %v7875_v63 }
0x48fc   :  { %v7882_v2 = vsel %vm136_vm2, %v7878_v10, 0.0 }
0x48fd   :  { %7883 = vadd.xlane.f32.xlu1 %v7882_v2  ;;  %v7879_v6 = vsel %vm136_vm2, %v7877_v3, 0.0  ;;  %v11567_v3 = vld [vmem:[#allocation2 + $0x7dc] ss:$0 sm:$0xff] }
0x48fe   :  { %7880 = vadd.xlane.f32.xlu0 %v7879_v6 }
0x498a   :  { %v7884_v16 = vpop.xlane.xlu1 %7883 }
0x498b   :  { %v7886_v17 = vmul.f32 0.03125, %v7884_v16  ;;  %v7881_v18 = vpop.xlane.xlu0 %7880 }
0x498c   :  { %v7885_v19 = vmul.f32 0.03125, %v7881_v18 }
0x498d   :  { %v7888_v20 = vadd.f32 1e-05, %v7886_v17 }
0x498e   :  { %v7887_v21 = vadd.f32 1e-05, %v7885_v19 }
0x498f   :  { %14365 = vrsqrt.f32 %v7888_v20 }
0x4990   :  { %14367 = vrsqrt.f32 %v7887_v21 }
0x4999   :  { %v14366_v22 = vpop.eup %14365 }
0x499a   :  { %v14368_v24 = vpop.eup %14367  ;;  %v7892_v25 = vmul.f32 %v14366_v22, %v7876_v0  ;;  %v11566_v0 = vld [vmem:[#allocation2 + $0x7db] ss:$0 sm:$0xff] }
0x499b   :  { %v7891_v26 = vmul.f32 %v14368_v24, %v7875_v63 }
0x499c   :  { %v7898_v32 = vmul.f32 %v11558_v23, %v7892_v25  ;;  %v8167_v25 = vld [vmem:[#allocation2 + $0x7e8] sm:$0xff] }
0x499d   :  { %v7897_v35 = vmul.f32 %v11558_v23, %v7891_v26  ;;  %v8168_v26 = vld [vmem:[#allocation2 + $0x7f0] sm:$0xff] }
0x499e   :  { %v7904_v37 = vadd.f32 %v11559_v29, %v7898_v32  ;;  %v13962_v32 = vpack.c.bf16 %v8168_v26, %v8167_v25 }
0x499f   :  { %v7903_v36 = vadd.f32 %v11559_v29, %v7897_v35  ;;  %v8261_v29 = vld [vmem:[#allocation2 + $0x808] sm:$0xff]  ;;  %v8262_v35 = vld [vmem:[#allocation2 + $0x810] sm:$0xff] }
0x49a0   :  { %13963 = vmatprep.subr.bf16.mxu1 %v13962_v32 }
0x49a1   :  { %13006 = vmatprep.mubr.msk.f32.mxu0 %vm136_vm2, %v7903_v36 }
0x49a2   :  { %13007 = vmatmul.mubr.msk.f32.vlgmr.msra.gmra.mrb[78].mxu0 %vm136_vm2, %v7904_v37 }
0x4a75   :  { %v13008_v52 = vpop.f32.mrb[78].mxu0 }
0x4a76   :  { %v7992_v39 = vadd.f32 %v13008_v52, %v11560_v27  ;;  %v7986_v31 = vpop.f32.mrb[79].mxu0 }
0x4a77   :  { %v7987_v30 = vadd.f32 %v11560_v27, %v7986_v31  ;;  %v8264_v27 = vld [vmem:[#allocation2 + $0x820] sm:$0xff]  ;;  %v8350_v31 = vld [vmem:[#allocation2 + $0x830] sm:$0xff] }
0x4a78   :  { %v7996_v34 = vmax.f32 %v7992_v39, 0.0  ;;  %v13974_v52 = vpack.c.bf16 %v8264_v27, %v8263_v40  ;;  %v8349_v39 = vld [vmem:[#allocation2 + $0x828] sm:$0xff] }
0x4a79   :  { %v7995_v51 = vmax.f32 %v7987_v30, 0.0  ;;  %v8437_v30 = vld [vmem:[#allocation2 + $0x848] sm:$0xff] }
0x4a7a   :  { %v11576_v27 = vld [vmem:[#allocation2 + $0x94d] ss:$0 sm:$0xff] }
0x4a7b   :  { %13013 = vmatprep.mubr.msk.f32.mxu1 %vm388_vm3, %v7995_v51  ;;  %v13978_v51 = vpack.c.bf16 %v8350_v31, %v8349_v39 }
0x4a7c   :  { %13014 = vmatmul.mubr.msk.f32.vlgmr.msra.gmra.mrb[76].mxu1 %vm388_vm3, %v7996_v34  ;;  %v8438_v34 = vld [vmem:[#allocation2 + $0x850] sm:$0xff] }
0x4a7d   :  { %13965 = vmatpush3.bf16.msra.mxu1 %v13962_v32  ;;  %v11573_v32 = vld [vmem:[#allocation2 + $0x94c] ss:$0 sm:$0xff] }
0x4b4f   :  { %v13015_v56 = vpop.f32.mrb[76].mxu1 }
0x4b50   :  { %v8082_v33 = vadd.f32 %v13015_v56, %v11563_v49  ;;  %v8076_v55 = vpop.f32.mrb[77].mxu1 }
0x4b51   :  { %v8077_v50 = vadd.f32 %v11563_v49, %v8076_v55  ;;  %v13986_v49 = vpack.c.bf16 %v8438_v34, %v8437_v30 }
0x4b52   :  { %v8086_v41 = vadd.f32 %v8082_v33, %v7904_v37  ;;  %v8169_v37 = vld [vmem:[#allocation2 + $0x7f8] sm:$0xff] }
0x4b53   :  { %v8085_v42 = vadd.f32 %v8077_v50, %v7903_v36  ;;  %v13970_v36 = vpack.c.bf16 %v8262_v35, %v8261_v29  ;;  %v13966_v28 = vpack.c.bf16 %v8170_v38, %v8169_v37  ;;  %v11570_v29 = vld [vmem:[#allocation2 + $0x94b] ss:$0 sm:$0xff] }
0x4b54   :  { %v8092_v43 = vsel %vm136_vm2, %v8086_v41, 0.0 }
0x4b55   :  { %8093 = vadd.xlane.f32.xlu1 %v8092_v43  ;;  %v8089_v44 = vsel %vm136_vm2, %v8085_v42, 0.0  ;;  %13971 = vmatprep.subr.bf16.mxu0 %v13970_v36 }
0x4b56   :  { %8090 = vadd.xlane.f32.xlu0 %v8089_v44  ;;  %13973 = vmatpush3.bf16.msra.mxu0 %v13970_v36  ;;  %v11568_v44 = vld [vmem:[#allocation2 + $0x949] ss:$0 sm:$0xff] }
0x4b57   :  { %13967 = vmatprep.subr.bf16.mxu1 %v13966_v28  ;;  %13975 = vmatprep.subr.bf16.mxu0 %v13974_v52 }
0x4b58   :  { %13969 = vmatpush3.bf16.msra.mxu1 %v13966_v28 }
0x4b59   :  { %13979 = vmatprep.subr.bf16.mxu1 %v13978_v51 }
0x4b5a   :  { %13977 = vmatpush3.bf16.msra.mxu0 %v13974_v52  ;;  %v11579_v52 = vld [vmem:[#allocation2 + $0x94e] ss:$0 sm:$0xff] }
0x4b5b   :  { %13987 = vmatprep.subr.bf16.mxu0 %v13986_v49 }
0x4be2   :  { %v8094_v45 = vpop.xlane.xlu1 %8093 }
0x4be3   :  { %v8096_v46 = vmul.f32 0.03125, %v8094_v45  ;;  %v8091_v47 = vpop.xlane.xlu0 %8090 }
0x4be4   :  { %v8095_v48 = vmul.f32 0.03125, %v8091_v47 }
0x4be5   :  { %v8098_v53 = vsub.f32 %v8086_v41, %v8096_v46 }
0x4be6   :  { %v8097_v54 = vsub.f32 %v8085_v42, %v8095_v48  ;;  %v11569_v48 = vld [vmem:[#allocation2 + $0x94a] ss:$0 sm:$0xff] }
0x4be7   :  { %v8100_v57 = vmul.f32 %v8098_v53, %v8098_v53 }
0x4be8   :  { %v8099_v58 = vmul.f32 %v8097_v54, %v8097_v54 }
0x4be9   :  { %v8104_v59 = vsel %vm136_vm2, %v8100_v57, 0.0  ;;  %v8351_v57 = vld [vmem:[#allocation2 + $0x838] sm:$0xff] }
0x4bea   :  { %8105 = vadd.xlane.f32.xlu1 %v8104_v59  ;;  %v8101_v60 = vsel %vm136_vm2, %v8099_v58, 0.0  ;;  %v8352_v58 = vld [vmem:[#allocation2 + $0x840] sm:$0xff]  ;;  %v8439_v59 = vld [vmem:[#allocation2 + $0x858] sm:$0xff] }
0x4beb   :  { %8102 = vadd.xlane.f32.xlu0 %v8101_v60  ;;  %v8440_v60 = vld [vmem:[#allocation2 + $0x860] sm:$0xff] }
0x4c77   :  { %v8106_v61 = vpop.xlane.xlu1 %8105 }
0x4c78   :  { %v8108_v62 = vmul.f32 0.03125, %v8106_v61  ;;  %v8103_v1 = vpop.xlane.xlu0 %8102 }
0x4c79   :  { %v8107_v4 = vmul.f32 0.03125, %v8103_v1  ;;  %v13982_v1 = vpack.c.bf16 %v8352_v58, %v8351_v57 }
0x4c7a   :  { %v8110_v7 = vadd.f32 1e-05, %v8108_v62 }
0x4c7b   :  { %v8109_v8 = vadd.f32 1e-05, %v8107_v4  ;;  %v13990_v4 = vpack.c.bf16 %v8440_v60, %v8439_v59 }
0x4c7c   :  { %14369 = vrsqrt.f32 %v8110_v7  ;;  %v8257_v7 = vld [vmem:[#allocation2 + $0x868] sm:$0xff] }
0x4c7d   :  { %14371 = vrsqrt.f32 %v8109_v8  ;;  %v8258_v8 = vld [vmem:[#allocation2 + $0x870] sm:$0xff] }
0x4c86   :  { %v14370_v9 = vpop.eup %14369 }
0x4c87   :  { %v14372_v63 = vpop.eup %14371  ;;  %v8114_v10 = vmul.f32 %v14370_v9, %v8098_v53  ;;  %v8345_v9 = vld [vmem:[#allocation2 + $0x888] sm:$0xff] }
0x4c88   :  { %v8113_v2 = vmul.f32 %v14372_v63, %v8097_v54  ;;  %v15069_v63 = vpack.c.bf16 %v8258_v8, %v8257_v7 }
0x4c89   :  { %v8120_v6 = vmul.f32 %v11566_v0, %v8114_v10 }
0x4c8a   :  { %v8119_v5 = vmul.f32 %v11566_v0, %v8113_v2  ;;  %v8346_v0 = vld [vmem:[#allocation2 + $0x890] sm:$0xff]  ;;  %v14560_v2 = vmov 0.0|0.0  }
0x4c8b   :  { %v8126_v11 = vadd.f32 %v11567_v3, %v8120_v6  ;;  %v15071_v10 = vpack.c.bf16 %v8346_v0, %v8345_v9  ;;  %v8260_v6 = vld [vmem:[#allocation2 + $0x880] sm:$0xff] }
0x4c8c   :  { %v8125_v12 = vadd.f32 %v11567_v3, %v8119_v5  ;;  %v8259_v3 = vld [vmem:[#allocation2 + $0x878] sm:$0xff] }
0x4c8d   :  { %v8132_v13 = vsel %vm136_vm2, %v8126_v11, 0.0  ;;  %v8347_v5 = vld [vmem:[#allocation2 + $0x898] sm:$0xff] }
0x4c8e   :  { %8133 = vadd.xlane.f32.xlu1 %v8132_v13  ;;  %v8129_v14 = vsel %vm136_vm2, %v8125_v12, 0.0 }
0x4c8f   :  { %8130 = vadd.xlane.f32.xlu0 %v8129_v14  ;;  %v8433_v14 = vld [vmem:[#allocation2 + $0x8a8] sm:$0xff] }
0x4d1b   :  { %v8134_v15 = vpop.xlane.xlu1 %8133 }
0x4d1c   :  { %v8136_v16 = vmul.f32 0.03125, %v8134_v15  ;;  %v8131_v17 = vpop.xlane.xlu0 %8130  ;;  %v8434_v15 = vld [vmem:[#allocation2 + $0x8b0] sm:$0xff] }
0x4d1d   :  { %v8135_v18 = vmul.f32 0.03125, %v8131_v17  ;;  %v8522_v17 = vld [vmem:[#allocation2 + $0x8d0] sm:$0xff] }
0x4d1e   :  { %v8138_v19 = vsub.f32 %v8126_v11, %v8136_v16  ;;  %v8348_v11 = vld [vmem:[#allocation2 + $0x8a0] sm:$0xff]  ;;  %v8521_v16 = vld [vmem:[#allocation2 + $0x8c8] sm:$0xff] }
0x4d1f   :  { %v8137_v20 = vsub.f32 %v8125_v12, %v8135_v18  ;;  %v15079_v12 = vpack.c.bf16 %v8260_v6, %v8259_v3  ;;  %v15081_v13 = vpack.c.bf16 %v8348_v11, %v8347_v5  ;;  %v14562_v18 = vmov 0.0  }
0x4d20   :  { %v8140_v21 = vmul.f32 %v8138_v19, %v8138_v19 }
0x4d21   :  { %v8139_v22 = vmul.f32 %v8137_v20, %v8137_v20 }
0x4d22   :  { %v8144_v23 = vsel %vm136_vm2, %v8140_v21, 0.0  ;;  %v8435_v21 = vld [vmem:[#allocation2 + $0x8b8] sm:$0xff] }
0x4d23   :  { %8145 = vadd.xlane.f32.xlu1 %v8144_v23  ;;  %v8141_v24 = vsel %vm136_vm2, %v8139_v22, 0.0  ;;  %v8436_v22 = vld [vmem:[#allocation2 + $0x8c0] sm:$0xff]  ;;  %v8523_v23 = vld [vmem:[#allocation2 + $0x8d8] sm:$0xff] }
0x4d24   :  { %8142 = vadd.xlane.f32.xlu0 %v8141_v24  ;;  %v8524_v24 = vld [vmem:[#allocation2 + $0x8e0] sm:$0xff]  ;;  %v15101_v25 = vpack.c.bf16 %v8436_v22, %v8435_v21 }
0x4d25   :  { %v15103_v26 = vpack.c.bf16 %v8524_v24, %v8523_v23 }
0x4db0   :  { %v8146_v56 = vpop.xlane.xlu1 %8145 }
0x4db1   :  { %v8148_v33 = vmul.f32 0.03125, %v8146_v56  ;;  %v8143_v55 = vpop.xlane.xlu0 %8142 }
0x4db2   :  { %v8147_v50 = vmul.f32 0.03125, %v8143_v55 }
0x4db3   :  { %v8150_v41 = vadd.f32 1e-05, %v8148_v33 }
0x4db4   :  { %v8149_v42 = vadd.f32 1e-05, %v8147_v50 }
0x4db5   :  { %14373 = vrsqrt.f32 %v8150_v41 }
0x4db6   :  { %14375 = vrsqrt.f32 %v8149_v42 }
0x4dbf   :  { %v14374_v43 = vpop.eup %14373 }
0x4dc0   :  { %v14376_v45 = vpop.eup %14375  ;;  %v8154_v46 = vmul.f32 %v14374_v43, %v8138_v19  ;;  %v15091_v19 = vpack.c.bf16 %v8434_v15, %v8433_v14 }
0x4dc1   :  { %v8153_v47 = vmul.f32 %v14376_v45, %v8137_v20  ;;  %v15093_v20 = vpack.c.bf16 %v8522_v17, %v8521_v16 }
0x4dc2   :  { %v8160_v53 = vmul.f32 %v11568_v44, %v8154_v46 }
0x4dc3   :  { %v8159_v54 = vmul.f32 %v11568_v44, %v8153_v47 }
0x4dc4   :  { %v8166_v62 = vadd.f32 %v11569_v48, %v8160_v53 }
0x4dc5   :  { %v8165_v61 = vadd.f32 %v11569_v48, %v8159_v54 }
0x4dc7   :  { %13024 = vmatprep.mubr.msk.f32.mxu1 %vm136_vm2, %v8165_v61  ;;  %13035 = vmatprep.mubr.msk.f32.mxu0 %vm136_vm2, %v8165_v61 }
0x4dc8   :  { %13025 = vmatmul.mubr.msk.f32.vlgmr.msra.gmra.mrb[78].mxu1 %vm136_vm2, %v8166_v62  ;;  %13036 = vmatmul.mubr.msk.f32.vlgmr.msra.gmra.mrb[80].mxu0 %vm136_vm2, %v8166_v62 }
0x4dc9   :  { %13981 = vmatpush3.bf16.msra.mxu1 %v13978_v51  ;;  %13989 = vmatpush3.bf16.msra.mxu0 %v13986_v49 }
0x4dca   :  { %13046 = vmatprep.mubr.msk.f32.mxu1 %vm136_vm2, %v8165_v61  ;;  %13057 = vmatprep.mubr.msk.f32.mxu0 %vm136_vm2, %v8165_v61 }
0x4dcb   :  { %13983 = vmatprep.subr.bf16.mxu1 %v13982_v1  ;;  %13991 = vmatprep.subr.bf16.mxu0 %v13990_v4 }
0x4dcd   :  { %13985 = vmatpush3.bf16.msra.mxu1 %v13982_v1  ;;  %13993 = vmatpush3.bf16.msra.mxu0 %v13990_v4 }
0x4dce   :  { %13994 = vmatprep.subr.bf16.mxu1 %v14560_v2  ;;  %14000 = vmatprep.subr.bf16.mxu0 %v14560_v2 }
0x4dd0   :  { %13047 = vmatmul.mubr.msk.f32.vlgmr.msra.gmra.mrb[80].mxu1 %vm136_vm2, %v8166_v62  ;;  %13058 = vmatmul.mubr.msk.f32.vlgmr.msra.gmra.mrb[82].mxu0 %vm136_vm2, %v8166_v62 }
0x4dd1   :  { %13996 = vmatpush3.bf16.msra.mxu1 %v15069_v63  ;;  %14002 = vmatpush3.bf16.msra.mxu0 %v15071_v10 }
0x4dd2   :  { %13997 = vmatprep.subr.bf16.mxu1 %v14560_v2  ;;  %14003 = vmatprep.subr.bf16.mxu0 %v14560_v2 }
0x4dd3   :  { %13068 = vmatprep.mubr.msk.f32.mxu1 %vm14561_vm5, %v14562_v18  ;;  %13079 = vmatprep.mubr.msk.f32.mxu0 %vm14561_vm5, %v14562_v18 }
0x4dd5   :  { %13999 = vmatpush3.bf16.msra.mxu1 %v15079_v12  ;;  %14005 = vmatpush3.bf16.msra.mxu0 %v15081_v13 }
0x4dd6   :  { %14006 = vmatprep.subr.bf16.mxu1 %v14560_v2  ;;  %14012 = vmatprep.subr.bf16.mxu0 %v14560_v2 }
0x4dd8   :  { %13069 = vmatmul.mubr.f32.vlgmr.msra.gmra.mrb[82].mxu1 %v14562_v18  ;;  %13080 = vmatmul.mubr.f32.vlgmr.msra.gmra.mrb[84].mxu0 %v14562_v18 }
0x4dd9   :  { %14008 = vmatpush3.bf16.msra.mxu1 %v15091_v19  ;;  %14014 = vmatpush3.bf16.msra.mxu0 %v15093_v20 }
0x4dda   :  { %14009 = vmatprep.subr.bf16.mxu1 %v14560_v2  ;;  %14015 = vmatprep.subr.bf16.mxu0 %v14560_v2 }
0x4ddb   :  { %13090 = vmatprep.mubr.msk.f32.mxu1 %vm14561_vm5, %v14562_v18  ;;  %13101 = vmatprep.mubr.msk.f32.mxu0 %vm14561_vm5, %v14562_v18 }
0x4ddd   :  { %14011 = vmatpush3.bf16.msra.mxu1 %v15101_v25  ;;  %14017 = vmatpush3.bf16.msra.mxu0 %v15103_v26 }
0x4dde   :  { %14018 = vmatprep.subr.bf16.mxu1 %v14560_v2  ;;  %14024 = vmatprep.subr.bf16.mxu0 %v14560_v2 }
0x4de0   :  { %13091 = vmatmul.mubr.f32.vlgmr.msra.gmra.mrb[84].mxu1 %v14562_v18  ;;  %13102 = vmatmul.mubr.f32.vlgmr.msra.gmra.mrb[86].mxu0 %v14562_v18 }
0x4de1   :  { %14020 = vmatpush3.bf16.msra.mxu1 %v15069_v63  ;;  %14026 = vmatpush3.bf16.msra.mxu0 %v15071_v10 }
0x4de2   :  { %14021 = vmatprep.subr.bf16.mxu1 %v14560_v2  ;;  %14027 = vmatprep.subr.bf16.mxu0 %v14560_v2 }
0x4de3   :  { %13112 = vmatprep.mubr.msk.f32.mxu1 %vm14561_vm5, %v14562_v18  ;;  %13123 = vmatprep.mubr.msk.f32.mxu0 %vm14561_vm5, %v14562_v18 }
0x4de5   :  { %14023 = vmatpush3.bf16.msra.mxu1 %v15079_v12  ;;  %14029 = vmatpush3.bf16.msra.mxu0 %v15081_v13 }
0x4de6   :  { %14030 = vmatprep.subr.bf16.mxu1 %v14560_v2  ;;  %14036 = vmatprep.subr.bf16.mxu0 %v14560_v2 }
0x4e9b   :  { %v13026_v35 = vpop.f32.mrb[78].mxu1  ;;  %v13037_v36 = vpop.f32.mrb[80].mxu0 }
0x4e9c   :  { %v15129_v37 = vadd.f32 %v13026_v35, %v11570_v29  ;;  %v15131_v38 = vadd.f32 %v13037_v36, %v11573_v32  ;;  %v8248_v40 = vpop.f32.mrb[79].mxu1  ;;  %v8336_v28 = vpop.f32.mrb[81].mxu0 }
0x4e9d   :  { %v15137_v56 = vadd.f32 %v11570_v29, %v8248_v40  ;;  %v15139_v33 = vadd.f32 %v11573_v32, %v8336_v28 }
0x4ea3   :  { %v13048_v39 = vpop.f32.mrb[80].mxu1  ;;  %v13059_v31 = vpop.f32.mrb[82].mxu0 }
0x4ea4   :  { %v15133_v30 = vadd.f32 %v13048_v39, %v11576_v27  ;;  %v15135_v51 = vadd.f32 %v13059_v31, %v11579_v52  ;;  %v8424_v34 = vpop.f32.mrb[81].mxu1  ;;  %v8512_v49 = vpop.f32.mrb[83].mxu0 }
0x4ea5   :  { %v15143_v47 = vadd.f32 %v11579_v52, %v8512_v49  ;;  %v15146_v59 = vadd.f32 %v11576_v27, %v8424_v34 }
0x4eab   :  { %v8594_v55 = vpop.f32.mrb[82].mxu1  ;;  %v8671_v50 = vpop.f32.mrb[84].mxu0 }
0x4eac   :  { %v8598_v41 = vadd.f32 %v8594_v55, %v15137_v56  ;;  %v8675_v42 = vadd.f32 %v8671_v50, %v15139_v33  ;;  %v13070_v43 = vpop.f32.mrb[83].mxu1  ;;  %v13081_v44 = vpop.f32.mrb[85].mxu0 }
0x4eae   :  { %v11582_v45 = vmul.f32 -1.442695, %v8598_v41  ;;  %v11583_v46 = vmul.f32 -1.442695, %v8675_v42 }
0x4eb0   :  { %14377 = vpow2.f32 %v11582_v45 }
0x4eb1   :  { %14379 = vpow2.f32 %v11583_v46 }
0x4eb3   :  { %v8748_v48 = vpop.f32.mrb[84].mxu1  ;;  %v8820_v53 = vpop.f32.mrb[86].mxu0 }
0x4eb4   :  { %v8824_v54 = vadd.f32 %v8820_v53, %v15143_v47  ;;  %v13092_v57 = vpop.f32.mrb[85].mxu1  ;;  %v13103_v58 = vpop.f32.mrb[87].mxu0  ;;  %v8752_v61 = vadd.f32 %v8748_v48, %v15146_v59 }
0x4eb6   :  { %v11584_v60 = vmul.f32 -1.442695, %v8824_v54 }
0x4eb8   :  { %14381 = vpow2.f32 %v11584_v60 }
0x4eb9   :  { %14383 = vtanh.f32 %v8752_v61 }
0x4eba   :  { %v14378_v62 = vpop.eup %14377 }
0x4ebb   :  { %v14380_v1 = vpop.eup %14379  ;;  %v8602_v4 = vadd.f32 1.0, %v14378_v62 }
0x4ebc   :  { %v8679_v7 = vadd.f32 1.0, %v14380_v1 }
0x4ebd   :  { %14385 = vrcp.f32 %v8602_v4 }
0x4ebe   :  { %14387 = vrcp.f32 %v8679_v7 }
0x4ec2   :  { %v14382_v8 = vpop.eup %14381 }
0x4ec3   :  { %v14384_v9 = vpop.eup %14383  ;;  %v8828_v5 = vadd.f32 1.0, %v14382_v8 }
0x4ec5   :  { %14389 = vrcp.f32 %v8828_v5 }
0x4ec7   :  { %v14386_v0 = vpop.eup %14385 }
0x4ec8   :  { %v14388_v3 = vpop.eup %14387  ;;  %v8832_v6 = vmul.f32 %v14386_v0, %v14384_v9 }
0x4ec9   :  { %v8831_v11 = vmul.f32 0.0, %v14388_v3 }
0x4ecb   :  { %v15149_v14 = vadd.f32 %v8832_v6, %v8831_v11 }
0x4ecd   :  { %14391 = vtanh.f32 %v15149_v14  ;;  %v9155_v54 = vrot.slane %v15149_v14, 6 }
0x4ecf   :  { %v14390_v15 = vpop.eup %14389 }
0x4ed7   :  { %v14392_v16 = vpop.eup %14391 }
0x4ed8   :  { %v8835_v17 = vmul.f32 %v14392_v16, %v14390_v15 }
0x4eda   :  { %13113 = vmatmul.mubr.msk.f32.vlgmr.msra.gmra.mrb[86].mxu1 %vm136_vm2, %v8835_v17  ;;  %13124 = vmatmul.mubr.msk.f32.vlgmr.msra.gmra.mrb[88].mxu0 %vm136_vm2, %v8835_v17 }
0x4edb   :  { %14032 = vmatpush3.bf16.msra.mxu1 %v15091_v19  ;;  %14038 = vmatpush3.bf16.msra.mxu0 %v15093_v20 }
0x4edc   :  { %14033 = vmatprep.subr.bf16.mxu1 %v14560_v2  ;;  %14039 = vmatprep.subr.bf16.mxu0 %v14560_v2 }
0x4edd   :  { %13134 = vmatprep.mubr.msk.f32.mxu1 %vm14561_vm5, %v14562_v18  ;;  %13145 = vmatprep.mubr.msk.f32.mxu0 %vm14561_vm5, %v14562_v18 }
0x4edf   :  { %14035 = vmatpush3.bf16.msra.mxu1 %v15101_v25  ;;  %14041 = vmatpush3.bf16.msra.mxu0 %v15103_v26 }
0x4ee0   :  { %14042 = vmatprep.subr.bf16.mxu1 %v14560_v2  ;;  %14048 = vmatprep.subr.bf16.mxu0 %v14560_v2 }
0x4ee2   :  { %13135 = vmatmul.mubr.msk.f32.vlgmr.msra.gmra.mrb[88].mxu1 %vm136_vm2, %v8835_v17  ;;  %13146 = vmatmul.mubr.msk.f32.vlgmr.msra.gmra.mrb[90].mxu0 %vm136_vm2, %v8835_v17 }
0x4ee3   :  { %14044 = vmatpush3.bf16.msra.mxu1 %v15069_v63  ;;  %14050 = vmatpush3.bf16.msra.mxu0 %v15071_v10 }
0x4ee4   :  { %14045 = vmatprep.subr.bf16.mxu1 %v14560_v2  ;;  %14051 = vmatprep.subr.bf16.mxu0 %v14560_v2 }
0x4ee5   :  { %13156 = vmatprep.mubr.msk.f32.mxu1 %vm14561_vm5, %v14562_v18  ;;  %13167 = vmatprep.mubr.msk.f32.mxu0 %vm14561_vm5, %v14562_v18 }
0x4ee7   :  { %14047 = vmatpush3.bf16.msra.mxu1 %v15079_v12  ;;  %14053 = vmatpush3.bf16.msra.mxu0 %v15081_v13 }
0x4ee8   :  { %14054 = vmatprep.subr.bf16.mxu1 %v14560_v2  ;;  %14060 = vmatprep.subr.bf16.mxu0 %v14560_v2 }
0x4fad   :  { %v8905_v21 = vpop.f32.mrb[86].mxu1  ;;  %v8985_v22 = vpop.f32.mrb[88].mxu0 }
0x4fae   :  { %v8910_v23 = vrot.slane %v8905_v21, 6  ;;  %v8990_v24 = vrot.slane %v8985_v22, 6  ;;  %v13114_v29 = vpop.f32.mrb[87].mxu1  ;;  %v13125_v32 = vpop.f32.mrb[89].mxu0 }
0x4fb0   :  { %v8912_v35 = vadd.f32 %v8910_v23, %v15137_v56  ;;  %v8992_v36 = vadd.f32 %v8990_v24, %v15139_v33 }
0x4fb2   :  { %v11586_v40 = vmul.f32 -1.442695, %v8912_v35  ;;  %v11588_v28 = vmul.f32 -1.442695, %v8992_v36 }
0x4fb4   :  { %14393 = vpow2.f32 %v11586_v40 }
0x4fb5   :  { %14395 = vpow2.f32 %v11588_v28  ;;  %v9065_v27 = vpop.f32.mrb[88].mxu1  ;;  %v9140_v52 = vpop.f32.mrb[90].mxu0 }
0x4fb6   :  { %v9145_v39 = vrot.slane %v9140_v52, 6  ;;  %v13136_v31 = vpop.f32.mrb[89].mxu1  ;;  %v13147_v34 = vpop.f32.mrb[91].mxu0  ;;  %v9070_v49 = vrot.slane %v9065_v27, 6 }
0x4fb8   :  { %v9147_v55 = vadd.f32 %v9145_v39, %v15143_v47  ;;  %v9072_v41 = vadd.f32 %v9070_v49, %v15146_v59 }
0x4fba   :  { %v11591_v50 = vmul.f32 -1.442695, %v9147_v55 }
0x4fbc   :  { %14397 = vpow2.f32 %v11591_v50 }
0x4fbd   :  { %14399 = vtanh.f32 %v9072_v41 }
0x4fbe   :  { %v14394_v42 = vpop.eup %14393 }
0x4fbf   :  { %v14396_v43 = vpop.eup %14395  ;;  %v8916_v44 = vadd.f32 1.0, %v14394_v42 }
0x4fc0   :  { %v8996_v45 = vadd.f32 1.0, %v14396_v43 }
0x4fc1   :  { %14401 = vrcp.f32 %v8916_v44 }
0x4fc2   :  { %14403 = vrcp.f32 %v8996_v45 }
0x4fc6   :  { %v14398_v46 = vpop.eup %14397 }
0x4fc7   :  { %v14400_v48 = vpop.eup %14399  ;;  %v9151_v60 = vadd.f32 1.0, %v14398_v46 }
0x4fc9   :  { %14405 = vrcp.f32 %v9151_v60 }
0x4fcb   :  { %v14402_v53 = vpop.eup %14401 }
0x4fcc   :  { %v14404_v57 = vpop.eup %14403  ;;  %v9158_v58 = vmul.f32 %v14402_v53, %v14400_v48 }
0x4fcd   :  { %v9157_v61 = vmul.f32 %v14404_v57, %v9155_v54 }
0x4fcf   :  { %v15185_v62 = vadd.f32 %v9158_v58, %v9157_v61 }
0x4fd1   :  { %14407 = vtanh.f32 %v15185_v62  ;;  %v9482_v55 = vrot.slane %v15185_v62, 6 }
0x4fd3   :  { %v14406_v1 = vpop.eup %14405 }
0x4fdb   :  { %v14408_v4 = vpop.eup %14407 }
0x4fdc   :  { %v9161_v7 = vmul.f32 %v14408_v4, %v14406_v1 }
0x4fde   :  { %v9163_v8 = vrot.slane %v9161_v7, 2 }
0x4fe0   :  { %13157 = vmatmul.mubr.msk.f32.vlgmr.msra.gmra.mrb[90].mxu1 %vm136_vm2, %v9163_v8  ;;  %13168 = vmatmul.mubr.msk.f32.vlgmr.msra.gmra.mrb[92].mxu0 %vm136_vm2, %v9163_v8 }
0x4fe1   :  { %14056 = vmatpush3.bf16.msra.mxu1 %v15091_v19  ;;  %14062 = vmatpush3.bf16.msra.mxu0 %v15093_v20 }
0x4fe2   :  { %14057 = vmatprep.subr.bf16.mxu1 %v14560_v2  ;;  %14063 = vmatprep.subr.bf16.mxu0 %v14560_v2 }
0x4fe3   :  { %13178 = vmatprep.mubr.msk.f32.mxu1 %vm14561_vm5, %v14562_v18  ;;  %13189 = vmatprep.mubr.msk.f32.mxu0 %vm14561_vm5, %v14562_v18 }
0x4fe5   :  { %14059 = vmatpush3.bf16.msra.mxu1 %v15101_v25  ;;  %14065 = vmatpush3.bf16.msra.mxu0 %v15103_v26 }
0x4fe6   :  { %14066 = vmatprep.subr.bf16.mxu1 %v14560_v2  ;;  %14072 = vmatprep.subr.bf16.mxu0 %v14560_v2 }
0x4fe8   :  { %13179 = vmatmul.mubr.msk.f32.vlgmr.msra.gmra.mrb[92].mxu1 %vm136_vm2, %v9163_v8  ;;  %13190 = vmatmul.mubr.msk.f32.vlgmr.msra.gmra.mrb[94].mxu0 %vm136_vm2, %v9163_v8 }
0x4fe9   :  { %14068 = vmatpush3.bf16.msra.mxu1 %v15069_v63  ;;  %14074 = vmatpush3.bf16.msra.mxu0 %v15071_v10 }
0x4fea   :  { %14069 = vmatprep.subr.bf16.mxu1 %v14560_v2  ;;  %14075 = vmatprep.subr.bf16.mxu0 %v14560_v2 }
0x4feb   :  { %13200 = vmatprep.mubr.msk.f32.mxu1 %vm14561_vm5, %v14562_v18  ;;  %13211 = vmatprep.mubr.msk.f32.mxu0 %vm14561_vm5, %v14562_v18 }
0x4fed   :  { %14071 = vmatpush3.bf16.msra.mxu1 %v15079_v12  ;;  %14077 = vmatpush3.bf16.msra.mxu0 %v15081_v13 }
0x4fee   :  { %14078 = vmatprep.subr.bf16.mxu1 %v14560_v2  ;;  %14084 = vmatprep.subr.bf16.mxu0 %v14560_v2 }
0x50b3   :  { %v9232_v9 = vpop.f32.mrb[90].mxu1  ;;  %v9312_v0 = vpop.f32.mrb[92].mxu0 }
0x50b4   :  { %v9237_v3 = vrot.slane %v9232_v9, 4  ;;  %v9317_v6 = vrot.slane %v9312_v0, 4  ;;  %v13158_v5 = vpop.f32.mrb[91].mxu1  ;;  %v13169_v11 = vpop.f32.mrb[93].mxu0 }
0x50b6   :  { %v9239_v14 = vadd.f32 %v9237_v3, %v15137_v56  ;;  %v9319_v15 = vadd.f32 %v9317_v6, %v15139_v33 }
0x50b8   :  { %v11593_v16 = vmul.f32 -1.442695, %v9239_v14  ;;  %v11595_v17 = vmul.f32 -1.442695, %v9319_v15 }
0x50ba   :  { %14409 = vpow2.f32 %v11593_v16 }
0x50bb   :  { %14411 = vpow2.f32 %v11595_v17  ;;  %v9392_v21 = vpop.f32.mrb[92].mxu1  ;;  %v9467_v22 = vpop.f32.mrb[94].mxu0 }
0x50bc   :  { %v9472_v23 = vrot.slane %v9467_v22, 4  ;;  %v13180_v24 = vpop.f32.mrb[93].mxu1  ;;  %v13191_v29 = vpop.f32.mrb[95].mxu0  ;;  %v9397_v32 = vrot.slane %v9392_v21, 4 }
0x50be   :  { %v9474_v35 = vadd.f32 %v9472_v23, %v15143_v47  ;;  %v9399_v40 = vadd.f32 %v9397_v32, %v15146_v59 }
0x50c0   :  { %v11598_v36 = vmul.f32 -1.442695, %v9474_v35 }
0x50c2   :  { %14413 = vpow2.f32 %v11598_v36 }
0x50c3   :  { %14415 = vtanh.f32 %v9399_v40 }
0x50c4   :  { %v14410_v28 = vpop.eup %14409 }
0x50c5   :  { %v14412_v27 = vpop.eup %14411  ;;  %v9243_v52 = vadd.f32 1.0, %v14410_v28 }
0x50c6   :  { %v9323_v39 = vadd.f32 1.0, %v14412_v27 }
0x50c7   :  { %14417 = vrcp.f32 %v9243_v52 }
0x50c8   :  { %14419 = vrcp.f32 %v9323_v39 }
0x50cc   :  { %v14414_v31 = vpop.eup %14413 }
0x50cd   :  { %v14416_v34 = vpop.eup %14415  ;;  %v9478_v42 = vadd.f32 1.0, %v14414_v31 }
0x50cf   :  { %14421 = vrcp.f32 %v9478_v42 }
0x50d1   :  { %v14418_v49 = vpop.eup %14417 }
0x50d2   :  { %v14420_v50 = vpop.eup %14419  ;;  %v9485_v41 = vmul.f32 %v14418_v49, %v14416_v34 }
0x50d3   :  { %v9484_v43 = vmul.f32 %v14420_v50, %v9482_v55 }
0x50d5   :  { %v15221_v44 = vadd.f32 %v9485_v41, %v9484_v43 }
0x50d7   :  { %14423 = vtanh.f32 %v15221_v44  ;;  %v9809_v29 = vrot.slane %v15221_v44, 6 }
0x50d9   :  { %v14422_v45 = vpop.eup %14421 }
0x50e1   :  { %v14424_v46 = vpop.eup %14423 }
0x50e2   :  { %v9488_v48 = vmul.f32 %v14424_v46, %v14422_v45 }
0x50e4   :  { %v9490_v53 = vrot.slane %v9488_v48, 4 }
0x50e6   :  { %13201 = vmatmul.mubr.msk.f32.vlgmr.msra.gmra.mrb[94].mxu1 %vm136_vm2, %v9490_v53  ;;  %13212 = vmatmul.mubr.msk.f32.vlgmr.msra.gmra.mrb[96].mxu0 %vm136_vm2, %v9490_v53 }
0x50e7   :  { %14080 = vmatpush3.bf16.msra.mxu1 %v15091_v19  ;;  %14086 = vmatpush3.bf16.msra.mxu0 %v15093_v20 }
0x50e8   :  { %14081 = vmatprep.subr.bf16.mxu1 %v14560_v2  ;;  %14087 = vmatprep.subr.bf16.mxu0 %v14560_v2 }
0x50e9   :  { %13222 = vmatprep.mubr.msk.f32.mxu1 %vm14561_vm5, %v14562_v18  ;;  %13233 = vmatprep.mubr.msk.f32.mxu0 %vm14561_vm5, %v14562_v18 }
0x50eb   :  { %14083 = vmatpush3.bf16.msra.mxu1 %v15101_v25  ;;  %14089 = vmatpush3.bf16.msra.mxu0 %v15103_v26 }
0x50ec   :  { %14090 = vmatprep.subr.bf16.mxu1 %v14560_v2  ;;  %14096 = vmatprep.subr.bf16.mxu0 %v14560_v2 }
0x50ee   :  { %13223 = vmatmul.mubr.msk.f32.vlgmr.msra.gmra.mrb[96].mxu1 %vm136_vm2, %v9490_v53  ;;  %13234 = vmatmul.mubr.msk.f32.vlgmr.msra.gmra.mrb[98].mxu0 %vm136_vm2, %v9490_v53 }
0x50ef   :  { %14092 = vmatpush3.bf16.msra.mxu1 %v15069_v63  ;;  %14098 = vmatpush3.bf16.msra.mxu0 %v15071_v10 }
0x50f0   :  { %14093 = vmatprep.subr.bf16.mxu1 %v14560_v2  ;;  %14099 = vmatprep.subr.bf16.mxu0 %v14560_v2 }
0x50f1   :  { %13244 = vmatprep.mubr.msk.f32.mxu1 %vm14561_vm5, %v14562_v18  ;;  %13255 = vmatprep.mubr.msk.f32.mxu0 %vm14561_vm5, %v14562_v18 }
0x50f3   :  { %14095 = vmatpush3.bf16.msra.mxu1 %v15079_v12  ;;  %14101 = vmatpush3.bf16.msra.mxu0 %v15081_v13 }
0x50f4   :  { %14102 = vmatprep.subr.bf16.mxu1 %v14560_v2  ;;  %14108 = vmatprep.subr.bf16.mxu0 %v14560_v2 }
0x51b9   :  { %v9559_v54 = vpop.f32.mrb[94].mxu1  ;;  %v9639_v57 = vpop.f32.mrb[96].mxu0 }
0x51ba   :  { %v9564_v58 = vrot.slane %v9559_v54, 2  ;;  %v9644_v60 = vrot.slane %v9639_v57, 2  ;;  %v13202_v61 = vpop.f32.mrb[95].mxu1  ;;  %v13213_v62 = vpop.f32.mrb[97].mxu0 }
0x51bc   :  { %v9566_v1 = vadd.f32 %v9564_v58, %v15137_v56  ;;  %v9646_v4 = vadd.f32 %v9644_v60, %v15139_v33 }
0x51be   :  { %v11600_v7 = vmul.f32 -1.442695, %v9566_v1  ;;  %v11602_v8 = vmul.f32 -1.442695, %v9646_v4 }
0x51c0   :  { %14425 = vpow2.f32 %v11600_v7 }
0x51c1   :  { %14427 = vpow2.f32 %v11602_v8  ;;  %v9719_v9 = vpop.f32.mrb[96].mxu1  ;;  %v9794_v0 = vpop.f32.mrb[98].mxu0 }
0x51c2   :  { %v9799_v3 = vrot.slane %v9794_v0, 2  ;;  %v13224_v6 = vpop.f32.mrb[97].mxu1  ;;  %v13235_v5 = vpop.f32.mrb[99].mxu0  ;;  %v9724_v11 = vrot.slane %v9719_v9, 2 }
0x51c4   :  { %v9801_v14 = vadd.f32 %v9799_v3, %v15143_v47  ;;  %v9726_v16 = vadd.f32 %v9724_v11, %v15146_v59 }
0x51c6   :  { %v11605_v15 = vmul.f32 -1.442695, %v9801_v14 }
0x51c8   :  { %14429 = vpow2.f32 %v11605_v15 }
0x51c9   :  { %14431 = vtanh.f32 %v9726_v16 }
0x51ca   :  { %v14426_v17 = vpop.eup %14425 }
0x51cb   :  { %v14428_v21 = vpop.eup %14427  ;;  %v9570_v56 = vadd.f32 1.0, %v14426_v17 }
0x51cc   :  { %v9650_v33 = vadd.f32 1.0, %v14428_v21 }
0x51cd   :  { %14433 = vrcp.f32 %v9570_v56 }
0x51ce   :  { %14435 = vrcp.f32 %v9650_v33 }
0x51d2   :  { %v14430_v22 = vpop.eup %14429 }
0x51d3   :  { %v14432_v23 = vpop.eup %14431  ;;  %v9805_v36 = vadd.f32 1.0, %v14430_v22 }
0x51d5   :  { %14437 = vrcp.f32 %v9805_v36 }
0x51d7   :  { %v14434_v24 = vpop.eup %14433 }
0x51d8   :  { %v14436_v32 = vpop.eup %14435  ;;  %v9812_v35 = vmul.f32 %v14434_v24, %v14432_v23 }
0x51d9   :  { %v9811_v47 = vmul.f32 %v14436_v32, %v9809_v29 }
0x51db   :  { %v15257_v40 = vadd.f32 %v9812_v35, %v9811_v47 }
0x51dd   :  { %14439 = vtanh.f32 %v15257_v40  ;;  %v10124_v7 = vrot.slane %v15257_v40, 6 }
0x51df   :  { %v14438_v59 = vpop.eup %14437 }
0x51e7   :  { %v14440_v28 = vpop.eup %14439 }
0x51e8   :  { %v9815_v27 = vmul.f32 %v14440_v28, %v14438_v59 }
0x51ea   :  { %v9817_v52 = vrot.slane %v9815_v27, 6 }
0x51ec   :  { %13245 = vmatmul.mubr.msk.f32.vlgmr.msra.gmra.mrb[98].mxu1 %vm136_vm2, %v9817_v52  ;;  %13256 = vmatmul.mubr.msk.f32.vlgmr.msra.gmra.mrb[100].mxu0 %vm136_vm2, %v9817_v52 }
0x51ed   :  { %14104 = vmatpush3.bf16.msra.mxu1 %v15091_v19  ;;  %14110 = vmatpush3.bf16.msra.mxu0 %v15093_v20 }
0x51ee   :  { %14105 = vmatprep.subr.bf16.mxu1 %v14560_v2  ;;  %14111 = vmatprep.subr.bf16.mxu0 %v14560_v2 }
0x51ef   :  { %13266 = vmatprep.mubr.msk.f32.mxu1 %vm14561_vm5, %v14562_v18  ;;  %13277 = vmatprep.mubr.msk.f32.mxu0 %vm14561_vm5, %v14562_v18 }
0x51f1   :  { %14107 = vmatpush3.bf16.msra.mxu1 %v15101_v25  ;;  %14113 = vmatpush3.bf16.msra.mxu0 %v15103_v26 }
0x51f2   :  { %14114 = vmatprep.subr.bf16.mxu1 %v14560_v2  ;;  %14120 = vmatprep.subr.bf16.mxu0 %v14560_v2 }
0x51f4   :  { %13267 = vmatmul.mubr.msk.f32.vlgmr.msra.gmra.mrb[100].mxu1 %vm136_vm2, %v9817_v52  ;;  %13278 = vmatmul.mubr.msk.f32.vlgmr.msra.gmra.mrb[102].mxu0 %vm136_vm2, %v9817_v52 }
0x51f5   :  { %14116 = vmatpush3.bf16.msra.mxu1 %v15069_v63  ;;  %14122 = vmatpush3.bf16.msra.mxu0 %v15071_v10 }
0x51f6   :  { %14117 = vmatprep.subr.bf16.mxu1 %v14560_v2  ;;  %14123 = vmatprep.subr.bf16.mxu0 %v14560_v2 }
0x51f7   :  { %13288 = vmatprep.mubr.msk.f32.mxu1 %vm14561_vm5, %v14562_v18  ;;  %13299 = vmatprep.mubr.msk.f32.mxu0 %vm14561_vm5, %v14562_v18 }
0x51f9   :  { %14119 = vmatpush3.bf16.msra.mxu1 %v15079_v12  ;;  %14125 = vmatpush3.bf16.msra.mxu0 %v15081_v13 }
0x51fa   :  { %14126 = vmatprep.subr.bf16.mxu1 %v14560_v2  ;;  %14132 = vmatprep.subr.bf16.mxu0 %v14560_v2 }
0x52bf   :  { %v9886_v39 = vpop.f32.mrb[98].mxu1  ;;  %v9963_v31 = vpop.f32.mrb[100].mxu0 }
0x52c0   :  { %v9890_v34 = vadd.f32 %v9886_v39, %v15129_v37  ;;  %v9967_v49 = vadd.f32 %v9963_v31, %v15131_v38  ;;  %v13246_v55 = vpop.f32.mrb[99].mxu1  ;;  %v13257_v50 = vpop.f32.mrb[101].mxu0 }
0x52c2   :  { %v11607_v41 = vmul.f32 -1.442695, %v9890_v34  ;;  %v11609_v42 = vmul.f32 -1.442695, %v9967_v49 }
0x52c4   :  { %14441 = vpow2.f32 %v11607_v41 }
0x52c5   :  { %14443 = vpow2.f32 %v11609_v42 }
0x52c7   :  { %v10040_v43 = vpop.f32.mrb[100].mxu1  ;;  %v10112_v44 = vpop.f32.mrb[102].mxu0 }
0x52c8   :  { %v10116_v45 = vadd.f32 %v10112_v44, %v15135_v51  ;;  %v13268_v46 = vpop.f32.mrb[101].mxu1  ;;  %v13279_v48 = vpop.f32.mrb[103].mxu0  ;;  %v10044_v54 = vadd.f32 %v10040_v43, %v15133_v30 }
0x52ca   :  { %v11612_v53 = vmul.f32 -1.442695, %v10116_v45 }
0x52cc   :  { %14445 = vpow2.f32 %v11612_v53 }
0x52cd   :  { %14447 = vtanh.f32 %v10044_v54 }
0x52ce   :  { %v14442_v57 = vpop.eup %14441 }
0x52cf   :  { %v14444_v58 = vpop.eup %14443  ;;  %v9894_v60 = vadd.f32 1.0, %v14442_v57 }
0x52d0   :  { %v9971_v61 = vadd.f32 1.0, %v14444_v58 }
0x52d1   :  { %14449 = vrcp.f32 %v9894_v60 }
0x52d2   :  { %14451 = vrcp.f32 %v9971_v61 }
0x52d6   :  { %v14446_v62 = vpop.eup %14445 }
0x52d7   :  { %v14448_v1 = vpop.eup %14447  ;;  %v10120_v0 = vadd.f32 1.0, %v14446_v62 }
0x52d9   :  { %14453 = vrcp.f32 %v10120_v0 }
0x52db   :  { %v14450_v4 = vpop.eup %14449 }
0x52dc   :  { %v14452_v8 = vpop.eup %14451  ;;  %v10127_v9 = vmul.f32 %v14450_v4, %v14448_v1 }
0x52dd   :  { %v10126_v3 = vmul.f32 %v14452_v8, %v10124_v7 }
0x52df   :  { %v15293_v6 = vadd.f32 %v10127_v9, %v10126_v3 }
0x52e1   :  { %14455 = vtanh.f32 %v15293_v6  ;;  %v10450_v42 = vrot.slane %v15293_v6, 6 }
0x52e3   :  { %v14454_v5 = vpop.eup %14453 }
0x52eb   :  { %v14456_v11 = vpop.eup %14455 }
0x52ec   :  { %v10130_v14 = vmul.f32 %v14456_v11, %v14454_v5 }
0x52ee   :  { %13289 = vmatmul.mubr.msk.f32.vlgmr.msra.gmra.mrb[102].mxu1 %vm136_vm2, %v10130_v14  ;;  %13300 = vmatmul.mubr.msk.f32.vlgmr.msra.gmra.mrb[104].mxu0 %vm136_vm2, %v10130_v14 }
0x52ef   :  { %14128 = vmatpush3.bf16.msra.mxu1 %v15091_v19  ;;  %14134 = vmatpush3.bf16.msra.mxu0 %v15093_v20 }
0x52f0   :  { %14129 = vmatprep.subr.bf16.mxu1 %v14560_v2  ;;  %14135 = vmatprep.subr.bf16.mxu0 %v14560_v2 }
0x52f1   :  { %13310 = vmatprep.mubr.msk.f32.mxu1 %vm14561_vm5, %v14562_v18  ;;  %13321 = vmatprep.mubr.msk.f32.mxu0 %vm14561_vm5, %v14562_v18 }
0x52f3   :  { %14131 = vmatpush3.bf16.msra.mxu1 %v15101_v25  ;;  %14137 = vmatpush3.bf16.msra.mxu0 %v15103_v26 }
0x52f4   :  { %14138 = vmatprep.subr.bf16.mxu1 %v14560_v2  ;;  %14144 = vmatprep.subr.bf16.mxu0 %v14560_v2 }
0x52f6   :  { %13311 = vmatmul.mubr.msk.f32.vlgmr.msra.gmra.mrb[104].mxu1 %vm136_vm2, %v10130_v14  ;;  %13322 = vmatmul.mubr.msk.f32.vlgmr.msra.gmra.mrb[106].mxu0 %vm136_vm2, %v10130_v14 }
0x52f7   :  { %14140 = vmatpush3.bf16.msra.mxu1 %v15069_v63  ;;  %14146 = vmatpush3.bf16.msra.mxu0 %v15071_v10 }
0x52f8   :  { %14141 = vmatprep.subr.bf16.mxu1 %v14560_v2  ;;  %14147 = vmatprep.subr.bf16.mxu0 %v14560_v2 }
0x52f9   :  { %13332 = vmatprep.mubr.msk.f32.mxu1 %vm14561_vm5, %v14562_v18  ;;  %13343 = vmatprep.mubr.msk.f32.mxu0 %vm14561_vm5, %v14562_v18 }
0x52fb   :  { %14143 = vmatpush3.bf16.msra.mxu1 %v15079_v12  ;;  %14149 = vmatpush3.bf16.msra.mxu0 %v15081_v13 }
0x52fc   :  { %14150 = vmatprep.subr.bf16.mxu1 %v14560_v2  ;;  %14156 = vmatprep.subr.bf16.mxu0 %v14560_v2 }
0x53c1   :  { %v10200_v15 = vpop.f32.mrb[102].mxu1  ;;  %v10280_v16 = vpop.f32.mrb[104].mxu0 }
0x53c2   :  { %v10205_v17 = vrot.slane %v10200_v15, 6  ;;  %v10285_v21 = vrot.slane %v10280_v16, 6  ;;  %v13290_v56 = vpop.f32.mrb[103].mxu1  ;;  %v13301_v33 = vpop.f32.mrb[105].mxu0 }
0x53c4   :  { %v10207_v22 = vadd.f32 %v10205_v17, %v15129_v37  ;;  %v10287_v23 = vadd.f32 %v10285_v21, %v15131_v38 }
0x53c6   :  { %v11614_v24 = vmul.f32 -1.442695, %v10207_v22  ;;  %v11616_v29 = vmul.f32 -1.442695, %v10287_v23 }
0x53c8   :  { %14457 = vpow2.f32 %v11614_v24 }
0x53c9   :  { %14459 = vpow2.f32 %v11616_v29  ;;  %v10360_v32 = vpop.f32.mrb[104].mxu1  ;;  %v10435_v35 = vpop.f32.mrb[106].mxu0 }
0x53ca   :  { %v10440_v36 = vrot.slane %v10435_v35, 6  ;;  %v13312_v47 = vpop.f32.mrb[105].mxu1  ;;  %v13323_v40 = vpop.f32.mrb[107].mxu0  ;;  %v10365_v59 = vrot.slane %v10360_v32, 6 }
0x53cc   :  { %v10442_v28 = vadd.f32 %v10440_v36, %v15135_v51  ;;  %v10367_v52 = vadd.f32 %v10365_v59, %v15133_v30 }
0x53ce   :  { %v11619_v27 = vmul.f32 -1.442695, %v10442_v28 }
0x53d0   :  { %14461 = vpow2.f32 %v11619_v27 }
0x53d1   :  { %14463 = vtanh.f32 %v10367_v52  ;;  %v11113_v52 = vld [vmem:[#allocation2 + $0x8f8] sm:$0xff] }
0x53d2   :  { %v14458_v39 = vpop.eup %14457 }
0x53d3   :  { %v14460_v31 = vpop.eup %14459  ;;  %v10211_v34 = vadd.f32 1.0, %v14458_v39  ;;  %v11114_v39 = vld [vmem:[#allocation2 + $0x900] sm:$0xff] }
0x53d4   :  { %v10291_v49 = vadd.f32 1.0, %v14460_v31  ;;  %v11195_v31 = vld [vmem:[#allocation2 + $0x908] sm:$0xff] }
0x53d5   :  { %14465 = vrcp.f32 %v10211_v34  ;;  %v11196_v34 = vld [vmem:[#allocation2 + $0x910] sm:$0xff] }
0x53d6   :  { %14467 = vrcp.f32 %v10291_v49  ;;  %v14193_v49 = vpack.c.bf16 %v11196_v34, %v11195_v31 }
0x53da   :  { %v14462_v55 = vpop.eup %14461 }
0x53db   :  { %v14464_v50 = vpop.eup %14463  ;;  %v10446_v45 = vadd.f32 1.0, %v14462_v55 }
0x53dd   :  { %14469 = vrcp.f32 %v10446_v45 }
0x53df   :  { %v14466_v41 = vpop.eup %14465 }
0x53e0   :  { %v14468_v43 = vpop.eup %14467  ;;  %v10453_v44 = vmul.f32 %v14466_v41, %v14464_v50 }
0x53e1   :  { %v10452_v46 = vmul.f32 %v14468_v43, %v10450_v42 }
0x53e3   :  { %v15329_v48 = vadd.f32 %v10453_v44, %v10452_v46 }
0x53e5   :  { %14471 = vtanh.f32 %v15329_v48  ;;  %v10777_v24 = vrot.slane %v15329_v48, 6 }
0x53e7   :  { %v14470_v53 = vpop.eup %14469 }
0x53ef   :  { %v14472_v54 = vpop.eup %14471 }
0x53f0   :  { %v10456_v57 = vmul.f32 %v14472_v54, %v14470_v53 }
0x53f2   :  { %v10458_v58 = vrot.slane %v10456_v57, 2 }
0x53f4   :  { %13333 = vmatmul.mubr.msk.f32.vlgmr.msra.gmra.mrb[106].mxu1 %vm136_vm2, %v10458_v58  ;;  %13344 = vmatmul.mubr.msk.f32.vlgmr.msra.gmra.mrb[108].mxu0 %vm136_vm2, %v10458_v58 }
0x53f5   :  { %14152 = vmatpush3.bf16.msra.mxu1 %v15091_v19  ;;  %14158 = vmatpush3.bf16.msra.mxu0 %v15093_v20 }
0x53f6   :  { %14153 = vmatprep.subr.bf16.mxu1 %v14560_v2  ;;  %14159 = vmatprep.subr.bf16.mxu0 %v14560_v2 }
0x53f7   :  { %13354 = vmatprep.mubr.msk.f32.mxu1 %vm14561_vm5, %v14562_v18  ;;  %13365 = vmatprep.mubr.msk.f32.mxu0 %vm14561_vm5, %v14562_v18 }
0x53f9   :  { %14155 = vmatpush3.bf16.msra.mxu1 %v15101_v25  ;;  %14161 = vmatpush3.bf16.msra.mxu0 %v15103_v26 }
0x53fa   :  { %14162 = vmatprep.subr.bf16.mxu1 %v14560_v2  ;;  %14168 = vmatprep.subr.bf16.mxu0 %v14560_v2 }
0x53fc   :  { %13355 = vmatmul.mubr.msk.f32.vlgmr.msra.gmra.mrb[108].mxu1 %vm136_vm2, %v10458_v58  ;;  %13366 = vmatmul.mubr.msk.f32.vlgmr.msra.gmra.mrb[110].mxu0 %vm136_vm2, %v10458_v58 }
0x53fd   :  { %14164 = vmatpush3.bf16.msra.mxu1 %v15069_v63  ;;  %14170 = vmatpush3.bf16.msra.mxu0 %v15071_v10 }
0x53fe   :  { %14165 = vmatprep.subr.bf16.mxu1 %v14560_v2  ;;  %14171 = vmatprep.subr.bf16.mxu0 %v14560_v2 }
0x53ff   :  { %13376 = vmatprep.mubr.msk.f32.mxu1 %vm14561_vm5, %v14562_v18  ;;  %13387 = vmatprep.mubr.msk.f32.mxu0 %vm14561_vm5, %v14562_v18 }
0x5401   :  { %14167 = vmatpush3.bf16.msra.mxu1 %v15079_v12  ;;  %14173 = vmatpush3.bf16.msra.mxu0 %v15081_v13 }
0x5402   :  { %14174 = vmatprep.subr.bf16.mxu1 %v14560_v2  ;;  %14180 = vmatprep.subr.bf16.mxu0 %v14560_v2 }
0x54c7   :  { %v10527_v63 = vpop.f32.mrb[106].mxu1  ;;  %v10607_v10 = vpop.f32.mrb[108].mxu0 }
0x54c8   :  { %v10532_v60 = vrot.slane %v10527_v63, 4  ;;  %v10612_v61 = vrot.slane %v10607_v10, 4  ;;  %v13334_v62 = vpop.f32.mrb[107].mxu1  ;;  %v13345_v1 = vpop.f32.mrb[109].mxu0 }
0x54ca   :  { %v10534_v4 = vadd.f32 %v10532_v60, %v15129_v37  ;;  %v10614_v7 = vadd.f32 %v10612_v61, %v15131_v38 }
0x54cc   :  { %v11621_v8 = vmul.f32 -1.442695, %v10534_v4  ;;  %v11623_v9 = vmul.f32 -1.442695, %v10614_v7 }
0x54ce   :  { %14473 = vpow2.f32 %v11621_v8 }
0x54cf   :  { %14475 = vpow2.f32 %v11623_v9  ;;  %v10687_v12 = vpop.f32.mrb[108].mxu1  ;;  %v10762_v13 = vpop.f32.mrb[110].mxu0 }
0x54d0   :  { %v10767_v0 = vrot.slane %v10762_v13, 4  ;;  %v13356_v3 = vpop.f32.mrb[109].mxu1  ;;  %v13367_v6 = vpop.f32.mrb[111].mxu0  ;;  %v10692_v5 = vrot.slane %v10687_v12, 4 }
0x54d2   :  { %v10769_v11 = vadd.f32 %v10767_v0, %v15135_v51  ;;  %v10694_v15 = vadd.f32 %v10692_v5, %v15133_v30 }
0x54d4   :  { %v11626_v14 = vmul.f32 -1.442695, %v10769_v11 }
0x54d6   :  { %14477 = vpow2.f32 %v11626_v14  ;;  %v11197_v14 = vld [vmem:[#allocation2 + $0x918] sm:$0xff] }
0x54d7   :  { %14479 = vtanh.f32 %v10694_v15  ;;  %v11198_v15 = vld [vmem:[#allocation2 + $0x920] sm:$0xff] }
0x54d8   :  { %v14474_v16 = vpop.eup %14473 }
0x54d9   :  { %v14476_v17 = vpop.eup %14475  ;;  %v10538_v21 = vadd.f32 1.0, %v14474_v16  ;;  %v14196_v16 = vpack.c.bf16 %v11198_v15, %v11197_v14 }
0x54da   :  { %v10618_v56 = vadd.f32 1.0, %v14476_v17  ;;  %v11634_v17 = vld [vmem:[#allocation2 + $0x94f] ss:$0 sm:$0xff] }
0x54db   :  { %14481 = vrcp.f32 %v10538_v21 }
0x54dc   :  { %14483 = vrcp.f32 %v10618_v56 }
0x54e0   :  { %v14478_v33 = vpop.eup %14477 }
0x54e1   :  { %v14480_v22 = vpop.eup %14479  ;;  %v10773_v35 = vadd.f32 1.0, %v14478_v33 }
0x54e3   :  { %14485 = vrcp.f32 %v10773_v35 }
0x54e5   :  { %v14482_v23 = vpop.eup %14481 }
0x54e6   :  { %v14484_v29 = vpop.eup %14483  ;;  %v10780_v32 = vmul.f32 %v14482_v23, %v14480_v22  ;;  %v11636_v23 = vld [vmem:[#allocation2 + $0x950] ss:$0 sm:$0xff] }
0x54e7   :  { %v10779_v36 = vmul.f32 %v14484_v29, %v10777_v24 }
0x54e9   :  { %v15365_v47 = vadd.f32 %v10780_v32, %v10779_v36 }
0x54eb   :  { %14487 = vtanh.f32 %v15365_v47  ;;  %v11104_v9 = vrot.slane %v15365_v47, 6 }
0x54ed   :  { %v14486_v40 = vpop.eup %14485 }
0x54f5   :  { %v14488_v59 = vpop.eup %14487 }
0x54f6   :  { %v10783_v28 = vmul.f32 %v14488_v59, %v14486_v40 }
0x54f8   :  { %v10785_v27 = vrot.slane %v10783_v28, 4 }
0x54fa   :  { %13377 = vmatmul.mubr.msk.f32.vlgmr.msra.gmra.mrb[110].mxu1 %vm136_vm2, %v10785_v27  ;;  %13388 = vmatmul.mubr.msk.f32.vlgmr.msra.gmra.mrb[112].mxu0 %vm136_vm2, %v10785_v27 }
0x54fb   :  { %14176 = vmatpush3.bf16.msra.mxu1 %v15091_v19  ;;  %14182 = vmatpush3.bf16.msra.mxu0 %v15093_v20  ;;  %v11111_v19 = vld [vmem:[#allocation2 + $0x8e8] sm:$0xff]  ;;  %v11112_v20 = vld [vmem:[#allocation2 + $0x8f0] sm:$0xff] }
0x54fc   :  { %14177 = vmatprep.subr.bf16.mxu1 %v14560_v2  ;;  %14183 = vmatprep.subr.bf16.mxu0 %v14560_v2 }
0x54fd   :  { %13398 = vmatprep.mubr.msk.f32.mxu1 %vm14561_vm5, %v14562_v18  ;;  %13409 = vmatprep.mubr.msk.f32.mxu0 %vm14561_vm5, %v14562_v18 }
0x54ff   :  { %14179 = vmatpush3.bf16.msra.mxu1 %v15101_v25  ;;  %14185 = vmatpush3.bf16.msra.mxu0 %v15103_v26  ;;  %v14187_v25 = vpack.c.bf16 %v11112_v20, %v11111_v19  ;;  %v14190_v26 = vpack.c.bf16 %v11114_v39, %v11113_v52 }
0x5500   :  { %14186 = vmatprep.subr.bf16.mxu1 %v14560_v2  ;;  %14192 = vmatprep.subr.bf16.mxu0 %v14560_v2 }
0x5502   :  { %13399 = vmatmul.mubr.msk.f32.vlgmr.msra.gmra.mrb[112].mxu1 %vm136_vm2, %v10785_v27  ;;  %13410 = vmatmul.mubr.msk.f32.vlgmr.msra.gmra.mrb[114].mxu0 %vm136_vm2, %v10785_v27 }
0x5503   :  { %13420 = vmatprep.mubr.msk.f32.mxu1 %vm14561_vm5, %v14562_v18  ;;  %13431 = vmatprep.mubr.msk.f32.mxu0 %vm14561_vm5, %v14562_v18 }
0x5504   :  { %14188 = vmatpush3.bf16.msra.mxu1 %v14187_v25  ;;  %14194 = vmatpush3.bf16.msra.mxu0 %v14193_v49 }
0x5505   :  { %14189 = vmatprep.subr.bf16.mxu1 %v14560_v2  ;;  %14195 = vmatprep.subr.bf16.mxu0 %v14560_v2 }
0x5508   :  { %14191 = vmatpush3.bf16.msra.mxu1 %v14190_v26  ;;  %14197 = vmatpush3.bf16.msra.mxu0 %v14196_v16 }
0x55cd   :  { %v10854_v55 = vpop.f32.mrb[110].mxu1  ;;  %v10934_v50 = vpop.f32.mrb[112].mxu0 }
0x55ce   :  { %v10859_v41 = vrot.slane %v10854_v55, 2  ;;  %v10939_v18 = vrot.slane %v10934_v50, 2  ;;  %v13378_v42 = vpop.f32.mrb[111].mxu1  ;;  %v13389_v43 = vpop.f32.mrb[113].mxu0 }
0x55d0   :  { %v10861_v44 = vadd.f32 %v10859_v41, %v15129_v37  ;;  %v10941_v45 = vadd.f32 %v10939_v18, %v15131_v38 }
0x55d2   :  { %v11628_v46 = vmul.f32 -1.442695, %v10861_v44  ;;  %v11630_v48 = vmul.f32 -1.442695, %v10941_v45 }
0x55d4   :  { %14489 = vpow2.f32 %v11628_v46 }
0x55d5   :  { %14491 = vpow2.f32 %v11630_v48  ;;  %v11014_v53 = vpop.f32.mrb[112].mxu1  ;;  %v11089_v54 = vpop.f32.mrb[114].mxu0 }
0x55d6   :  { %v11094_v57 = vrot.slane %v11089_v54, 2  ;;  %v13400_v58 = vpop.f32.mrb[113].mxu1  ;;  %v13411_v63 = vpop.f32.mrb[115].mxu0  ;;  %v11019_v2 = vrot.slane %v11014_v53, 2 }
0x55d8   :  { %v11096_v10 = vadd.f32 %v11094_v57, %v15135_v51  ;;  %v11021_v61 = vadd.f32 %v11019_v2, %v15133_v30 }
0x55da   :  { %v11633_v60 = vmul.f32 -1.442695, %v11096_v10 }
0x55dc   :  { %14493 = vpow2.f32 %v11633_v60 }
0x55dd   :  { %14495 = vtanh.f32 %v11021_v61 }
0x55de   :  { %v14490_v62 = vpop.eup %14489 }
0x55df   :  { %v14492_v1 = vpop.eup %14491  ;;  %v10865_v37 = vadd.f32 1.0, %v14490_v62 }
0x55e0   :  { %v10945_v38 = vadd.f32 1.0, %v14492_v1 }
0x55e1   :  { %14497 = vrcp.f32 %v10865_v37 }
0x55e2   :  { %14499 = vrcp.f32 %v10945_v38 }
0x55e6   :  { %v14494_v4 = vpop.eup %14493 }
0x55e7   :  { %v14496_v7 = vpop.eup %14495  ;;  %v11100_v0 = vadd.f32 1.0, %v14494_v4 }
0x55e9   :  { %14501 = vrcp.f32 %v11100_v0 }
0x55eb   :  { %v14498_v8 = vpop.eup %14497 }
0x55ec   :  { %v14500_v12 = vpop.eup %14499  ;;  %v11107_v13 = vmul.f32 %v14498_v8, %v14496_v7 }
0x55ed   :  { %v11106_v51 = vmul.f32 %v14500_v12, %v11104_v9 }
0x55ef   :  { %v11108_v3 = vadd.f32 %v11107_v13, %v11106_v51 }
0x55f1   :  { %14503 = vtanh.f32 %v11108_v3 }
0x55f3   :  { %v14502_v30 = vpop.eup %14501 }
0x55fb   :  { %v14504_v6 = vpop.eup %14503 }
0x55fc   :  { %v11110_v5 = vmul.f32 %v14504_v6, %v14502_v30 }
0x55fe   :  { %v11121_v11 = vrot.slane %v11110_v5, 6 }
0x5600   :  { %13421 = vmatmul.mubr.msk.f32.vlgmr.msra.gmra.mrb[114].mxu1 %vm136_vm2, %v11121_v11 }
0x56d3   :  { %v11190_v21 = vpop.f32.mrb[114].mxu1 }
0x56d4   :  { %v11191_v56 = vadd.f32 %v11634_v17, %v11190_v21  ;;  %v13422_v33 = vpop.f32.mrb[115].mxu1 }
0x56d6   :  { %v11194_v22 = vmax.f32 %v11191_v56, 0.0 }
0x56d8   :  { %13432 = vmatmul.mubr.msk.f32.vlgmr.msra.gmra.mrb[116].mxu0 %vm136_vm2, %v11194_v22 }
0x57ab   :  { %v11273_v24 = vpop.f32.mrb[116].mxu0 }
0x57ac   :  { %v11274_v29 = vadd.f32 %v11636_v23, %v11273_v24  ;;  %v13433_v32 = vpop.f32.mrb[117].mxu0 }
0x57ae   :  { %11278 = vst.msk [vmem:[#allocation5] sm:$0x3] %vm11277_vm6, %v11274_v29 }
0x57af   :  { %14542 = shalt.err (!%p14539_p12)
}
0x57b0   :  { %s14543_s30 = scalar_lea.hbm %s15411_s2, 32 }
0x57b1   :  { %p14544_p13 = scmp.ne.s32.totalorder %s15411_s2, %s14543_s30  ;;  %p14547_p0 = scmp.lt.u32.totalorder %s14543_s30, %s15411_s2 }
0x57b3   :  { %p14549_p1 = pnand %p14547_p0, %p14544_p13 }
0x57b5   :  { %14552 = shalt.err (!%p14549_p1)
}
0x57b6   :  { %11288 = dma.vmem_to_hbm [thread:$0]  %s11286_s1, 32, %s15411_s2, [#allocation4]  }
0x57b7   :  { %14555 = dma.done.wait [#allocation4], 32  }
0x57b8   :  { %14556 = vsyncadd [#allocation4], 4294967264 }
0x57b9   :  { %11292 = vsyncpa [#allocation3], 1 }
0x57ba   :  { %11293 = vsyncpa [#allocation4], 1 }

</bundles_post_ra>
